<compile_context>
chip_gen: v5e
topology: v5e:2x2
jax: 0.10.0
libtpu: 0.0.40
codegen_flags: <defaults>
</compile_context>

<pallas_src>
import functools

import numpy as np
import jax
import jax.numpy as jnp
from jax.experimental import pallas as pl
from jax.experimental.pallas import tpu as pltpu

NEG_SLOPE = 0.01   # nn.LeakyReLU default negative_slope
SPEC = 12          # spectral bands: FC expects 64 * (SPEC - 6) * 9 == 3456
CLASSES = 16
LANE = 128         # TPU lane width; classes / layer-1 K are padded to this


def _leaky(v):
    return jnp.where(v >= 0.0, v, NEG_SLOPE * v)


def _round_up(x, m):
    return (x + m - 1) // m * m


# --------------------------------------------------------------------------- #
# Kernel
# --------------------------------------------------------------------------- #
def _cnn3d_kernel(x_ref, w1_ref, b1_ref, w2_ref, b2_ref, w3_ref, b3_ref,
                  wfc_ref, bfc_ref, out_ref, a1_ref, a2_ref, a3_ref, *, bt):
    """One batch block (bt samples) per grid step.

    x_ref  : (1, 12*bt, 128)  rows = (depth, batch), lanes 0..8 = 3x3 positions
    w*_ref : (3, 9*Cin[_pad], 9*Cout) folded conv weights, one slab per depth tap
    b*_ref : (1, 9*Cout)
    wfc_ref: (6, 576, 128)    FC weight per output depth, classes padded to 128
    out_ref: (bt, 128)
    a1/a2/a3_ref: VMEM activations, rows (depth, batch), cols (position, chan).
    """
    f32 = jnp.float32

    # ---- conv1: depth 12 -> 10, channels 1 -> 16 (per 3x3 position) -------
    a1_ref[...] = jnp.dot(x_ref[0, 0 * bt:10 * bt, :], w1_ref[0],
                          preferred_element_type=f32)
    a1_ref[...] += jnp.dot(x_ref[0, 1 * bt:11 * bt, :], w1_ref[1],
                           preferred_element_type=f32)
    a1_ref[...] += jnp.dot(x_ref[0, 2 * bt:12 * bt, :], w1_ref[2],
                           preferred_element_type=f32)
    a1_ref[...] = _leaky(a1_ref[...] + b1_ref[...])

    # ---- conv2: depth 10 -> 8, channels 16 -> 32 ---------------------------
    a2_ref[...] = jnp.dot(a1_ref[0 * bt:8 * bt, :], w2_ref[0],
                          preferred_element_type=f32)
    a2_ref[...] += jnp.dot(a1_ref[1 * bt:9 * bt, :], w2_ref[1],
                           preferred_element_type=f32)
    a2_ref[...] += jnp.dot(a1_ref[2 * bt:10 * bt, :], w2_ref[2],
                           preferred_element_type=f32)
    a2_ref[...] = _leaky(a2_ref[...] + b2_ref[...])

    # ---- conv3: depth 8 -> 6, channels 32 -> 64 ----------------------------
    a3_ref[...] = jnp.dot(a2_ref[0 * bt:6 * bt, :], w3_ref[0],
                          preferred_element_type=f32)
    a3_ref[...] += jnp.dot(a2_ref[1 * bt:7 * bt, :], w3_ref[1],
                           preferred_element_type=f32)
    a3_ref[...] += jnp.dot(a2_ref[2 * bt:8 * bt, :], w3_ref[2],
                           preferred_element_type=f32)
    a3_ref[...] = _leaky(a3_ref[...] + b3_ref[...])

    # ---- FC (Dropout is identity in eval mode) -----------------------------
    acc = jnp.dot(a3_ref[0:bt, :], wfc_ref[0], preferred_element_type=f32)
    for dd in range(1, 6):
        acc = acc + jnp.dot(a3_ref[dd * bt:(dd + 1) * bt, :], wfc_ref[dd],
                            preferred_element_type=f32)
    out_ref[...] = acc + bfc_ref[...]


# --------------------------------------------------------------------------- #
# Parameter re-layout (done once, outside the per-call path)
# --------------------------------------------------------------------------- #
def _spatial_fold_matrix():
    # S[p, q, kh, kw] = 1 iff input position p feeds output position q through
    # spatial tap (kh, kw) under padding=(1,1) on the 3x3 grid.
    S = np.zeros((9, 9, 3, 3), np.float32)
    for q in range(9):
        i, j = divmod(q, 3)
        for kh in range(3):
            for kw in range(3):
                pi, pj = i + kh - 1, j + kw - 1
                if 0 <= pi < 3 and 0 <= pj < 3:
                    S[pi * 3 + pj, q, kh, kw] = 1.0
    return jnp.asarray(S)


def _fold_conv_weight(w, S):
    # PyTorch Conv3d weight (Cout, Cin, kd, kh, kw) ->
    #   (3, 9*Cin, 9*Cout): [kd, p*Cin+cin, q*Cout+cout], spatial padding folded.
    c_out, c_in = int(w.shape[0]), int(w.shape[1])
    wb = jnp.einsum('pqhw,oidhw->dpiqo', S, w.astype(jnp.float32),
                    precision=jax.lax.Precision.HIGHEST)
    return wb.reshape(3, 9 * c_in, 9 * c_out)


def prepare_params(params):
    """Re-layout PyTorch-shaped parameters into the kernel format (call once)."""
    w1, b1, w2, b2, w3, b3, wfc, bfc = params
    classes = int(wfc.shape[0])
    assert classes <= LANE, "classes must fit one lane tile (<= 128)"
    S = _spatial_fold_matrix()

    w1b = _fold_conv_weight(w1, S)                              # (3, 9, 144)
    w1b = jnp.pad(w1b, ((0, 0), (0, LANE - 9), (0, 0)))         # (3, 128, 144)
    w2b = _fold_conv_weight(w2, S)                              # (3, 144, 288)
    w3b = _fold_conv_weight(w3, S)                              # (3, 288, 576)

    b1b = jnp.tile(b1.astype(jnp.float32), 9).reshape(1, 9 * 16)
    b2b = jnp.tile(b2.astype(jnp.float32), 9).reshape(1, 9 * 32)
    b3b = jnp.tile(b3.astype(jnp.float32), 9).reshape(1, 9 * 64)

    # FC weight (classes, 3456), PyTorch feature order (c, d, h, w) ->
    #   (6, 9*64, classes_pad): [dd, (h*3+w)*64 + c, cls]
    wfcb = jnp.transpose(wfc.astype(jnp.float32).reshape(classes, 64, 6, 3, 3),
                         (2, 3, 4, 1, 0)).reshape(6, 9 * 64, classes)
    wfcb = jnp.pad(wfcb, ((0, 0), (0, 0), (0, LANE - classes)))
    bfcb = jnp.pad(bfc.astype(jnp.float32), (0, LANE - classes)).reshape(1, LANE)
    return (w1b, b1b, w2b, b2b, w3b, b3b, wfcb, bfcb)


# --------------------------------------------------------------------------- #
# Forward wrapper
# --------------------------------------------------------------------------- #
@functools.partial(jax.jit, static_argnames=("classes", "b_tile"))
def cnn3d_forward(x, prepared, *, classes=CLASSES, b_tile=128):
    w1b, b1b, w2b, b2b, w3b, b3b, wfcb, bfcb = prepared
    B, C, H, W = x.shape
    assert C == SPEC, "spectral depth must be 12 so that 64*(C-6)*9 == 3456"
    assert H >= 3 and W >= 3, "need a 3x3 center patch"

    # center 3x3 patch extraction (glue, as in the PyTorch forward)
    pth = (H - 1) // 2
    ptw = (W - 1) // 2
    pt = x[:, :, pth - 1:pth + 2, ptw - 1:ptw + 2].astype(jnp.float32)  # (B,12,3,3)

    # batch blocking: rows ordered (depth, batch) within each block
    bt = min(b_tile, _round_up(B, 8))
    nb = pl.cdiv(B, bt)
    b_pad = nb * bt
    ptp = jnp.pad(pt, ((0, b_pad - B), (0, 0), (0, 0), (0, 0)))
    xk = ptp.reshape(nb, bt, SPEC, 9)
    xk = jnp.transpose(xk, (0, 2, 1, 3)).reshape(nb, SPEC * bt, 9)
    xk = jnp.pad(xk, ((0, 0), (0, 0), (0, LANE - 9)))           # (nb, 12*bt, 128)

    kernel = functools.partial(_cnn3d_kernel, bt=bt)
    out = pl.pallas_call(
        kernel,
        out_shape=jax.ShapeDtypeStruct((b_pad, LANE), jnp.float32),
        grid=(nb,),
        in_specs=[
            pl.BlockSpec((1, SPEC * bt, LANE), lambda n: (n, 0, 0)),
            pl.BlockSpec(w1b.shape, lambda n: (0, 0, 0)),
            pl.BlockSpec(b1b.shape, lambda n: (0, 0)),
            pl.BlockSpec(w2b.shape, lambda n: (0, 0, 0)),
            pl.BlockSpec(b2b.shape, lambda n: (0, 0)),
            pl.BlockSpec(w3b.shape, lambda n: (0, 0, 0)),
            pl.BlockSpec(b3b.shape, lambda n: (0, 0)),
            pl.BlockSpec(wfcb.shape, lambda n: (0, 0, 0)),
            pl.BlockSpec(bfcb.shape, lambda n: (0, 0)),
        ],
        out_specs=pl.BlockSpec((bt, LANE), lambda n: (n, 0)),
        scratch_shapes=[
            pltpu.VMEM((10 * bt, 9 * 16), jnp.float32),   # conv1 activations
            pltpu.VMEM((8 * bt, 9 * 32), jnp.float32),    # conv2 activations
            pltpu.VMEM((6 * bt, 9 * 64), jnp.float32),    # conv3 activations
        ],
        compiler_params=pltpu.CompilerParams(
            dimension_semantics=("parallel",),
            vmem_limit_bytes=32 * 1024 * 1024),
    )(xk, w1b, b1b, w2b, b2b, w3b, b3b, wfcb, bfcb)
    return out[:B, :classes]


# --------------------------------------------------------------------------- #
# Pure-JAX reference (replicates the PyTorch forward in eval mode)
# --------------------------------------------------------------------------- #
def cnn3d_reference(x, params):
    w1, b1, w2, b2, w3, b3, wfc, bfc = params
    B, C, H, W = x.shape
    pth = (H - 1) // 2
    ptw = (W - 1) // 2
    pt = x[:, :, pth - 1:pth + 2, ptw - 1:ptw + 2]
    z = pt[:, None]                                             # (B,1,12,3,3)
    dn = ("NCDHW", "OIDHW", "NCDHW")

    def conv(z, w, b):
        y = jax.lax.conv_general_dilated(
            z, w, window_strides=(1, 1, 1),
            padding=[(0, 0), (1, 1), (1, 1)], dimension_numbers=dn,
            precision=jax.lax.Precision.HIGHEST)
        return _leaky(y + b[None, :, None, None, None])

    z = conv(z, w1, b1)
    z = conv(z, w2, b2)
    z = conv(z, w3, b3)
    flat = z.reshape(B, -1)                                     # (B, 3456)
    return jnp.dot(flat, wfc.T, precision=jax.lax.Precision.HIGHEST) + bfc


if __name__ == "__main__":
    key = jax.random.PRNGKey(0)
    ks = jax.random.split(key, 10)
    params = (
        jax.random.normal(ks[0], (16, 1, 3, 3, 3), jnp.float32) * 0.05,
        jax.random.normal(ks[1], (16,), jnp.float32) * 0.05,
        jax.random.normal(ks[2], (32, 16, 3, 3, 3), jnp.float32) * 0.05,
        jax.random.normal(ks[3], (32,), jnp.float32) * 0.05,
        jax.random.normal(ks[4], (64, 32, 3, 3, 3), jnp.float32) * 0.05,
        jax.random.normal(ks[5], (64,), jnp.float32) * 0.05,
        jax.random.normal(ks[6], (CLASSES, 3456), jnp.float32) * 0.02,
        jax.random.normal(ks[7], (CLASSES,), jnp.float32) * 0.02,
    )
    x = jax.random.normal(ks[8], (2, SPEC, 16, 16), jnp.float32)

    prepared = jax.block_until_ready(prepare_params(params))    # hoisted re-layout
    out = jax.block_until_ready(cnn3d_forward(x, prepared))
    ref = jax.block_until_ready(cnn3d_reference(x, params))

    assert out.shape == (2, CLASSES)
    max_err = float(jnp.max(jnp.abs(out - ref)))
    assert max_err < 5e-3, f"kernel/reference mismatch, max abs err = {max_err}"
    print("KERNEL_OK")
</pallas_src>

<mosaic_0001>
module attributes {stable_mosaic.version = 11 : i64} {
  func.func @_cnn3d_kernel(%arg0: i32, %arg1: memref<1x96x128xf32, #tpu.memory_space<vmem>>, %arg2: memref<3x128x144xf32, #tpu.memory_space<vmem>>, %arg3: memref<1x144xf32, #tpu.memory_space<vmem>>, %arg4: memref<3x144x288xf32, #tpu.memory_space<vmem>>, %arg5: memref<1x288xf32, #tpu.memory_space<vmem>>, %arg6: memref<3x288x576xf32, #tpu.memory_space<vmem>>, %arg7: memref<1x576xf32, #tpu.memory_space<vmem>>, %arg8: memref<6x576x128xf32, #tpu.memory_space<vmem>>, %arg9: memref<1x128xf32, #tpu.memory_space<vmem>>, %arg10: memref<8x128xf32, #tpu.memory_space<vmem>>, %arg11: memref<80x144xf32, #tpu.memory_space<vmem>>, %arg12: memref<64x288xf32, #tpu.memory_space<vmem>>, %arg13: memref<48x576xf32, #tpu.memory_space<vmem>>) attributes {dimension_semantics = [#tpu.dimension_semantics<parallel>], iteration_bounds = array<i64: 1>, scalar_prefetch = 0 : i64, scratch_operands = 3 : i64, tpu.core_type = #tpu.core_type<tc>, window_params = [{transform_indices = @transform_0, window_bounds = array<i64: 1, 96, 128>}, {pipeline_mode = #tpu.pipeline_mode<synchronous>, transform_indices = @transform_1, window_bounds = array<i64: 3, 128, 144>}, {pipeline_mode = #tpu.pipeline_mode<synchronous>, transform_indices = @transform_2, window_bounds = array<i64: 1, 144>}, {pipeline_mode = #tpu.pipeline_mode<synchronous>, transform_indices = @transform_3, window_bounds = array<i64: 3, 144, 288>}, {pipeline_mode = #tpu.pipeline_mode<synchronous>, transform_indices = @transform_4, window_bounds = array<i64: 1, 288>}, {pipeline_mode = #tpu.pipeline_mode<synchronous>, transform_indices = @transform_5, window_bounds = array<i64: 3, 288, 576>}, {pipeline_mode = #tpu.pipeline_mode<synchronous>, transform_indices = @transform_6, window_bounds = array<i64: 1, 576>}, {pipeline_mode = #tpu.pipeline_mode<synchronous>, transform_indices = @transform_7, window_bounds = array<i64: 6, 576, 128>}, {pipeline_mode = #tpu.pipeline_mode<synchronous>, transform_indices = @transform_8, window_bounds = array<i64: 1, 128>}, {transform_indices = @transform_9, window_bounds = array<i64: 8, 128>}]} {
    %c0 = arith.constant 0 : index
    %c0_0 = arith.constant 0 : index
    %c0_1 = arith.constant 0 : index
    %0 = vector.load %arg1[%c0, %c0_0, %c0_1] : memref<1x96x128xf32, #tpu.memory_space<vmem>>, vector<1x80x128xf32>
    %1 = vector.shape_cast %0 : vector<1x80x128xf32> to vector<80x128xf32>
    %c0_2 = arith.constant 0 : index
    %c0_3 = arith.constant 0 : index
    %c0_4 = arith.constant 0 : index
    %2 = vector.load %arg2[%c0_2, %c0_3, %c0_4] : memref<3x128x144xf32, #tpu.memory_space<vmem>>, vector<1x128x144xf32>
    %3 = vector.shape_cast %2 : vector<1x128x144xf32> to vector<128x144xf32>
    %cst = arith.constant dense<0.000000e+00> : vector<80x144xf32>
    %4 = tpu.matmul %1, %3, %cst {dimension_numbers = #tpu.dot_dimension_numbers<[1], [0], [0], [1], [0, 0, 1, 1], [], []>} : vector<80x128xf32>, vector<128x144xf32>, vector<80x144xf32> -> vector<80x144xf32>
    %c0_5 = arith.constant 0 : index
    %c0_6 = arith.constant 0 : index
    %5 = vector.load %arg11[%c0_5, %c0_6] : memref<80x144xf32, #tpu.memory_space<vmem>>, vector<80x144xf32>
    tpu.vector_store %arg11[%c0_5, %c0_6], %4 {strides = array<i32>} : memref<80x144xf32, #tpu.memory_space<vmem>>, vector<80x144xf32>,
    %c0_7 = arith.constant 0 : index
    %c0_8 = arith.constant 0 : index
    %6 = vector.load %arg11[%c0_7, %c0_8] : memref<80x144xf32, #tpu.memory_space<vmem>>, vector<80x144xf32>
    %c0_9 = arith.constant 0 : index
    %c8 = arith.constant 8 : index
    %c0_10 = arith.constant 0 : index
    %7 = vector.load %arg1[%c0_9, %c8, %c0_10] : memref<1x96x128xf32, #tpu.memory_space<vmem>>, vector<1x80x128xf32>
    %8 = vector.shape_cast %7 : vector<1x80x128xf32> to vector<80x128xf32>
    %c1 = arith.constant 1 : index
    %c0_11 = arith.constant 0 : index
    %c0_12 = arith.constant 0 : index
    %9 = vector.load %arg2[%c1, %c0_11, %c0_12] : memref<3x128x144xf32, #tpu.memory_space<vmem>>, vector<1x128x144xf32>
    %10 = vector.shape_cast %9 : vector<1x128x144xf32> to vector<128x144xf32>
    %cst_13 = arith.constant dense<0.000000e+00> : vector<80x144xf32>
    %11 = tpu.matmul %8, %10, %cst_13 {dimension_numbers = #tpu.dot_dimension_numbers<[1], [0], [0], [1], [0, 0, 1, 1], [], []>} : vector<80x128xf32>, vector<128x144xf32>, vector<80x144xf32> -> vector<80x144xf32>
    %12 = arith.addf %6, %11 : vector<80x144xf32>
    %c0_14 = arith.constant 0 : index
    %c0_15 = arith.constant 0 : index
    %13 = vector.load %arg11[%c0_14, %c0_15] : memref<80x144xf32, #tpu.memory_space<vmem>>, vector<80x144xf32>
    tpu.vector_store %arg11[%c0_14, %c0_15], %12 {strides = array<i32>} : memref<80x144xf32, #tpu.memory_space<vmem>>, vector<80x144xf32>,
    %c0_16 = arith.constant 0 : index
    %c0_17 = arith.constant 0 : index
    %14 = vector.load %arg11[%c0_16, %c0_17] : memref<80x144xf32, #tpu.memory_space<vmem>>, vector<80x144xf32>
    %c0_18 = arith.constant 0 : index
    %c16 = arith.constant 16 : index
    %c0_19 = arith.constant 0 : index
    %15 = vector.load %arg1[%c0_18, %c16, %c0_19] : memref<1x96x128xf32, #tpu.memory_space<vmem>>, vector<1x80x128xf32>
    %16 = vector.shape_cast %15 : vector<1x80x128xf32> to vector<80x128xf32>
    %c2 = arith.constant 2 : index
    %c0_20 = arith.constant 0 : index
    %c0_21 = arith.constant 0 : index
    %17 = vector.load %arg2[%c2, %c0_20, %c0_21] : memref<3x128x144xf32, #tpu.memory_space<vmem>>, vector<1x128x144xf32>
    %18 = vector.shape_cast %17 : vector<1x128x144xf32> to vector<128x144xf32>
    %cst_22 = arith.constant dense<0.000000e+00> : vector<80x144xf32>
    %19 = tpu.matmul %16, %18, %cst_22 {dimension_numbers = #tpu.dot_dimension_numbers<[1], [0], [0], [1], [0, 0, 1, 1], [], []>} : vector<80x128xf32>, vector<128x144xf32>, vector<80x144xf32> -> vector<80x144xf32>
    %20 = arith.addf %14, %19 : vector<80x144xf32>
    %c0_23 = arith.constant 0 : index
    %c0_24 = arith.constant 0 : index
    %21 = vector.load %arg11[%c0_23, %c0_24] : memref<80x144xf32, #tpu.memory_space<vmem>>, vector<80x144xf32>
    tpu.vector_store %arg11[%c0_23, %c0_24], %20 {strides = array<i32>} : memref<80x144xf32, #tpu.memory_space<vmem>>, vector<80x144xf32>,
    %c0_25 = arith.constant 0 : index
    %c0_26 = arith.constant 0 : index
    %22 = vector.load %arg11[%c0_25, %c0_26] : memref<80x144xf32, #tpu.memory_space<vmem>>, vector<80x144xf32>
    %c0_27 = arith.constant 0 : index
    %c0_28 = arith.constant 0 : index
    %23 = vector.load %arg3[%c0_27, %c0_28] : memref<1x144xf32, #tpu.memory_space<vmem>>, vector<1x144xf32>
    %24 = vector.broadcast %23 : vector<1x144xf32> to vector<80x144xf32>
    %25 = arith.addf %22, %24 : vector<80x144xf32>
    %cst_29 = arith.constant 0.000000e+00 : f32
    %26 = vector.broadcast %cst_29 : f32 to vector<80x144xf32>
    %27 = arith.cmpf oge, %25, %26 : vector<80x144xf32>
    %cst_30 = arith.constant 0.00999999977 : f32
    %28 = vector.broadcast %cst_30 : f32 to vector<80x144xf32>
    %29 = arith.mulf %28, %25 : vector<80x144xf32>
    %30 = arith.select %27, %25, %29 : vector<80x144xi1>, vector<80x144xf32>
    %c0_31 = arith.constant 0 : index
    %c0_32 = arith.constant 0 : index
    %31 = vector.load %arg11[%c0_31, %c0_32] : memref<80x144xf32, #tpu.memory_space<vmem>>, vector<80x144xf32>
    tpu.vector_store %arg11[%c0_31, %c0_32], %30 {strides = array<i32>} : memref<80x144xf32, #tpu.memory_space<vmem>>, vector<80x144xf32>,
    %c0_33 = arith.constant 0 : index
    %c0_34 = arith.constant 0 : index
    %32 = vector.load %arg11[%c0_33, %c0_34] : memref<80x144xf32, #tpu.memory_space<vmem>>, vector<64x144xf32>
    %c0_35 = arith.constant 0 : index
    %c0_36 = arith.constant 0 : index
    %c0_37 = arith.constant 0 : index
    %33 = vector.load %arg4[%c0_35, %c0_36, %c0_37] : memref<3x144x288xf32, #tpu.memory_space<vmem>>, vector<1x144x288xf32>
    %34 = vector.shape_cast %33 : vector<1x144x288xf32> to vector<144x288xf32>
    %cst_38 = arith.constant dense<0.000000e+00> : vector<64x288xf32>
    %35 = tpu.matmul %32, %34, %cst_38 {dimension_numbers = #tpu.dot_dimension_numbers<[1], [0], [0], [1], [0, 0, 1, 1], [], []>} : vector<64x144xf32>, vector<144x288xf32>, vector<64x288xf32> -> vector<64x288xf32>
    %c0_39 = arith.constant 0 : index
    %c0_40 = arith.constant 0 : index
    %36 = vector.load %arg12[%c0_39, %c0_40] : memref<64x288xf32, #tpu.memory_space<vmem>>, vector<64x288xf32>
    tpu.vector_store %arg12[%c0_39, %c0_40], %35 {strides = array<i32>} : memref<64x288xf32, #tpu.memory_space<vmem>>, vector<64x288xf32>,
    %c0_41 = arith.constant 0 : index
    %c0_42 = arith.constant 0 : index
    %37 = vector.load %arg12[%c0_41, %c0_42] : memref<64x288xf32, #tpu.memory_space<vmem>>, vector<64x288xf32>
    %c8_43 = arith.constant 8 : index
    %c0_44 = arith.constant 0 : index
    %38 = vector.load %arg11[%c8_43, %c0_44] : memref<80x144xf32, #tpu.memory_space<vmem>>, vector<64x144xf32>
    %c1_45 = arith.constant 1 : index
    %c0_46 = arith.constant 0 : index
    %c0_47 = arith.constant 0 : index
    %39 = vector.load %arg4[%c1_45, %c0_46, %c0_47] : memref<3x144x288xf32, #tpu.memory_space<vmem>>, vector<1x144x288xf32>
    %40 = vector.shape_cast %39 : vector<1x144x288xf32> to vector<144x288xf32>
    %cst_48 = arith.constant dense<0.000000e+00> : vector<64x288xf32>
    %41 = tpu.matmul %38, %40, %cst_48 {dimension_numbers = #tpu.dot_dimension_numbers<[1], [0], [0], [1], [0, 0, 1, 1], [], []>} : vector<64x144xf32>, vector<144x288xf32>, vector<64x288xf32> -> vector<64x288xf32>
    %42 = arith.addf %37, %41 : vector<64x288xf32>
    %c0_49 = arith.constant 0 : index
    %c0_50 = arith.constant 0 : index
    %43 = vector.load %arg12[%c0_49, %c0_50] : memref<64x288xf32, #tpu.memory_space<vmem>>, vector<64x288xf32>
    tpu.vector_store %arg12[%c0_49, %c0_50], %42 {strides = array<i32>} : memref<64x288xf32, #tpu.memory_space<vmem>>, vector<64x288xf32>,
    %c0_51 = arith.constant 0 : index
    %c0_52 = arith.constant 0 : index
    %44 = vector.load %arg12[%c0_51, %c0_52] : memref<64x288xf32, #tpu.memory_space<vmem>>, vector<64x288xf32>
    %c16_53 = arith.constant 16 : index
    %c0_54 = arith.constant 0 : index
    %45 = vector.load %arg11[%c16_53, %c0_54] : memref<80x144xf32, #tpu.memory_space<vmem>>, vector<64x144xf32>
    %c2_55 = arith.constant 2 : index
    %c0_56 = arith.constant 0 : index
    %c0_57 = arith.constant 0 : index
    %46 = vector.load %arg4[%c2_55, %c0_56, %c0_57] : memref<3x144x288xf32, #tpu.memory_space<vmem>>, vector<1x144x288xf32>
    %47 = vector.shape_cast %46 : vector<1x144x288xf32> to vector<144x288xf32>
    %cst_58 = arith.constant dense<0.000000e+00> : vector<64x288xf32>
    %48 = tpu.matmul %45, %47, %cst_58 {dimension_numbers = #tpu.dot_dimension_numbers<[1], [0], [0], [1], [0, 0, 1, 1], [], []>} : vector<64x144xf32>, vector<144x288xf32>, vector<64x288xf32> -> vector<64x288xf32>
    %49 = arith.addf %44, %48 : vector<64x288xf32>
    %c0_59 = arith.constant 0 : index
    %c0_60 = arith.constant 0 : index
    %50 = vector.load %arg12[%c0_59, %c0_60] : memref<64x288xf32, #tpu.memory_space<vmem>>, vector<64x288xf32>
    tpu.vector_store %arg12[%c0_59, %c0_60], %49 {strides = array<i32>} : memref<64x288xf32, #tpu.memory_space<vmem>>, vector<64x288xf32>,
    %c0_61 = arith.constant 0 : index
    %c0_62 = arith.constant 0 : index
    %51 = vector.load %arg12[%c0_61, %c0_62] : memref<64x288xf32, #tpu.memory_space<vmem>>, vector<64x288xf32>
    %c0_63 = arith.constant 0 : index
    %c0_64 = arith.constant 0 : index
    %52 = vector.load %arg5[%c0_63, %c0_64] : memref<1x288xf32, #tpu.memory_space<vmem>>, vector<1x288xf32>
    %53 = vector.broadcast %52 : vector<1x288xf32> to vector<64x288xf32>
    %54 = arith.addf %51, %53 : vector<64x288xf32>
    %cst_65 = arith.constant 0.000000e+00 : f32
    %55 = vector.broadcast %cst_65 : f32 to vector<64x288xf32>
    %56 = arith.cmpf oge, %54, %55 : vector<64x288xf32>
    %cst_66 = arith.constant 0.00999999977 : f32
    %57 = vector.broadcast %cst_66 : f32 to vector<64x288xf32>
    %58 = arith.mulf %57, %54 : vector<64x288xf32>
    %59 = arith.select %56, %54, %58 : vector<64x288xi1>, vector<64x288xf32>
    %c0_67 = arith.constant 0 : index
    %c0_68 = arith.constant 0 : index
    %60 = vector.load %arg12[%c0_67, %c0_68] : memref<64x288xf32, #tpu.memory_space<vmem>>, vector<64x288xf32>
    tpu.vector_store %arg12[%c0_67, %c0_68], %59 {strides = array<i32>} : memref<64x288xf32, #tpu.memory_space<vmem>>, vector<64x288xf32>,
    %c0_69 = arith.constant 0 : index
    %c0_70 = arith.constant 0 : index
    %61 = vector.load %arg12[%c0_69, %c0_70] : memref<64x288xf32, #tpu.memory_space<vmem>>, vector<48x288xf32>
    %c0_71 = arith.constant 0 : index
    %c0_72 = arith.constant 0 : index
    %c0_73 = arith.constant 0 : index
    %62 = vector.load %arg6[%c0_71, %c0_72, %c0_73] : memref<3x288x576xf32, #tpu.memory_space<vmem>>, vector<1x288x576xf32>
    %63 = vector.shape_cast %62 : vector<1x288x576xf32> to vector<288x576xf32>
    %cst_74 = arith.constant dense<0.000000e+00> : vector<48x576xf32>
    %64 = tpu.matmul %61, %63, %cst_74 {dimension_numbers = #tpu.dot_dimension_numbers<[1], [0], [0], [1], [0, 0, 1, 1], [], []>} : vector<48x288xf32>, vector<288x576xf32>, vector<48x576xf32> -> vector<48x576xf32>
    %c0_75 = arith.constant 0 : index
    %c0_76 = arith.constant 0 : index
    %65 = vector.load %arg13[%c0_75, %c0_76] : memref<48x576xf32, #tpu.memory_space<vmem>>, vector<48x576xf32>
    tpu.vector_store %arg13[%c0_75, %c0_76], %64 {strides = array<i32>} : memref<48x576xf32, #tpu.memory_space<vmem>>, vector<48x576xf32>,
    %c0_77 = arith.constant 0 : index
    %c0_78 = arith.constant 0 : index
    %66 = vector.load %arg13[%c0_77, %c0_78] : memref<48x576xf32, #tpu.memory_space<vmem>>, vector<48x576xf32>
    %c8_79 = arith.constant 8 : index
    %c0_80 = arith.constant 0 : index
    %67 = vector.load %arg12[%c8_79, %c0_80] : memref<64x288xf32, #tpu.memory_space<vmem>>, vector<48x288xf32>
    %c1_81 = arith.constant 1 : index
    %c0_82 = arith.constant 0 : index
    %c0_83 = arith.constant 0 : index
    %68 = vector.load %arg6[%c1_81, %c0_82, %c0_83] : memref<3x288x576xf32, #tpu.memory_space<vmem>>, vector<1x288x576xf32>
    %69 = vector.shape_cast %68 : vector<1x288x576xf32> to vector<288x576xf32>
    %cst_84 = arith.constant dense<0.000000e+00> : vector<48x576xf32>
    %70 = tpu.matmul %67, %69, %cst_84 {dimension_numbers = #tpu.dot_dimension_numbers<[1], [0], [0], [1], [0, 0, 1, 1], [], []>} : vector<48x288xf32>, vector<288x576xf32>, vector<48x576xf32> -> vector<48x576xf32>
    %71 = arith.addf %66, %70 : vector<48x576xf32>
    %c0_85 = arith.constant 0 : index
    %c0_86 = arith.constant 0 : index
    %72 = vector.load %arg13[%c0_85, %c0_86] : memref<48x576xf32, #tpu.memory_space<vmem>>, vector<48x576xf32>
    tpu.vector_store %arg13[%c0_85, %c0_86], %71 {strides = array<i32>} : memref<48x576xf32, #tpu.memory_space<vmem>>, vector<48x576xf32>,
    %c0_87 = arith.constant 0 : index
    %c0_88 = arith.constant 0 : index
    %73 = vector.load %arg13[%c0_87, %c0_88] : memref<48x576xf32, #tpu.memory_space<vmem>>, vector<48x576xf32>
    %c16_89 = arith.constant 16 : index
    %c0_90 = arith.constant 0 : index
    %74 = vector.load %arg12[%c16_89, %c0_90] : memref<64x288xf32, #tpu.memory_space<vmem>>, vector<48x288xf32>
    %c2_91 = arith.constant 2 : index
    %c0_92 = arith.constant 0 : index
    %c0_93 = arith.constant 0 : index
    %75 = vector.load %arg6[%c2_91, %c0_92, %c0_93] : memref<3x288x576xf32, #tpu.memory_space<vmem>>, vector<1x288x576xf32>
    %76 = vector.shape_cast %75 : vector<1x288x576xf32> to vector<288x576xf32>
    %cst_94 = arith.constant dense<0.000000e+00> : vector<48x576xf32>
    %77 = tpu.matmul %74, %76, %cst_94 {dimension_numbers = #tpu.dot_dimension_numbers<[1], [0], [0], [1], [0, 0, 1, 1], [], []>} : vector<48x288xf32>, vector<288x576xf32>, vector<48x576xf32> -> vector<48x576xf32>
    %78 = arith.addf %73, %77 : vector<48x576xf32>
    %c0_95 = arith.constant 0 : index
    %c0_96 = arith.constant 0 : index
    %79 = vector.load %arg13[%c0_95, %c0_96] : memref<48x576xf32, #tpu.memory_space<vmem>>, vector<48x576xf32>
    tpu.vector_store %arg13[%c0_95, %c0_96], %78 {strides = array<i32>} : memref<48x576xf32, #tpu.memory_space<vmem>>, vector<48x576xf32>,
    %c0_97 = arith.constant 0 : index
    %c0_98 = arith.constant 0 : index
    %80 = vector.load %arg13[%c0_97, %c0_98] : memref<48x576xf32, #tpu.memory_space<vmem>>, vector<48x576xf32>
    %c0_99 = arith.constant 0 : index
    %c0_100 = arith.constant 0 : index
    %81 = vector.load %arg7[%c0_99, %c0_100] : memref<1x576xf32, #tpu.memory_space<vmem>>, vector<1x576xf32>
    %82 = vector.broadcast %81 : vector<1x576xf32> to vector<48x576xf32>
    %83 = arith.addf %80, %82 : vector<48x576xf32>
    %cst_101 = arith.constant 0.000000e+00 : f32
    %84 = vector.broadcast %cst_101 : f32 to vector<48x576xf32>
    %85 = arith.cmpf oge, %83, %84 : vector<48x576xf32>
    %cst_102 = arith.constant 0.00999999977 : f32
    %86 = vector.broadcast %cst_102 : f32 to vector<48x576xf32>
    %87 = arith.mulf %86, %83 : vector<48x576xf32>
    %88 = arith.select %85, %83, %87 : vector<48x576xi1>, vector<48x576xf32>
    %c0_103 = arith.constant 0 : index
    %c0_104 = arith.constant 0 : index
    %89 = vector.load %arg13[%c0_103, %c0_104] : memref<48x576xf32, #tpu.memory_space<vmem>>, vector<48x576xf32>
    tpu.vector_store %arg13[%c0_103, %c0_104], %88 {strides = array<i32>} : memref<48x576xf32, #tpu.memory_space<vmem>>, vector<48x576xf32>,
    %c0_105 = arith.constant 0 : index
    %c0_106 = arith.constant 0 : index
    %90 = vector.load %arg13[%c0_105, %c0_106] : memref<48x576xf32, #tpu.memory_space<vmem>>, vector<8x576xf32>
    %c0_107 = arith.constant 0 : index
    %c0_108 = arith.constant 0 : index
    %c0_109 = arith.constant 0 : index
    %91 = vector.load %arg8[%c0_107, %c0_108, %c0_109] : memref<6x576x128xf32, #tpu.memory_space<vmem>>, vector<1x576x128xf32>
    %92 = vector.shape_cast %91 : vector<1x576x128xf32> to vector<576x128xf32>
    %cst_110 = arith.constant dense<0.000000e+00> : vector<8x128xf32>
    %93 = tpu.matmul %90, %92, %cst_110 {dimension_numbers = #tpu.dot_dimension_numbers<[1], [0], [0], [1], [0, 0, 1, 1], [], []>} : vector<8x576xf32>, vector<576x128xf32>, vector<8x128xf32> -> vector<8x128xf32>
    %c8_111 = arith.constant 8 : index
    %c0_112 = arith.constant 0 : index
    %94 = vector.load %arg13[%c8_111, %c0_112] : memref<48x576xf32, #tpu.memory_space<vmem>>, vector<8x576xf32>
    %c1_113 = arith.constant 1 : index
    %c0_114 = arith.constant 0 : index
    %c0_115 = arith.constant 0 : index
    %95 = vector.load %arg8[%c1_113, %c0_114, %c0_115] : memref<6x576x128xf32, #tpu.memory_space<vmem>>, vector<1x576x128xf32>
    %96 = vector.shape_cast %95 : vector<1x576x128xf32> to vector<576x128xf32>
    %cst_116 = arith.constant dense<0.000000e+00> : vector<8x128xf32>
    %97 = tpu.matmul %94, %96, %cst_116 {dimension_numbers = #tpu.dot_dimension_numbers<[1], [0], [0], [1], [0, 0, 1, 1], [], []>} : vector<8x576xf32>, vector<576x128xf32>, vector<8x128xf32> -> vector<8x128xf32>
    %98 = arith.addf %93, %97 : vector<8x128xf32>
    %c16_117 = arith.constant 16 : index
    %c0_118 = arith.constant 0 : index
    %99 = vector.load %arg13[%c16_117, %c0_118] : memref<48x576xf32, #tpu.memory_space<vmem>>, vector<8x576xf32>
    %c2_119 = arith.constant 2 : index
    %c0_120 = arith.constant 0 : index
    %c0_121 = arith.constant 0 : index
    %100 = vector.load %arg8[%c2_119, %c0_120, %c0_121] : memref<6x576x128xf32, #tpu.memory_space<vmem>>, vector<1x576x128xf32>
    %101 = vector.shape_cast %100 : vector<1x576x128xf32> to vector<576x128xf32>
    %cst_122 = arith.constant dense<0.000000e+00> : vector<8x128xf32>
    %102 = tpu.matmul %99, %101, %cst_122 {dimension_numbers = #tpu.dot_dimension_numbers<[1], [0], [0], [1], [0, 0, 1, 1], [], []>} : vector<8x576xf32>, vector<576x128xf32>, vector<8x128xf32> -> vector<8x128xf32>
    %103 = arith.addf %98, %102 : vector<8x128xf32>
    %c24 = arith.constant 24 : index
    %c0_123 = arith.constant 0 : index
    %104 = vector.load %arg13[%c24, %c0_123] : memref<48x576xf32, #tpu.memory_space<vmem>>, vector<8x576xf32>
    %c3 = arith.constant 3 : index
    %c0_124 = arith.constant 0 : index
    %c0_125 = arith.constant 0 : index
    %105 = vector.load %arg8[%c3, %c0_124, %c0_125] : memref<6x576x128xf32, #tpu.memory_space<vmem>>, vector<1x576x128xf32>
    %106 = vector.shape_cast %105 : vector<1x576x128xf32> to vector<576x128xf32>
    %cst_126 = arith.constant dense<0.000000e+00> : vector<8x128xf32>
    %107 = tpu.matmul %104, %106, %cst_126 {dimension_numbers = #tpu.dot_dimension_numbers<[1], [0], [0], [1], [0, 0, 1, 1], [], []>} : vector<8x576xf32>, vector<576x128xf32>, vector<8x128xf32> -> vector<8x128xf32>
    %108 = arith.addf %103, %107 : vector<8x128xf32>
    %c32 = arith.constant 32 : index
    %c0_127 = arith.constant 0 : index
    %109 = vector.load %arg13[%c32, %c0_127] : memref<48x576xf32, #tpu.memory_space<vmem>>, vector<8x576xf32>
    %c4 = arith.constant 4 : index
    %c0_128 = arith.constant 0 : index
    %c0_129 = arith.constant 0 : index
    %110 = vector.load %arg8[%c4, %c0_128, %c0_129] : memref<6x576x128xf32, #tpu.memory_space<vmem>>, vector<1x576x128xf32>
    %111 = vector.shape_cast %110 : vector<1x576x128xf32> to vector<576x128xf32>
    %cst_130 = arith.constant dense<0.000000e+00> : vector<8x128xf32>
    %112 = tpu.matmul %109, %111, %cst_130 {dimension_numbers = #tpu.dot_dimension_numbers<[1], [0], [0], [1], [0, 0, 1, 1], [], []>} : vector<8x576xf32>, vector<576x128xf32>, vector<8x128xf32> -> vector<8x128xf32>
    %113 = arith.addf %108, %112 : vector<8x128xf32>
    %c40 = arith.constant 40 : index
    %c0_131 = arith.constant 0 : index
    %114 = vector.load %arg13[%c40, %c0_131] : memref<48x576xf32, #tpu.memory_space<vmem>>, vector<8x576xf32>
    %c5 = arith.constant 5 : index
    %c0_132 = arith.constant 0 : index
    %c0_133 = arith.constant 0 : index
    %115 = vector.load %arg8[%c5, %c0_132, %c0_133] : memref<6x576x128xf32, #tpu.memory_space<vmem>>, vector<1x576x128xf32>
    %116 = vector.shape_cast %115 : vector<1x576x128xf32> to vector<576x128xf32>
    %cst_134 = arith.constant dense<0.000000e+00> : vector<8x128xf32>
    %117 = tpu.matmul %114, %116, %cst_134 {dimension_numbers = #tpu.dot_dimension_numbers<[1], [0], [0], [1], [0, 0, 1, 1], [], []>} : vector<8x576xf32>, vector<576x128xf32>, vector<8x128xf32> -> vector<8x128xf32>
    %118 = arith.addf %113, %117 : vector<8x128xf32>
    %c0_135 = arith.constant 0 : index
    %c0_136 = arith.constant 0 : index
    %119 = vector.load %arg9[%c0_135, %c0_136] : memref<1x128xf32, #tpu.memory_space<vmem>>, vector<1x128xf32>
    %120 = vector.broadcast %119 : vector<1x128xf32> to vector<8x128xf32>
    %121 = arith.addf %118, %120 : vector<8x128xf32>
    %c0_137 = arith.constant 0 : index
    %c0_138 = arith.constant 0 : index
    %122 = vector.load %arg10[%c0_137, %c0_138] : memref<8x128xf32, #tpu.memory_space<vmem>>, vector<8x128xf32>
    tpu.vector_store %arg10[%c0_137, %c0_138], %121 {strides = array<i32>} : memref<8x128xf32, #tpu.memory_space<vmem>>, vector<8x128xf32>,
    return
  }
  func.func @transform_0(%arg0: i32) -> (i32, i32, i32) {
    %c0_i32 = arith.constant 0 : i32
    %c0_i32_0 = arith.constant 0 : i32
    %c0_i32_1 = arith.constant 0 : i32
    return %arg0, %c0_i32, %c0_i32_0 : i32, i32, i32
  }
  func.func @transform_1(%arg0: i32) -> (i32, i32, i32) {
    %c0_i32 = arith.constant 0 : i32
    %c0_i32_0 = arith.constant 0 : i32
    %c0_i32_1 = arith.constant 0 : i32
    %c0_i32_2 = arith.constant 0 : i32
    return %c0_i32, %c0_i32_0, %c0_i32_1 : i32, i32, i32
  }
  func.func @transform_2(%arg0: i32) -> (i32, i32) {
    %c0_i32 = arith.constant 0 : i32
    %c0_i32_0 = arith.constant 0 : i32
    %c0_i32_1 = arith.constant 0 : i32
    return %c0_i32, %c0_i32_0 : i32, i32
  }
  func.func @transform_3(%arg0: i32) -> (i32, i32, i32) {
    %c0_i32 = arith.constant 0 : i32
    %c0_i32_0 = arith.constant 0 : i32
    %c0_i32_1 = arith.constant 0 : i32
    %c0_i32_2 = arith.constant 0 : i32
    return %c0_i32, %c0_i32_0, %c0_i32_1 : i32, i32, i32
  }
  func.func @transform_4(%arg0: i32) -> (i32, i32) {
    %c0_i32 = arith.constant 0 : i32
    %c0_i32_0 = arith.constant 0 : i32
    %c0_i32_1 = arith.constant 0 : i32
    return %c0_i32, %c0_i32_0 : i32, i32
  }
  func.func @transform_5(%arg0: i32) -> (i32, i32, i32) {
    %c0_i32 = arith.constant 0 : i32
    %c0_i32_0 = arith.constant 0 : i32
    %c0_i32_1 = arith.constant 0 : i32
    %c0_i32_2 = arith.constant 0 : i32
    return %c0_i32, %c0_i32_0, %c0_i32_1 : i32, i32, i32
  }
  func.func @transform_6(%arg0: i32) -> (i32, i32) {
    %c0_i32 = arith.constant 0 : i32
    %c0_i32_0 = arith.constant 0 : i32
    %c0_i32_1 = arith.constant 0 : i32
    return %c0_i32, %c0_i32_0 : i32, i32
  }
  func.func @transform_7(%arg0: i32) -> (i32, i32, i32) {
    %c0_i32 = arith.constant 0 : i32
    %c0_i32_0 = arith.constant 0 : i32
    %c0_i32_1 = arith.constant 0 : i32
    %c0_i32_2 = arith.constant 0 : i32
    return %c0_i32, %c0_i32_0, %c0_i32_1 : i32, i32, i32
  }
  func.func @transform_8(%arg0: i32) -> (i32, i32) {
    %c0_i32 = arith.constant 0 : i32
    %c0_i32_0 = arith.constant 0 : i32
    %c0_i32_1 = arith.constant 0 : i32
    return %c0_i32, %c0_i32_0 : i32, i32
  }
  func.func @transform_9(%arg0: i32) -> (i32, i32) {
    %c0_i32 = arith.constant 0 : i32
    %c0_i32_0 = arith.constant 0 : i32
    return %arg0, %c0_i32 : i32, i32
  }
}

</mosaic_0001>

<bundles_post_ra>
// kernel: cnn3d_forward.1
= control target key start
LH: loop header
LB: loop body
LE: loop exit
PB: predicated region body
PF: predicated region fallthrough
CT: control target
= control target key end

     0   :  { %14 = vsyncpa [#allocation6], 0  ;;  %s8309_s0 = inlined_call_operand.vmem [shape: f32[1,96,128], index: 0, kind: input, shape index: {}]   ;;  %s8310_s1 = inlined_call_operand.vmem [shape: f32[3,128,144], index: 1, kind: input, shape index: {}]   ;;  %s8311_s2 = inlined_call_operand.hbm [shape: f32[1,144], index: 2, kind: input, shape index: {}]   ;;  %s8312_s3 = inlined_call_operand.hbm [shape: f32[3,144,288], index: 3, kind: input, shape index: {}]   ;;  %s8313_s4 = inlined_call_operand.hbm [shape: f32[1,288], index: 4, kind: input, shape index: {}]   ;;  %s8314_s5 = inlined_call_operand.hbm [shape: f32[3,288,576], index: 5, kind: input, shape index: {}]   ;;  %s8315_s6 = inlined_call_operand.hbm [shape: f32[1,576], index: 6, kind: input, shape index: {}]   ;;  %s8316_s7 = inlined_call_operand.hbm [shape: f32[6,576,128], index: 7, kind: input, shape index: {}]   ;;  %s8317_s8 = inlined_call_operand.hbm [shape: f32[1,128], index: 8, kind: input, shape index: {}]   ;;  %s8318_s9 = inlined_call_operand.vmem [shape: f32[8,128], index: 9, kind: output, shape index: {}]  }
   0x1   :  { %15 = vsyncpa [#allocation8], 0 }
   0x2   :  { %16 = vsyncpa [#allocation11], 0  ;;  %s37_s11 = sshll.u32 %s8312_s3, 4  ;;  %s38_s11 = int_to_ptr.hbm [resolvable:$true] %s37_s11 }
   0x3   :  { %17 = vsyncpa [#allocation14], 0  ;;  %s6360_s12 = smov [#allocation7]   ;;  %s61_s16 = sshll.u32 %s8314_s5, 4  ;;  %s62_s16 = int_to_ptr.hbm [resolvable:$true] %s61_s16 }
   0x4   :  { %s39_s13 = sshll.u32 %s6360_s12, 4  ;;  %s6361_s17 = smov 384   ;;  %s40_s13 = int_to_ptr.vmem [resolvable:$true] %s39_s13 }
   0x5   :  { %s6362_s18 = smov 24   ;;  %s6363_s19 = smov [#allocation10]  }
   0x6   :  { %45 = dma.hbm_to_vmem [thread:$0]  %s38_s11, 20736, %s40_s13, [#allocation8], %s6361_s17, %s6361_s17, %s6362_s18  }
   0x7   :  { %s63_s20 = sshll.u32 %s6363_s19, 4  ;;  %s6364_s21 = smov 640   ;;  %s64_s20 = int_to_ptr.vmem [resolvable:$true] %s63_s20 }
   0x8   :  { %s6365_s22 = smov 40   ;;  %s85_s24 = sshll.u32 %s8316_s7, 4  ;;  %s86_s24 = int_to_ptr.hbm [resolvable:$true] %s85_s24 }
   0x9   :  { %69 = dma.hbm_to_vmem [thread:$0]  %s62_s16, 69120, %s64_s20, [#allocation11], %s6364_s21, %s6364_s21, %s6365_s22  }
   0xa   :  { %s6366_s25 = smov [#allocation13]   ;;  %s27_s28 = sshll.u32 %s8311_s2, 4  ;;  %s28_s28 = int_to_ptr.hbm [resolvable:$true] %s27_s28 }
   0xb   :  { %s87_s26 = sshll.u32 %s6366_s25, 4  ;;  %s6367_s29 = smov 128   ;;  %s88_s26 = int_to_ptr.vmem [resolvable:$true] %s87_s26 }
   0xc   :  { %s6368_s30 = smov 8   ;;  %s6369_s10 = smov [#allocation5]  }
   0xd   :  { %93 = dma.hbm_to_vmem [thread:$0]  %s86_s24, 55296, %s88_s26, [#allocation14], %s6367_s29, %s6367_s29, %s6368_s30  }
   0xe   :  { %s29_s11 = sshll.u32 %s6369_s10, 4  ;;  %s51_s14 = sshll.u32 %s8313_s4, 4  ;;  %s30_s11 = int_to_ptr.vmem [resolvable:$true] %s29_s11  ;;  %s52_s14 = int_to_ptr.hbm [resolvable:$true] %s51_s14 }
   0xf   :  { %32 = dma.hbm_to_vmem [thread:$0]  %s28_s28, 32, %s30_s11, [#allocation6]  }
  0x10   :  { %s75_s16 = sshll.u32 %s8315_s6, 4  ;;  %s6370_s17 = smov [#allocation9]   ;;  %s76_s16 = int_to_ptr.hbm [resolvable:$true] %s75_s16 }
  0x11   :  { %s53_s18 = sshll.u32 %s6370_s17, 4  ;;  %s6371_s2 = smov [#allocation12]   ;;  %s54_s18 = int_to_ptr.vmem [resolvable:$true] %s53_s18 }
  0x12   :  { %56 = dma.hbm_to_vmem [thread:$0]  %s52_s14, 48, %s54_s18, [#allocation8]  }
  0x13   :  { %s77_s19 = sshll.u32 %s6371_s2, 4  ;;  %s99_s22 = sshll.u32 %s8317_s8, 4  ;;  %s78_s19 = int_to_ptr.vmem [resolvable:$true] %s77_s19  ;;  %s100_s22 = int_to_ptr.hbm [resolvable:$true] %s99_s22 }
  0x14   :  { %80 = dma.hbm_to_vmem [thread:$0]  %s76_s16, 80, %s78_s19, [#allocation11]  }
  0x15   :  { %s6372_s4 = smov [#allocation15]  }
  0x16   :  { %s101_s3 = sshll.u32 %s6372_s4, 4  ;;  %s102_s3 = int_to_ptr.vmem [resolvable:$true] %s101_s3 }
  0x17   :  { %104 = dma.hbm_to_vmem [thread:$0]  %s100_s22, 16, %s102_s3, [#allocation14]  }
  0x18   :  { %6352 = dma.done.wait [#allocation6], 32  }
  0x19   :  { %6353 = vsyncadd [#allocation6], 4294967264 }
  0x1a   :  { %6354 = dma.done.wait [#allocation8], 20784  }
  0x1b   :  { %6355 = vsyncadd [#allocation8], 4294946512 }
  0x1c   :  { %6356 = dma.done.wait [#allocation11], 69200  }
  0x1d   :  { %6357 = vsyncadd [#allocation11], 4294898096 }
  0x1e   :  { %6358 = dma.done.wait [#allocation14], 55312  }
  0x1f   :  { %6359 = vsyncadd [#allocation14], 4294911984  ;;  %v173_v0 = vld [vmem:[%s8310_s1 + $0xf0] sm:$0xff]  ;;  %v174_v1 = vld [vmem:[%s8310_s1 + $0xf8] sm:$0xff]  ;;  %vm270_vm0 = vcmask 130048  }
  0x20   :  { %v171_v2 = vld [vmem:[%s8310_s1 + $0xe0] sm:$0xff]  ;;  %175 = vmatpush.msra.mxu0 %v173_v0  ;;  %222 = vmatpush.msra.mxu1 %v174_v1  ;;  %v172_v3 = vld [vmem:[%s8310_s1 + $0xe8] sm:$0xff]  ;;  %v5914_v4 = vld [vmem:[%s8310_s1 + $0x1f0] sm:$0xff] }
  0x21   :  { %v5915_v5 = vld [vmem:[%s8310_s1 + $0x1f8] sm:$0xff]  ;;  %353 = vmatpush.msra.mxu2 %v5914_v4  ;;  %v169_v6 = vld [vmem:[%s8310_s1 + $0xd0] sm:$0xff]  ;;  %v5912_v8 = vld [vmem:[%s8310_s1 + $0x1e0] sm:$0xff] }
  0x22   :  { %400 = vmatpush.msra.mxu3 %v5915_v5  ;;  %v170_v7 = vld [vmem:[%s8310_s1 + $0xd8] sm:$0xff]  ;;  %176 = vmatpush.msra.mxu0 %v171_v2  ;;  %v5913_v9 = vld [vmem:[%s8310_s1 + $0x1e8] sm:$0xff]  ;;  %v167_v10 = vld [vmem:[%s8310_s1 + $0xc0] sm:$0xff] }
  0x23   :  { %223 = vmatpush.msra.mxu1 %v172_v3  ;;  %354 = vmatpush.msra.mxu2 %v5912_v8  ;;  %v168_v11 = vld [vmem:[%s8310_s1 + $0xc8] sm:$0xff]  ;;  %v5910_v12 = vld [vmem:[%s8310_s1 + $0x1d0] sm:$0xff]  ;;  %v5911_v13 = vld [vmem:[%s8310_s1 + $0x1d8] sm:$0xff] }
  0x24   :  { %401 = vmatpush.msra.mxu3 %v5913_v9  ;;  %177 = vmatpush.msra.mxu0 %v169_v6  ;;  %v5908_v14 = vld [vmem:[%s8310_s1 + $0x1c0] sm:$0xff]  ;;  %v5909_v15 = vld [vmem:[%s8310_s1 + $0x1c8] sm:$0xff]  ;;  %v165_v16 = vld [vmem:[%s8310_s1 + $0xb0] sm:$0xff] }
  0x25   :  { %224 = vmatpush.msra.mxu1 %v170_v7  ;;  %355 = vmatpush.msra.mxu2 %v5910_v12  ;;  %v166_v17 = vld [vmem:[%s8310_s1 + $0xb8] sm:$0xff]  ;;  %v5906_v18 = vld [vmem:[%s8310_s1 + $0x1b0] sm:$0xff]  ;;  %v163_v20 = vld [vmem:[%s8310_s1 + $0xa0] sm:$0xff] }
  0x26   :  { %402 = vmatpush.msra.mxu3 %v5911_v13  ;;  %178 = vmatpush.msra.mxu0 %v167_v10  ;;  %v5907_v19 = vld [vmem:[%s8310_s1 + $0x1b8] sm:$0xff]  ;;  %v164_v21 = vld [vmem:[%s8310_s1 + $0xa8] sm:$0xff]  ;;  %v5904_v22 = vld [vmem:[%s8310_s1 + $0x1a0] sm:$0xff] }
  0x27   :  { %225 = vmatpush.msra.mxu1 %v168_v11  ;;  %356 = vmatpush.msra.mxu2 %v5908_v14  ;;  %v5905_v23 = vld [vmem:[%s8310_s1 + $0x1a8] sm:$0xff]  ;;  %v161_v24 = vld [vmem:[%s8310_s1 + $0x90] sm:$0xff]  ;;  %v162_v25 = vld [vmem:[%s8310_s1 + $0x98] sm:$0xff] }
  0x28   :  { %403 = vmatpush.msra.mxu3 %v5909_v15  ;;  %179 = vmatpush.msra.mxu0 %v165_v16  ;;  %v5902_v26 = vld [vmem:[%s8310_s1 + $0x190] sm:$0xff]  ;;  %v5903_v27 = vld [vmem:[%s8310_s1 + $0x198] sm:$0xff]  ;;  %v159_v28 = vld [vmem:[%s8310_s1 + $0x80] sm:$0xff] }
  0x29   :  { %226 = vmatpush.msra.mxu1 %v166_v17  ;;  %357 = vmatpush.msra.mxu2 %v5906_v18  ;;  %v160_v29 = vld [vmem:[%s8310_s1 + $0x88] sm:$0xff]  ;;  %v5900_v30 = vld [vmem:[%s8310_s1 + $0x180] sm:$0xff]  ;;  %v157_v32 = vld [vmem:[%s8310_s1 + $0x70] sm:$0xff] }
  0x2a   :  { %404 = vmatpush.msra.mxu3 %v5907_v19  ;;  %180 = vmatpush.msra.mxu0 %v163_v20  ;;  %v5901_v31 = vld [vmem:[%s8310_s1 + $0x188] sm:$0xff]  ;;  %v158_v33 = vld [vmem:[%s8310_s1 + $0x78] sm:$0xff]  ;;  %v5898_v34 = vld [vmem:[%s8310_s1 + $0x170] sm:$0xff] }
  0x2b   :  { %227 = vmatpush.msra.mxu1 %v164_v21  ;;  %358 = vmatpush.msra.mxu2 %v5904_v22  ;;  %v5899_v35 = vld [vmem:[%s8310_s1 + $0x178] sm:$0xff]  ;;  %v155_v36 = vld [vmem:[%s8310_s1 + $0x60] sm:$0xff]  ;;  %v156_v37 = vld [vmem:[%s8310_s1 + $0x68] sm:$0xff] }
  0x2c   :  { %405 = vmatpush.msra.mxu3 %v5905_v23  ;;  %181 = vmatpush.msra.mxu0 %v161_v24  ;;  %v5896_v38 = vld [vmem:[%s8310_s1 + $0x160] sm:$0xff]  ;;  %v5897_v39 = vld [vmem:[%s8310_s1 + $0x168] sm:$0xff]  ;;  %v153_v40 = vld [vmem:[%s8310_s1 + $0x50] sm:$0xff] }
  0x2d   :  { %228 = vmatpush.msra.mxu1 %v162_v25  ;;  %359 = vmatpush.msra.mxu2 %v5902_v26  ;;  %v154_v41 = vld [vmem:[%s8310_s1 + $0x58] sm:$0xff]  ;;  %v5894_v42 = vld [vmem:[%s8310_s1 + $0x150] sm:$0xff]  ;;  %v151_v44 = vld [vmem:[%s8310_s1 + $0x40] sm:$0xff] }
  0x2e   :  { %406 = vmatpush.msra.mxu3 %v5903_v27  ;;  %182 = vmatpush.msra.mxu0 %v159_v28  ;;  %v5895_v43 = vld [vmem:[%s8310_s1 + $0x158] sm:$0xff]  ;;  %v152_v45 = vld [vmem:[%s8310_s1 + $0x48] sm:$0xff]  ;;  %v5892_v46 = vld [vmem:[%s8310_s1 + $0x140] sm:$0xff] }
  0x2f   :  { %229 = vmatpush.msra.mxu1 %v160_v29  ;;  %360 = vmatpush.msra.mxu2 %v5900_v30  ;;  %v5893_v47 = vld [vmem:[%s8310_s1 + $0x148] sm:$0xff]  ;;  %v149_v48 = vld [vmem:[%s8310_s1 + $0x30] sm:$0xff]  ;;  %v150_v49 = vld [vmem:[%s8310_s1 + $0x38] sm:$0xff] }
  0x30   :  { %407 = vmatpush.msra.mxu3 %v5901_v31  ;;  %183 = vmatpush.msra.mxu0 %v157_v32  ;;  %v5890_v50 = vld [vmem:[%s8310_s1 + $0x130] sm:$0xff]  ;;  %v5891_v51 = vld [vmem:[%s8310_s1 + $0x138] sm:$0xff]  ;;  %v147_v52 = vld [vmem:[%s8310_s1 + $0x20] sm:$0xff] }
  0x31   :  { %230 = vmatpush.msra.mxu1 %v158_v33  ;;  %361 = vmatpush.msra.mxu2 %v5898_v34  ;;  %v148_v53 = vld [vmem:[%s8310_s1 + $0x28] sm:$0xff]  ;;  %v5888_v54 = vld [vmem:[%s8310_s1 + $0x120] sm:$0xff]  ;;  %v145_v56 = vld [vmem:[%s8310_s1 + $0x10] sm:$0xff] }
  0x32   :  { %408 = vmatpush.msra.mxu3 %v5899_v35  ;;  %184 = vmatpush.msra.mxu0 %v155_v36  ;;  %v5889_v55 = vld [vmem:[%s8310_s1 + $0x128] sm:$0xff]  ;;  %v146_v57 = vld [vmem:[%s8310_s1 + $0x18] sm:$0xff]  ;;  %v5886_v58 = vld [vmem:[%s8310_s1 + $0x110] sm:$0xff] }
  0x33   :  { %231 = vmatpush.msra.mxu1 %v156_v37  ;;  %362 = vmatpush.msra.mxu2 %v5896_v38  ;;  %v5887_v59 = vld [vmem:[%s8310_s1 + $0x118] sm:$0xff]  ;;  %v143_v60 = vld [vmem:[%s8310_s1] sm:$0xff]  ;;  %v144_v61 = vld [vmem:[%s8310_s1 + $0x8] sm:$0xff] }
  0x34   :  { %409 = vmatpush.msra.mxu3 %v5897_v39  ;;  %185 = vmatpush.msra.mxu0 %v153_v40  ;;  %v133_v62 = vld [vmem:[%s8309_s0] sm:$0xff]  ;;  %v5885_v0 = vld [vmem:[%s8310_s1 + $0x108] sm:$0xff]  ;;  %v6645_v2 = vld [vmem:[%s8309_s0 + $0x10] sm:$0xff] }
  0x35   :  { %232 = vmatpush.msra.mxu1 %v154_v41  ;;  %363 = vmatpush.msra.mxu2 %v5894_v42  ;;  %v5884_v63 = vld [vmem:[%s8310_s1 + $0x100] sm:$0xff]  ;;  %v310_v1 = vld [vmem:[%s8309_s0 + $0x8] sm:$0xff]  ;;  %v6652_v3 = vld [vmem:[%s8309_s0 + $0x18] sm:$0xff] }
  0x36   :  { %410 = vmatpush.msra.mxu3 %v5895_v43  ;;  %186 = vmatpush.msra.mxu0 %v151_v44  ;;  %v5946_v4 = vld [vmem:[%s8310_s1 + $0x2f0] sm:$0xff]  ;;  %v5947_v5 = vld [vmem:[%s8310_s1 + $0x2f8] sm:$0xff]  ;;  %v5944_v6 = vld [vmem:[%s8310_s1 + $0x2e0] sm:$0xff] }
  0x37   :  { %233 = vmatpush.msra.mxu1 %v152_v45  ;;  %364 = vmatpush.msra.mxu2 %v5892_v46  ;;  %v5945_v7 = vld [vmem:[%s8310_s1 + $0x2e8] sm:$0xff]  ;;  %v5942_v8 = vld [vmem:[%s8310_s1 + $0x2d0] sm:$0xff]  ;;  %v5943_v9 = vld [vmem:[%s8310_s1 + $0x2d8] sm:$0xff] }
  0x38   :  { %411 = vmatpush.msra.mxu3 %v5893_v47  ;;  %187 = vmatpush.msra.mxu0 %v149_v48  ;;  %v5940_v10 = vld [vmem:[%s8310_s1 + $0x2c0] sm:$0xff]  ;;  %v5941_v11 = vld [vmem:[%s8310_s1 + $0x2c8] sm:$0xff]  ;;  %v5938_v13 = vld [vmem:[%s8310_s1 + $0x2b0] sm:$0xff] }
  0x39   :  { %234 = vmatpush.msra.mxu1 %v150_v49  ;;  %365 = vmatpush.msra.mxu2 %v5890_v50  ;;  %v6685_v12 = vld [vmem:[%s8309_s0 + $0x20] sm:$0xff]  ;;  %v5939_v14 = vld [vmem:[%s8310_s1 + $0x2b8] sm:$0xff]  ;;  %v5937_v16 = vld [vmem:[%s8310_s1 + $0x2a8] sm:$0xff] }
  0x3a   :  { %412 = vmatpush.msra.mxu3 %v5891_v51  ;;  %188 = vmatpush.msra.mxu0 %v147_v52  ;;  %v5936_v15 = vld [vmem:[%s8310_s1 + $0x2a0] sm:$0xff]  ;;  %v5934_v17 = vld [vmem:[%s8310_s1 + $0x290] sm:$0xff]  ;;  %v5935_v18 = vld [vmem:[%s8310_s1 + $0x298] sm:$0xff] }
  0x3b   :  { %235 = vmatpush.msra.mxu1 %v148_v53  ;;  %366 = vmatpush.msra.mxu2 %v5888_v54  ;;  %v5932_v19 = vld [vmem:[%s8310_s1 + $0x280] sm:$0xff]  ;;  %v5933_v20 = vld [vmem:[%s8310_s1 + $0x288] sm:$0xff]  ;;  %v5930_v22 = vld [vmem:[%s8310_s1 + $0x270] sm:$0xff] }
  0x3c   :  { %413 = vmatpush.msra.mxu3 %v5889_v55  ;;  %189 = vmatpush.msra.mxu0 %v145_v56  ;;  %v6718_v21 = vld [vmem:[%s8309_s0 + $0x28] sm:$0xff]  ;;  %v5931_v23 = vld [vmem:[%s8310_s1 + $0x278] sm:$0xff]  ;;  %v5928_v24 = vld [vmem:[%s8310_s1 + $0x260] sm:$0xff] }
  0x3d   :  { %236 = vmatpush.msra.mxu1 %v146_v57  ;;  %367 = vmatpush.msra.mxu2 %v5886_v58  ;;  %v5929_v25 = vld [vmem:[%s8310_s1 + $0x268] sm:$0xff]  ;;  %v5926_v26 = vld [vmem:[%s8310_s1 + $0x250] sm:$0xff]  ;;  %v5927_v27 = vld [vmem:[%s8310_s1 + $0x258] sm:$0xff] }
  0x3e   :  { %414 = vmatpush.msra.mxu3 %v5887_v59  ;;  %190 = vmatpush.msra.mxu0 %v143_v60  ;;  %v5924_v28 = vld [vmem:[%s8310_s1 + $0x240] sm:$0xff]  ;;  %v5925_v29 = vld [vmem:[%s8310_s1 + $0x248] sm:$0xff]  ;;  %v315_v30 = vld [vmem:[%s8309_s0 + $0x30] sm:$0xff] }
  0x3f   :  { %237 = vmatpush.msra.mxu1 %v144_v61  ;;  %191 = vmatmul.f32.vlgmr.msra.gmra.mxu0 %v133_v62  ;;  %v5922_v31 = vld [vmem:[%s8310_s1 + $0x230] sm:$0xff]  ;;  %v5923_v32 = vld [vmem:[%s8310_s1 + $0x238] sm:$0xff]  ;;  %v5920_v33 = vld [vmem:[%s8310_s1 + $0x220] sm:$0xff] }
  0x40   :  { %238 = vmatmul.f32.vlgmr.msra.gmra.mxu1 %v133_v62  ;;  %368 = vmatpush.msra.mxu2 %v5884_v63  ;;  %v5921_v34 = vld [vmem:[%s8310_s1 + $0x228] sm:$0xff]  ;;  %v5918_v35 = vld [vmem:[%s8310_s1 + $0x210] sm:$0xff]  ;;  %v5919_v36 = vld [vmem:[%s8310_s1 + $0x218] sm:$0xff] }
  0x41   :  { %415 = vmatpush.msra.mxu3 %v5885_v0  ;;  %369 = vmatmul.f32.vlgmr.msra.gmra.mxu2 %v310_v1  ;;  %v5916_v37 = vld [vmem:[%s8310_s1 + $0x200] sm:$0xff]  ;;  %v5917_v38 = vld [vmem:[%s8310_s1 + $0x208] sm:$0xff]  ;;  %v316_v39 = vld [vmem:[%s8309_s0 + $0x38] sm:$0xff] }
  0x42   :  { %416 = vmatmul.f32.vlgmr.msra.gmra.mxu3 %v310_v1  ;;  %550 = vmatpush.msrb.mxu0 %v5946_v4  ;;  %v317_v40 = vld [vmem:[%s8309_s0 + $0x40] sm:$0xff]  ;;  %v318_v41 = vld [vmem:[%s8309_s0 + $0x48] sm:$0xff]  ;;  %v319_v42 = vld [vmem:[%s8309_s0 + $0x50] sm:$0xff] }
  0x43   :  { %597 = vmatpush.msrb.mxu1 %v5947_v5  ;;  %v516_v58 = vld [vmem:[%s8309_s0 + $0x58] sm:$0xff]  ;;  %v873_v61 = vld [vmem:[#allocation7 + $0x178] sm:$0xff]  ;;  %v868_v63 = vld [vmem:[#allocation7 + $0x150] sm:$0xff] }
  0x44   :  { %551 = vmatpush.msrb.mxu0 %v5944_v6  ;;  %v871_v60 = vld [vmem:[#allocation7 + $0x168] sm:$0xff]  ;;  %v870_v0 = vld [vmem:[#allocation7 + $0x160] sm:$0xff]  ;;  %v864_v4 = vld [vmem:[#allocation7 + $0x130] sm:$0xff] }
  0x45   :  { %598 = vmatpush.msrb.mxu1 %v5945_v7  ;;  %904 = vmatpush.msrb.mxu2 %v871_v60 }
  0x46   :  { %552 = vmatpush.msrb.mxu0 %v5942_v8 }
  0x47   :  { %194 = vmatmul.f32.gmra.mxu0 %v310_v1  ;;  %599 = vmatpush.msrb.mxu1 %v5943_v9  ;;  %v859_v9 = vld [vmem:[#allocation7 + $0x108] sm:$0xff] }
  0x48   :  { %241 = vmatmul.f32.gmra.mxu1 %v310_v1  ;;  %553 = vmatpush.msrb.mxu0 %v5940_v10  ;;  %v865_v1 = vld [vmem:[#allocation7 + $0x138] sm:$0xff] }
  0x49   :  { %372 = vmatmul.f32.gmra.mxu2 %v6645_v2  ;;  %600 = vmatpush.msrb.mxu1 %v5941_v11  ;;  %v861_v10 = vld [vmem:[#allocation7 + $0x118] sm:$0xff] }
  0x4a   :  { %419 = vmatmul.f32.gmra.mxu3 %v6645_v2  ;;  %554 = vmatpush.msrb.mxu0 %v5938_v13  ;;  %v858_v13 = vld [vmem:[#allocation7 + $0x100] sm:$0xff] }
  0x4b   :  { %601 = vmatpush.msrb.mxu1 %v5939_v14  ;;  %905 = vmatpush.msrb.mxu2 %v868_v63  ;;  %v853_v14 = vld [vmem:[#allocation7 + $0xd8] sm:$0xff]  ;;  %v876_v63 = vld [vmem:[#allocation7 + $0x190] sm:$0xff] }
  0x4c   :  { %555 = vmatpush.msrb.mxu0 %v5936_v15  ;;  %v855_v15 = vld [vmem:[#allocation7 + $0xe8] sm:$0xff] }
  0x4d   :  { %602 = vmatpush.msrb.mxu1 %v5937_v16  ;;  %906 = vmatpush.msrb.mxu2 %v865_v1  ;;  %v850_v16 = vld [vmem:[#allocation7 + $0xc0] sm:$0xff] }
  0x4e   :  { %556 = vmatpush.msrb.mxu0 %v5934_v17  ;;  %v852_v17 = vld [vmem:[#allocation7 + $0xd0] sm:$0xff] }
  0x4f   :  { %197 = vmatmul.f32.gmra.mxu0 %v6645_v2  ;;  %603 = vmatpush.msrb.mxu1 %v5935_v18 }
  0x50   :  { %244 = vmatmul.f32.gmra.mxu1 %v6645_v2  ;;  %557 = vmatpush.msrb.mxu0 %v5932_v19 }
  0x51   :  { %375 = vmatmul.f32.gmra.mxu2 %v6652_v3  ;;  %604 = vmatpush.msrb.mxu1 %v5933_v20 }
  0x52   :  { %422 = vmatmul.f32.gmra.mxu3 %v6652_v3  ;;  %558 = vmatpush.msrb.mxu0 %v5930_v22  ;;  %v847_v22 = vld [vmem:[#allocation7 + $0xa8] sm:$0xff] }
  0x53   :  { %605 = vmatpush.msrb.mxu1 %v5931_v23  ;;  %v849_v23 = vld [vmem:[#allocation7 + $0xb8] sm:$0xff] }
  0x54   :  { %559 = vmatpush.msrb.mxu0 %v5928_v24 }
  0x55   :  { %606 = vmatpush.msrb.mxu1 %v5929_v25  ;;  %v844_v25 = vld [vmem:[#allocation7 + $0x90] sm:$0xff] }
  0x56   :  { %560 = vmatpush.msrb.mxu0 %v5926_v26  ;;  %v846_v26 = vld [vmem:[#allocation7 + $0xa0] sm:$0xff] }
  0x57   :  { %200 = vmatmul.f32.gmra.mxu0 %v6652_v3  ;;  %607 = vmatpush.msrb.mxu1 %v5927_v27  ;;  %v841_v27 = vld [vmem:[#allocation7 + $0x78] sm:$0xff] }
  0x58   :  { %247 = vmatmul.f32.gmra.mxu1 %v6652_v3  ;;  %561 = vmatpush.msrb.mxu0 %v5924_v28  ;;  %v843_v28 = vld [vmem:[#allocation7 + $0x88] sm:$0xff] }
  0x59   :  { %378 = vmatmul.f32.gmra.mxu2 %v6685_v12  ;;  %608 = vmatpush.msrb.mxu1 %v5925_v29  ;;  %v838_v29 = vld [vmem:[#allocation7 + $0x60] sm:$0xff] }
  0x5a   :  { %425 = vmatmul.f32.gmra.mxu3 %v6685_v12  ;;  %562 = vmatpush.msrb.mxu0 %v5922_v31 }
  0x5b   :  { %609 = vmatpush.msrb.mxu1 %v5923_v32 }
  0x5c   :  { %563 = vmatpush.msrb.mxu0 %v5920_v33 }
  0x5d   :  { %610 = vmatpush.msrb.mxu1 %v5921_v34 }
  0x5e   :  { %564 = vmatpush.msrb.mxu0 %v5918_v35  ;;  %v835_v35 = vld [vmem:[#allocation7 + $0x48] sm:$0xff] }
  0x5f   :  { %203 = vmatmul.f32.gmra.mxu0 %v6685_v12  ;;  %611 = vmatpush.msrb.mxu1 %v5919_v36  ;;  %v837_v36 = vld [vmem:[#allocation7 + $0x58] sm:$0xff] }
  0x60   :  { %250 = vmatmul.f32.gmra.mxu1 %v6685_v12  ;;  %565 = vmatpush.msrb.mxu0 %v5916_v37 }
  0x61   :  { %381 = vmatmul.f32.gmra.mxu2 %v6718_v21  ;;  %612 = vmatpush.msrb.mxu1 %v5917_v38  ;;  %v832_v38 = vld [vmem:[#allocation7 + $0x30] sm:$0xff] }
  0x62   :  { %428 = vmatmul.f32.gmra.mxu3 %v6718_v21  ;;  %1068 = vmatpush.msra.mxu0 %v873_v61  ;;  %v879_v61 = vld [vmem:[#allocation7 + $0x1a8] sm:$0xff] }
  0x63   :  { %1123 = vmatpush.msra.mxu1 %v879_v61  ;;  %v857_v61 = vld [vmem:[#allocation7 + $0xf8] sm:$0xff] }
  0x64   :  { %1069 = vmatpush.msra.mxu0 %v870_v0 }
  0x65   :  { %1124 = vmatpush.msra.mxu1 %v876_v63 }
  0x67   :  { %206 = vmatmul.f32.gmra.mxu0 %v6718_v21 }
  0x68   :  { %253 = vmatmul.f32.gmra.mxu1 %v6718_v21 }
  0x69   :  { %384 = vmatmul.f32.gmra.mxu2 %v315_v30 }
  0x6a   :  { %431 = vmatmul.f32.gmra.mxu3 %v315_v30 }
  0x6f   :  { %209 = vmatmul.f32.gmra.mxu0 %v315_v30 }
  0x70   :  { %256 = vmatmul.f32.gmra.mxu1 %v315_v30 }
  0x71   :  { %387 = vmatmul.f32.gmra.mxu2 %v316_v39 }
  0x72   :  { %434 = vmatmul.f32.gmra.mxu3 %v316_v39 }
  0x77   :  { %212 = vmatmul.f32.gmra.mxu0 %v316_v39 }
  0x78   :  { %259 = vmatmul.f32.gmra.mxu1 %v316_v39 }
  0x79   :  { %390 = vmatmul.f32.gmra.mxu2 %v317_v40 }
  0x7a   :  { %437 = vmatmul.f32.gmra.mxu3 %v317_v40 }
  0x7f   :  { %215 = vmatmul.f32.gmra.mxu0 %v317_v40 }
  0x80   :  { %262 = vmatmul.f32.gmra.mxu1 %v317_v40 }
  0x81   :  { %393 = vmatmul.f32.gmra.mxu2 %v318_v41 }
  0x82   :  { %440 = vmatmul.f32.gmra.mxu3 %v318_v41 }
  0x87   :  { %218 = vmatmul.f32.gmra.mxu0 %v318_v41 }
  0x88   :  { %265 = vmatmul.f32.gmra.mxu1 %v318_v41 }
  0x89   :  { %396 = vmatmul.f32.gmra.mxu2 %v319_v42 }
  0x8a   :  { %443 = vmatmul.f32.gmra.mxu3 %v319_v42 }
  0x8f   :  { %566 = vmatmul.f32.vlgmr.msrb.gmra.mxu0 %v6645_v2 }
  0x90   :  { %613 = vmatmul.f32.vlgmr.msrb.gmra.mxu1 %v6645_v2  ;;  %v867_v2 = vld [vmem:[#allocation7 + $0x148] sm:$0xff] }
  0x91   :  { %1070 = vmatpush.msra.mxu0 %v867_v2 }
  0x93   :  { %1071 = vmatpush.msra.mxu0 %v864_v4 }
  0x95   :  { %1072 = vmatpush.msra.mxu0 %v861_v10 }
  0x97   :  { %569 = vmatmul.f32.gmra.mxu0 %v6652_v3 }
  0x98   :  { %616 = vmatmul.f32.gmra.mxu1 %v6652_v3  ;;  %v862_v3 = vld [vmem:[#allocation7 + $0x120] sm:$0xff]  ;;  %1073 = vmatpush.msra.mxu0 %v858_v13 }
  0x99   :  { %907 = vmatpush.msrb.mxu2 %v862_v3 }
  0x9a   :  { %1074 = vmatpush.msra.mxu0 %v855_v15 }
  0x9b   :  { %908 = vmatpush.msrb.mxu2 %v859_v9 }
  0x9c   :  { %1075 = vmatpush.msra.mxu0 %v852_v17 }
  0x9e   :  { %1076 = vmatpush.msra.mxu0 %v849_v23 }
  0x9f   :  { %572 = vmatmul.f32.gmra.mxu0 %v6685_v12 }
  0xa0   :  { %619 = vmatmul.f32.gmra.mxu1 %v6685_v12  ;;  %v856_v12 = vld [vmem:[#allocation7 + $0xf0] sm:$0xff]  ;;  %1077 = vmatpush.msra.mxu0 %v846_v26 }
  0xa1   :  { %909 = vmatpush.msrb.mxu2 %v856_v12 }
  0xa2   :  { %1078 = vmatpush.msra.mxu0 %v843_v28 }
  0xa3   :  { %910 = vmatpush.msrb.mxu2 %v853_v14 }
  0xa5   :  { %911 = vmatpush.msrb.mxu2 %v850_v16 }
  0xa7   :  { %575 = vmatmul.f32.gmra.mxu0 %v6718_v21  ;;  %912 = vmatpush.msrb.mxu2 %v847_v22 }
  0xa8   :  { %622 = vmatmul.f32.gmra.mxu1 %v6718_v21 }
  0xa9   :  { %913 = vmatpush.msrb.mxu2 %v844_v25 }
  0xab   :  { %914 = vmatpush.msrb.mxu2 %v841_v27 }
  0xad   :  { %915 = vmatpush.msrb.mxu2 %v838_v29  ;;  %v872_v29 = vld [vmem:[#allocation7 + $0x170] sm:$0xff] }
  0xaf   :  { %578 = vmatmul.f32.gmra.mxu0 %v315_v30  ;;  %916 = vmatpush.msrb.mxu2 %v835_v35  ;;  %v1259_v35 = vld [vmem:[#allocation7 + $0x308] sm:$0xff] }
  0xb0   :  { %625 = vmatmul.f32.gmra.mxu1 %v315_v30  ;;  %v840_v30 = vld [vmem:[#allocation7 + $0x70] sm:$0xff] }
  0xb1   :  { %1079 = vmatpush.msra.mxu0 %v840_v30  ;;  %917 = vmatpush.msrb.mxu2 %v832_v38  ;;  %v1262_v30 = vld [vmem:[#allocation7 + $0x320] sm:$0xff] }
  0xb2   :  { %v866_v38 = vld [vmem:[#allocation7 + $0x140] sm:$0xff] }
  0xb3   :  { %1080 = vmatpush.msra.mxu0 %v837_v36 }
  0xb7   :  { %581 = vmatmul.f32.gmra.mxu0 %v316_v39 }
  0xb8   :  { %628 = vmatmul.f32.gmra.mxu1 %v316_v39  ;;  %v834_v39 = vld [vmem:[#allocation7 + $0x40] sm:$0xff] }
  0xb9   :  { %1081 = vmatpush.msra.mxu0 %v834_v39  ;;  %v1256_v39 = vld [vmem:[#allocation7 + $0x2f0] sm:$0xff] }
  0xbc   :  { %v6797_v43 = vpop.f32.mrf.mxu0 }
  0xbd   :  { %v239_v44 = vpop.f32.mrf.mxu1 }
  0xbe   :  { %271 = vst.msk [vmem:[#allocation2 + $0x8] sm:$0xff] %vm270_vm0, %v239_v44  ;;  %v828_v44 = vld [vmem:[#allocation7 + $0x10] sm:$0xff] }
  0xbf   :  { %584 = vmatmul.f32.gmra.mxu0 %v317_v40 }
  0xc0   :  { %631 = vmatmul.f32.gmra.mxu1 %v317_v40  ;;  %v829_v40 = vld [vmem:[#allocation7 + $0x18] sm:$0xff] }
  0xc1   :  { %918 = vmatpush.msrb.mxu2 %v829_v40 }
  0xc4   :  { %v6800_v45 = vpop.f32.mrf.mxu0 }
  0xc5   :  { %v242_v46 = vpop.f32.mrf.mxu1  ;;  %v291_v47 = vld [vmem:[#allocation2 + $0x8] sm:$0xff]  ;;  %v417_v48 = vpop.f32.mrf.mxu3 }
  0xc6   :  { %273 = vst.msk [vmem:[#allocation2 + $0x18] sm:$0xff] %vm270_vm0, %v242_v46  ;;  %v448_v49 = vadd.f32 %v417_v48, %v291_v47 }
  0xc7   :  { %587 = vmatmul.f32.gmra.mxu0 %v318_v41 }
  0xc8   :  { %634 = vmatmul.f32.gmra.mxu1 %v318_v41  ;;  %468 = vst.msk [vmem:[#allocation2 + $0x8] sm:$0xff] %vm270_vm0, %v448_v49  ;;  %v831_v41 = vld [vmem:[#allocation7 + $0x28] sm:$0xff]  ;;  %v370_v49 = vpop.f32.mrf.mxu2 }
  0xc9   :  { %1082 = vmatpush.msra.mxu0 %v831_v41 }
  0xcb   :  { %1083 = vmatpush.msra.mxu0 %v828_v44  ;;  %v863_v44 = vld [vmem:[#allocation7 + $0x128] sm:$0xff] }
  0xcc   :  { %v6804_v50 = vpop.f32.mrf.mxu0 }
  0xcd   :  { %v245_v51 = vpop.f32.mrf.mxu1  ;;  %v293_v52 = vld [vmem:[#allocation2 + $0x18] sm:$0xff]  ;;  %v420_v53 = vpop.f32.mrf.mxu3  ;;  %1376 = vmatpush.msrb.mxu0 %v1262_v30 }
  0xce   :  { %275 = vst.msk [vmem:[#allocation2 + $0x28] sm:$0xff] %vm270_vm0, %v245_v51  ;;  %v450_v54 = vadd.f32 %v420_v53, %v293_v52 }
  0xcf   :  { %590 = vmatmul.f32.gmra.mxu0 %v319_v42  ;;  %v488_v12 = vld [vmem:[#allocation2 + $0x8] sm:$0xff] }
  0xd0   :  { %637 = vmatmul.f32.gmra.mxu1 %v319_v42  ;;  %470 = vst.msk [vmem:[#allocation2 + $0x18] sm:$0xff] %vm270_vm0, %v450_v54  ;;  %v826_v42 = vld [vmem:[#allocation7] sm:$0xff]  ;;  %v373_v60 = vpop.f32.mrf.mxu2  ;;  %1377 = vmatpush.msrb.mxu0 %v1259_v35 }
  0xd1   :  { %919 = vmatpush.msrb.mxu2 %v826_v42 }
  0xd2   :  { %1378 = vmatpush.msrb.mxu0 %v1256_v39  ;;  %v1229_v39 = vld [vmem:[#allocation7 + $0x218] sm:$0xff] }
  0xd3   :  { %986 = vmatpush.msra.mxu2 %v872_v29 }
  0xd4   :  { %v6808_v55 = vpop.f32.mrf.mxu0 }
  0xd5   :  { %v248_v56 = vpop.f32.mrf.mxu1  ;;  %v295_v57 = vld [vmem:[#allocation2 + $0x28] sm:$0xff]  ;;  %v423_v59 = vpop.f32.mrf.mxu3 }
  0xd6   :  { %277 = vst.msk [vmem:[#allocation2 + $0x38] sm:$0xff] %vm270_vm0, %v248_v56  ;;  %v452_v62 = vadd.f32 %v423_v59, %v295_v57  ;;  %v877_v57 = vld [vmem:[#allocation7 + $0x198] sm:$0xff] }
  0xd7   :  { %593 = vmatmul.f32.gmra.mxu0 %v516_v58  ;;  %959 = vmatpush.msrb.mxu3 %v877_v57  ;;  %v490_v25 = vld [vmem:[#allocation2 + $0x18] sm:$0xff] }
  0xd8   :  { %640 = vmatmul.f32.gmra.mxu1 %v516_v58  ;;  %472 = vst.msk [vmem:[#allocation2 + $0x28] sm:$0xff] %vm270_vm0, %v452_v62  ;;  %v874_v62 = vld [vmem:[#allocation7 + $0x180] sm:$0xff] }
  0xd9   :  { %960 = vmatpush.msrb.mxu3 %v874_v62  ;;  %v1250_v57 = vld [vmem:[#allocation7 + $0x2c0] sm:$0xff]  ;;  %v1247_v62 = vld [vmem:[#allocation7 + $0x2a8] sm:$0xff] }
  0xdc   :  { %v6815_v5 = vpop.f32.mrf.mxu0 }
  0xdd   :  { %v251_v6 = vpop.f32.mrf.mxu1  ;;  %v297_v7 = vld [vmem:[#allocation2 + $0x38] sm:$0xff]  ;;  %v426_v8 = vpop.f32.mrf.mxu3 }
  0xde   :  { %279 = vst.msk [vmem:[#allocation2 + $0x48] sm:$0xff] %vm270_vm0, %v251_v6  ;;  %v454_v11 = vadd.f32 %v426_v8, %v297_v7  ;;  %v704_v6 = vld [vmem:[#allocation5] sm:$0x3]  ;;  %v376_v7 = vpop.f32.mrf.mxu2  ;;  %v447_v8 = vadd.f32 %v370_v49, %v6797_v43  ;;  %v449_v43 = vadd.f32 %v373_v60, %v6800_v45 }
  0xdf   :  { %v6840_v9 = vperm.slane %v704_v6, 0  ;;  %v6848_v22 = vperm.slane %v704_v6, 1  ;;  %v451_v40 = vadd.f32 %v376_v7, %v6804_v50  ;;  %v492_v49 = vld [vmem:[#allocation2 + $0x28] sm:$0xff] }
  0xe0   :  { %474 = vst.msk [vmem:[#allocation2 + $0x38] sm:$0xff] %vm270_vm0, %v454_v11  ;;  %v860_v50 = vld [vmem:[#allocation7 + $0x110] sm:$0xff] }
  0xe4   :  { %v6819_v18 = vpop.f32.mrf.mxu0 }
  0xe5   :  { %v254_v19 = vpop.f32.mrf.mxu1  ;;  %v299_v20 = vld [vmem:[#allocation2 + $0x48] sm:$0xff]  ;;  %v429_v21 = vpop.f32.mrf.mxu3 }
  0xe6   :  { %281 = vst.msk [vmem:[#allocation2 + $0x58] sm:$0xff] %vm270_vm0, %v254_v19  ;;  %v456_v24 = vadd.f32 %v429_v21, %v299_v20  ;;  %v6846_v21 = vpop.f32.mrf.mxu2 }
  0xe8   :  { %476 = vst.msk [vmem:[#allocation2 + $0x48] sm:$0xff] %vm270_vm0, %v456_v24 }
  0xec   :  { %v6823_v31 = vpop.f32.mrf.mxu0 }
  0xed   :  { %v257_v32 = vpop.f32.mrf.mxu1  ;;  %v301_v33 = vld [vmem:[#allocation2 + $0x58] sm:$0xff]  ;;  %v432_v34 = vpop.f32.mrf.mxu3 }
  0xee   :  { %283 = vst.msk [vmem:[#allocation2 + $0x68] sm:$0xff] %vm270_vm0, %v257_v32  ;;  %v458_v37 = vadd.f32 %v432_v34, %v301_v33  ;;  %v869_v34 = vld [vmem:[#allocation7 + $0x158] sm:$0xff] }
  0xef   :  { %987 = vmatpush.msra.mxu2 %v869_v34  ;;  %v496_v35 = vld [vmem:[#allocation2 + $0x48] sm:$0xff] }
  0xf0   :  { %478 = vst.msk [vmem:[#allocation2 + $0x58] sm:$0xff] %vm270_vm0, %v458_v37 }
  0xf1   :  { %988 = vmatpush.msra.mxu2 %v866_v38  ;;  %v839_v38 = vld [vmem:[#allocation7 + $0x68] sm:$0xff] }
  0xf3   :  { %989 = vmatpush.msra.mxu2 %v863_v44 }
  0xf4   :  { %v6827_v46 = vpop.f32.mrf.mxu0 }
  0xf5   :  { %v260_v47 = vpop.f32.mrf.mxu1  ;;  %v303_v48 = vld [vmem:[#allocation2 + $0x68] sm:$0xff]  ;;  %v435_v51 = vpop.f32.mrf.mxu3  ;;  %990 = vmatpush.msra.mxu2 %v860_v50 }
  0xf6   :  { %285 = vst.msk [vmem:[#allocation2 + $0x78] sm:$0xff] %vm270_vm0, %v260_v47  ;;  %v460_v52 = vadd.f32 %v435_v51, %v303_v48  ;;  %v1253_v47 = vld [vmem:[#allocation7 + $0x2d8] sm:$0xff] }
  0xf7   :  { %1379 = vmatpush.msrb.mxu0 %v1253_v47  ;;  %991 = vmatpush.msra.mxu2 %v857_v61  ;;  %v836_v47 = vld [vmem:[#allocation7 + $0x50] sm:$0xff]  ;;  %v498_v61 = vld [vmem:[#allocation2 + $0x58] sm:$0xff] }
  0xf8   :  { %480 = vst.msk [vmem:[#allocation2 + $0x68] sm:$0xff] %vm270_vm0, %v460_v52  ;;  %v382_v52 = vpop.f32.mrf.mxu2 }
  0xf9   :  { %1380 = vmatpush.msrb.mxu0 %v1250_v57 }
  0xfb   :  { %1381 = vmatpush.msrb.mxu0 %v1247_v62 }
  0xfc   :  { %v6831_v53 = vpop.f32.mrf.mxu0 }
  0xfd   :  { %v263_v54 = vpop.f32.mrf.mxu1  ;;  %v305_v56 = vld [vmem:[#allocation2 + $0x78] sm:$0xff]  ;;  %v438_v58 = vpop.f32.mrf.mxu3 }
  0xfe   :  { %287 = vst.msk [vmem:[#allocation2 + $0x88] sm:$0xff] %vm270_vm0, %v263_v54  ;;  %v462_v59 = vadd.f32 %v438_v58, %v305_v56 }
 0x100   :  { %482 = vst.msk [vmem:[#allocation2 + $0x78] sm:$0xff] %vm270_vm0, %v462_v59 }
 0x104   :  { %v6835_v0 = vpop.f32.mrf.mxu0 }
 0x105   :  { %v266_v1 = vpop.f32.mrf.mxu1  ;;  %v307_v2 = vld [vmem:[#allocation2 + $0x88] sm:$0xff]  ;;  %v441_v3 = vpop.f32.mrf.mxu3 }
 0x106   :  { %289 = vst.msk [vmem:[#allocation2 + $0x98] sm:$0xff] %vm270_vm0, %v266_v1  ;;  %v464_v4 = vadd.f32 %v441_v3, %v307_v2  ;;  %v854_v2 = vld [vmem:[#allocation7 + $0xe0] sm:$0xff]  ;;  %v1244_v3 = vld [vmem:[#allocation7 + $0x290] sm:$0xff] }
 0x107   :  { %992 = vmatpush.msra.mxu2 %v854_v2  ;;  %1382 = vmatpush.msrb.mxu0 %v1244_v3  ;;  %v1220_v2 = vld [vmem:[#allocation7 + $0x1d0] sm:$0xff] }
 0x108   :  { %484 = vst.msk [vmem:[#allocation2 + $0x88] sm:$0xff] %vm270_vm0, %v464_v4  ;;  %v453_v4 = vadd.f32 %v6846_v21, %v6808_v55 }
 0x10c   :  { %v567_v11 = vpop.f32.mrf.mxu0 }
 0x10d   :  { %v309_v10 = vld [vmem:[#allocation2 + $0x98] sm:$0xff]  ;;  %v614_v13 = vpop.f32.mrf.mxu1  ;;  %v444_v14 = vpop.f32.mrf.mxu3  ;;  %v644_v15 = vadd.f32 %v567_v11, %v447_v8  ;;  %v1241_v11 = vld [vmem:[#allocation7 + $0x278] sm:$0xff] }
 0x10e   :  { %v645_v16 = vadd.f32 %v614_v13, %v488_v12  ;;  %v466_v17 = vadd.f32 %v444_v14, %v309_v10  ;;  %v851_v10 = vld [vmem:[#allocation7 + $0xc8] sm:$0xff]  ;;  %1383 = vmatpush.msrb.mxu0 %v1241_v11  ;;  %v1217_v11 = vld [vmem:[#allocation7 + $0x1b8] sm:$0xff] }
 0x10f   :  { %v710_v19 = vadd.f32 %v6840_v9, %v644_v15  ;;  %v494_v13 = vld [vmem:[#allocation2 + $0x38] sm:$0xff]  ;;  %993 = vmatpush.msra.mxu2 %v851_v10 }
 0x110   :  { %665 = vst.msk [vmem:[#allocation2 + $0x8] sm:$0xff] %vm270_vm0, %v645_v16  ;;  %v848_v16 = vld [vmem:[#allocation7 + $0xb0] sm:$0xff]  ;;  %v827_v10 = vld [vmem:[#allocation7 + $0x8] sm:$0xff] }
 0x111   :  { %486 = vst.msk [vmem:[#allocation2 + $0x98] sm:$0xff] %vm270_vm0, %v466_v17  ;;  %vm730_vm1 = vcmp.ge.f32.partialorder %v710_v19, 0.0  ;;  %v750_v20 = vmul.f32 0.01, %v710_v19  ;;  %v1238_v17 = vld [vmem:[#allocation7 + $0x260] sm:$0xff]  ;;  %994 = vmatpush.msra.mxu2 %v848_v16 }
 0x112   :  { %1384 = vmatpush.msrb.mxu0 %v1238_v17 }
 0x113   :  { %v6850_v23 = vsel %vm730_vm1, %v710_v19, %v750_v20  ;;  %v385_v20 = vpop.f32.mrf.mxu2 }
 0x114   :  { %v570_v24 = vpop.f32.mrf.mxu0  ;;  %920 = vmatmul.f32.vlgmr.msrb.gmra.mxu2 %v6850_v23  ;;  %1084 = vmatmul.f32.vlgmr.msra.gmra.mxu0 %v6850_v23 }
 0x115   :  { %v617_v26 = vpop.f32.mrf.mxu1  ;;  %v646_v27 = vadd.f32 %v570_v24, %v449_v43  ;;  %v845_v24 = vld [vmem:[#allocation7 + $0x98] sm:$0xff] }
 0x116   :  { %v647_v28 = vadd.f32 %v617_v26, %v490_v25  ;;  %v1235_v25 = vld [vmem:[#allocation7 + $0x248] sm:$0xff]  ;;  %995 = vmatpush.msra.mxu2 %v845_v24 }
 0x117   :  { %v685_v32 = vld [vmem:[#allocation2 + $0x8] sm:$0xff]  ;;  %v712_v33 = vadd.f32 %v6840_v9, %v646_v27  ;;  %1385 = vmatpush.msrb.mxu0 %v1235_v25 }
 0x118   :  { %v711_v45 = vadd.f32 %v6848_v22, %v685_v32  ;;  %667 = vst.msk [vmem:[#allocation2 + $0x18] sm:$0xff] %vm270_vm0, %v647_v28  ;;  %v455_v28 = vadd.f32 %v382_v52, %v6815_v5 }
 0x119   :  { %vm732_vm3 = vcmp.ge.f32.partialorder %v712_v33, 0.0  ;;  %v752_v37 = vmul.f32 0.01, %v712_v33 }
 0x11a   :  { %vm731_vm2 = vcmp.ge.f32.partialorder %v711_v45, 0.0  ;;  %v751_v36 = vmul.f32 0.01, %v711_v45 }
 0x11b   :  { %v6858_v42 = vsel %vm732_vm3, %v712_v33, %v752_v37  ;;  %v1232_v33 = vld [vmem:[#allocation7 + $0x230] sm:$0xff] }
 0x11c   :  { %v771_v41 = vsel %vm731_vm2, %v711_v45, %v751_v36  ;;  %v573_v48 = vpop.f32.mrf.mxu0  ;;  %923 = vmatmul.f32.gmra.mxu2 %v6858_v42  ;;  %1087 = vmatmul.f32.gmra.mxu0 %v6858_v42  ;;  %v842_v45 = vld [vmem:[#allocation7 + $0x80] sm:$0xff] }
 0x11d   :  { %791 = vst.msk [vmem:[#allocation2 + $0x8] sm:$0xff] %vm270_vm0, %v771_v41  ;;  %v620_v51 = vpop.f32.mrf.mxu1  ;;  %v648_v54 = vadd.f32 %v573_v48, %v451_v40  ;;  %996 = vmatpush.msra.mxu2 %v842_v45  ;;  %1386 = vmatpush.msrb.mxu0 %v1232_v33  ;;  %v1226_v48 = vld [vmem:[#allocation7 + $0x200] sm:$0xff]  ;;  %v1268_v45 = vld [vmem:[#allocation7 + $0x350] sm:$0xff] }
 0x11e   :  { %v649_v56 = vadd.f32 %v620_v51, %v492_v49  ;;  %v388_v49 = vpop.f32.mrf.mxu2  ;;  %1431 = vmatpush.msrb.mxu1 %v1268_v45 }
 0x11f   :  { %v687_v58 = vld [vmem:[#allocation2 + $0x18] sm:$0xff]  ;;  %v714_v60 = vadd.f32 %v6840_v9, %v648_v54  ;;  %997 = vmatpush.msra.mxu2 %v839_v38  ;;  %1387 = vmatpush.msrb.mxu0 %v1229_v39  ;;  %v457_v54 = vadd.f32 %v385_v20, %v6819_v18  ;;  %v500_v20 = vld [vmem:[#allocation2 + $0x68] sm:$0xff] }
 0x120   :  { %v713_v59 = vadd.f32 %v6848_v22, %v687_v58  ;;  %669 = vst.msk [vmem:[#allocation2 + $0x28] sm:$0xff] %vm270_vm0, %v649_v56  ;;  %v833_v58 = vld [vmem:[#allocation7 + $0x38] sm:$0xff]  ;;  %v502_v39 = vld [vmem:[#allocation2 + $0x78] sm:$0xff] }
 0x121   :  { %vm734_vm5 = vcmp.ge.f32.partialorder %v714_v60, 0.0  ;;  %v754_v1 = vmul.f32 0.01, %v714_v60  ;;  %998 = vmatpush.msra.mxu2 %v836_v47  ;;  %1388 = vmatpush.msrb.mxu0 %v1226_v48 }
 0x122   :  { %vm733_vm4 = vcmp.ge.f32.partialorder %v713_v59, 0.0  ;;  %v753_v63 = vmul.f32 0.01, %v713_v59 }
 0x123   :  { %v6868_v7 = vsel %vm734_vm5, %v714_v60, %v754_v1  ;;  %v830_v1 = vld [vmem:[#allocation7 + $0x20] sm:$0xff]  ;;  %999 = vmatpush.msra.mxu2 %v833_v58 }
 0x124   :  { %v773_v6 = vsel %vm733_vm4, %v713_v59, %v753_v63  ;;  %v6870_v8 = vld [vmem:[#allocation2 + $0x8] sm:$0xff]  ;;  %v576_v12 = vpop.f32.mrf.mxu0  ;;  %794 = vst [vmem:[#allocation2 + $0x20] sm:$0xff] %v6868_v7  ;;  %926 = vmatmul.f32.gmra.mxu2 %v6868_v7  ;;  %1090 = vmatmul.f32.gmra.mxu0 %v6868_v7  ;;  %v1223_v59 = vld [vmem:[#allocation7 + $0x1e8] sm:$0xff] }
 0x125   :  { %793 = vst.msk [vmem:[#allocation2 + $0x18] sm:$0xff] %vm270_vm0, %v773_v6  ;;  %v623_v14 = vpop.f32.mrf.mxu1  ;;  %5948 = vmatmul.msk.f32.vlgmr.msrb.gmra.mxu3 %vm270_vm0, %v6870_v8  ;;  %5964 = vmatmul.msk.f32.vlgmr.msra.gmra.mxu1 %vm270_vm0, %v6870_v8  ;;  %v650_v55 = vadd.f32 %v576_v12, %v453_v4 }
 0x126   :  { %v651_v15 = vadd.f32 %v623_v14, %v494_v13  ;;  %1389 = vmatpush.msrb.mxu0 %v1223_v59  ;;  %1000 = vmatpush.msra.mxu2 %v830_v1  ;;  %v459_v14 = vadd.f32 %v388_v49, %v6823_v31 }
 0x127   :  { %v689_v19 = vld [vmem:[#allocation2 + $0x28] sm:$0xff]  ;;  %v716_v21 = vadd.f32 %v6840_v9, %v650_v55  ;;  %v391_v55 = vpop.f32.mrf.mxu2 }
 0x128   :  { %v715_v43 = vadd.f32 %v6848_v22, %v689_v19  ;;  %671 = vst.msk [vmem:[#allocation2 + $0x38] sm:$0xff] %vm270_vm0, %v651_v15  ;;  %1390 = vmatpush.msrb.mxu0 %v1220_v2  ;;  %1001 = vmatpush.msra.mxu2 %v827_v10  ;;  %v461_v33 = vadd.f32 %v391_v55, %v6827_v46  ;;  %v506_v55 = vld [vmem:[#allocation2 + $0x98] sm:$0xff] }
 0x129   :  { %vm736_vm7 = vcmp.ge.f32.partialorder %v716_v21, 0.0  ;;  %v756_v27 = vmul.f32 0.01, %v716_v21 }
 0x12a   :  { %vm735_vm6 = vcmp.ge.f32.partialorder %v715_v43, 0.0  ;;  %v755_v26 = vmul.f32 0.01, %v715_v43  ;;  %1391 = vmatpush.msrb.mxu0 %v1217_v11 }
 0x12b   :  { %v6884_v30 = vsel %vm736_vm7, %v716_v21, %v756_v27 }
 0x12c   :  { %v775_v29 = vsel %vm735_vm6, %v715_v43, %v755_v26  ;;  %v6886_v32 = vld [vmem:[#allocation2 + $0x18] sm:$0xff]  ;;  %v579_v34 = vpop.f32.mrf.mxu0  ;;  %796 = vst [vmem:[#allocation2 + $0x30] sm:$0xff] %v6884_v30  ;;  %929 = vmatmul.f32.gmra.mxu2 %v6884_v30  ;;  %1093 = vmatmul.f32.gmra.mxu0 %v6884_v30  ;;  %vm1152_vm6 = vcmask 261120  }
 0x12d   :  { %795 = vst.msk [vmem:[#allocation2 + $0x28] sm:$0xff] %vm270_vm0, %v775_v29  ;;  %v626_v36 = vpop.f32.mrf.mxu1  ;;  %5949 = vmatmul.msk.f32.gmra.mxu3 %vm270_vm0, %v6886_v32  ;;  %5965 = vmatmul.msk.f32.gmra.mxu1 %vm270_vm0, %v6886_v32  ;;  %v652_v5 = vadd.f32 %v579_v34, %v455_v28  ;;  %v878_v29 = vld [vmem:[#allocation7 + $0x1a0] sm:$0xff] }
 0x12e   :  { %v653_v37 = vadd.f32 %v626_v36, %v496_v35  ;;  %1041 = vmatpush.msra.mxu3 %v878_v29  ;;  %v1668_v29 = vld [vmem:[#allocation7 + $0x498] sm:$0xff] }
 0x12f   :  { %v691_v40 = vld [vmem:[#allocation2 + $0x38] sm:$0xff]  ;;  %v718_v44 = vadd.f32 %v6840_v9, %v652_v5 }
 0x130   :  { %v717_v41 = vadd.f32 %v6848_v22, %v691_v40  ;;  %673 = vst.msk [vmem:[#allocation2 + $0x48] sm:$0xff] %vm270_vm0, %v653_v37  ;;  %v875_v5 = vld [vmem:[#allocation7 + $0x188] sm:$0xff]  ;;  %v1265_v37 = vld [vmem:[#allocation7 + $0x338] sm:$0xff] }
 0x131   :  { %vm738_vm9 = vcmp.ge.f32.partialorder %v718_v44, 0.0  ;;  %v758_v52 = vmul.f32 0.01, %v718_v44  ;;  %1042 = vmatpush.msra.mxu3 %v875_v5  ;;  %1432 = vmatpush.msrb.mxu1 %v1265_v37  ;;  %v1665_v5 = vld [vmem:[#allocation7 + $0x480] sm:$0xff]  ;;  %v1249_v37 = vld [vmem:[#allocation7 + $0x2b8] sm:$0xff] }
 0x132   :  { %vm737_vm8 = vcmp.ge.f32.partialorder %v717_v41, 0.0  ;;  %v757_v51 = vmul.f32 0.01, %v717_v41 }
 0x133   :  { %v6900_v50 = vsel %vm738_vm9, %v718_v44, %v758_v52  ;;  %v394_v44 = vpop.f32.mrf.mxu2 }
 0x134   :  { %v777_v56 = vsel %vm737_vm8, %v717_v41, %v757_v51  ;;  %v6902_v57 = vld [vmem:[#allocation2 + $0x28] sm:$0xff]  ;;  %v582_v60 = vpop.f32.mrf.mxu0  ;;  %798 = vst [vmem:[#allocation2 + $0x40] sm:$0xff] %v6900_v50  ;;  %932 = vmatmul.f32.gmra.mxu2 %v6900_v50  ;;  %1096 = vmatmul.f32.gmra.mxu0 %v6900_v50 }
 0x135   :  { %797 = vst.msk [vmem:[#allocation2 + $0x38] sm:$0xff] %vm270_vm0, %v777_v56  ;;  %v629_v62 = vpop.f32.mrf.mxu1  ;;  %5950 = vmatmul.msk.f32.gmra.mxu3 %vm270_vm0, %v6902_v57  ;;  %5966 = vmatmul.msk.f32.gmra.mxu1 %vm270_vm0, %v6902_v57  ;;  %v654_v18 = vadd.f32 %v582_v60, %v457_v54  ;;  %v463_v54 = vadd.f32 %v394_v44, %v6831_v53 }
 0x136   :  { %v655_v63 = vadd.f32 %v629_v62, %v498_v61  ;;  %v504_v61 = vld [vmem:[#allocation2 + $0x88] sm:$0xff] }
 0x137   :  { %v693_v3 = vld [vmem:[#allocation2 + $0x48] sm:$0xff]  ;;  %v720_v6 = vadd.f32 %v6840_v9, %v654_v18 }
 0x138   :  { %v719_v4 = vadd.f32 %v6848_v22, %v693_v3  ;;  %675 = vst.msk [vmem:[#allocation2 + $0x58] sm:$0xff] %vm270_vm0, %v655_v63 }
 0x139   :  { %vm740_vm11 = vcmp.ge.f32.partialorder %v720_v6, 0.0  ;;  %v760_v13 = vmul.f32 0.01, %v720_v6 }
 0x13a   :  { %vm739_vm10 = vcmp.ge.f32.partialorder %v719_v4, 0.0  ;;  %v759_v12 = vmul.f32 0.01, %v719_v4 }
 0x13b   :  { %v6916_v16 = vsel %vm740_vm11, %v720_v6, %v760_v13  ;;  %v397_v3 = vpop.f32.mrf.mxu2 }
 0x13c   :  { %v779_v15 = vsel %vm739_vm10, %v719_v4, %v759_v12  ;;  %v6918_v17 = vld [vmem:[#allocation2 + $0x38] sm:$0xff]  ;;  %v585_v19 = vpop.f32.mrf.mxu0  ;;  %800 = vst [vmem:[#allocation2 + $0x50] sm:$0xff] %v6916_v16  ;;  %935 = vmatmul.f32.gmra.mxu2 %v6916_v16  ;;  %1099 = vmatmul.f32.gmra.mxu0 %v6916_v16  ;;  %v465_v10 = vadd.f32 %v397_v3, %v6835_v0 }
 0x13d   :  { %799 = vst.msk [vmem:[#allocation2 + $0x48] sm:$0xff] %vm270_vm0, %v779_v15  ;;  %v632_v43 = vpop.f32.mrf.mxu1  ;;  %5951 = vmatmul.msk.f32.gmra.mxu3 %vm270_vm0, %v6918_v17  ;;  %5967 = vmatmul.msk.f32.gmra.mxu1 %vm270_vm0, %v6918_v17  ;;  %v656_v31 = vadd.f32 %v585_v19, %v459_v14  ;;  %v1219_v3 = vld [vmem:[#allocation7 + $0x1c8] sm:$0xff] }
 0x13e   :  { %v657_v21 = vadd.f32 %v632_v43, %v500_v20  ;;  %v1261_v20 = vld [vmem:[#allocation7 + $0x318] sm:$0xff]  ;;  %v1674_v43 = vld [vmem:[#allocation7 + $0x4c8] sm:$0xff] }
 0x13f   :  { %v695_v24 = vld [vmem:[#allocation2 + $0x58] sm:$0xff]  ;;  %v722_v26 = vadd.f32 %v6840_v9, %v656_v31  ;;  %1294 = vmatpush.msrb.mxu2 %v1261_v20  ;;  %1707 = vmatpush.msra.mxu0 %v1674_v43  ;;  %v1676_v20 = vld [vmem:[#allocation7 + $0x4d8] sm:$0xff] }
 0x140   :  { %v721_v25 = vadd.f32 %v6848_v22, %v695_v24  ;;  %677 = vst.msk [vmem:[#allocation2 + $0x68] sm:$0xff] %vm270_vm0, %v657_v21 }
 0x141   :  { %vm742_vm13 = vcmp.ge.f32.partialorder %v722_v26, 0.0  ;;  %v762_v28 = vmul.f32 0.01, %v722_v26 }
 0x142   :  { %vm741_vm12 = vcmp.ge.f32.partialorder %v721_v25, 0.0  ;;  %v761_v27 = vmul.f32 0.01, %v721_v25 }
 0x143   :  { %v6932_v35 = vsel %vm742_vm13, %v722_v26, %v762_v28  ;;  %v1671_v26 = vld [vmem:[#allocation7 + $0x4b0] sm:$0xff]  ;;  %v1255_v28 = vld [vmem:[#allocation7 + $0x2e8] sm:$0xff] }
 0x144   :  { %v781_v34 = vsel %vm741_vm12, %v721_v25, %v761_v27  ;;  %v6934_v36 = vld [vmem:[#allocation2 + $0x48] sm:$0xff]  ;;  %v588_v38 = vpop.f32.mrf.mxu0  ;;  %802 = vst [vmem:[#allocation2 + $0x60] sm:$0xff] %v6932_v35  ;;  %938 = vmatmul.f32.gmra.mxu2 %v6932_v35  ;;  %1102 = vmatmul.f32.gmra.mxu0 %v6932_v35  ;;  %v1258_v25 = vld [vmem:[#allocation7 + $0x300] sm:$0xff] }
 0x145   :  { %801 = vst.msk [vmem:[#allocation2 + $0x58] sm:$0xff] %vm270_vm0, %v781_v34  ;;  %v635_v40 = vpop.f32.mrf.mxu1  ;;  %5952 = vmatmul.msk.f32.gmra.mxu3 %vm270_vm0, %v6934_v36  ;;  %5968 = vmatmul.msk.f32.gmra.mxu1 %vm270_vm0, %v6934_v36  ;;  %v658_v46 = vadd.f32 %v588_v38, %v461_v33  ;;  %v1662_v38 = vld [vmem:[#allocation7 + $0x468] sm:$0xff] }
 0x146   :  { %v659_v41 = vadd.f32 %v635_v40, %v502_v39  ;;  %1295 = vmatpush.msrb.mxu2 %v1258_v25  ;;  %1708 = vmatpush.msra.mxu0 %v1671_v26  ;;  %v1257_v25 = vld [vmem:[#allocation7 + $0x2f8] sm:$0xff]  ;;  %v1670_v26 = vld [vmem:[#allocation7 + $0x4a8] sm:$0xff] }
 0x147   :  { %v697_v47 = vld [vmem:[#allocation2 + $0x68] sm:$0xff]  ;;  %v724_v49 = vadd.f32 %v6840_v9, %v658_v46  ;;  %v1246_v46 = vld [vmem:[#allocation7 + $0x2a0] sm:$0xff] }
 0x148   :  { %v723_v48 = vadd.f32 %v6848_v22, %v697_v47  ;;  %679 = vst.msk [vmem:[#allocation2 + $0x78] sm:$0xff] %vm270_vm0, %v659_v41  ;;  %1296 = vmatpush.msrb.mxu2 %v1255_v28  ;;  %1709 = vmatpush.msra.mxu0 %v1668_v29  ;;  %v1659_v41 = vld [vmem:[#allocation7 + $0x450] sm:$0xff]  ;;  %v1251_v29 = vld [vmem:[#allocation7 + $0x2c8] sm:$0xff] }
 0x149   :  { %vm744_vm15 = vcmp.ge.f32.partialorder %v724_v49, 0.0  ;;  %v764_v52 = vmul.f32 0.01, %v724_v49  ;;  %v1667_v28 = vld [vmem:[#allocation7 + $0x490] sm:$0xff] }
 0x14a   :  { %vm743_vm14 = vcmp.ge.f32.partialorder %v723_v48, 0.0  ;;  %v763_v51 = vmul.f32 0.01, %v723_v48  ;;  %1710 = vmatpush.msra.mxu0 %v1665_v5  ;;  %v1248_v5 = vld [vmem:[#allocation7 + $0x2b0] sm:$0xff] }
 0x14b   :  { %v6948_v58 = vsel %vm744_vm15, %v724_v49, %v764_v52  ;;  %v1656_v49 = vld [vmem:[#allocation7 + $0x438] sm:$0xff] }
 0x14c   :  { %v783_v56 = vsel %vm743_vm14, %v723_v48, %v763_v51  ;;  %v6950_v59 = vld [vmem:[#allocation2 + $0x58] sm:$0xff]  ;;  %v591_v60 = vpop.f32.mrf.mxu0  ;;  %804 = vst [vmem:[#allocation2 + $0x70] sm:$0xff] %v6948_v58  ;;  %941 = vmatmul.f32.gmra.mxu2 %v6948_v58  ;;  %1105 = vmatmul.f32.gmra.mxu0 %v6948_v58  ;;  %v1237_v52 = vld [vmem:[#allocation7 + $0x258] sm:$0xff] }
 0x14d   :  { %803 = vst.msk [vmem:[#allocation2 + $0x68] sm:$0xff] %vm270_vm0, %v783_v56  ;;  %v638_v62 = vpop.f32.mrf.mxu1  ;;  %5953 = vmatmul.msk.f32.gmra.mxu3 %vm270_vm0, %v6950_v59  ;;  %5969 = vmatmul.msk.f32.gmra.mxu1 %vm270_vm0, %v6950_v59  ;;  %v660_v18 = vadd.f32 %v591_v60, %v463_v54  ;;  %v1243_v48 = vld [vmem:[#allocation7 + $0x288] sm:$0xff]  ;;  %v1653_v51 = vld [vmem:[#allocation7 + $0x420] sm:$0xff]  ;;  %v1647_v60 = vld [vmem:[#allocation7 + $0x3f0] sm:$0xff] }
 0x14e   :  { %v661_v53 = vadd.f32 %v638_v62, %v504_v61  ;;  %1711 = vmatpush.msra.mxu0 %v1662_v38  ;;  %v1650_v54 = vld [vmem:[#allocation7 + $0x408] sm:$0xff]  ;;  %v1234_v56 = vld [vmem:[#allocation7 + $0x240] sm:$0xff]  ;;  %v1644_v61 = vld [vmem:[#allocation7 + $0x3d8] sm:$0xff] }
 0x14f   :  { %v699_v63 = vld [vmem:[#allocation2 + $0x78] sm:$0xff]  ;;  %v726_v2 = vadd.f32 %v6840_v9, %v660_v18  ;;  %v1228_v62 = vld [vmem:[#allocation7 + $0x210] sm:$0xff] }
 0x150   :  { %v725_v1 = vadd.f32 %v6848_v22, %v699_v63  ;;  %681 = vst.msk [vmem:[#allocation2 + $0x88] sm:$0xff] %vm270_vm0, %v661_v53  ;;  %1712 = vmatpush.msra.mxu0 %v1659_v41  ;;  %v1641_v18 = vld [vmem:[#allocation7 + $0x3c0] sm:$0xff]  ;;  %v1225_v53 = vld [vmem:[#allocation7 + $0x1f8] sm:$0xff]  ;;  %v1638_v63 = vld [vmem:[#allocation7 + $0x3a8] sm:$0xff] }
 0x151   :  { %vm746_vm2 = vcmp.ge.f32.partialorder %v726_v2, 0.0  ;;  %v766_v6 = vmul.f32 0.01, %v726_v2  ;;  %v1658_v41 = vld [vmem:[#allocation7 + $0x448] sm:$0xff] }
 0x152   :  { %vm745_vm1 = vcmp.ge.f32.partialorder %v725_v1, 0.0  ;;  %v765_v4 = vmul.f32 0.01, %v725_v1  ;;  %1713 = vmatpush.msra.mxu0 %v1656_v49  ;;  %v1239_v49 = vld [vmem:[#allocation7 + $0x268] sm:$0xff] }
 0x153   :  { %v6964_v12 = vsel %vm746_vm2, %v726_v2, %v766_v6  ;;  %v1635_v2 = vld [vmem:[#allocation7 + $0x390] sm:$0xff] }
 0x154   :  { %v785_v11 = vsel %vm745_vm1, %v725_v1, %v765_v4  ;;  %v6966_v13 = vld [vmem:[#allocation2 + $0x68] sm:$0xff]  ;;  %v594_v14 = vpop.f32.mrf.mxu0  ;;  %806 = vst [vmem:[#allocation2 + $0x80] sm:$0xff] %v6964_v12  ;;  %1002 = vmatmul.f32.vlgmr.msra.gmra.mxu2 %v6850_v23  ;;  %1392 = vmatmul.f32.vlgmr.msrb.gmra.mxu0 %v6858_v42  ;;  %v1222_v1 = vld [vmem:[#allocation7 + $0x1e0] sm:$0xff] }
 0x155   :  { %805 = vst.msk [vmem:[#allocation2 + $0x78] sm:$0xff] %vm270_vm0, %v785_v11  ;;  %v641_v15 = vpop.f32.mrf.mxu1  ;;  %5954 = vmatmul.msk.f32.gmra.mxu3 %vm270_vm0, %v6966_v13  ;;  %5970 = vmatmul.msk.f32.gmra.mxu1 %vm270_vm0, %v6966_v13  ;;  %v662_v19 = vadd.f32 %v594_v14, %v465_v10  ;;  %v1632_v4 = vld [vmem:[#allocation7 + $0x378] sm:$0xff]  ;;  %v1216_v6 = vld [vmem:[#allocation7 + $0x1b0] sm:$0xff]  ;;  %v1267_v10 = vld [vmem:[#allocation7 + $0x348] sm:$0xff] }
 0x156   :  { %v663_v0 = vadd.f32 %v641_v15, %v506_v55  ;;  %1714 = vmatpush.msra.mxu0 %v1653_v51  ;;  %v1629_v11 = vld [vmem:[#allocation7 + $0x360] sm:$0xff]  ;;  %1349 = vmatpush.msrb.mxu3 %v1267_v10  ;;  %v1680_v14 = vld [vmem:[#allocation7 + $0x4f8] sm:$0xff]  ;;  %v1264_v55 = vld [vmem:[#allocation7 + $0x330] sm:$0xff] }
 0x157   :  { %v701_v31 = vld [vmem:[#allocation2 + $0x88] sm:$0xff]  ;;  %v728_v24 = vadd.f32 %v6840_v9, %v662_v19  ;;  %1762 = vmatpush.msra.mxu1 %v1680_v14  ;;  %v1677_v15 = vld [vmem:[#allocation7 + $0x4e0] sm:$0xff] }
 0x158   :  { %v727_v21 = vadd.f32 %v6848_v22, %v701_v31  ;;  %683 = vst.msk [vmem:[#allocation2 + $0x98] sm:$0xff] %vm270_vm0, %v663_v0  ;;  %v1252_v9 = vld [vmem:[#allocation7 + $0x2d0] sm:$0xff]  ;;  %1715 = vmatpush.msra.mxu0 %v1650_v54  ;;  %1350 = vmatpush.msrb.mxu3 %v1264_v55  ;;  %v1263_v0 = vld [vmem:[#allocation7 + $0x328] sm:$0xff]  ;;  %v1640_v14 = vld [vmem:[#allocation7 + $0x3b8] sm:$0xff] }
 0x159   :  { %vm748_vm4 = vcmp.ge.f32.partialorder %v728_v24, 0.0  ;;  %v768_v23 = vmul.f32 0.01, %v728_v24  ;;  %1297 = vmatpush.msrb.mxu2 %v1252_v9  ;;  %1763 = vmatpush.msra.mxu1 %v1677_v15  ;;  %v1260_v31 = vld [vmem:[#allocation7 + $0x310] sm:$0xff]  ;;  %v1637_v15 = vld [vmem:[#allocation7 + $0x3a0] sm:$0xff] }
 0x15a   :  { %vm747_vm3 = vcmp.ge.f32.partialorder %v727_v21, 0.0  ;;  %v767_v27 = vmul.f32 0.01, %v727_v21  ;;  %1716 = vmatpush.msra.mxu0 %v1647_v60  ;;  %v1224_v55 = vld [vmem:[#allocation7 + $0x1f0] sm:$0xff] }
 0x15b   :  { %v6979_v33 = vsel %vm748_vm4, %v728_v24, %v768_v23  ;;  %1298 = vmatpush.msrb.mxu2 %v1249_v37  ;;  %v1254_v23 = vld [vmem:[#allocation7 + $0x2e0] sm:$0xff] }
 0x15c   :  { %v787_v45 = vsel %vm747_vm3, %v727_v21, %v767_v27  ;;  %v6981_v34 = vld [vmem:[#allocation2 + $0x78] sm:$0xff]  ;;  %808 = vst [vmem:[#allocation2 + $0x90] sm:$0xff] %v6979_v33  ;;  %1005 = vmatmul.f32.gmra.mxu2 %v6858_v42  ;;  %1395 = vmatmul.f32.gmra.mxu0 %v6868_v7 }
 0x15d   :  { %807 = vst.msk [vmem:[#allocation2 + $0x88] sm:$0xff] %vm270_vm0, %v787_v45  ;;  %5955 = vmatmul.msk.f32.gmra.mxu3 %vm270_vm0, %v6981_v34  ;;  %5971 = vmatmul.msk.f32.gmra.mxu1 %vm270_vm0, %v6981_v34  ;;  %v1673_v21 = vld [vmem:[#allocation7 + $0x4c0] sm:$0xff]  ;;  %v1664_v45 = vld [vmem:[#allocation7 + $0x478] sm:$0xff] }
 0x15e   :  { %1299 = vmatpush.msrb.mxu2 %v1246_v46  ;;  %1717 = vmatpush.msra.mxu0 %v1644_v61  ;;  %v1661_v37 = vld [vmem:[#allocation7 + $0x460] sm:$0xff]  ;;  %v1245_v46 = vld [vmem:[#allocation7 + $0x298] sm:$0xff] }
 0x15f   :  { %v703_v39 = vld [vmem:[#allocation2 + $0x98] sm:$0xff] }
 0x160   :  { %v729_v40 = vadd.f32 %v6848_v22, %v703_v39  ;;  %v1240_v22 = vld [vmem:[#allocation7 + $0x270] sm:$0xff]  ;;  %1300 = vmatpush.msrb.mxu2 %v1243_v48  ;;  %1718 = vmatpush.msra.mxu0 %v1641_v18  ;;  %v1649_v61 = vld [vmem:[#allocation7 + $0x400] sm:$0xff]  ;;  %v1646_v18 = vld [vmem:[#allocation7 + $0x3e8] sm:$0xff] }
 0x162   :  { %vm749_vm5 = vcmp.ge.f32.partialorder %v729_v40, 0.0  ;;  %v769_v44 = vmul.f32 0.01, %v729_v40  ;;  %1301 = vmatpush.msrb.mxu2 %v1240_v22  ;;  %1719 = vmatpush.msra.mxu0 %v1638_v63  ;;  %v1652_v22 = vld [vmem:[#allocation7 + $0x418] sm:$0xff]  ;;  %v1230_v63 = vld [vmem:[#allocation7 + $0x220] sm:$0xff] }
 0x164   :  { %v789_v47 = vsel %vm749_vm5, %v729_v40, %v769_v44  ;;  %1008 = vmatmul.f32.gmra.mxu2 %v6868_v7  ;;  %1398 = vmatmul.f32.gmra.mxu0 %v6884_v30  ;;  %v7035_v27 = vld [vmem:[#allocation2 + $0x88] sm:$0xff]  ;;  %v1242_v44 = vld [vmem:[#allocation7 + $0x280] sm:$0xff] }
 0x165   :  { %809 = vst.msk [vmem:[#allocation2 + $0x98] sm:$0xff] %vm270_vm0, %v789_v47  ;;  %5956 = vmatmul.msk.f32.vlgmr.msra.gmra.mxu3 %vm270_vm0, %v6870_v8  ;;  %5980 = vmatmul.msk.f32.vlgmr.msrb.gmra.mxu1 %vm270_vm0, %v6886_v32  ;;  %v1231_v8 = vld [vmem:[#allocation7 + $0x228] sm:$0xff]  ;;  %v1655_v47 = vld [vmem:[#allocation7 + $0x430] sm:$0xff] }
 0x166   :  { %1302 = vmatpush.msrb.mxu2 %v1237_v52  ;;  %1720 = vmatpush.msra.mxu0 %v1635_v2 }
 0x168   :  { %1303 = vmatpush.msrb.mxu2 %v1234_v56  ;;  %1721 = vmatpush.msra.mxu0 %v1632_v4 }
 0x16a   :  { %1304 = vmatpush.msrb.mxu2 %v1231_v8  ;;  %1722 = vmatpush.msra.mxu0 %v1629_v11  ;;  %v1236_v8 = vld [vmem:[#allocation7 + $0x250] sm:$0xff]  ;;  %v1227_v11 = vld [vmem:[#allocation7 + $0x208] sm:$0xff] }
 0x16c   :  { %1011 = vmatmul.f32.gmra.mxu2 %v6884_v30  ;;  %1401 = vmatmul.f32.gmra.mxu0 %v6900_v50 }
 0x16d   :  { %5957 = vmatmul.msk.f32.gmra.mxu3 %vm270_vm0, %v6886_v32  ;;  %5981 = vmatmul.msk.f32.gmra.mxu1 %vm270_vm0, %v6902_v57 }
 0x16e   :  { %1305 = vmatpush.msrb.mxu2 %v1228_v62  ;;  %1871 = vmatpush.msrb.mxu0 %v1676_v20  ;;  %v1233_v62 = vld [vmem:[#allocation7 + $0x238] sm:$0xff]  ;;  %v1634_v20 = vld [vmem:[#allocation7 + $0x388] sm:$0xff] }
 0x170   :  { %1306 = vmatpush.msrb.mxu2 %v1225_v53  ;;  %1872 = vmatpush.msrb.mxu0 %v1673_v21 }
 0x172   :  { %1307 = vmatpush.msrb.mxu2 %v1222_v1  ;;  %1873 = vmatpush.msrb.mxu0 %v1670_v26  ;;  %v1643_v1 = vld [vmem:[#allocation7 + $0x3d0] sm:$0xff]  ;;  %v1218_v26 = vld [vmem:[#allocation7 + $0x1c0] sm:$0xff] }
 0x174   :  { %1014 = vmatmul.f32.gmra.mxu2 %v6900_v50  ;;  %1404 = vmatmul.f32.gmra.mxu0 %v6916_v16 }
 0x175   :  { %5958 = vmatmul.msk.f32.gmra.mxu3 %vm270_vm0, %v6902_v57  ;;  %5982 = vmatmul.msk.f32.gmra.mxu1 %vm270_vm0, %v6918_v17 }
 0x176   :  { %1308 = vmatpush.msrb.mxu2 %v1219_v3  ;;  %1874 = vmatpush.msrb.mxu0 %v1667_v28 }
 0x178   :  { %1309 = vmatpush.msrb.mxu2 %v1216_v6  ;;  %1875 = vmatpush.msrb.mxu0 %v1664_v45 }
 0x17a   :  { %1458 = vmatpush.msra.mxu2 %v1263_v0  ;;  %1876 = vmatpush.msrb.mxu0 %v1661_v37  ;;  %v1221_v0 = vld [vmem:[#allocation7 + $0x1d8] sm:$0xff]  ;;  %v1682_v37 = vld [vmem:[#allocation7 + $0x508] sm:$0xff] }
 0x17b   :  { %1926 = vmatpush.msrb.mxu1 %v1682_v37 }
 0x17c   :  { %1017 = vmatmul.f32.gmra.mxu2 %v6916_v16  ;;  %1407 = vmatmul.f32.gmra.mxu0 %v6932_v35 }
 0x17d   :  { %5959 = vmatmul.msk.f32.gmra.mxu3 %vm270_vm0, %v6918_v17  ;;  %5983 = vmatmul.msk.f32.gmra.mxu1 %vm270_vm0, %v6934_v36 }
 0x17e   :  { %1459 = vmatpush.msra.mxu2 %v1260_v31  ;;  %1877 = vmatpush.msrb.mxu0 %v1658_v41 }
 0x180   :  { %1460 = vmatpush.msra.mxu2 %v1257_v25  ;;  %1878 = vmatpush.msrb.mxu0 %v1655_v47 }
 0x182   :  { %1461 = vmatpush.msra.mxu2 %v1254_v23  ;;  %1879 = vmatpush.msrb.mxu0 %v1652_v22  ;;  %v1631_v23 = vld [vmem:[#allocation7 + $0x370] sm:$0xff] }
 0x184   :  { %1020 = vmatmul.f32.gmra.mxu2 %v6932_v35  ;;  %1410 = vmatmul.f32.gmra.mxu0 %v6948_v58 }
 0x185   :  { %5960 = vmatmul.msk.f32.gmra.mxu3 %vm270_vm0, %v6934_v36  ;;  %5984 = vmatmul.msk.f32.gmra.mxu1 %vm270_vm0, %v6950_v59 }
 0x186   :  { %1462 = vmatpush.msra.mxu2 %v1251_v29  ;;  %1880 = vmatpush.msrb.mxu0 %v1649_v61 }
 0x188   :  { %1463 = vmatpush.msra.mxu2 %v1248_v5  ;;  %1881 = vmatpush.msrb.mxu0 %v1646_v18 }
 0x18a   :  { %1464 = vmatpush.msra.mxu2 %v1245_v46  ;;  %1882 = vmatpush.msrb.mxu0 %v1643_v1  ;;  %v1679_v46 = vld [vmem:[#allocation7 + $0x4f0] sm:$0xff] }
 0x18b   :  { %1927 = vmatpush.msrb.mxu1 %v1679_v46 }
 0x18c   :  { %1023 = vmatmul.f32.gmra.mxu2 %v6948_v58  ;;  %1413 = vmatmul.f32.gmra.mxu0 %v6964_v12 }
 0x18d   :  { %5961 = vmatmul.msk.f32.gmra.mxu3 %vm270_vm0, %v6950_v59  ;;  %5985 = vmatmul.msk.f32.gmra.mxu1 %vm270_vm0, %v6966_v13 }
 0x18e   :  { %1465 = vmatpush.msra.mxu2 %v1242_v44  ;;  %1883 = vmatpush.msrb.mxu0 %v1640_v14  ;;  %v1666_v14 = vld [vmem:[#allocation7 + $0x488] sm:$0xff] }
 0x190   :  { %1466 = vmatpush.msra.mxu2 %v1239_v49  ;;  %1884 = vmatpush.msrb.mxu0 %v1637_v15  ;;  %v1660_v15 = vld [vmem:[#allocation7 + $0x458] sm:$0xff] }
 0x191   :  { %v1085_v19 = vpop.f32.mrf.mxu0 }
 0x192   :  { %1467 = vmatpush.msra.mxu2 %v1236_v8  ;;  %1885 = vmatpush.msrb.mxu0 %v1634_v20 }
 0x194   :  { %1310 = vmatmul.f32.vlgmr.msrb.gmra.mxu2 %v6858_v42  ;;  %1723 = vmatmul.f32.vlgmr.msra.gmra.mxu0 %v6868_v7 }
 0x195   :  { %5962 = vmatmul.msk.f32.gmra.mxu3 %vm270_vm0, %v6966_v13  ;;  %5986 = vmatmul.msk.f32.gmra.mxu1 %vm270_vm0, %v6981_v34 }
 0x196   :  { %1468 = vmatpush.msra.mxu2 %v1233_v62  ;;  %1886 = vmatpush.msrb.mxu0 %v1631_v23  ;;  %v1675_v62 = vld [vmem:[#allocation7 + $0x4d0] sm:$0xff] }
 0x197   :  { %v921_v43 = vpop.f32.mrf.mxu2 }
 0x198   :  { %1469 = vmatpush.msra.mxu2 %v1230_v63 }
 0x199   :  { %v1088_v24 = vpop.f32.mrf.mxu0 }
 0x19a   :  { %1470 = vmatpush.msra.mxu2 %v1227_v11  ;;  %v7106_v11 = vld [vmem:[#allocation2 + $0x98] sm:$0xff] }
 0x19c   :  { %1313 = vmatmul.f32.gmra.mxu2 %v6868_v7  ;;  %1726 = vmatmul.f32.gmra.mxu0 %v6884_v30 }
 0x19d   :  { %5963 = vmatmul.msk.f32.gmra.mxu3 %vm270_vm0, %v6981_v34  ;;  %5987 = vmatmul.msk.f32.gmra.mxu1 %vm270_vm0, %v7035_v27 }
 0x19e   :  { %1471 = vmatpush.msra.mxu2 %v1224_v55 }
 0x19f   :  { %v924_v9 = vpop.f32.mrf.mxu2 }
 0x1a0   :  { %1472 = vmatpush.msra.mxu2 %v1221_v0 }
 0x1a1   :  { %v1091_v40 = vpop.f32.mrf.mxu0 }
 0x1a2   :  { %v1126_v38 = vpop.f32.mrf.mxu1  ;;  %1473 = vmatpush.msra.mxu2 %v1218_v26 }
 0x1a3   :  { %v1127_v39 = vadd.f32 %v1126_v38, %v1085_v19 }
 0x1a4   :  { %1316 = vmatmul.f32.gmra.mxu2 %v6884_v30  ;;  %1729 = vmatmul.f32.gmra.mxu0 %v6900_v50 }
 0x1a5   :  { %1153 = vst.msk [vmem:[#allocation3 + $0x10] sm:$0xff] %vm1152_vm6, %v1127_v39  ;;  %5972 = vmatmul.msk.f32.vlgmr.msrb.gmra.mxu3 %vm270_vm0, %v6886_v32  ;;  %5996 = vmatmul.msk.f32.vlgmr.msra.gmra.mxu1 %vm270_vm0, %v6902_v57 }
 0x1a6   :  { %1789 = vmatpush.msrb.mxu2 %v1675_v62 }
 0x1a7   :  { %v927_v52 = vpop.f32.mrf.mxu2 }
 0x1a8   :  { %v962_v48 = vpop.f32.mrf.mxu3 }
 0x1a9   :  { %v7050_v51 = vadd.f32 %v962_v48, %v921_v43  ;;  %v1094_v60 = vpop.f32.mrf.mxu0 }
 0x1aa   :  { %v1129_v54 = vpop.f32.mrf.mxu1 }
 0x1ab   :  { %v1130_v56 = vadd.f32 %v1129_v54, %v1088_v24 }
 0x1ac   :  { %1319 = vmatmul.f32.gmra.mxu2 %v6900_v50  ;;  %1732 = vmatmul.f32.gmra.mxu0 %v6916_v16 }
 0x1ad   :  { %1156 = vst.msk [vmem:[#allocation3 + $0x28] sm:$0xff] %vm1152_vm6, %v1130_v56  ;;  %5973 = vmatmul.msk.f32.gmra.mxu3 %vm270_vm0, %v6902_v57  ;;  %5997 = vmatmul.msk.f32.gmra.mxu1 %vm270_vm0, %v6918_v17 }
 0x1af   :  { %v930_v3 = vpop.f32.mrf.mxu2 }
 0x1b0   :  { %v965_v53 = vpop.f32.mrf.mxu3 }
 0x1b1   :  { %v7059_v2 = vadd.f32 %v965_v53, %v924_v9  ;;  %v1097_v10 = vpop.f32.mrf.mxu0  ;;  %v1269_v9 = vld [vmem:[#allocation7 + $0x358] sm:$0xff] }
 0x1b2   :  { %v1132_v4 = vpop.f32.mrf.mxu1  ;;  %1513 = vmatpush.msra.mxu3 %v1269_v9  ;;  %v1672_v53 = vld [vmem:[#allocation7 + $0x4b8] sm:$0xff] }
 0x1b3   :  { %v1133_v6 = vadd.f32 %v1132_v4, %v1091_v40  ;;  %v1266_v40 = vld [vmem:[#allocation7 + $0x340] sm:$0xff]  ;;  %1790 = vmatpush.msrb.mxu2 %v1672_v53 }
 0x1b4   :  { %1322 = vmatmul.f32.gmra.mxu2 %v6916_v16  ;;  %1735 = vmatmul.f32.gmra.mxu0 %v6932_v35  ;;  %v1669_v4 = vld [vmem:[#allocation7 + $0x4a0] sm:$0xff] }
 0x1b5   :  { %1159 = vst.msk [vmem:[#allocation3 + $0x40] sm:$0xff] %vm1152_vm6, %v1133_v6  ;;  %5974 = vmatmul.msk.f32.gmra.mxu3 %vm270_vm0, %v6918_v17  ;;  %5998 = vmatmul.msk.f32.gmra.mxu1 %vm270_vm0, %v6934_v36 }
 0x1b6   :  { %1514 = vmatpush.msra.mxu3 %v1266_v40  ;;  %1791 = vmatpush.msrb.mxu2 %v1669_v4 }
 0x1b7   :  { %v933_v31 = vpop.f32.mrf.mxu2 }
 0x1b8   :  { %v968_v19 = vpop.f32.mrf.mxu3  ;;  %1792 = vmatpush.msrb.mxu2 %v1666_v14 }
 0x1b9   :  { %v7068_v43 = vadd.f32 %v968_v19, %v927_v52  ;;  %v1100_v25 = vpop.f32.mrf.mxu0 }
 0x1ba   :  { %v1135_v21 = vpop.f32.mrf.mxu1 }
 0x1bb   :  { %v1136_v24 = vadd.f32 %v1135_v21, %v1094_v60  ;;  %v1657_v21 = vld [vmem:[#allocation7 + $0x440] sm:$0xff] }
 0x1bc   :  { %1325 = vmatmul.f32.gmra.mxu2 %v6932_v35  ;;  %1738 = vmatmul.f32.gmra.mxu0 %v6948_v58 }
 0x1bd   :  { %1162 = vst.msk [vmem:[#allocation3 + $0x58] sm:$0xff] %vm1152_vm6, %v1136_v24  ;;  %5975 = vmatmul.msk.f32.gmra.mxu3 %vm270_vm0, %v6934_v36  ;;  %5999 = vmatmul.msk.f32.gmra.mxu1 %vm270_vm0, %v6950_v59 }
 0x1bf   :  { %v936_v45 = vpop.f32.mrf.mxu2 }
 0x1c0   :  { %v971_v28 = vpop.f32.mrf.mxu3 }
 0x1c1   :  { %v7077_v29 = vadd.f32 %v971_v28, %v930_v3  ;;  %v1103_v39 = vpop.f32.mrf.mxu0 }
 0x1c2   :  { %v1138_v5 = vpop.f32.mrf.mxu1 }
 0x1c3   :  { %v1139_v38 = vadd.f32 %v1138_v5, %v1097_v10 }
 0x1c4   :  { %1328 = vmatmul.f32.gmra.mxu2 %v6948_v58  ;;  %1741 = vmatmul.f32.gmra.mxu0 %v6964_v12 }
 0x1c5   :  { %1165 = vst.msk [vmem:[#allocation3 + $0x70] sm:$0xff] %vm1152_vm6, %v1139_v38  ;;  %5976 = vmatmul.msk.f32.gmra.mxu3 %vm270_vm0, %v6950_v59  ;;  %6000 = vmatmul.msk.f32.gmra.mxu1 %vm270_vm0, %v6966_v13  ;;  %v1642_v38 = vld [vmem:[#allocation7 + $0x3c8] sm:$0xff] }
 0x1c7   :  { %v939_v47 = vpop.f32.mrf.mxu2 }
 0x1c8   :  { %v974_v41 = vpop.f32.mrf.mxu3 }
 0x1c9   :  { %v7086_v44 = vadd.f32 %v974_v41, %v933_v31  ;;  %v1106_v22 = vpop.f32.mrf.mxu0 }
 0x1ca   :  { %v1141_v48 = vpop.f32.mrf.mxu1 }
 0x1cb   :  { %v1142_v49 = vadd.f32 %v1141_v48, %v1100_v25  ;;  %v1651_v25 = vld [vmem:[#allocation7 + $0x410] sm:$0xff] }
 0x1cc   :  { %1331 = vmatmul.f32.gmra.mxu2 %v6964_v12  ;;  %1744 = vmatmul.f32.gmra.mxu0 %v6979_v33 }
 0x1cd   :  { %1168 = vst.msk [vmem:[#allocation3 + $0x88] sm:$0xff] %vm1152_vm6, %v1142_v49  ;;  %5977 = vmatmul.msk.f32.gmra.mxu3 %vm270_vm0, %v6966_v13  ;;  %6001 = vmatmul.msk.f32.gmra.mxu1 %vm270_vm0, %v6981_v34  ;;  %v1636_v49 = vld [vmem:[#allocation7 + $0x398] sm:$0xff] }
 0x1cf   :  { %v942_v56 = vpop.f32.mrf.mxu2 }
 0x1d0   :  { %v977_v52 = vpop.f32.mrf.mxu3 }
 0x1d1   :  { %v7095_v54 = vadd.f32 %v977_v52, %v936_v45  ;;  %v1393_v61 = vpop.f32.mrf.mxu0 }
 0x1d2   :  { %v1144_v60 = vpop.f32.mrf.mxu1 }
 0x1d3   :  { %v1145_v8 = vadd.f32 %v1144_v60, %v1103_v39 }
 0x1d4   :  { %1474 = vmatmul.f32.vlgmr.msra.gmra.mxu2 %v6858_v42  ;;  %1887 = vmatmul.f32.vlgmr.msrb.gmra.mxu0 %v6868_v7  ;;  %v1663_v42 = vld [vmem:[#allocation7 + $0x470] sm:$0xff] }
 0x1d5   :  { %1171 = vst.msk [vmem:[#allocation3 + $0xa0] sm:$0xff] %vm1152_vm6, %v1145_v8  ;;  %5978 = vmatmul.msk.f32.gmra.mxu3 %vm270_vm0, %v6981_v34  ;;  %6002 = vmatmul.msk.f32.gmra.mxu1 %vm270_vm0, %v7035_v27 }
 0x1d6   :  { %1793 = vmatpush.msrb.mxu2 %v1663_v42 }
 0x1d7   :  { %v1003_v1 = vpop.f32.mrf.mxu2 }
 0x1d8   :  { %v980_v18 = vpop.f32.mrf.mxu3  ;;  %1794 = vmatpush.msrb.mxu2 %v1660_v15  ;;  %v1681_v15 = vld [vmem:[#allocation7 + $0x500] sm:$0xff] }
 0x1d9   :  { %v7104_v63 = vadd.f32 %v980_v18, %v939_v47  ;;  %v1396_v10 = vpop.f32.mrf.mxu0  ;;  %1844 = vmatpush.msrb.mxu3 %v1681_v15 }
 0x1da   :  { %v1147_v3 = vpop.f32.mrf.mxu1  ;;  %1795 = vmatpush.msrb.mxu2 %v1657_v21 }
 0x1db   :  { %v1148_v6 = vadd.f32 %v1147_v3, %v1106_v22  ;;  %v2242_v22 = vld [vmem:[#allocation10 + $0x238] sm:$0xff]  ;;  %v2227_v3 = vld [vmem:[#allocation10 + $0x1c0] sm:$0xff] }
 0x1dc   :  { %1477 = vmatmul.f32.gmra.mxu2 %v6868_v7  ;;  %1890 = vmatmul.f32.gmra.mxu0 %v6884_v30  ;;  %v1654_v7 = vld [vmem:[#allocation7 + $0x428] sm:$0xff] }
 0x1dd   :  { %1174 = vst.msk [vmem:[#allocation3 + $0xb8] sm:$0xff] %vm1152_vm6, %v1148_v6  ;;  %5979 = vmatmul.msk.f32.gmra.mxu3 %vm270_vm0, %v7035_v27  ;;  %6003 = vmatmul.msk.f32.gmra.mxu1 %vm270_vm0, %v7106_v11  ;;  %v2222_v6 = vld [vmem:[#allocation10 + $0x198] sm:$0xff] }
 0x1de   :  { %1796 = vmatpush.msrb.mxu2 %v1654_v7  ;;  %v2207_v7 = vld [vmem:[#allocation10 + $0x120] sm:$0xff] }
 0x1df   :  { %v1006_v0 = vpop.f32.mrf.mxu2 }
 0x1e0   :  { %v983_v55 = vpop.f32.mrf.mxu3  ;;  %1797 = vmatpush.msrb.mxu2 %v1651_v25 }
 0x1e1   :  { %v7115_v19 = vadd.f32 %v983_v55, %v942_v56  ;;  %v1399_v31 = vpop.f32.mrf.mxu0  ;;  %v1633_v56 = vld [vmem:[#allocation7 + $0x380] sm:$0xff] }
 0x1e2   :  { %v1434_v20 = vpop.f32.mrf.mxu1 }
 0x1e3   :  { %v1435_v26 = vadd.f32 %v1434_v20, %v1393_v61  ;;  %v1678_v20 = vld [vmem:[#allocation7 + $0x4e8] sm:$0xff] }
 0x1e4   :  { %1480 = vmatmul.f32.gmra.mxu2 %v6884_v30  ;;  %1893 = vmatmul.f32.gmra.mxu0 %v6900_v50  ;;  %v1645_v30 = vld [vmem:[#allocation7 + $0x3e0] sm:$0xff] }
 0x1e5   :  { %5988 = vmatmul.msk.f32.vlgmr.msra.gmra.mxu3 %vm270_vm0, %v6886_v32  ;;  %6012 = vmatmul.msk.f32.vlgmr.msrb.gmra.mxu1 %vm270_vm0, %v6902_v57  ;;  %v1648_v32 = vld [vmem:[#allocation7 + $0x3f8] sm:$0xff] }
 0x1e6   :  { %1798 = vmatpush.msrb.mxu2 %v1648_v32  ;;  %1845 = vmatpush.msrb.mxu3 %v1678_v20  ;;  %v2201_v20 = vld [vmem:[#allocation10 + $0xf0] sm:$0xff] }
 0x1e7   :  { %v1009_v28 = vpop.f32.mrf.mxu2 }
 0x1e8   :  { %v1044_v24 = vpop.f32.mrf.mxu3  ;;  %1799 = vmatpush.msrb.mxu2 %v1645_v30 }
 0x1e9   :  { %v1045_v23 = vadd.f32 %v1044_v24, %v1003_v1  ;;  %v1402_v5 = vpop.f32.mrf.mxu0  ;;  %v2232_v1 = vld [vmem:[#allocation10 + $0x1e8] sm:$0xff] }
 0x1ea   :  { %v1437_v45 = vpop.f32.mrf.mxu1  ;;  %1800 = vmatpush.msrb.mxu2 %v1642_v38 }
 0x1eb   :  { %v1541_v9 = vadd.f32 %v1435_v26, %v1045_v23  ;;  %v1438_v39 = vadd.f32 %v1437_v45, %v1396_v10 }
 0x1ec   :  { %1483 = vmatmul.f32.gmra.mxu2 %v6900_v50  ;;  %1896 = vmatmul.f32.gmra.mxu0 %v6916_v16  ;;  %v2247_v50 = vld [vmem:[#allocation10 + $0x260] sm:$0xff] }
 0x1ed   :  { %1565 = vst [vmem:[#allocation3 + $0x8] sm:$0xff] %v1541_v9  ;;  %5989 = vmatmul.msk.f32.gmra.mxu3 %vm270_vm0, %v6902_v57  ;;  %6013 = vmatmul.msk.f32.gmra.mxu1 %vm270_vm0, %v6918_v17  ;;  %v1639_v57 = vld [vmem:[#allocation7 + $0x3b0] sm:$0xff] }
 0x1ee   :  { %1801 = vmatpush.msrb.mxu2 %v1639_v57  ;;  %2474 = vmatpush.msra.mxu1 %v2247_v50 }
 0x1ef   :  { %v1012_v46 = vpop.f32.mrf.mxu2 }
 0x1f0   :  { %v1047_v37 = vpop.f32.mrf.mxu3  ;;  %1802 = vmatpush.msrb.mxu2 %v1636_v49  ;;  %2475 = vmatpush.msra.mxu1 %v2242_v22  ;;  %v2172_v22 = vld [vmem:[#allocation10 + $0x8] sm:$0xff] }
 0x1f1   :  { %v1048_v40 = vadd.f32 %v1047_v37, %v1006_v0  ;;  %v1405_v48 = vpop.f32.mrf.mxu0 }
 0x1f2   :  { %v1440_v41 = vpop.f32.mrf.mxu1  ;;  %1803 = vmatpush.msrb.mxu2 %v1633_v56 }
 0x1f3   :  { %v1544_v47 = vadd.f32 %v1438_v39, %v1048_v40  ;;  %v1441_v60 = vadd.f32 %v1440_v41, %v1399_v31  ;;  %v2217_v31 = vld [vmem:[#allocation10 + $0x170] sm:$0xff]  ;;  %v2187_v40 = vld [vmem:[#allocation10 + $0x80] sm:$0xff] }
 0x1f4   :  { %1486 = vmatmul.f32.gmra.mxu2 %v6916_v16  ;;  %1899 = vmatmul.f32.gmra.mxu0 %v6932_v35  ;;  %v1630_v16 = vld [vmem:[#allocation7 + $0x368] sm:$0xff] }
 0x1f5   :  { %1568 = vst [vmem:[#allocation3 + $0x20] sm:$0xff] %v1544_v47  ;;  %5990 = vmatmul.msk.f32.gmra.mxu3 %vm270_vm0, %v6918_v17  ;;  %6014 = vmatmul.msk.f32.gmra.mxu1 %vm270_vm0, %v6934_v36  ;;  %v2237_v17 = vld [vmem:[#allocation10 + $0x210] sm:$0xff] }
 0x1f6   :  { %2476 = vmatpush.msra.mxu1 %v2237_v17  ;;  %1804 = vmatpush.msrb.mxu2 %v1630_v16  ;;  %v2177_v41 = vld [vmem:[#allocation10 + $0x30] sm:$0xff]  ;;  %v2226_v17 = vld [vmem:[#allocation10 + $0x1b8] sm:$0xff] }
 0x1f7   :  { %v1015_v61 = vpop.f32.mrf.mxu2 }
 0x1f8   :  { %v1050_v52 = vpop.f32.mrf.mxu3  ;;  %2477 = vmatpush.msra.mxu1 %v2232_v1 }
 0x1f9   :  { %v1051_v8 = vadd.f32 %v1050_v52, %v1009_v28  ;;  %v1408_v53 = vpop.f32.mrf.mxu0 }
 0x1fa   :  { %v1443_v62 = vpop.f32.mrf.mxu1  ;;  %2478 = vmatpush.msra.mxu1 %v2227_v3 }
 0x1fb   :  { %v1547_v18 = vadd.f32 %v1441_v60, %v1051_v8  ;;  %v1444_v10 = vadd.f32 %v1443_v62, %v1402_v5  ;;  %v2192_v5 = vld [vmem:[#allocation10 + $0xa8] sm:$0xff]  ;;  %v2231_v60 = vld [vmem:[#allocation10 + $0x1e0] sm:$0xff] }
 0x1fc   :  { %1489 = vmatmul.f32.gmra.mxu2 %v6932_v35  ;;  %1902 = vmatmul.f32.gmra.mxu0 %v6948_v58  ;;  %v2212_v35 = vld [vmem:[#allocation10 + $0x148] sm:$0xff] }
 0x1fd   :  { %1571 = vst [vmem:[#allocation3 + $0x38] sm:$0xff] %v1547_v18  ;;  %5991 = vmatmul.msk.f32.gmra.mxu3 %vm270_vm0, %v6934_v36  ;;  %6015 = vmatmul.msk.f32.gmra.mxu1 %vm270_vm0, %v6950_v59  ;;  %v2221_v18 = vld [vmem:[#allocation10 + $0x190] sm:$0xff] }
 0x1fe   :  { %2479 = vmatpush.msra.mxu1 %v2222_v6 }
 0x1ff   :  { %v1018_v42 = vpop.f32.mrf.mxu2 }
 0x200   :  { %v1053_v4 = vpop.f32.mrf.mxu3  ;;  %2480 = vmatpush.msra.mxu1 %v2217_v31 }
 0x201   :  { %v1054_v14 = vadd.f32 %v1053_v4, %v1012_v46  ;;  %v1411_v36 = vpop.f32.mrf.mxu0  ;;  %v2246_v46 = vld [vmem:[#allocation10 + $0x258] sm:$0xff]  ;;  %v2216_v4 = vld [vmem:[#allocation10 + $0x168] sm:$0xff] }
 0x202   :  { %v1446_v55 = vpop.f32.mrf.mxu1  ;;  %2481 = vmatpush.msra.mxu1 %v2212_v35  ;;  %2369 = vmatpush.msra.mxu2 %v2246_v46  ;;  %v2171_v46 = vld [vmem:[#allocation10] sm:$0xff] }
 0x203   :  { %v1550_v0 = vadd.f32 %v1444_v10, %v1054_v14  ;;  %v1447_v24 = vadd.f32 %v1446_v55, %v1405_v48  ;;  %v2241_v48 = vld [vmem:[#allocation10 + $0x230] sm:$0xff]  ;;  %v2211_v10 = vld [vmem:[#allocation10 + $0x140] sm:$0xff]  ;;  %v2206_v55 = vld [vmem:[#allocation10 + $0x118] sm:$0xff] }
 0x204   :  { %1492 = vmatmul.f32.gmra.mxu2 %v6948_v58  ;;  %1905 = vmatmul.f32.gmra.mxu0 %v6964_v12  ;;  %v2197_v58 = vld [vmem:[#allocation10 + $0xd0] sm:$0xff]  ;;  %v6132_v14 = vld [vmem:[#allocation2 + $0x28] sm:$0xff] }
 0x205   :  { %1574 = vst [vmem:[#allocation3 + $0x50] sm:$0xff] %v1550_v0  ;;  %5992 = vmatmul.msk.f32.gmra.mxu3 %vm270_vm0, %v6950_v59  ;;  %6016 = vmatmul.msk.f32.gmra.mxu1 %vm270_vm0, %v6966_v13  ;;  %v2202_v59 = vld [vmem:[#allocation10 + $0xf8] sm:$0xff] }
 0x206   :  { %2482 = vmatpush.msra.mxu1 %v2207_v7  ;;  %2370 = vmatpush.msra.mxu2 %v2241_v48  ;;  %v7162_v0 = vld [vmem:[#allocation9] sm:$0x7]  ;;  %v2196_v7 = vld [vmem:[#allocation10 + $0xc8] sm:$0xff] }
 0x207   :  { %v1021_v26 = vpop.f32.mrf.mxu2  ;;  %v6137_v48 = vld [vmem:[#allocation2 + $0x60] sm:$0xff] }
 0x208   :  { %v1056_v21 = vpop.f32.mrf.mxu3  ;;  %2483 = vmatpush.msra.mxu1 %v2202_v59  ;;  %v6135_v59 = vld [vmem:[#allocation2 + $0x50] sm:$0xff] }
 0x209   :  { %v1057_v25 = vadd.f32 %v1056_v21, %v1015_v61  ;;  %v1414_v45 = vpop.f32.mrf.mxu0  ;;  %v6131_v61 = vld [vmem:[#allocation2 + $0x30] sm:$0xff] }
 0x20a   :  { %v1449_v23 = vpop.f32.mrf.mxu1  ;;  %2484 = vmatpush.msra.mxu1 %v2197_v58  ;;  %v2186_v58 = vld [vmem:[#allocation10 + $0x78] sm:$0xff] }
 0x20b   :  { %v1553_v28 = vadd.f32 %v1447_v24, %v1057_v25  ;;  %v1450_v32 = vadd.f32 %v1449_v23, %v1408_v53  ;;  %v2191_v23 = vld [vmem:[#allocation10 + $0xa0] sm:$0xff] }
 0x20c   :  { %1495 = vmatmul.f32.gmra.mxu2 %v6964_v12  ;;  %1908 = vmatmul.f32.gmra.mxu0 %v6979_v33  ;;  %v2182_v12 = vld [vmem:[#allocation10 + $0x58] sm:$0xff] }
 0x20d   :  { %1577 = vst [vmem:[#allocation3 + $0x68] sm:$0xff] %v1553_v28  ;;  %5993 = vmatmul.msk.f32.gmra.mxu3 %vm270_vm0, %v6966_v13  ;;  %6017 = vmatmul.msk.f32.gmra.mxu1 %vm270_vm0, %v6981_v34  ;;  %v6130_v33 = vld [vmem:[#allocation2 + $0x20] sm:$0xff] }
 0x20e   :  { %2485 = vmatpush.msra.mxu1 %v2192_v5 }
 0x20f   :  { %v1024_v37 = vpop.f32.mrf.mxu2 }
 0x210   :  { %v1059_v9 = vpop.f32.mrf.mxu3  ;;  %2486 = vmatpush.msra.mxu1 %v2187_v40  ;;  %v2176_v40 = vld [vmem:[#allocation10 + $0x28] sm:$0xff] }
 0x211   :  { %v1060_v30 = vadd.f32 %v1059_v9, %v1018_v42  ;;  %v1724_v13 = vpop.f32.mrf.mxu0  ;;  %v6133_v42 = vld [vmem:[#allocation2 + $0x40] sm:$0xff] }
 0x212   :  { %v1452_v38 = vpop.f32.mrf.mxu1  ;;  %2487 = vmatpush.msra.mxu1 %v2182_v12 }
 0x213   :  { %v1556_v39 = vadd.f32 %v1450_v32, %v1060_v30  ;;  %v1453_v57 = vadd.f32 %v1452_v38, %v1411_v36  ;;  %v2181_v32 = vld [vmem:[#allocation10 + $0x50] sm:$0xff] }
 0x214   :  { %1805 = vmatmul.f32.vlgmr.msrb.gmra.mxu2 %v6130_v33  ;;  %2488 = vmatpush.msra.mxu1 %v2177_v41 }
 0x215   :  { %1580 = vst [vmem:[#allocation3 + $0x80] sm:$0xff] %v1556_v39  ;;  %5994 = vmatmul.msk.f32.gmra.mxu3 %vm270_vm0, %v6981_v34  ;;  %6018 = vmatmul.msk.f32.gmra.mxu1 %vm270_vm0, %v7035_v27  ;;  %v2236_v34 = vld [vmem:[#allocation10 + $0x208] sm:$0xff] }
 0x216   :  { %2371 = vmatpush.msra.mxu2 %v2236_v34  ;;  %2489 = vmatpush.msra.mxu1 %v2172_v22 }
 0x217   :  { %v1311_v49 = vpop.f32.mrf.mxu2 }
 0x218   :  { %v1062_v47 = vpop.f32.mrf.mxu3  ;;  %2372 = vmatpush.msra.mxu2 %v2231_v60 }
 0x219   :  { %v1063_v50 = vadd.f32 %v1062_v47, %v1021_v26  ;;  %v1727_v8 = vpop.f32.mrf.mxu0  ;;  %v7166_v26 = vperm.slane %v7162_v0, 0  ;;  %v6136_v47 = vld [vmem:[#allocation2 + $0x48] sm:$0xff] }
 0x21a   :  { %v1455_v52 = vpop.f32.mrf.mxu1  ;;  %2373 = vmatpush.msra.mxu2 %v2226_v17  ;;  %v6138_v17 = vld [vmem:[#allocation2 + $0x58] sm:$0xff] }
 0x21b   :  { %v1559_v56 = vadd.f32 %v1453_v57, %v1063_v50  ;;  %v1456_v53 = vadd.f32 %v1455_v52, %v1414_v45  ;;  %v6134_v45 = vld [vmem:[#allocation2 + $0x38] sm:$0xff] }
 0x21c   :  { %1808 = vmatmul.f32.gmra.mxu2 %v6131_v61 }
 0x21d   :  { %1583 = vst [vmem:[#allocation3 + $0x98] sm:$0xff] %v1559_v56  ;;  %5995 = vmatmul.msk.f32.gmra.mxu3 %vm270_vm0, %v7035_v27  ;;  %6019 = vmatmul.msk.f32.gmra.mxu1 %vm270_vm0, %v7106_v11 }
 0x21e   :  { %2374 = vmatpush.msra.mxu2 %v2221_v18 }
 0x21f   :  { %v1314_v1 = vpop.f32.mrf.mxu2 }
 0x220   :  { %v1065_v62 = vpop.f32.mrf.mxu3  ;;  %2375 = vmatpush.msra.mxu2 %v2216_v4 }
 0x221   :  { %v1066_v16 = vadd.f32 %v1065_v62, %v1024_v37  ;;  %v1730_v36 = vpop.f32.mrf.mxu0  ;;  %v6139_v62 = vld [vmem:[#allocation2 + $0x70] sm:$0xff] }
 0x222   :  { %v1765_v3 = vpop.f32.mrf.mxu1  ;;  %2376 = vmatpush.msra.mxu2 %v2211_v10 }
 0x223   :  { %v1562_v6 = vadd.f32 %v1456_v53, %v1066_v16  ;;  %v1766_v24 = vadd.f32 %v1765_v3, %v1724_v13 }
 0x224   :  { %1811 = vmatmul.f32.gmra.mxu2 %v6133_v42  ;;  %v6140_v42 = vld [vmem:[#allocation2 + $0x68] sm:$0xff] }
 0x225   :  { %1586 = vst [vmem:[#allocation3 + $0xb0] sm:$0xff] %v1562_v6  ;;  %6004 = vmatmul.msk.f32.vlgmr.msrb.gmra.mxu3 %vm270_vm0, %v6132_v14  ;;  %2377 = vmatpush.msra.mxu2 %v2206_v55 }
 0x227   :  { %v1317_v35 = vpop.f32.mrf.mxu2  ;;  %2378 = vmatpush.msra.mxu2 %v2201_v20 }
 0x228   :  { %v1352_v15 = vpop.f32.mrf.mxu3 }
 0x229   :  { %v1353_v31 = vadd.f32 %v1352_v15, %v1311_v49  ;;  %2379 = vmatpush.msra.mxu2 %v2196_v7  ;;  %v1733_v39 = vpop.f32.mrf.mxu0  ;;  %v6141_v15 = vld [vmem:[#allocation2 + $0x80] sm:$0xff] }
 0x22a   :  { %v1768_v21 = vpop.f32.mrf.mxu1 }
 0x22b   :  { %v1540_v25 = vadd.f32 %v1353_v31, %v7050_v51  ;;  %2380 = vmatpush.msra.mxu2 %v2191_v23  ;;  %v1769_v12 = vadd.f32 %v1768_v21, %v1727_v8 }
 0x22c   :  { %1814 = vmatmul.f32.gmra.mxu2 %v6135_v59 }
 0x22d   :  { %v1953_v28 = vadd.f32 %v1766_v24, %v1540_v25  ;;  %6005 = vmatmul.msk.f32.gmra.mxu3 %vm270_vm0, %v6134_v45  ;;  %2381 = vmatpush.msra.mxu2 %v2186_v58  ;;  %v6143_v45 = vld [vmem:[#allocation2 + $0x90] sm:$0xff] }
 0x22f   :  { %v2033_v9 = vadd.f32 %v7166_v26, %v1953_v28  ;;  %v1320_v37 = vpop.f32.mrf.mxu2  ;;  %2382 = vmatpush.msra.mxu2 %v2181_v32  ;;  %v6142_v28 = vld [vmem:[#allocation2 + $0x78] sm:$0xff] }
 0x230   :  { %v1355_v5 = vpop.f32.mrf.mxu3 }
 0x231   :  { %vm2057_vm7 = vcmp.ge.f32.partialorder %v2033_v9, 0.0  ;;  %v2081_v51 = vmul.f32 0.01, %v2033_v9  ;;  %v1356_v30 = vadd.f32 %v1355_v5, %v1314_v1  ;;  %2383 = vmatpush.msra.mxu2 %v2176_v40  ;;  %v1736_v8 = vpop.f32.mrf.mxu0 }
 0x232   :  { %v1771_v38 = vpop.f32.mrf.mxu1 }
 0x233   :  { %v7170_v13 = vsel %vm2057_vm7, %v2033_v9, %v2081_v51  ;;  %v1543_v33 = vadd.f32 %v1356_v30, %v7059_v2  ;;  %2384 = vmatpush.msra.mxu2 %v2171_v46  ;;  %v1772_v56 = vadd.f32 %v1771_v38, %v1730_v36 }
 0x234   :  { %2129 = vst [vmem:[#allocation3] sm:$0xff] %v7170_v13  ;;  %2490 = vmatmul.f32.vlgmr.msra.gmra.mxu1 %v7170_v13  ;;  %1817 = vmatmul.f32.gmra.mxu2 %v6137_v48 }
 0x235   :  { %v1956_v41 = vadd.f32 %v1769_v12, %v1543_v33  ;;  %6006 = vmatmul.msk.f32.gmra.mxu3 %vm270_vm0, %v6136_v47 }
 0x237   :  { %v2036_v57 = vadd.f32 %v7166_v26, %v1956_v41  ;;  %v1323_v22 = vpop.f32.mrf.mxu2 }
 0x238   :  { %v1358_v50 = vpop.f32.mrf.mxu3 }
 0x239   :  { %vm2060_vm8 = vcmp.ge.f32.partialorder %v2036_v57, 0.0  ;;  %v2084_v49 = vmul.f32 0.01, %v2036_v57  ;;  %v1359_v2 = vadd.f32 %v1358_v50, %v1317_v35  ;;  %v1739_v55 = vpop.f32.mrf.mxu0 }
 0x23a   :  { %v1774_v52 = vpop.f32.mrf.mxu1 }
 0x23b   :  { %v7177_v34 = vsel %vm2060_vm8, %v2036_v57, %v2084_v49  ;;  %v1546_v60 = vadd.f32 %v1359_v2, %v7068_v43  ;;  %v1775_v6 = vadd.f32 %v1774_v52, %v1733_v39 }
 0x23c   :  { %2132 = vst [vmem:[#allocation3 + $0x18] sm:$0xff] %v7177_v34  ;;  %2493 = vmatmul.f32.gmra.mxu1 %v7177_v34  ;;  %1820 = vmatmul.f32.gmra.mxu2 %v6139_v62 }
 0x23d   :  { %v1959_v61 = vadd.f32 %v1772_v56, %v1546_v60  ;;  %6007 = vmatmul.msk.f32.gmra.mxu3 %vm270_vm0, %v6138_v17 }
 0x23f   :  { %v2039_v18 = vadd.f32 %v7166_v26, %v1959_v61  ;;  %v1326_v3 = vpop.f32.mrf.mxu2 }
 0x240   :  { %v1361_v53 = vpop.f32.mrf.mxu3 }
 0x241   :  { %vm2063_vm9 = vcmp.ge.f32.partialorder %v2039_v18, 0.0  ;;  %v2087_v16 = vmul.f32 0.01, %v2039_v18  ;;  %v1362_v1 = vadd.f32 %v1361_v53, %v1320_v37  ;;  %v1742_v9 = vpop.f32.mrf.mxu0  ;;  %v2341_v53 = vld [vmem:[#allocation10 + $0x550] sm:$0xff] }
 0x242   :  { %v1777_v4 = vpop.f32.mrf.mxu1 }
 0x243   :  { %v7184_v43 = vsel %vm2063_vm9, %v2039_v18, %v2087_v16  ;;  %v1549_v10 = vadd.f32 %v1362_v1, %v7077_v29  ;;  %v1778_v24 = vadd.f32 %v1777_v4, %v1736_v8  ;;  %v2346_v18 = vld [vmem:[#allocation10 + $0x578] sm:$0xff] }
 0x244   :  { %2135 = vst [vmem:[#allocation3 + $0x30] sm:$0xff] %v7184_v43  ;;  %2496 = vmatmul.f32.gmra.mxu1 %v7184_v43  ;;  %1823 = vmatmul.f32.gmra.mxu2 %v6141_v15 }
 0x245   :  { %v1962_v14 = vadd.f32 %v1775_v6, %v1549_v10  ;;  %6008 = vmatmul.msk.f32.gmra.mxu3 %vm270_vm0, %v6140_v42  ;;  %2451 = vmatpush.msra.mxu0 %v2346_v18  ;;  %v2336_v6 = vld [vmem:[#allocation10 + $0x528] sm:$0xff]  ;;  %v2331_v42 = vld [vmem:[#allocation10 + $0x500] sm:$0xff] }
 0x246   :  { %v1177_v10 = vld [vmem:[#allocation3 + $0x10] sm:$0xff] }
 0x247   :  { %v2042_v36 = vadd.f32 %v7166_v26, %v1962_v14  ;;  %v1329_v21 = vpop.f32.mrf.mxu2  ;;  %2452 = vmatpush.msra.mxu0 %v2341_v53  ;;  %v2298_v53 = vld [vmem:[#allocation10 + $0x3f8] sm:$0xff] }
 0x248   :  { %v1364_v20 = vpop.f32.mrf.mxu3 }
 0x249   :  { %vm2066_vm10 = vcmp.ge.f32.partialorder %v2042_v36, 0.0  ;;  %v2090_v31 = vmul.f32 0.01, %v2042_v36  ;;  %v1365_v35 = vadd.f32 %v1364_v20, %v1323_v22  ;;  %v1745_v47 = vpop.f32.mrf.mxu0  ;;  %2453 = vmatpush.msra.mxu0 %v2336_v6  ;;  %v2292_v6 = vld [vmem:[#allocation10 + $0x3c8] sm:$0xff] }
 0x24a   :  { %v1780_v7 = vpop.f32.mrf.mxu1 }
 0x24b   :  { %v7191_v29 = vsel %vm2066_vm10, %v2042_v36, %v2090_v31  ;;  %v1552_v25 = vadd.f32 %v1365_v35, %v7086_v44  ;;  %v1781_v37 = vadd.f32 %v1780_v7, %v1739_v55  ;;  %2454 = vmatpush.msra.mxu0 %v2331_v42  ;;  %v1180_v31 = vld [vmem:[#allocation3 + $0x28] sm:$0xff]  ;;  %v2326_v7 = vld [vmem:[#allocation10 + $0x4d8] sm:$0xff] }
 0x24c   :  { %2138 = vst [vmem:[#allocation3 + $0x48] sm:$0xff] %v7191_v29  ;;  %2499 = vmatmul.f32.gmra.mxu1 %v7191_v29  ;;  %1826 = vmatmul.f32.gmra.mxu2 %v6143_v45  ;;  %v2321_v45 = vld [vmem:[#allocation10 + $0x4b0] sm:$0xff] }
 0x24d   :  { %v1965_v23 = vadd.f32 %v1778_v24, %v1552_v25  ;;  %6009 = vmatmul.msk.f32.gmra.mxu3 %vm270_vm0, %v6142_v28  ;;  %v2327_v24 = vld [vmem:[#allocation10 + $0x4e0] sm:$0xff]  ;;  %v2328_v25 = vld [vmem:[#allocation10 + $0x4e8] sm:$0xff] }
 0x24e   :  { %2404 = vmatpush.msra.mxu3 %v2326_v7  ;;  %2509 = vmatpush.msrb.mxu2 %v2327_v24  ;;  %v2228_v7 = vld [vmem:[#allocation10 + $0x1c8] sm:$0xff]  ;;  %v2281_v24 = vld [vmem:[#allocation10 + $0x370] sm:$0xff] }
 0x24f   :  { %v2045_v59 = vadd.f32 %v7166_v26, %v1965_v23  ;;  %v1332_v51 = vpop.f32.mrf.mxu2  ;;  %2614 = vmatpush.msrb.mxu1 %v2328_v25  ;;  %v2282_v25 = vld [vmem:[#allocation10 + $0x378] sm:$0xff] }
 0x250   :  { %v1367_v58 = vpop.f32.mrf.mxu3  ;;  %2405 = vmatpush.msra.mxu3 %v2321_v45 }
 0x251   :  { %vm2069_vm11 = vcmp.ge.f32.partialorder %v2045_v59, 0.0  ;;  %v2093_v5 = vmul.f32 0.01, %v2045_v59  ;;  %v1368_v32 = vadd.f32 %v1367_v58, %v1326_v3  ;;  %v1888_v17 = vpop.f32.mrf.mxu0  ;;  %v2323_v58 = vld [vmem:[#allocation10 + $0x4c0] sm:$0xff] }
 0x252   :  { %v1783_v30 = vpop.f32.mrf.mxu1  ;;  %2615 = vmatpush.msrb.mxu1 %v2323_v58  ;;  %v2276_v58 = vld [vmem:[#allocation10 + $0x348] sm:$0xff] }
 0x253   :  { %v7198_v44 = vsel %vm2069_vm11, %v2045_v59, %v2093_v5  ;;  %v1555_v38 = vadd.f32 %v1368_v32, %v7095_v54  ;;  %v1784_v57 = vadd.f32 %v1783_v30, %v1742_v9  ;;  %v2322_v59 = vld [vmem:[#allocation10 + $0x4b8] sm:$0xff]  ;;  %v2316_v5 = vld [vmem:[#allocation10 + $0x488] sm:$0xff]  ;;  %v2317_v32 = vld [vmem:[#allocation10 + $0x490] sm:$0xff] }
 0x254   :  { %2141 = vst [vmem:[#allocation3 + $0x60] sm:$0xff] %v7198_v44  ;;  %2502 = vmatmul.f32.gmra.mxu1 %v7198_v44  ;;  %2385 = vmatmul.f32.vlgmr.msra.gmra.mxu2 %v7170_v13 }
 0x255   :  { %v1968_v39 = vadd.f32 %v1781_v37, %v1555_v38  ;;  %6010 = vmatmul.msk.f32.gmra.mxu3 %vm270_vm0, %v7035_v27  ;;  %2510 = vmatpush.msrb.mxu2 %v2322_v59  ;;  %v2223_v59 = vld [vmem:[#allocation10 + $0x1a0] sm:$0xff] }
 0x256   :  { %2406 = vmatpush.msra.mxu3 %v2316_v5 }
 0x257   :  { %v2048_v40 = vadd.f32 %v7166_v26, %v1968_v39  ;;  %v1475_v41 = vpop.f32.mrf.mxu2  ;;  %2511 = vmatpush.msrb.mxu2 %v2317_v32  ;;  %v2278_v32 = vld [vmem:[#allocation10 + $0x358] sm:$0xff] }
 0x258   :  { %v1370_v12 = vpop.f32.mrf.mxu3 }
 0x259   :  { %vm2072_vm12 = vcmp.ge.f32.partialorder %v2048_v40, 0.0  ;;  %v2096_v33 = vmul.f32 0.01, %v2048_v40  ;;  %v1371_v46 = vadd.f32 %v1370_v12, %v1329_v21  ;;  %v1891_v15 = vpop.f32.mrf.mxu0  ;;  %v2312_v12 = vld [vmem:[#allocation10 + $0x468] sm:$0xff] }
 0x25a   :  { %v1786_v48 = vpop.f32.mrf.mxu1  ;;  %2512 = vmatpush.msrb.mxu2 %v2312_v12  ;;  %v2272_v12 = vld [vmem:[#allocation10 + $0x328] sm:$0xff] }
 0x25b   :  { %v7207_v54 = vsel %vm2072_vm12, %v2048_v40, %v2096_v33  ;;  %v1558_v50 = vadd.f32 %v1371_v46, %v7104_v63  ;;  %v1787_v63 = vadd.f32 %v1786_v48, %v1745_v47  ;;  %v2311_v40 = vld [vmem:[#allocation10 + $0x460] sm:$0xff]  ;;  %v2313_v33 = vld [vmem:[#allocation10 + $0x470] sm:$0xff] }
 0x25c   :  { %2144 = vst [vmem:[#allocation3 + $0x78] sm:$0xff] %v7207_v54  ;;  %2505 = vmatmul.f32.gmra.mxu1 %v7207_v54  ;;  %2388 = vmatmul.f32.gmra.mxu2 %v7177_v34  ;;  %v1183_v46 = vld [vmem:[#allocation3 + $0x40] sm:$0xff] }
 0x25d   :  { %v1971_v27 = vadd.f32 %v1784_v57, %v1558_v50  ;;  %6011 = vmatmul.msk.f32.gmra.mxu3 %vm270_vm0, %v7106_v11  ;;  %v2306_v57 = vld [vmem:[#allocation10 + $0x438] sm:$0xff]  ;;  %v2307_v50 = vld [vmem:[#allocation10 + $0x440] sm:$0xff] }
 0x25e   :  { %2407 = vmatpush.msra.mxu3 %v2311_v40  ;;  %2513 = vmatpush.msrb.mxu2 %v2307_v50  ;;  %v2271_v40 = vld [vmem:[#allocation10 + $0x320] sm:$0xff] }
 0x25f   :  { %v2051_v49 = vadd.f32 %v7166_v26, %v1971_v27  ;;  %v1478_v56 = vpop.f32.mrf.mxu2  ;;  %v2308_v27 = vld [vmem:[#allocation10 + $0x448] sm:$0xff] }
 0x260   :  { %v1373_v2 = vpop.f32.mrf.mxu3  ;;  %2408 = vmatpush.msra.mxu3 %v2306_v57 }
 0x261   :  { %vm2075_vm13 = vcmp.ge.f32.partialorder %v2051_v49, 0.0  ;;  %v2099_v22 = vmul.f32 0.01, %v2051_v49  ;;  %v1374_v52 = vadd.f32 %v1373_v2, %v1332_v51  ;;  %v2318_v51 = vld [vmem:[#allocation10 + $0x498] sm:$0xff]  ;;  %v1894_v30 = vpop.f32.mrf.mxu0 }
 0x262   :  { %v1929_v60 = vpop.f32.mrf.mxu1  ;;  %2616 = vmatpush.msrb.mxu1 %v2318_v51 }
 0x263   :  { %v2123_v8 = vsel %vm2075_vm13, %v2051_v49, %v2099_v22  ;;  %v1561_v61 = vadd.f32 %v1374_v52, %v7115_v19  ;;  %v1930_v35 = vadd.f32 %v1929_v60, %v1888_v17  ;;  %v2248_v22 = vld [vmem:[#allocation10 + $0x268] sm:$0xff]  ;;  %v2301_v52 = vld [vmem:[#allocation10 + $0x410] sm:$0xff] }
 0x264   :  { %2147 = vst [vmem:[#allocation3 + $0x90] sm:$0xff] %v2123_v8  ;;  %2391 = vmatmul.f32.gmra.mxu2 %v7184_v43  ;;  %2617 = vmatpush.msrb.mxu1 %v2313_v33  ;;  %v2303_v8 = vld [vmem:[#allocation10 + $0x420] sm:$0xff]  ;;  %v2296_v17 = vld [vmem:[#allocation10 + $0x3e8] sm:$0xff] }
 0x265   :  { %v1974_v62 = vadd.f32 %v1787_v63, %v1561_v61  ;;  %2579 = vmatpush.msrb.mxu0 %v2248_v22  ;;  %v2243_v61 = vld [vmem:[#allocation10 + $0x240] sm:$0xff]  ;;  %2409 = vmatpush.msra.mxu3 %v2301_v52 }
 0x266   :  { %2618 = vmatpush.msrb.mxu1 %v2308_v27  ;;  %v2267_v52 = vld [vmem:[#allocation10 + $0x300] sm:$0xff] }
 0x267   :  { %v2054_v11 = vadd.f32 %v7166_v26, %v1974_v62  ;;  %v1481_v4 = vpop.f32.mrf.mxu2  ;;  %v2297_v62 = vld [vmem:[#allocation10 + $0x3f0] sm:$0xff]  ;;  %2580 = vmatpush.msrb.mxu0 %v2243_v61  ;;  %2410 = vmatpush.msra.mxu3 %v2296_v17  ;;  %v2262_v61 = vld [vmem:[#allocation10 + $0x2d8] sm:$0xff] }
 0x268   :  { %v1516_v16 = vpop.f32.mrf.mxu3  ;;  %2619 = vmatpush.msrb.mxu1 %v2303_v8  ;;  %v2208_v8 = vld [vmem:[#allocation10 + $0x128] sm:$0xff] }
 0x269   :  { %vm2078_vm0 = vcmp.ge.f32.partialorder %v2054_v11, 0.0  ;;  %v2102_v1 = vmul.f32 0.01, %v2054_v11  ;;  %v1517_v3 = vadd.f32 %v1516_v16, %v1475_v41  ;;  %v7231_v41 = vperm.slane %v7162_v0, 2 }
 0x26a   :  { %v1932_v55 = vpop.f32.mrf.mxu1  ;;  %2620 = vmatpush.msrb.mxu1 %v2298_v53  ;;  %v2256_v53 = vld [vmem:[#allocation10 + $0x2a8] sm:$0xff] }
 0x26b   :  { %v2126_v19 = vsel %vm2078_vm0, %v2054_v11, %v2102_v1  ;;  %v1542_v14 = vadd.f32 %v1517_v3, %v1177_v10  ;;  %v1933_v47 = vadd.f32 %v1932_v55, %v1891_v15  ;;  %v2238_v3 = vld [vmem:[#allocation10 + $0x218] sm:$0xff]  ;;  %v1897_v10 = vpop.f32.mrf.mxu0 }
 0x26c   :  { %2150 = vst [vmem:[#allocation3 + $0xa8] sm:$0xff] %v2126_v19  ;;  %2394 = vmatmul.f32.gmra.mxu2 %v7191_v29  ;;  %v1186_v19 = vld [vmem:[#allocation3 + $0x58] sm:$0xff]  ;;  %2581 = vmatpush.msrb.mxu0 %v2238_v3 }
 0x26d   :  { %1566 = vst.msk [vmem:[#allocation3 + $0x10] sm:$0xff] %vm1152_vm6, %v1542_v14  ;;  %v2293_v14 = vld [vmem:[#allocation10 + $0x3d0] sm:$0xff]  ;;  %v2258_v3 = vld [vmem:[#allocation10 + $0x2b8] sm:$0xff] }
 0x26e   :  { %2621 = vmatpush.msrb.mxu1 %v2293_v14  ;;  %v2251_v14 = vld [vmem:[#allocation10 + $0x280] sm:$0xff] }
 0x26f   :  { %v7221_v20 = vpop.f32.mrf.mxu2 }
 0x270   :  { %v1519_v26 = vpop.f32.mrf.mxu3 }
 0x271   :  { %v1520_v36 = vadd.f32 %v1519_v26, %v1478_v56  ;;  %v2302_v56 = vld [vmem:[#allocation10 + $0x418] sm:$0xff]  ;;  %v2233_v26 = vld [vmem:[#allocation10 + $0x1f0] sm:$0xff] }
 0x272   :  { %v7224_v9 = vpop.f32.mrf.mxu1  ;;  %2514 = vmatpush.msrb.mxu2 %v2302_v56  ;;  %2582 = vmatpush.msrb.mxu0 %v2233_v26  ;;  %v2268_v56 = vld [vmem:[#allocation10 + $0x308] sm:$0xff] }
 0x273   :  { %v1545_v21 = vadd.f32 %v1520_v36, %v1180_v31  ;;  %v1936_v55 = vadd.f32 %v7224_v9, %v1894_v30  ;;  %v2286_v36 = vld [vmem:[#allocation10 + $0x398] sm:$0xff]  ;;  %v2277_v9 = vld [vmem:[#allocation10 + $0x350] sm:$0xff]  ;;  %v1900_v22 = vpop.f32.mrf.mxu0 }
 0x274   :  { %v1590_v23 = vld [vmem:[#allocation3 + $0x10] sm:$0xff]  ;;  %2397 = vmatmul.f32.gmra.mxu2 %v7198_v44  ;;  %2583 = vmatpush.msrb.mxu0 %v2228_v7 }
 0x275   :  { %v1955_v28 = vadd.f32 %v1930_v35, %v1590_v23  ;;  %1569 = vst.msk [vmem:[#allocation3 + $0x28] sm:$0xff] %vm1152_vm6, %v1545_v21  ;;  %2515 = vmatpush.msrb.mxu2 %v2297_v62  ;;  %v2288_v35 = vld [vmem:[#allocation10 + $0x3a8] sm:$0xff]  ;;  %v2263_v62 = vld [vmem:[#allocation10 + $0x2e0] sm:$0xff] }
 0x276   :  { %2622 = vmatpush.msrb.mxu1 %v2288_v35  ;;  %2584 = vmatpush.msrb.mxu0 %v2223_v59  ;;  %v2193_v35 = vld [vmem:[#allocation10 + $0xb0] sm:$0xff] }
 0x277   :  { %1979 = vst.msk [vmem:[#allocation3 + $0x10] sm:$0xff] %vm1152_vm6, %v1955_v28  ;;  %v7228_v39 = vpop.f32.mrf.mxu2  ;;  %2516 = vmatpush.msrb.mxu2 %v2292_v6  ;;  %v2283_v28 = vld [vmem:[#allocation10 + $0x380] sm:$0xff] }
 0x278   :  { %v1522_v37 = vpop.f32.mrf.mxu3  ;;  %2623 = vmatpush.msrb.mxu1 %v2283_v28 }
 0x279   :  { %v1523_v38 = vadd.f32 %v1522_v37, %v1481_v4  ;;  %v2291_v4 = vld [vmem:[#allocation10 + $0x3c0] sm:$0xff] }
 0x27a   :  { %v7237_v18 = vpop.f32.mrf.mxu1  ;;  %2411 = vmatpush.msra.mxu3 %v2291_v4  ;;  %2624 = vmatpush.msrb.mxu1 %v2278_v32  ;;  %v1195_v32 = vld [vmem:[#allocation3 + $0xa0] sm:$0xff] }
 0x27b   :  { %v1548_v48 = vadd.f32 %v1523_v38, %v1183_v46  ;;  %v2218_v38 = vld [vmem:[#allocation10 + $0x178] sm:$0xff]  ;;  %v1189_v46 = vld [vmem:[#allocation3 + $0x70] sm:$0xff]  ;;  %v1939_v57 = vadd.f32 %v7237_v18, %v1897_v10 }
 0x27c   :  { %v1593_v49 = vld [vmem:[#allocation3 + $0x28] sm:$0xff]  ;;  %2400 = vmatmul.f32.gmra.mxu2 %v7207_v54  ;;  %2412 = vmatpush.msra.mxu3 %v2286_v36 }
 0x27d   :  { %v1958_v2 = vadd.f32 %v1933_v47, %v1593_v49  ;;  %1572 = vst.msk [vmem:[#allocation3 + $0x40] sm:$0xff] %vm1152_vm6, %v1548_v48  ;;  %2585 = vmatpush.msrb.mxu0 %v2218_v38  ;;  %v2273_v47 = vld [vmem:[#allocation10 + $0x330] sm:$0xff] }
 0x27e   :  { %v2003_v60 = vld [vmem:[#allocation3 + $0x10] sm:$0xff]  ;;  %2413 = vmatpush.msra.mxu3 %v2281_v24  ;;  %2625 = vmatpush.msrb.mxu1 %v2273_v47 }
 0x27f   :  { %v2035_v63 = vadd.f32 %v7231_v41, %v2003_v60  ;;  %1982 = vst.msk [vmem:[#allocation3 + $0x28] sm:$0xff] %vm1152_vm6, %v1958_v2  ;;  %v7240_v1 = vpop.f32.mrf.mxu2  ;;  %v2213_v49 = vld [vmem:[#allocation10 + $0x150] sm:$0xff]  ;;  %v2188_v24 = vld [vmem:[#allocation10 + $0x88] sm:$0xff] }
 0x280   :  { %v1525_v11 = vpop.f32.mrf.mxu3  ;;  %2414 = vmatpush.msra.mxu3 %v2276_v58  ;;  %2586 = vmatpush.msrb.mxu0 %v2213_v49 }
 0x281   :  { %vm2059_vm14 = vcmp.ge.f32.partialorder %v2035_v63, 0.0  ;;  %v2083_v16 = vmul.f32 0.01, %v2035_v63  ;;  %v1526_v54 = vadd.f32 %v1525_v11, %v7221_v20  ;;  %v2287_v20 = vld [vmem:[#allocation10 + $0x3a0] sm:$0xff]  ;;  %2626 = vmatpush.msrb.mxu1 %v2268_v56 }
 0x282   :  { %2517 = vmatpush.msrb.mxu2 %v2287_v20  ;;  %v1941_v33 = vpop.f32.mrf.mxu1  ;;  %2415 = vmatpush.msra.mxu3 %v2271_v40  ;;  %v2203_v11 = vld [vmem:[#allocation10 + $0x100] sm:$0xff] }
 0x283   :  { %v2107_v42 = vsel %vm2059_vm14, %v2035_v63, %v2083_v16  ;;  %v1551_v15 = vadd.f32 %v1526_v54, %v1186_v19  ;;  %v2261_v63 = vld [vmem:[#allocation10 + $0x2d0] sm:$0xff]  ;;  %2587 = vmatpush.msrb.mxu0 %v2208_v8  ;;  %2627 = vmatpush.msrb.mxu1 %v2263_v62  ;;  %v2198_v19 = vld [vmem:[#allocation10 + $0xd8] sm:$0xff]  ;;  %v1942_v36 = vadd.f32 %v1941_v33, %v1900_v22 }
 0x284   :  { %2131 = vst.msk [vmem:[#allocation3 + $0x10] sm:$0xff] %vm1152_vm6, %v2107_v42  ;;  %v1596_v31 = vld [vmem:[#allocation3 + $0x40] sm:$0xff]  ;;  %2518 = vmatpush.msrb.mxu2 %v2282_v25  ;;  %v2257_v16 = vld [vmem:[#allocation10 + $0x2b0] sm:$0xff]  ;;  %v2252_v42 = vld [vmem:[#allocation10 + $0x288] sm:$0xff] }
 0x285   :  { %v1961_v21 = vadd.f32 %v1936_v55, %v1596_v31  ;;  %1575 = vst.msk [vmem:[#allocation3 + $0x58] sm:$0xff] %vm1152_vm6, %v1551_v15  ;;  %2588 = vmatpush.msrb.mxu0 %v2203_v11  ;;  %v1192_v55 = vld [vmem:[#allocation3 + $0x88] sm:$0xff]  ;;  %2628 = vmatpush.msrb.mxu1 %v2258_v3  ;;  %v2253_v15 = vld [vmem:[#allocation10 + $0x290] sm:$0xff]  ;;  %v7286_v3 = vperm.slane %v7162_v0, 1 }
 0x286   :  { %v2006_v23 = vld [vmem:[#allocation3 + $0x28] sm:$0xff]  ;;  %2519 = vmatpush.msrb.mxu2 %v2277_v9  ;;  %v2173_v33 = vld [vmem:[#allocation10 + $0x10] sm:$0xff] }
 0x287   :  { %v2038_v45 = vadd.f32 %v7231_v41, %v2006_v23  ;;  %1985 = vst.msk [vmem:[#allocation3 + $0x40] sm:$0xff] %vm1152_vm6, %v1961_v21  ;;  %v7248_v37 = vpop.f32.mrf.mxu2  ;;  %2589 = vmatpush.msrb.mxu0 %v2198_v19  ;;  %2629 = vmatpush.msrb.mxu1 %v2253_v15  ;;  %v1903_v23 = vpop.f32.mrf.mxu0  ;;  %v1198_v22 = vld [vmem:[#allocation3 + $0xb8] sm:$0xff] }
 0x288   :  { %v1528_v5 = vpop.f32.mrf.mxu3  ;;  %2520 = vmatpush.msrb.mxu2 %v2272_v12 }
 0x289   :  { %vm2062_vm15 = vcmp.ge.f32.partialorder %v2038_v45, 0.0  ;;  %v2086_v51 = vmul.f32 0.01, %v2038_v45  ;;  %v1529_v30 = vadd.f32 %v1528_v5, %v7228_v39  ;;  %v2266_v39 = vld [vmem:[#allocation10 + $0x2f8] sm:$0xff]  ;;  %2590 = vmatpush.msrb.mxu0 %v2193_v35 }
 0x28a   :  { %2416 = vmatpush.msra.mxu3 %v2266_v39  ;;  %2521 = vmatpush.msrb.mxu2 %v2267_v52  ;;  %v1944_v21 = vpop.f32.mrf.mxu1  ;;  %v2178_v5 = vld [vmem:[#allocation10 + $0x38] sm:$0xff] }
 0x28b   :  { %v2110_v48 = vsel %vm2062_vm15, %v2038_v45, %v2086_v51  ;;  %v1554_v50 = vadd.f32 %v1529_v30, %v1189_v46  ;;  %v7251_v27 = vld [vmem:[#allocation3 + $0x10] sm:$0xff]  ;;  %2591 = vmatpush.msrb.mxu0 %v2188_v24  ;;  %v2183_v45 = vld [vmem:[#allocation10 + $0x60] sm:$0xff]  ;;  %v1945_v38 = vadd.f32 %v1944_v21, %v1903_v23  ;;  %vm2898_vm15 = vcmask 523264  }
 0x28c   :  { %2134 = vst.msk [vmem:[#allocation3 + $0x28] sm:$0xff] %vm1152_vm6, %v2110_v48  ;;  %v1599_v2 = vld [vmem:[#allocation3 + $0x58] sm:$0xff]  ;;  %6020 = vmatmul.msk.f32.vlgmr.msra.gmra.mxu0 %vm1152_vm6, %v7251_v27  ;;  %2417 = vmatpush.msra.mxu3 %v2261_v63  ;;  %v2324_v21 = vld [vmem:[#allocation10 + $0x4c8] sm:$0xff] }
 0x28d   :  { %v1964_v60 = vadd.f32 %v1939_v57, %v1599_v2  ;;  %1578 = vst.msk [vmem:[#allocation3 + $0x70] sm:$0xff] %vm1152_vm6, %v1554_v50  ;;  %2522 = vmatpush.msrb.mxu2 %v2262_v61  ;;  %2592 = vmatpush.msrb.mxu0 %v2183_v45  ;;  %v1592_v45 = vld [vmem:[#allocation3 + $0x20] sm:$0xff] }
 0x28e   :  { %v2009_v17 = vld [vmem:[#allocation3 + $0x40] sm:$0xff]  ;;  %2418 = vmatpush.msra.mxu3 %v2256_v53 }
 0x28f   :  { %v2041_v18 = vadd.f32 %v7231_v41, %v2009_v17  ;;  %1988 = vst.msk [vmem:[#allocation3 + $0x58] sm:$0xff] %vm1152_vm6, %v1964_v60  ;;  %v1496_v10 = vpop.f32.mrf.mxu2  ;;  %2523 = vmatpush.msrb.mxu2 %v2257_v16  ;;  %2593 = vmatpush.msrb.mxu0 %v2178_v5  ;;  %v1906_v50 = vpop.f32.mrf.mxu0  ;;  %v2314_v5 = vld [vmem:[#allocation10 + $0x478] sm:$0xff] }
 0x290   :  { %v1531_v54 = vpop.f32.mrf.mxu3  ;;  %2419 = vmatpush.msra.mxu3 %v2251_v14 }
 0x291   :  { %vm2065_vm1 = vcmp.ge.f32.partialorder %v2041_v18, 0.0  ;;  %v2089_v4 = vmul.f32 0.01, %v2041_v18  ;;  %v1532_v6 = vadd.f32 %v1531_v54, %v7240_v1  ;;  %2524 = vmatpush.msrb.mxu2 %v2252_v42  ;;  %2594 = vmatpush.msrb.mxu0 %v2173_v33  ;;  %v2304_v33 = vld [vmem:[#allocation10 + $0x428] sm:$0xff] }
 0x292   :  { %v1947_v48 = vpop.f32.mrf.mxu1 }
 0x293   :  { %v2113_v26 = vsel %vm2065_vm1, %v2041_v18, %v2089_v4  ;;  %v1557_v20 = vadd.f32 %v1532_v6, %v1192_v55  ;;  %v7260_v31 = vld [vmem:[#allocation3 + $0x28] sm:$0xff]  ;;  %v1948_v56 = vadd.f32 %v1947_v48, %v1906_v50 }
 0x294   :  { %2137 = vst.msk [vmem:[#allocation3 + $0x40] sm:$0xff] %vm1152_vm6, %v2113_v26  ;;  %v1602_v1 = vld [vmem:[#allocation3 + $0x70] sm:$0xff]  ;;  %6021 = vmatmul.msk.f32.gmra.mxu0 %vm1152_vm6, %v7260_v31  ;;  %v1589_v6 = vld [vmem:[#allocation3 + $0x8] sm:$0xff] }
 0x295   :  { %v1967_v7 = vadd.f32 %v1942_v36, %v1602_v1  ;;  %1581 = vst.msk [vmem:[#allocation3 + $0x88] sm:$0xff] %vm1152_vm6, %v1557_v20  ;;  %v2329_v36 = vld [vmem:[#allocation10 + $0x4f0] sm:$0xff]  ;;  %v2299_v50 = vld [vmem:[#allocation10 + $0x400] sm:$0xff] }
 0x296   :  { %v2012_v25 = vld [vmem:[#allocation3 + $0x58] sm:$0xff]  ;;  %2719 = vmatpush.msra.mxu0 %v2329_v36 }
 0x297   :  { %v2044_v28 = vadd.f32 %v7231_v41, %v2012_v25  ;;  %1991 = vst.msk [vmem:[#allocation3 + $0x70] sm:$0xff] %vm1152_vm6, %v1967_v7  ;;  %v1806_v51 = vpop.f32.mrf.mxu2  ;;  %v1909_v4 = vpop.f32.mrf.mxu0  ;;  %v2333_v36 = vld [vmem:[#allocation10 + $0x510] sm:$0xff] }
 0x298   :  { %v1534_v59 = vpop.f32.mrf.mxu3  ;;  %2720 = vmatpush.msra.mxu0 %v2324_v21  ;;  %v2264_v21 = vld [vmem:[#allocation10 + $0x2e8] sm:$0xff] }
 0x299   :  { %vm2068_vm2 = vcmp.ge.f32.partialorder %v2044_v28, 0.0  ;;  %v2092_v58 = vmul.f32 0.01, %v2044_v28  ;;  %v1535_v9 = vadd.f32 %v1534_v59, %v7248_v37 }
 0x29a   :  { %v1950_v11 = vpop.f32.mrf.mxu1 }
 0x29b   :  { %v2116_v30 = vsel %vm2068_vm2, %v2044_v28, %v2092_v58  ;;  %v1560_v40 = vadd.f32 %v1535_v9, %v1195_v32  ;;  %v7269_v12 = vld [vmem:[#allocation3 + $0x40] sm:$0xff]  ;;  %v1951_v19 = vadd.f32 %v1950_v11, %v1909_v4  ;;  %v2284_v11 = vld [vmem:[#allocation10 + $0x388] sm:$0xff] }
 0x29c   :  { %2140 = vst.msk [vmem:[#allocation3 + $0x58] sm:$0xff] %vm1152_vm6, %v2116_v30  ;;  %v1605_v46 = vld [vmem:[#allocation3 + $0x88] sm:$0xff]  ;;  %6022 = vmatmul.msk.f32.gmra.mxu0 %vm1152_vm6, %v7269_v12 }
 0x29d   :  { %v1970_v47 = vadd.f32 %v1945_v38, %v1605_v46  ;;  %1584 = vst.msk [vmem:[#allocation3 + $0xa0] sm:$0xff] %vm1152_vm6, %v1560_v40  ;;  %v2319_v28 = vld [vmem:[#allocation10 + $0x4a0] sm:$0xff] }
 0x29e   :  { %v2015_v37 = vld [vmem:[#allocation3 + $0x70] sm:$0xff]  ;;  %2721 = vmatpush.msra.mxu0 %v2319_v28  ;;  %v2259_v28 = vld [vmem:[#allocation10 + $0x2c0] sm:$0xff] }
 0x29f   :  { %v2047_v57 = vadd.f32 %v7231_v41, %v2015_v37  ;;  %1994 = vst.msk [vmem:[#allocation3 + $0x88] sm:$0xff] %vm1152_vm6, %v1970_v47  ;;  %v1809_v61 = vpop.f32.mrf.mxu2 }
 0x2a0   :  { %v1537_v49 = vpop.f32.mrf.mxu3  ;;  %2722 = vmatpush.msra.mxu0 %v2314_v5 }
 0x2a1   :  { %vm2071_vm3 = vcmp.ge.f32.partialorder %v2047_v57, 0.0  ;;  %v2095_v39 = vmul.f32 0.01, %v2047_v57  ;;  %v1538_v2 = vadd.f32 %v1537_v49, %v1496_v10  ;;  %v1595_v49 = vld [vmem:[#allocation3 + $0x38] sm:$0xff] }
 0x2a3   :  { %v2119_v52 = vsel %vm2071_vm3, %v2047_v57, %v2095_v39  ;;  %v1563_v60 = vadd.f32 %v1538_v2, %v1198_v22  ;;  %v7277_v8 = vld [vmem:[#allocation3 + $0x58] sm:$0xff]  ;;  %v2347_v22 = vld [vmem:[#allocation10 + $0x580] sm:$0xff] }
 0x2a4   :  { %2143 = vst.msk [vmem:[#allocation3 + $0x70] sm:$0xff] %vm1152_vm6, %v2119_v52  ;;  %v1608_v63 = vld [vmem:[#allocation3 + $0xa0] sm:$0xff]  ;;  %6023 = vmatmul.msk.f32.gmra.mxu0 %vm1152_vm6, %v7277_v8  ;;  %v2348_v52 = vld [vmem:[#allocation10 + $0x588] sm:$0xff]  ;;  %2556 = vmatpush.msrb.mxu3 %v2347_v22 }
 0x2a5   :  { %v1973_v17 = vadd.f32 %v1948_v56, %v1608_v63  ;;  %1587 = vst.msk [vmem:[#allocation3 + $0xb8] sm:$0xff] %vm1152_vm6, %v1563_v60  ;;  %v2294_v2 = vld [vmem:[#allocation10 + $0x3d8] sm:$0xff]  ;;  %v2349_v56 = vld [vmem:[#allocation10 + $0x590] sm:$0xff]  ;;  %2661 = vmatpush.msra.mxu2 %v2348_v52  ;;  %v2240_v22 = vld [vmem:[#allocation10 + $0x228] sm:$0xff] }
 0x2a6   :  { %v2018_v62 = vld [vmem:[#allocation3 + $0x88] sm:$0xff]  ;;  %v2289_v63 = vld [vmem:[#allocation10 + $0x3b0] sm:$0xff]  ;;  %2766 = vmatpush.msra.mxu1 %v2349_v56 }
 0x2a7   :  { %v2050_v18 = vadd.f32 %v7231_v41, %v2018_v62  ;;  %1997 = vst.msk [vmem:[#allocation3 + $0xa0] sm:$0xff] %vm1152_vm6, %v1973_v17  ;;  %v1812_v0 = vpop.f32.mrf.mxu2  ;;  %v2343_v17 = vld [vmem:[#allocation10 + $0x560] sm:$0xff]  ;;  %v2344_v62 = vld [vmem:[#allocation10 + $0x568] sm:$0xff] }
 0x2a8   :  { %v1847_v53 = vpop.f32.mrf.mxu3  ;;  %2662 = vmatpush.msra.mxu2 %v2343_v17  ;;  %2767 = vmatpush.msra.mxu1 %v2344_v62  ;;  %v3039_v52 = vld [vmem:[#allocation10 + $0x7a8] sm:$0xff]  ;;  %v1607_v17 = vld [vmem:[#allocation3 + $0x98] sm:$0xff]  ;;  %v3034_v62 = vld [vmem:[#allocation10 + $0x780] sm:$0xff] }
 0x2a9   :  { %vm2074_vm4 = vcmp.ge.f32.partialorder %v2050_v18, 0.0  ;;  %v2098_v16 = vmul.f32 0.01, %v2050_v18  ;;  %v1848_v54 = vadd.f32 %v1847_v53, %v1806_v51  ;;  %v2309_v51 = vld [vmem:[#allocation10 + $0x450] sm:$0xff] }
 0x2aa   :  { %2723 = vmatpush.msra.mxu0 %v2309_v51  ;;  %v2337_v53 = vld [vmem:[#allocation10 + $0x530] sm:$0xff] }
 0x2ab   :  { %v2122_v10 = vsel %vm2074_vm4, %v2050_v18, %v2098_v16  ;;  %v1954_v14 = vadd.f32 %v1848_v54, %v1589_v6  ;;  %v7288_v42 = vld [vmem:[#allocation3 + $0x70] sm:$0xff]  ;;  %v2338_v16 = vld [vmem:[#allocation10 + $0x538] sm:$0xff]  ;;  %v2279_v6 = vld [vmem:[#allocation10 + $0x360] sm:$0xff] }
 0x2ac   :  { %2146 = vst.msk [vmem:[#allocation3 + $0x88] sm:$0xff] %vm1152_vm6, %v2122_v10  ;;  %v1611_v55 = vld [vmem:[#allocation3 + $0xb8] sm:$0xff]  ;;  %6024 = vmatmul.msk.f32.gmra.mxu0 %vm1152_vm6, %v7288_v42  ;;  %2663 = vmatpush.msra.mxu2 %v2338_v16  ;;  %v2339_v10 = vld [vmem:[#allocation10 + $0x540] sm:$0xff] }
 0x2ad   :  { %v1976_v15 = vadd.f32 %v1951_v19, %v1611_v55  ;;  %v2034_v26 = vadd.f32 %v7286_v3, %v1954_v14  ;;  %2724 = vmatpush.msra.mxu0 %v2304_v33  ;;  %v1598_v19 = vld [vmem:[#allocation3 + $0x50] sm:$0xff]  ;;  %2768 = vmatpush.msra.mxu1 %v2339_v10  ;;  %v3029_v16 = vld [vmem:[#allocation10 + $0x758] sm:$0xff] }
 0x2ae   :  { %v2021_v20 = vld [vmem:[#allocation3 + $0xa0] sm:$0xff]  ;;  %v2332_v55 = vld [vmem:[#allocation10 + $0x508] sm:$0xff]  ;;  %2664 = vmatpush.msra.mxu2 %v2333_v36  ;;  %v3024_v10 = vld [vmem:[#allocation10 + $0x730] sm:$0xff] }
 0x2af   :  { %v2053_v35 = vadd.f32 %v7231_v41, %v2021_v20  ;;  %2000 = vst.msk [vmem:[#allocation3 + $0xb8] sm:$0xff] %vm1152_vm6, %v1976_v15  ;;  %vm2058_vm5 = vcmp.ge.f32.partialorder %v2034_v26, 0.0  ;;  %v2082_v1 = vmul.f32 0.01, %v2034_v26  ;;  %v1815_v47 = vpop.f32.mrf.mxu2  ;;  %2725 = vmatpush.msra.mxu0 %v2299_v50  ;;  %v2334_v20 = vld [vmem:[#allocation10 + $0x518] sm:$0xff]  ;;  %v2245_v50 = vld [vmem:[#allocation10 + $0x250] sm:$0xff] }
 0x2b0   :  { %v1850_v7 = vpop.f32.mrf.mxu3  ;;  %2769 = vmatpush.msra.mxu1 %v2334_v20  ;;  %v3019_v20 = vld [vmem:[#allocation10 + $0x708] sm:$0xff] }
 0x2b1   :  { %vm2077_vm7 = vcmp.ge.f32.partialorder %v2053_v35, 0.0  ;;  %v2101_v24 = vmul.f32 0.01, %v2053_v35  ;;  %v7296_v25 = vsel %vm2058_vm5, %v2034_v26, %v2082_v1  ;;  %v1851_v23 = vadd.f32 %v1850_v7, %v1809_v61  ;;  %2726 = vmatpush.msra.mxu0 %v2294_v2  ;;  %v2342_v61 = vld [vmem:[#allocation10 + $0x558] sm:$0xff]  ;;  %v2239_v2 = vld [vmem:[#allocation10 + $0x220] sm:$0xff] }
 0x2b2   :  { %2130 = vst [vmem:[#allocation3 + $0x8] sm:$0xff] %v7296_v25  ;;  %2420 = vmatmul.f32.vlgmr.msra.gmra.mxu3 %v7296_v25  ;;  %2525 = vmatmul.f32.vlgmr.msrb.gmra.mxu2 %v7296_v25  ;;  %v2274_v26 = vld [vmem:[#allocation10 + $0x338] sm:$0xff] }
 0x2b3   :  { %v2125_v59 = vsel %vm2077_vm7, %v2053_v35, %v2101_v24  ;;  %v1957_v58 = vadd.f32 %v1851_v23, %v1592_v45  ;;  %v7301_v9 = vld [vmem:[#allocation3 + $0x88] sm:$0xff]  ;;  %2630 = vmatmul.f32.vlgmr.msrb.gmra.mxu1 %v7296_v25  ;;  %2557 = vmatpush.msrb.mxu3 %v2342_v61  ;;  %v2269_v35 = vld [vmem:[#allocation10 + $0x310] sm:$0xff]  ;;  %v2254_v45 = vld [vmem:[#allocation10 + $0x298] sm:$0xff] }
 0x2b4   :  { %2149 = vst.msk [vmem:[#allocation3 + $0xa0] sm:$0xff] %vm1152_vm6, %v2125_v59  ;;  %6025 = vmatmul.msk.f32.gmra.mxu0 %vm1152_vm6, %v7301_v9  ;;  %v2235_v61 = vld [vmem:[#allocation10 + $0x200] sm:$0xff] }
 0x2b5   :  { %v2037_v32 = vadd.f32 %v7286_v3, %v1957_v58  ;;  %2727 = vmatpush.msra.mxu0 %v2289_v63  ;;  %2558 = vmatpush.msrb.mxu3 %v2337_v53  ;;  %v2234_v63 = vld [vmem:[#allocation10 + $0x1f8] sm:$0xff] }
 0x2b6   :  { %v2024_v30 = vld [vmem:[#allocation3 + $0xb8] sm:$0xff] }
 0x2b7   :  { %v2056_v38 = vadd.f32 %v7231_v41, %v2024_v30  ;;  %vm2061_vm8 = vcmp.ge.f32.partialorder %v2037_v32, 0.0  ;;  %v2085_v40 = vmul.f32 0.01, %v2037_v32  ;;  %2728 = vmatpush.msra.mxu0 %v2284_v11  ;;  %v1818_v14 = vpop.f32.mrf.mxu2  ;;  %2559 = vmatpush.msrb.mxu3 %v2332_v55  ;;  %v2229_v11 = vld [vmem:[#allocation10 + $0x1d0] sm:$0xff]  ;;  %v2230_v53 = vld [vmem:[#allocation10 + $0x1d8] sm:$0xff] }
 0x2b8   :  { %v1853_v46 = vpop.f32.mrf.mxu3 }
 0x2b9   :  { %vm2080_vm9 = vcmp.ge.f32.partialorder %v2056_v38, 0.0  ;;  %v2104_v37 = vmul.f32 0.01, %v2056_v38  ;;  %v7309_v48 = vsel %vm2061_vm8, %v2037_v32, %v2085_v40  ;;  %v1854_v57 = vadd.f32 %v1853_v46, %v1812_v0  ;;  %2729 = vmatpush.msra.mxu0 %v2279_v6  ;;  %v1604_v40 = vld [vmem:[#allocation3 + $0x80] sm:$0xff]  ;;  %v2225_v6 = vld [vmem:[#allocation10 + $0x1b0] sm:$0xff] }
 0x2ba   :  { %2133 = vst [vmem:[#allocation3 + $0x20] sm:$0xff] %v7309_v48  ;;  %2423 = vmatmul.f32.gmra.mxu3 %v7309_v48  ;;  %2528 = vmatmul.f32.gmra.mxu2 %v7309_v48  ;;  %v2250_v46 = vld [vmem:[#allocation10 + $0x278] sm:$0xff] }
 0x2bb   :  { %v2128_v41 = vsel %vm2080_vm9, %v2056_v38, %v2104_v37  ;;  %v1960_v39 = vadd.f32 %v1854_v57, %v1595_v49  ;;  %2633 = vmatmul.f32.gmra.mxu1 %v7309_v48  ;;  %2730 = vmatpush.msra.mxu0 %v2274_v26  ;;  %v2244_v57 = vld [vmem:[#allocation10 + $0x248] sm:$0xff]  ;;  %v3044_v49 = vld [vmem:[#allocation10 + $0x7d0] sm:$0xff] }
 0x2bc   :  { %2152 = vst.msk [vmem:[#allocation3 + $0xb8] sm:$0xff] %vm1152_vm6, %v2128_v41  ;;  %2595 = vmatmul.f32.vlgmr.msrb.gmra.mxu0 %v7170_v13  ;;  %2789 = vmatpush.msrb.mxu2 %v2250_v46  ;;  %v2220_v26 = vld [vmem:[#allocation10 + $0x188] sm:$0xff]  ;;  %v2189_v46 = vld [vmem:[#allocation10 + $0x90] sm:$0xff] }
 0x2bd   :  { %v2040_v60 = vadd.f32 %v7286_v3, %v1960_v39  ;;  %2731 = vmatpush.msra.mxu0 %v2269_v35  ;;  %v2214_v35 = vld [vmem:[#allocation10 + $0x158] sm:$0xff] }
 0x2be   :  { %2790 = vmatpush.msrb.mxu2 %v2245_v50  ;;  %v2185_v50 = vld [vmem:[#allocation10 + $0x70] sm:$0xff] }
 0x2bf   :  { %vm2064_vm10 = vcmp.ge.f32.partialorder %v2040_v60, 0.0  ;;  %v2088_v18 = vmul.f32 0.01, %v2040_v60  ;;  %2732 = vmatpush.msra.mxu0 %v2264_v21  ;;  %v1821_v58 = vpop.f32.mrf.mxu2 }
 0x2c0   :  { %v1856_v13 = vpop.f32.mrf.mxu3  ;;  %2791 = vmatpush.msrb.mxu2 %v2240_v22  ;;  %v2350_v22 = vld [vmem:[#allocation10 + $0x598] sm:$0xff] }
 0x2c1   :  { %v7318_v54 = vsel %vm2064_vm10, %v2040_v60, %v2088_v18  ;;  %v1857_v4 = vadd.f32 %v1856_v13, %v1815_v47  ;;  %2733 = vmatpush.msra.mxu0 %v2259_v28  ;;  %v3049_v47 = vld [vmem:[#allocation10 + $0x7f8] sm:$0xff]  ;;  %v2209_v28 = vld [vmem:[#allocation10 + $0x130] sm:$0xff] }
 0x2c2   :  { %2136 = vst [vmem:[#allocation3 + $0x38] sm:$0xff] %v7318_v54  ;;  %2426 = vmatmul.f32.gmra.mxu3 %v7318_v54  ;;  %2531 = vmatmul.f32.gmra.mxu2 %v7318_v54 }
 0x2c3   :  { %v1963_v15 = vadd.f32 %v1857_v4, %v1598_v19  ;;  %2636 = vmatmul.f32.gmra.mxu1 %v7318_v54  ;;  %2734 = vmatpush.msra.mxu0 %v2254_v45  ;;  %v2224_v4 = vld [vmem:[#allocation10 + $0x1a8] sm:$0xff] }
 0x2c4   :  { %2598 = vmatmul.f32.gmra.mxu0 %v7177_v34  ;;  %v1601_v34 = vld [vmem:[#allocation3 + $0x68] sm:$0xff]  ;;  %3172 = vmatpush.msrb.mxu1 %v3049_v47 }
 0x2c5   :  { %v2043_v0 = vadd.f32 %v7286_v3, %v1963_v15  ;;  %2792 = vmatpush.msrb.mxu2 %v2235_v61  ;;  %v2994_v47 = vld [vmem:[#allocation10 + $0x640] sm:$0xff]  ;;  %2871 = vmatpush.msrb.mxu0 %v2350_v22  ;;  %v7377_v61 = vpop.f32.mrf.mxu1 }
 0x2c6   :  { %3173 = vmatpush.msrb.mxu1 %v3044_v49  ;;  %v2989_v49 = vld [vmem:[#allocation10 + $0x618] sm:$0xff] }
 0x2c7   :  { %vm2067_vm11 = vcmp.ge.f32.partialorder %v2043_v0, 0.0  ;;  %v2091_v1 = vmul.f32 0.01, %v2043_v0  ;;  %v1824_v41 = vpop.f32.mrf.mxu2  ;;  %2793 = vmatpush.msrb.mxu2 %v2230_v53 }
 0x2c8   :  { %v1859_v7 = vpop.f32.mrf.mxu3  ;;  %3174 = vmatpush.msrb.mxu1 %v3039_v52  ;;  %v2345_v52 = vld [vmem:[#allocation10 + $0x570] sm:$0xff] }
 0x2c9   :  { %v7326_v24 = vsel %vm2067_vm11, %v2043_v0, %v2091_v1  ;;  %v1860_v23 = vadd.f32 %v1859_v7, %v1818_v14  ;;  %v2219_v14 = vld [vmem:[#allocation10 + $0x180] sm:$0xff]  ;;  %2794 = vmatpush.msrb.mxu2 %v2225_v6  ;;  %v1610_v0 = vld [vmem:[#allocation3 + $0xb0] sm:$0xff]  ;;  %2872 = vmatpush.msrb.mxu0 %v2345_v52 }
 0x2ca   :  { %2139 = vst [vmem:[#allocation3 + $0x50] sm:$0xff] %v7326_v24  ;;  %2429 = vmatmul.f32.gmra.mxu3 %v7326_v24  ;;  %2534 = vmatmul.f32.gmra.mxu2 %v7326_v24  ;;  %v2215_v1 = vld [vmem:[#allocation10 + $0x160] sm:$0xff] }
 0x2cb   :  { %v1966_v59 = vadd.f32 %v1860_v23, %v1601_v34  ;;  %2639 = vmatmul.f32.gmra.mxu1 %v7326_v24  ;;  %2795 = vmatpush.msrb.mxu2 %v2220_v26  ;;  %v3014_v7 = vld [vmem:[#allocation10 + $0x6e0] sm:$0xff]  ;;  %v7359_v23 = vld [vmem:[#allocation3 + $0x78] sm:$0xff] }
 0x2cc   :  { %2601 = vmatmul.f32.gmra.mxu0 %v7184_v43  ;;  %v2249_v43 = vld [vmem:[#allocation10 + $0x270] sm:$0xff]  ;;  %3175 = vmatpush.msrb.mxu1 %v3034_v62  ;;  %v2210_v34 = vld [vmem:[#allocation10 + $0x138] sm:$0xff]  ;;  %v2974_v62 = vld [vmem:[#allocation10 + $0x5a0] sm:$0xff] }
 0x2cd   :  { %v2046_v5 = vadd.f32 %v7286_v3, %v1966_v59  ;;  %2684 = vmatpush.msra.mxu3 %v2249_v43  ;;  %2796 = vmatpush.msrb.mxu2 %v2215_v1  ;;  %v3009_v59 = vld [vmem:[#allocation10 + $0x6b8] sm:$0xff]  ;;  %v2195_v43 = vld [vmem:[#allocation10 + $0xc0] sm:$0xff]  ;;  %v7388_v53 = vpop.f32.mrf.mxu1  ;;  %v3120_v26 = vld [vmem:[#allocation10 + $0xa30] sm:$0xff] }
 0x2ce   :  { %3176 = vmatpush.msrb.mxu1 %v3029_v16  ;;  %v2330_v16 = vld [vmem:[#allocation10 + $0x4f8] sm:$0xff]  ;;  %v3115_v1 = vld [vmem:[#allocation10 + $0xa08] sm:$0xff] }
 0x2cf   :  { %vm2070_vm12 = vcmp.ge.f32.partialorder %v2046_v5, 0.0  ;;  %v2094_v32 = vmul.f32 0.01, %v2046_v5  ;;  %2685 = vmatpush.msra.mxu3 %v2244_v57  ;;  %v1827_v55 = vpop.f32.mrf.mxu2  ;;  %2797 = vmatpush.msrb.mxu2 %v2210_v34  ;;  %v2184_v57 = vld [vmem:[#allocation10 + $0x68] sm:$0xff]  ;;  %v3045_v34 = vld [vmem:[#allocation10 + $0x7d8] sm:$0xff] }
 0x2d0   :  { %v1862_v51 = vpop.f32.mrf.mxu3  ;;  %3177 = vmatpush.msrb.mxu1 %v3024_v10  ;;  %v2325_v10 = vld [vmem:[#allocation10 + $0x4d0] sm:$0xff] }
 0x2d1   :  { %v7334_v30 = vsel %vm2070_vm12, %v2046_v5, %v2094_v32  ;;  %v1863_v38 = vadd.f32 %v1862_v51, %v1821_v58  ;;  %2686 = vmatpush.msra.mxu3 %v2239_v2  ;;  %v2204_v58 = vld [vmem:[#allocation10 + $0x108] sm:$0xff]  ;;  %v2205_v5 = vld [vmem:[#allocation10 + $0x110] sm:$0xff] }
 0x2d2   :  { %2142 = vst [vmem:[#allocation3 + $0x68] sm:$0xff] %v7334_v30  ;;  %2432 = vmatmul.f32.gmra.mxu3 %v7334_v30  ;;  %2537 = vmatmul.f32.gmra.mxu2 %v7334_v30  ;;  %v2180_v2 = vld [vmem:[#allocation10 + $0x48] sm:$0xff] }
 0x2d3   :  { %v1969_v33 = vadd.f32 %v1863_v38, %v1604_v40  ;;  %2642 = vmatmul.f32.gmra.mxu1 %v7334_v30  ;;  %2687 = vmatpush.msra.mxu3 %v2234_v63  ;;  %v3004_v38 = vld [vmem:[#allocation10 + $0x690] sm:$0xff]  ;;  %v2194_v40 = vld [vmem:[#allocation10 + $0xb8] sm:$0xff]  ;;  %v2175_v63 = vld [vmem:[#allocation10 + $0x20] sm:$0xff] }
 0x2d4   :  { %2604 = vmatmul.f32.gmra.mxu0 %v7191_v29  ;;  %3178 = vmatpush.msrb.mxu1 %v3019_v20  ;;  %v2315_v20 = vld [vmem:[#allocation10 + $0x480] sm:$0xff] }
 0x2d5   :  { %v2049_v37 = vadd.f32 %v7286_v3, %v1969_v33  ;;  %2688 = vmatpush.msra.mxu3 %v2229_v11  ;;  %2798 = vmatpush.msrb.mxu2 %v2205_v5  ;;  %v2999_v33 = vld [vmem:[#allocation10 + $0x668] sm:$0xff]  ;;  %v3105_v5 = vld [vmem:[#allocation10 + $0x9b8] sm:$0xff] }
 0x2d6   :  { %3179 = vmatpush.msrb.mxu1 %v3014_v7  ;;  %v3109_v7 = vld [vmem:[#allocation10 + $0x9d8] sm:$0xff] }
 0x2d7   :  { %vm2073_vm13 = vcmp.ge.f32.partialorder %v2049_v37, 0.0  ;;  %v2097_v39 = vmul.f32 0.01, %v2049_v37  ;;  %2689 = vmatpush.msra.mxu3 %v2224_v4  ;;  %v7383_v11 = vpop.f32.mrf.mxu2  ;;  %v3130_v4 = vld [vmem:[#allocation10 + $0xa80] sm:$0xff] }
 0x2d8   :  { %v1865_v56 = vpop.f32.mrf.mxu3  ;;  %3180 = vmatpush.msrb.mxu1 %v3009_v59  ;;  %v2305_v59 = vld [vmem:[#allocation10 + $0x430] sm:$0xff] }
 0x2d9   :  { %v7342_v29 = vsel %vm2073_vm13, %v2049_v37, %v2097_v39  ;;  %v1866_v60 = vadd.f32 %v1865_v56, %v1824_v41  ;;  %2690 = vmatpush.msra.mxu3 %v2219_v14  ;;  %v2190_v37 = vld [vmem:[#allocation10 + $0x98] sm:$0xff]  ;;  %v2179_v41 = vld [vmem:[#allocation10 + $0x40] sm:$0xff]  ;;  %v2984_v39 = vld [vmem:[#allocation10 + $0x5f0] sm:$0xff] }
 0x2da   :  { %2145 = vst [vmem:[#allocation3 + $0x80] sm:$0xff] %v7342_v29  ;;  %2435 = vmatmul.f32.gmra.mxu3 %v7342_v29  ;;  %2540 = vmatmul.f32.gmra.mxu2 %v7342_v29  ;;  %v2174_v56 = vld [vmem:[#allocation10 + $0x18] sm:$0xff] }
 0x2db   :  { %v1972_v18 = vadd.f32 %v1866_v60, %v1607_v17  ;;  %2645 = vmatmul.f32.gmra.mxu1 %v7342_v29  ;;  %2691 = vmatpush.msra.mxu3 %v2214_v35  ;;  %v2979_v60 = vld [vmem:[#allocation10 + $0x5c8] sm:$0xff]  ;;  %v3125_v14 = vld [vmem:[#allocation10 + $0xa58] sm:$0xff]  ;;  %v7401_v35 = vpop.f32.mrf.mxu1 }
 0x2dc   :  { %2607 = vmatmul.f32.gmra.mxu0 %v7198_v44  ;;  %3181 = vmatpush.msrb.mxu1 %v3004_v38  ;;  %v2340_v17 = vld [vmem:[#allocation10 + $0x548] sm:$0xff] }
 0x2dd   :  { %v2052_v13 = vadd.f32 %v7286_v3, %v1972_v18  ;;  %2692 = vmatpush.msra.mxu3 %v2209_v28  ;;  %v2335_v18 = vld [vmem:[#allocation10 + $0x520] sm:$0xff]  ;;  %2873 = vmatpush.msrb.mxu0 %v2340_v17  ;;  %v2300_v38 = vld [vmem:[#allocation10 + $0x408] sm:$0xff] }
 0x2de   :  { %3182 = vmatpush.msrb.mxu1 %v2999_v33  ;;  %v3050_v28 = vld [vmem:[#allocation10 + $0x800] sm:$0xff]  ;;  %v3035_v33 = vld [vmem:[#allocation10 + $0x788] sm:$0xff] }
 0x2df   :  { %vm2076_vm0 = vcmp.ge.f32.partialorder %v2052_v13, 0.0  ;;  %v2100_v19 = vmul.f32 0.01, %v2052_v13  ;;  %2693 = vmatpush.msra.mxu3 %v2204_v58  ;;  %2874 = vmatpush.msrb.mxu0 %v2335_v18  ;;  %v7397_v6 = vpop.f32.mrf.mxu2  ;;  %v3104_v58 = vld [vmem:[#allocation10 + $0x9b0] sm:$0xff] }
 0x2e0   :  { %v1868_v15 = vpop.f32.mrf.mxu3  ;;  %3183 = vmatpush.msrb.mxu1 %v2994_v47  ;;  %v2295_v47 = vld [vmem:[#allocation10 + $0x3e0] sm:$0xff]  ;;  %v7424_v17 = vld [vmem:[#allocation3 + $0x30] sm:$0xff] }
 0x2e1   :  { %v7350_v44 = vsel %vm2076_vm0, %v2052_v13, %v2100_v19  ;;  %v1869_v36 = vadd.f32 %v1868_v15, %v1827_v55  ;;  %v3129_v13 = vld [vmem:[#allocation10 + $0xa78] sm:$0xff]  ;;  %v3124_v19 = vld [vmem:[#allocation10 + $0xa50] sm:$0xff]  ;;  %v2320_v55 = vld [vmem:[#allocation10 + $0x4a8] sm:$0xff] }
 0x2e2   :  { %2148 = vst [vmem:[#allocation3 + $0x98] sm:$0xff] %v7350_v44  ;;  %6026 = vmatmul.msk.f32.vlgmr.msrb.gmra.mxu3 %vm1152_vm6, %v7251_v27  ;;  %6032 = vmatmul.msk.f32.vlgmr.msra.gmra.mxu2 %vm1152_vm6, %v7251_v27  ;;  %v3119_v15 = vld [vmem:[#allocation10 + $0xa28] sm:$0xff]  ;;  %v2285_v18 = vld [vmem:[#allocation10 + $0x390] sm:$0xff] }
 0x2e3   :  { %v1975_v21 = vadd.f32 %v1869_v36, %v1610_v0  ;;  %6038 = vmatmul.msk.f32.vlgmr.msra.gmra.mxu1 %vm1152_vm6, %v7251_v27  ;;  %v2199_v27 = vld [vmem:[#allocation10 + $0xe0] sm:$0xff] }
 0x2e4   :  { %2610 = vmatmul.f32.gmra.mxu0 %v7359_v23  ;;  %2694 = vmatpush.msra.mxu3 %v2199_v27  ;;  %v3114_v0 = vld [vmem:[#allocation10 + $0xa00] sm:$0xff] }
 0x2e5   :  { %v2055_v45 = vadd.f32 %v7286_v3, %v1975_v21  ;;  %v2200_v3 = vld [vmem:[#allocation10 + $0xe8] sm:$0xff]  ;;  %3184 = vmatpush.msrb.mxu1 %v2989_v49  ;;  %v2310_v21 = vld [vmem:[#allocation10 + $0x458] sm:$0xff] }
 0x2e6   :  { %2799 = vmatpush.msrb.mxu2 %v2200_v3  ;;  %2695 = vmatpush.msra.mxu3 %v2194_v40  ;;  %v6145_v3 = vld [vmem:[#allocation3] sm:$0xff]  ;;  %v7414_v40 = vld [vmem:[#allocation3 + $0x18] sm:$0xff]  ;;  %v3095_v49 = vld [vmem:[#allocation10 + $0x968] sm:$0xff] }
 0x2e7   :  { %vm2079_vm14 = vcmp.ge.f32.partialorder %v2055_v45, 0.0  ;;  %v2103_v32 = vmul.f32 0.01, %v2055_v45  ;;  %3185 = vmatpush.msrb.mxu1 %v2984_v39  ;;  %v3025_v39 = vld [vmem:[#allocation10 + $0x738] sm:$0xff] }
 0x2e8   :  { %2800 = vmatpush.msrb.mxu2 %v2195_v43  ;;  %2696 = vmatpush.msra.mxu3 %v2189_v46  ;;  %v3099_v43 = vld [vmem:[#allocation10 + $0x988] sm:$0xff]  ;;  %v3100_v46 = vld [vmem:[#allocation10 + $0x990] sm:$0xff] }
 0x2e9   :  { %v2127_v51 = vsel %vm2079_vm14, %v2055_v45, %v2103_v32  ;;  %3186 = vmatpush.msrb.mxu1 %v2979_v60  ;;  %v3110_v45 = vld [vmem:[#allocation10 + $0x9e0] sm:$0xff]  ;;  %v7410_v32 = vpop.f32.mrf.mxu2 }
 0x2ea   :  { %2151 = vst [vmem:[#allocation3 + $0xb0] sm:$0xff] %v2127_v51  ;;  %6027 = vmatmul.msk.f32.gmra.mxu3 %vm1152_vm6, %v7260_v31  ;;  %6033 = vmatmul.msk.f32.gmra.mxu2 %vm1152_vm6, %v7260_v31  ;;  %v3040_v51 = vld [vmem:[#allocation10 + $0x7b0] sm:$0xff]  ;;  %v3090_v60 = vld [vmem:[#allocation10 + $0x940] sm:$0xff] }
 0x2eb   :  { %6039 = vmatmul.msk.f32.gmra.mxu1 %vm1152_vm6, %v7260_v31  ;;  %2801 = vmatpush.msrb.mxu2 %v2190_v37  ;;  %v7417_v37 = vpop.f32.mrf.mxu1 }
 0x2ec   :  { %2735 = vmatmul.f32.vlgmr.msra.gmra.mxu0 %v7296_v25  ;;  %2697 = vmatpush.msra.mxu3 %v2184_v57  ;;  %v3030_v57 = vld [vmem:[#allocation10 + $0x760] sm:$0xff] }
 0x2ed   :  { %2802 = vmatpush.msrb.mxu2 %v2185_v50  ;;  %3187 = vmatpush.msrb.mxu1 %v2974_v62  ;;  %v3094_v50 = vld [vmem:[#allocation10 + $0x960] sm:$0xff]  ;;  %v3015_v62 = vld [vmem:[#allocation10 + $0x6e8] sm:$0xff] }
 0x2ee   :  { %2698 = vmatpush.msra.mxu3 %v2179_v41  ;;  %3277 = vmatpush.msra.mxu0 %v3050_v28  ;;  %v2290_v41 = vld [vmem:[#allocation10 + $0x3b8] sm:$0xff]  ;;  %v7432_v28 = vld [vmem:[#allocation3 + $0x48] sm:$0xff] }
 0x2ef   :  { %2803 = vmatpush.msrb.mxu2 %v2180_v2  ;;  %3312 = vmatpush.msra.mxu1 %v3130_v4  ;;  %v3089_v2 = vld [vmem:[#allocation10 + $0x938] sm:$0xff]  ;;  %v6147_v4 = vld [vmem:[#allocation3 + $0x10] sm:$0xff] }
 0x2f0   :  { %2699 = vmatpush.msra.mxu3 %v2174_v56  ;;  %3278 = vmatpush.msra.mxu0 %v3045_v34  ;;  %v3020_v56 = vld [vmem:[#allocation10 + $0x710] sm:$0xff]  ;;  %v2995_v34 = vld [vmem:[#allocation10 + $0x648] sm:$0xff] }
 0x2f1   :  { %2804 = vmatpush.msrb.mxu2 %v2175_v63  ;;  %3313 = vmatpush.msra.mxu1 %v3125_v14  ;;  %v7420_v22 = vpop.f32.mrf.mxu2  ;;  %v6146_v63 = vld [vmem:[#allocation3 + $0x18] sm:$0xff]  ;;  %v3079_v14 = vld [vmem:[#allocation10 + $0x8e8] sm:$0xff] }
 0x2f2   :  { %6028 = vmatmul.msk.f32.gmra.mxu3 %vm1152_vm6, %v7269_v12  ;;  %6034 = vmatmul.msk.f32.gmra.mxu2 %vm1152_vm6, %v7269_v12 }
 0x2f3   :  { %6040 = vmatmul.msk.f32.gmra.mxu1 %vm1152_vm6, %v7269_v12  ;;  %2824 = vmatpush.msrb.mxu3 %v2330_v16  ;;  %v3084_v16 = vld [vmem:[#allocation10 + $0x910] sm:$0xff] }
 0x2f4   :  { %2738 = vmatmul.f32.gmra.mxu0 %v7309_v48  ;;  %3207 = vmatpush.msra.mxu2 %v3129_v13  ;;  %v3085_v13 = vld [vmem:[#allocation10 + $0x918] sm:$0xff] }
 0x2f5   :  { %2825 = vmatpush.msrb.mxu3 %v2325_v10  ;;  %3314 = vmatpush.msra.mxu1 %v3120_v26  ;;  %v3010_v10 = vld [vmem:[#allocation10 + $0x6c0] sm:$0xff]  ;;  %v3005_v26 = vld [vmem:[#allocation10 + $0x698] sm:$0xff] }
 0x2f6   :  { %3208 = vmatpush.msra.mxu2 %v3124_v19  ;;  %3279 = vmatpush.msra.mxu0 %v3040_v51  ;;  %v2280_v19 = vld [vmem:[#allocation10 + $0x368] sm:$0xff]  ;;  %v2990_v51 = vld [vmem:[#allocation10 + $0x620] sm:$0xff] }
 0x2f7   :  { %2826 = vmatpush.msrb.mxu3 %v2320_v55  ;;  %3315 = vmatpush.msra.mxu1 %v3115_v1  ;;  %v3080_v55 = vld [vmem:[#allocation10 + $0x8f0] sm:$0xff] }
 0x2f8   :  { %3209 = vmatpush.msra.mxu2 %v3119_v15  ;;  %3280 = vmatpush.msra.mxu0 %v3035_v33  ;;  %v7428_v15 = vpop.f32.mrf.mxu1  ;;  %v3000_v1 = vld [vmem:[#allocation10 + $0x670] sm:$0xff] }
 0x2f9   :  { %2827 = vmatpush.msrb.mxu3 %v2315_v20  ;;  %3316 = vmatpush.msra.mxu1 %v3110_v45  ;;  %v2275_v20 = vld [vmem:[#allocation10 + $0x340] sm:$0xff]  ;;  %v3075_v45 = vld [vmem:[#allocation10 + $0x8c8] sm:$0xff]  ;;  %v3064_v33 = vld [vmem:[#allocation10 + $0x870] sm:$0xff] }
 0x2fa   :  { %6029 = vmatmul.msk.f32.gmra.mxu3 %vm1152_vm6, %v7277_v8  ;;  %6035 = vmatmul.msk.f32.gmra.mxu2 %vm1152_vm6, %v7277_v8 }
 0x2fb   :  { %6041 = vmatmul.msk.f32.gmra.mxu1 %vm1152_vm6, %v7277_v8  ;;  %3210 = vmatpush.msra.mxu2 %v3114_v0 }
 0x2fc   :  { %2741 = vmatmul.f32.gmra.mxu0 %v7318_v54  ;;  %2828 = vmatpush.msrb.mxu3 %v2310_v21  ;;  %v3074_v21 = vld [vmem:[#allocation10 + $0x8c0] sm:$0xff] }
 0x2fd   :  { %3211 = vmatpush.msra.mxu2 %v3109_v7  ;;  %3317 = vmatpush.msra.mxu1 %v3105_v5  ;;  %v6148_v7 = vld [vmem:[#allocation3 + $0x30] sm:$0xff]  ;;  %v3069_v5 = vld [vmem:[#allocation10 + $0x898] sm:$0xff] }
 0x2fe   :  { %2829 = vmatpush.msrb.mxu3 %v2305_v59  ;;  %3281 = vmatpush.msra.mxu0 %v3030_v57  ;;  %v7434_v59 = vpop.f32.mrf.mxu2 }
 0x2ff   :  { %3212 = vmatpush.msra.mxu2 %v3104_v58  ;;  %3318 = vmatpush.msra.mxu1 %v3100_v46  ;;  %v2270_v58 = vld [vmem:[#allocation10 + $0x318] sm:$0xff] }
 0x300   :  { %2830 = vmatpush.msrb.mxu3 %v2300_v38  ;;  %3282 = vmatpush.msra.mxu0 %v3025_v39  ;;  %v3070_v38 = vld [vmem:[#allocation10 + $0x8a0] sm:$0xff]  ;;  %v3065_v46 = vld [vmem:[#allocation10 + $0x878] sm:$0xff]  ;;  %v2975_v39 = vld [vmem:[#allocation10 + $0x5a8] sm:$0xff] }
 0x301   :  { %3213 = vmatpush.msra.mxu2 %v3099_v43  ;;  %3319 = vmatpush.msra.mxu1 %v3095_v49  ;;  %v2985_v43 = vld [vmem:[#allocation10 + $0x5f8] sm:$0xff]  ;;  %v6149_v49 = vld [vmem:[#allocation3 + $0x48] sm:$0xff] }
 0x302   :  { %6030 = vmatmul.msk.f32.gmra.mxu3 %vm1152_vm6, %v7288_v42  ;;  %6036 = vmatmul.msk.f32.gmra.mxu2 %vm1152_vm6, %v7288_v42 }
 0x303   :  { %6042 = vmatmul.msk.f32.gmra.mxu1 %vm1152_vm6, %v7288_v42  ;;  %2831 = vmatpush.msrb.mxu3 %v2295_v47  ;;  %v7439_v47 = vpop.f32.mrf.mxu1 }
 0x304   :  { %2744 = vmatmul.f32.gmra.mxu0 %v7326_v24  ;;  %3214 = vmatpush.msra.mxu2 %v3094_v50  ;;  %v2260_v50 = vld [vmem:[#allocation10 + $0x2c8] sm:$0xff] }
 0x305   :  { %2832 = vmatpush.msrb.mxu3 %v2290_v41  ;;  %3283 = vmatpush.msra.mxu0 %v3020_v56  ;;  %v7443_v41 = vld [vmem:[#allocation3 + $0x60] sm:$0xff]  ;;  %v3060_v56 = vld [vmem:[#allocation10 + $0x850] sm:$0xff] }
 0x306   :  { %3215 = vmatpush.msra.mxu2 %v3089_v2  ;;  %3320 = vmatpush.msra.mxu1 %v3090_v60  ;;  %v3059_v2 = vld [vmem:[#allocation10 + $0x848] sm:$0xff]  ;;  %v2255_v60 = vld [vmem:[#allocation10 + $0x2a0] sm:$0xff] }
 0x307   :  { %3284 = vmatpush.msra.mxu0 %v3015_v62  ;;  %2833 = vmatpush.msrb.mxu3 %v2285_v18  ;;  %v7448_v62 = vpop.f32.mrf.mxu2  ;;  %v3055_v18 = vld [vmem:[#allocation10 + $0x828] sm:$0xff] }
 0x308   :  { %3216 = vmatpush.msra.mxu2 %v3084_v16  ;;  %3321 = vmatpush.msra.mxu1 %v3085_v13 }
 0x309   :  { %v7399_v36 = vpop.f32.mrf.mxu0  ;;  %3285 = vmatpush.msra.mxu0 %v3010_v10  ;;  %2834 = vmatpush.msrb.mxu3 %v2280_v19  ;;  %v7454_v10 = vld [vmem:[#allocation3 + $0x78] sm:$0xff] }
 0x30a   :  { %6031 = vmatmul.msk.f32.gmra.mxu3 %vm1152_vm6, %v7301_v9  ;;  %6037 = vmatmul.msk.f32.gmra.mxu2 %vm1152_vm6, %v7301_v9 }
 0x30b   :  { %6043 = vmatmul.msk.f32.gmra.mxu1 %vm1152_vm6, %v7301_v9  ;;  %3217 = vmatpush.msra.mxu2 %v3079_v14 }
 0x30c   :  { %2747 = vmatmul.f32.gmra.mxu0 %v7334_v30  ;;  %3322 = vmatpush.msra.mxu1 %v3080_v55 }
 0x30d   :  { %3286 = vmatpush.msra.mxu0 %v3005_v26  ;;  %2835 = vmatpush.msrb.mxu3 %v2275_v20 }
 0x30e   :  { %3218 = vmatpush.msra.mxu2 %v3074_v21  ;;  %3323 = vmatpush.msra.mxu1 %v3075_v45 }
 0x30f   :  { %3287 = vmatpush.msra.mxu0 %v3000_v1  ;;  %2836 = vmatpush.msrb.mxu3 %v2270_v58  ;;  %v7469_v1 = vld [vmem:[#allocation3 + $0x90] sm:$0xff]  ;;  %v7482_v58 = vld [vmem:[#allocation3 + $0x20] sm:$0xff] }
 0x310   :  { %3219 = vmatpush.msra.mxu2 %v3069_v5  ;;  %3324 = vmatpush.msra.mxu1 %v3070_v38  ;;  %v3121_v5 = vld [vmem:[#allocation10 + $0xa38] sm:$0xff] }
 0x311   :  { %v7412_v27 = vpop.f32.mrf.mxu0  ;;  %3288 = vmatpush.msra.mxu0 %v2995_v34 }
 0x312   :  { %2700 = vmatmul.f32.vlgmr.msra.gmra.mxu3 %v6145_v3  ;;  %2805 = vmatmul.f32.vlgmr.msrb.gmra.mxu2 %v6145_v3  ;;  %v2265_v3 = vld [vmem:[#allocation10 + $0x2f0] sm:$0xff] }
 0x313   :  { %3188 = vmatmul.f32.vlgmr.msrb.gmra.mxu1 %v7414_v40  ;;  %3289 = vmatpush.msra.mxu0 %v2990_v51 }
 0x314   :  { %2750 = vmatmul.f32.gmra.mxu0 %v7342_v29  ;;  %2837 = vmatpush.msrb.mxu3 %v2265_v3  ;;  %v3106_v3 = vld [vmem:[#allocation10 + $0x9c0] sm:$0xff] }
 0x315   :  { %3220 = vmatpush.msra.mxu2 %v3064_v33  ;;  %3290 = vmatpush.msra.mxu0 %v2985_v43 }
 0x316   :  { %3325 = vmatpush.msra.mxu1 %v3065_v46  ;;  %2838 = vmatpush.msrb.mxu3 %v2260_v50  ;;  %v7497_v46 = vld [vmem:[#allocation3 + $0x38] sm:$0xff]  ;;  %v3150_v50 = vld [vmem:[#allocation10 + $0xb20] sm:$0xff] }
 0x317   :  { %3221 = vmatpush.msra.mxu2 %v3059_v2 }
 0x318   :  { %3326 = vmatpush.msra.mxu1 %v3060_v56  ;;  %2839 = vmatpush.msrb.mxu3 %v2255_v60  ;;  %v3144_v56 = vld [vmem:[#allocation10 + $0xaf0] sm:$0xff]  ;;  %v3146_v60 = vld [vmem:[#allocation10 + $0xb00] sm:$0xff] }
 0x319   :  { %v7422_v52 = vpop.f32.mrf.mxu0 }
 0x31a   :  { %2703 = vmatmul.f32.gmra.mxu3 %v6146_v63  ;;  %2808 = vmatmul.f32.gmra.mxu2 %v6146_v63  ;;  %v3054_v63 = vld [vmem:[#allocation10 + $0x820] sm:$0xff] }
 0x31b   :  { %3191 = vmatmul.f32.gmra.mxu1 %v7424_v17  ;;  %3222 = vmatpush.msra.mxu2 %v3054_v63 }
 0x31c   :  { %6044 = vmatmul.msk.f32.vlgmr.msrb.gmra.mxu0 %vm1152_vm6, %v6147_v4  ;;  %3327 = vmatpush.msra.mxu1 %v3055_v18  ;;  %v6150_v4 = vld [vmem:[#allocation3 + $0x60] sm:$0xff] }
 0x31d   :  { %3359 = vmatpush.msrb.mxu2 %v3150_v50  ;;  %v3086_v18 = vld [vmem:[#allocation10 + $0x920] sm:$0xff] }
 0x321   :  { %v7430_v0 = vpop.f32.mrf.mxu0 }
 0x322   :  { %2706 = vmatmul.f32.gmra.mxu3 %v6148_v7  ;;  %2811 = vmatmul.f32.gmra.mxu2 %v6148_v7 }
 0x323   :  { %3194 = vmatmul.f32.gmra.mxu1 %v7432_v28 }
 0x324   :  { %6045 = vmatmul.msk.f32.gmra.mxu0 %vm1152_vm6, %v7260_v31  ;;  %v2980_v31 = vld [vmem:[#allocation10 + $0x5d0] sm:$0xff] }
 0x325   :  { %3291 = vmatpush.msra.mxu0 %v2980_v31  ;;  %v3101_v31 = vld [vmem:[#allocation10 + $0x998] sm:$0xff] }
 0x327   :  { %3292 = vmatpush.msra.mxu0 %v2975_v39 }
 0x329   :  { %v7441_v57 = vpop.f32.mrf.mxu0 }
 0x32a   :  { %2709 = vmatmul.f32.gmra.mxu3 %v6149_v49  ;;  %2814 = vmatmul.f32.gmra.mxu2 %v6149_v49  ;;  %v3091_v49 = vld [vmem:[#allocation10 + $0x948] sm:$0xff] }
 0x32b   :  { %3197 = vmatmul.f32.gmra.mxu1 %v7443_v41 }
 0x32c   :  { %6046 = vmatmul.msk.f32.gmra.mxu0 %vm1152_vm6, %v7269_v12 }
 0x330   :  { %v7450_v16 = vpop.f32.mrf.mxu1 }
 0x331   :  { %v7452_v13 = vpop.f32.mrf.mxu0 }
 0x332   :  { %2712 = vmatmul.f32.gmra.mxu3 %v6150_v4  ;;  %2817 = vmatmul.f32.gmra.mxu2 %v6150_v4  ;;  %v3139_v4 = vld [vmem:[#allocation10 + $0xac8] sm:$0xff] }
 0x333   :  { %3200 = vmatmul.f32.gmra.mxu1 %v7454_v10 }
 0x334   :  { %6047 = vmatmul.msk.f32.gmra.mxu0 %vm1152_vm6, %v7277_v8  ;;  %v3131_v8 = vld [vmem:[#allocation10 + $0xa88] sm:$0xff] }
 0x335   :  { %v2421_v12 = vpop.f32.mrf.mxu3  ;;  %v7459_v19 = vpop.f32.mrf.mxu2  ;;  %3417 = vmatpush.msrb.mxu0 %v3131_v8 }
 0x336   :  { %v2422_v14 = vadd.f32 %v2421_v12, %v7383_v11  ;;  %v3126_v11 = vld [vmem:[#allocation10 + $0xa60] sm:$0xff]  ;;  %v3140_v12 = vld [vmem:[#allocation10 + $0xad0] sm:$0xff] }
 0x337   :  { %3418 = vmatpush.msrb.mxu0 %v3126_v11  ;;  %v3081_v11 = vld [vmem:[#allocation10 + $0x8f8] sm:$0xff] }
 0x338   :  { %v2457_v55 = vadd.f32 %v7399_v36, %v2422_v14  ;;  %v7463_v26 = vpop.f32.mrf.mxu1 }
 0x339   :  { %v7465_v20 = vpop.f32.mrf.mxu0  ;;  %3419 = vmatpush.msrb.mxu0 %v3121_v5  ;;  %v3071_v5 = vld [vmem:[#allocation10 + $0x8a8] sm:$0xff] }
 0x33a   :  { %2894 = vst [vmem:[#allocation4] sm:$0xff] %v2457_v55  ;;  %2715 = vmatmul.f32.gmra.mxu3 %v7359_v23  ;;  %2820 = vmatmul.f32.gmra.mxu2 %v7359_v23 }
 0x33b   :  { %3203 = vmatmul.f32.gmra.mxu1 %v7469_v1 }
 0x33c   :  { %6048 = vmatmul.msk.f32.gmra.mxu0 %vm1152_vm6, %v7288_v42  ;;  %v3116_v42 = vld [vmem:[#allocation10 + $0xa10] sm:$0xff] }
 0x33d   :  { %v2424_v21 = vpop.f32.mrf.mxu3  ;;  %v7474_v36 = vpop.f32.mrf.mxu2  ;;  %3420 = vmatpush.msrb.mxu0 %v3116_v42 }
 0x33e   :  { %v2425_v7 = vadd.f32 %v2424_v21, %v7397_v6  ;;  %v3111_v6 = vld [vmem:[#allocation10 + $0x9e8] sm:$0xff]  ;;  %v3141_v21 = vld [vmem:[#allocation10 + $0xad8] sm:$0xff] }
 0x33f   :  { %3421 = vmatpush.msrb.mxu0 %v3111_v6 }
 0x340   :  { %v2460_v34 = vadd.f32 %v7412_v27, %v2425_v7  ;;  %v7478_v45 = vpop.f32.mrf.mxu1  ;;  %v3134_v7 = vld [vmem:[#allocation10 + $0xaa0] sm:$0xff] }
 0x341   :  { %v7480_v23 = vpop.f32.mrf.mxu0  ;;  %3422 = vmatpush.msrb.mxu0 %v3106_v3 }
 0x342   :  { %2900 = vst [vmem:[#allocation4 + $0x28] sm:$0xff] %v2460_v34  ;;  %2840 = vmatmul.f32.vlgmr.msrb.gmra.mxu3 %v7296_v25  ;;  %3223 = vmatmul.f32.vlgmr.msra.gmra.mxu2 %v7482_v58  ;;  %v3136_v34 = vld [vmem:[#allocation10 + $0xab0] sm:$0xff] }
 0x343   :  { %3328 = vmatmul.f32.vlgmr.msra.gmra.mxu1 %v7482_v58  ;;  %3423 = vmatpush.msrb.mxu0 %v3101_v31  ;;  %v3061_v31 = vld [vmem:[#allocation10 + $0x858] sm:$0xff] }
 0x344   :  { %6049 = vmatmul.msk.f32.gmra.mxu0 %vm1152_vm6, %v7301_v9  ;;  %v3096_v9 = vld [vmem:[#allocation10 + $0x970] sm:$0xff] }
 0x345   :  { %v2427_v27 = vpop.f32.mrf.mxu3  ;;  %v7489_v51 = vpop.f32.mrf.mxu2  ;;  %3424 = vmatpush.msrb.mxu0 %v3096_v9  ;;  %v3056_v9 = vld [vmem:[#allocation10 + $0x830] sm:$0xff] }
 0x346   :  { %v2428_v38 = vadd.f32 %v2427_v27, %v7410_v32  ;;  %v3149_v32 = vld [vmem:[#allocation10 + $0xb18] sm:$0xff]  ;;  %v3066_v27 = vld [vmem:[#allocation10 + $0x880] sm:$0xff] }
 0x347   :  { %3254 = vmatpush.msra.mxu3 %v3149_v32  ;;  %3425 = vmatpush.msrb.mxu0 %v3091_v49 }
 0x348   :  { %v2463_v25 = vadd.f32 %v7422_v52, %v2428_v38  ;;  %v7493_v33 = vpop.f32.mrf.mxu1  ;;  %v3151_v52 = vld [vmem:[#allocation10 + $0xb28] sm:$0xff] }
 0x349   :  { %v7495_v43 = vpop.f32.mrf.mxu0  ;;  %3464 = vmatpush.msrb.mxu1 %v3151_v52  ;;  %3255 = vmatpush.msra.mxu3 %v3144_v56  ;;  %v3053_v56 = vld [vmem:[#allocation10 + $0x818] sm:$0xff] }
 0x34a   :  { %2905 = vst [vmem:[#allocation4 + $0x50] sm:$0xff] %v2463_v25  ;;  %2843 = vmatmul.f32.gmra.mxu3 %v7309_v48  ;;  %3226 = vmatmul.f32.gmra.mxu2 %v7497_v46  ;;  %v3145_v48 = vld [vmem:[#allocation10 + $0xaf8] sm:$0xff] }
 0x34b   :  { %3331 = vmatmul.f32.gmra.mxu1 %v7497_v46  ;;  %3360 = vmatpush.msrb.mxu2 %v3145_v48  ;;  %v2632_v48 = vadd.f32 %v7450_v16, %v7465_v20  ;;  %v3042_v16 = vld [vmem:[#allocation10 + $0x7c0] sm:$0xff]  ;;  %v3043_v20 = vld [vmem:[#allocation10 + $0x7c8] sm:$0xff] }
 0x34c   :  { %3293 = vmatmul.f32.vlgmr.msra.gmra.mxu0 %v7414_v40  ;;  %3465 = vmatpush.msrb.mxu1 %v3146_v60 }
 0x34d   :  { %v2430_v39 = vpop.f32.mrf.mxu3  ;;  %v7503_v2 = vpop.f32.mrf.mxu2  ;;  %3256 = vmatpush.msra.mxu3 %v3139_v4  ;;  %3426 = vmatpush.msrb.mxu0 %v3086_v18  ;;  %v3048_v18 = vld [vmem:[#allocation10 + $0x7f0] sm:$0xff] }
 0x34e   :  { %v2431_v63 = vadd.f32 %v2430_v39, %v7420_v22  ;;  %3361 = vmatpush.msrb.mxu2 %v3140_v12  ;;  %v3076_v22 = vld [vmem:[#allocation10 + $0x8d0] sm:$0xff]  ;;  %3466 = vmatpush.msrb.mxu1 %v3141_v21  ;;  %v3037_v21 = vld [vmem:[#allocation10 + $0x798] sm:$0xff] }
 0x34f   :  { %3427 = vmatpush.msrb.mxu0 %v3081_v11  ;;  %3257 = vmatpush.msra.mxu3 %v3134_v7  ;;  %v3052_v39 = vld [vmem:[#allocation10 + $0x810] sm:$0xff]  ;;  %v3031_v7 = vld [vmem:[#allocation10 + $0x768] sm:$0xff] }
 0x350   :  { %v2466_v14 = vadd.f32 %v7430_v0, %v2431_v63  ;;  %v7507_v55 = vpop.f32.mrf.mxu1  ;;  %v3135_v0 = vld [vmem:[#allocation10 + $0xaa8] sm:$0xff]  ;;  %3467 = vmatpush.msrb.mxu1 %v3136_v34  ;;  %v3036_v11 = vld [vmem:[#allocation10 + $0x790] sm:$0xff]  ;;  %v2635_v34 = vadd.f32 %v7463_v26, %v7480_v23  ;;  %v3021_v26 = vld [vmem:[#allocation10 + $0x718] sm:$0xff] }
 0x351   :  { %v7509_v8 = vpop.f32.mrf.mxu0  ;;  %3428 = vmatpush.msrb.mxu0 %v3076_v22  ;;  %3362 = vmatpush.msrb.mxu2 %v3135_v0  ;;  %v3047_v63 = vld [vmem:[#allocation10 + $0x7e8] sm:$0xff]  ;;  %v3038_v22 = vld [vmem:[#allocation10 + $0x7a0] sm:$0xff]  ;;  %v3032_v0 = vld [vmem:[#allocation10 + $0x770] sm:$0xff] }
 0x352   :  { %2910 = vst [vmem:[#allocation4 + $0x78] sm:$0xff] %v2466_v14  ;;  %2846 = vmatmul.f32.gmra.mxu3 %v7318_v54  ;;  %3229 = vmatmul.f32.gmra.mxu2 %v7326_v24  ;;  %v3041_v14 = vld [vmem:[#allocation10 + $0x7b8] sm:$0xff] }
 0x353   :  { %3334 = vmatmul.f32.gmra.mxu1 %v7326_v24  ;;  %3429 = vmatpush.msrb.mxu0 %v3071_v5  ;;  %v2530_v5 = vadd.f32 %v7474_v36, %v7388_v53  ;;  %v3022_v53 = vld [vmem:[#allocation10 + $0x720] sm:$0xff] }
 0x354   :  { %3296 = vmatmul.f32.gmra.mxu0 %v7424_v17  ;;  %3487 = vmatpush.msra.mxu2 %v3052_v39  ;;  %v7559_v36 = vld [vmem:[#allocation3 + $0x28] sm:$0xff]  ;;  %v2638_v39 = vadd.f32 %v7478_v45, %v7495_v43  ;;  %v3008_v43 = vld [vmem:[#allocation10 + $0x6b0] sm:$0xff] }
 0x355   :  { %v2433_v42 = vpop.f32.mrf.mxu3  ;;  %v7515_v6 = vpop.f32.mrf.mxu2  ;;  %3430 = vmatpush.msrb.mxu0 %v3066_v27  ;;  %3592 = vmatpush.msra.mxu1 %v3053_v56  ;;  %v3026_v27 = vld [vmem:[#allocation10 + $0x740] sm:$0xff]  ;;  %v2533_v56 = vadd.f32 %v7489_v51, %v7401_v35  ;;  %v3001_v35 = vld [vmem:[#allocation10 + $0x678] sm:$0xff] }
 0x356   :  { %v2434_v54 = vadd.f32 %v2433_v42, %v7434_v59  ;;  %3488 = vmatpush.msra.mxu2 %v3047_v63  ;;  %v3033_v42 = vld [vmem:[#allocation10 + $0x778] sm:$0xff] }
 0x357   :  { %3431 = vmatpush.msrb.mxu0 %v3061_v31  ;;  %3593 = vmatpush.msra.mxu1 %v3048_v18  ;;  %v7576_v51 = vld [vmem:[#allocation3 + $0x40] sm:$0xff] }
 0x358   :  { %v2469_v38 = vadd.f32 %v7441_v57, %v2434_v54  ;;  %v7519_v3 = vpop.f32.mrf.mxu1  ;;  %3489 = vmatpush.msra.mxu2 %v3042_v16  ;;  %v2996_v16 = vld [vmem:[#allocation10 + $0x650] sm:$0xff] }
 0x359   :  { %v7521_v25 = vpop.f32.mrf.mxu0  ;;  %3432 = vmatpush.msrb.mxu0 %v3056_v9  ;;  %3594 = vmatpush.msra.mxu1 %v3043_v20  ;;  %v3028_v9 = vld [vmem:[#allocation10 + $0x750] sm:$0xff]  ;;  %v3003_v20 = vld [vmem:[#allocation10 + $0x688] sm:$0xff] }
 0x35a   :  { %2915 = vst [vmem:[#allocation4 + $0xa0] sm:$0xff] %v2469_v38  ;;  %2849 = vmatmul.f32.gmra.mxu3 %v7326_v24  ;;  %3232 = vmatmul.f32.gmra.mxu2 %v7334_v30  ;;  %v3051_v24 = vld [vmem:[#allocation10 + $0x808] sm:$0xff] }
 0x35b   :  { %3337 = vmatmul.f32.gmra.mxu1 %v7334_v30  ;;  %3382 = vmatpush.msrb.mxu3 %v3051_v24  ;;  %v3027_v38 = vld [vmem:[#allocation10 + $0x748] sm:$0xff]  ;;  %v3018_v24 = vld [vmem:[#allocation10 + $0x700] sm:$0xff] }
 0x35c   :  { %3299 = vmatmul.f32.gmra.mxu0 %v7432_v28  ;;  %3490 = vmatpush.msra.mxu2 %v3037_v21  ;;  %v2536_v21 = vadd.f32 %v7503_v2, %v7417_v37  ;;  %v2987_v37 = vld [vmem:[#allocation10 + $0x608] sm:$0xff]  ;;  %v7593_v2 = vld [vmem:[#allocation3 + $0x58] sm:$0xff] }
 0x35d   :  { %v2436_v59 = vpop.f32.mrf.mxu3  ;;  %v7527_v32 = vpop.f32.mrf.mxu2  ;;  %3595 = vmatpush.msra.mxu1 %v3038_v22  ;;  %v2997_v22 = vld [vmem:[#allocation10 + $0x658] sm:$0xff] }
 0x35e   :  { %v2437_v57 = vadd.f32 %v2436_v59, %v7448_v62  ;;  %v2527_v62 = vadd.f32 %v7459_v19, %v7377_v61  ;;  %3491 = vmatpush.msra.mxu2 %v3032_v0  ;;  %v3023_v59 = vld [vmem:[#allocation10 + $0x728] sm:$0xff] }
 0x35f   :  { %3596 = vmatpush.msra.mxu1 %v3033_v42 }
 0x360   :  { %v2472_v50 = vadd.f32 %v7452_v13, %v2437_v57  ;;  %v7531_v52 = vpop.f32.mrf.mxu1  ;;  %3492 = vmatpush.msra.mxu2 %v3027_v38  ;;  %v3016_v57 = vld [vmem:[#allocation10 + $0x6f0] sm:$0xff]  ;;  %v2981_v38 = vld [vmem:[#allocation10 + $0x5d8] sm:$0xff] }
 0x361   :  { %v7533_v49 = vpop.f32.mrf.mxu0  ;;  %3597 = vmatpush.msra.mxu1 %v3028_v9  ;;  %v2644_v9 = vadd.f32 %v7507_v55, %v7521_v25  ;;  %v3142_v25 = vld [vmem:[#allocation10 + $0xae0] sm:$0xff] }
 0x362   :  { %2920 = vst [vmem:[#allocation4 + $0xc8] sm:$0xff] %v2472_v50  ;;  %2852 = vmatmul.f32.gmra.mxu3 %v7334_v30  ;;  %3235 = vmatmul.f32.gmra.mxu2 %v7342_v29  ;;  %v3046_v30 = vld [vmem:[#allocation10 + $0x7e0] sm:$0xff]  ;;  %v3017_v50 = vld [vmem:[#allocation10 + $0x6f8] sm:$0xff] }
 0x363   :  { %3340 = vmatmul.f32.gmra.mxu1 %v7342_v29  ;;  %3383 = vmatpush.msrb.mxu3 %v3046_v30  ;;  %v3013_v30 = vld [vmem:[#allocation10 + $0x6d8] sm:$0xff] }
 0x364   :  { %3302 = vmatmul.f32.gmra.mxu0 %v7443_v41  ;;  %3493 = vmatpush.msra.mxu2 %v3022_v53  ;;  %v3152_v53 = vld [vmem:[#allocation10 + $0xb30] sm:$0xff] }
 0x365   :  { %v2561_v13 = vpop.f32.mrf.mxu3  ;;  %v2666_v60 = vpop.f32.mrf.mxu2  ;;  %3384 = vmatpush.msrb.mxu3 %v3041_v14  ;;  %3598 = vmatpush.msra.mxu1 %v3023_v59  ;;  %v3002_v14 = vld [vmem:[#allocation10 + $0x680] sm:$0xff]  ;;  %v3147_v59 = vld [vmem:[#allocation10 + $0xb08] sm:$0xff] }
 0x366   :  { %v2562_v4 = vadd.f32 %v2561_v13, %v2527_v62  ;;  %v2667_v12 = vadd.f32 %v2666_v60, %v2632_v48  ;;  %v3011_v48 = vld [vmem:[#allocation10 + $0x6c8] sm:$0xff]  ;;  %v3012_v62 = vld [vmem:[#allocation10 + $0x6d0] sm:$0xff]  ;;  %3494 = vmatpush.msra.mxu2 %v3017_v50  ;;  %3569 = vmatpush.msra.mxu0 %v3152_v53 }
 0x367   :  { %3385 = vmatpush.msrb.mxu3 %v3036_v11  ;;  %3599 = vmatpush.msra.mxu1 %v3018_v24  ;;  %v2641_v11 = vadd.f32 %v7493_v33, %v7509_v8  ;;  %v2993_v8 = vld [vmem:[#allocation10 + $0x638] sm:$0xff]  ;;  %v3876_v53 = vld [vmem:[#allocation10 + $0xd70] sm:$0xff] }
 0x368   :  { %2895 = vst [vmem:[#allocation4 + $0x8] sm:$0xff] %v2562_v4  ;;  %v7543_v61 = vpop.f32.mrf.mxu1  ;;  %v3006_v4 = vld [vmem:[#allocation10 + $0x6a0] sm:$0xff]  ;;  %3495 = vmatpush.msra.mxu2 %v3012_v62  ;;  %3570 = vmatpush.msra.mxu0 %v3147_v59  ;;  %v3941_v59 = vld [vmem:[#allocation10 + $0xf78] sm:$0xff] }
 0x369   :  { %v7545_v19 = vpop.f32.mrf.mxu0  ;;  %2896 = vst [vmem:[#allocation4 + $0x10] sm:$0xff] %v2667_v12  ;;  %3386 = vmatpush.msrb.mxu3 %v3031_v7  ;;  %v3007_v12 = vld [vmem:[#allocation10 + $0x6a8] sm:$0xff]  ;;  %3600 = vmatpush.msra.mxu1 %v3013_v30  ;;  %v2647_v30 = vadd.f32 %v7519_v3, %v7533_v49  ;;  %v3961_v49 = vld [vmem:[#allocation10 + $0x1018] sm:$0xff] }
 0x36a   :  { %2855 = vmatmul.f32.gmra.mxu3 %v7342_v29  ;;  %3238 = vmatmul.f32.gmra.mxu2 %v7350_v44  ;;  %v2991_v7 = vld [vmem:[#allocation10 + $0x628] sm:$0xff] }
 0x36b   :  { %3343 = vmatmul.f32.gmra.mxu1 %v7350_v44  ;;  %3387 = vmatpush.msrb.mxu3 %v3026_v27  ;;  %v2986_v27 = vld [vmem:[#allocation10 + $0x600] sm:$0xff] }
 0x36c   :  { %3305 = vmatmul.f32.gmra.mxu0 %v7454_v10  ;;  %3496 = vmatpush.msra.mxu2 %v3007_v12  ;;  %v7629_v3 = vld [vmem:[#allocation3 + $0x88] sm:$0xff] }
 0x36d   :  { %v2564_v54 = vpop.f32.mrf.mxu3  ;;  %v2669_v29 = vpop.f32.mrf.mxu2  ;;  %3388 = vmatpush.msrb.mxu3 %v3021_v26  ;;  %3601 = vmatpush.msra.mxu1 %v3008_v43  ;;  %v2539_v26 = vadd.f32 %v7515_v6, %v7428_v15  ;;  %v7610_v6 = vld [vmem:[#allocation3 + $0x70] sm:$0xff] }
 0x36e   :  { %v2565_v44 = vadd.f32 %v2564_v54, %v2530_v5  ;;  %v2670_v31 = vadd.f32 %v2669_v29, %v2635_v34  ;;  %3497 = vmatpush.msra.mxu2 %v3002_v14  ;;  %v2998_v5 = vld [vmem:[#allocation10 + $0x660] sm:$0xff]  ;;  %v2992_v29 = vld [vmem:[#allocation10 + $0x630] sm:$0xff]  ;;  %3571 = vmatpush.msra.mxu0 %v3142_v25 }
 0x36f   :  { %3389 = vmatpush.msrb.mxu3 %v3016_v57  ;;  %3602 = vmatpush.msra.mxu1 %v3003_v20  ;;  %v2976_v57 = vld [vmem:[#allocation10 + $0x5b0] sm:$0xff]  ;;  %v7637_v20 = vld [vmem:[#allocation3 + $0x68] sm:$0xff] }
 0x370   :  { %2901 = vst [vmem:[#allocation4 + $0x30] sm:$0xff] %v2565_v44  ;;  %v7555_v23 = vpop.f32.mrf.mxu1  ;;  %3498 = vmatpush.msra.mxu2 %v2997_v22  ;;  %v2988_v44 = vld [vmem:[#allocation10 + $0x610] sm:$0xff]  ;;  %v3127_v22 = vld [vmem:[#allocation10 + $0xa68] sm:$0xff] }
 0x371   :  { %v7557_v10 = vpop.f32.mrf.mxu0  ;;  %2902 = vst [vmem:[#allocation4 + $0x38] sm:$0xff] %v2670_v31  ;;  %3390 = vmatpush.msrb.mxu3 %v3011_v48  ;;  %3603 = vmatpush.msra.mxu1 %v2998_v5  ;;  %v2982_v31 = vld [vmem:[#allocation10 + $0x5e0] sm:$0xff] }
 0x372   :  { %6050 = vmatmul.msk.f32.vlgmr.msra.gmra.mxu3 %vm1152_vm6, %v7559_v36  ;;  %6056 = vmatmul.msk.f32.vlgmr.msrb.gmra.mxu2 %vm1152_vm6, %v7559_v36  ;;  %v3122_v5 = vld [vmem:[#allocation10 + $0xa40] sm:$0xff] }
 0x373   :  { %6062 = vmatmul.msk.f32.vlgmr.msrb.gmra.mxu1 %vm1152_vm6, %v7559_v36  ;;  %3391 = vmatpush.msrb.mxu3 %v3006_v4 }
 0x374   :  { %3308 = vmatmul.f32.gmra.mxu0 %v7469_v1  ;;  %3499 = vmatpush.msra.mxu2 %v2992_v29 }
 0x375   :  { %v2567_v13 = vpop.f32.mrf.mxu3  ;;  %v2672_v60 = vpop.f32.mrf.mxu2  ;;  %3392 = vmatpush.msrb.mxu3 %v3001_v35  ;;  %3604 = vmatpush.msra.mxu1 %v2993_v8  ;;  %v7648_v8 = vld [vmem:[#allocation3 + $0xa0] sm:$0xff] }
 0x376   :  { %v2568_v63 = vadd.f32 %v2567_v13, %v2533_v56  ;;  %v2673_v18 = vadd.f32 %v2672_v60, %v2638_v39  ;;  %3500 = vmatpush.msra.mxu2 %v2987_v37  ;;  %v2983_v39 = vld [vmem:[#allocation10 + $0x5e8] sm:$0xff]  ;;  %v2977_v56 = vld [vmem:[#allocation10 + $0x5b8] sm:$0xff]  ;;  %v2978_v13 = vld [vmem:[#allocation10 + $0x5c0] sm:$0xff] }
 0x377   :  { %3393 = vmatpush.msrb.mxu3 %v2996_v16  ;;  %3605 = vmatpush.msra.mxu1 %v2988_v44  ;;  %v3137_v60 = vld [vmem:[#allocation10 + $0xab8] sm:$0xff]  ;;  %v3118_v44 = vld [vmem:[#allocation10 + $0xa20] sm:$0xff] }
 0x378   :  { %2906 = vst [vmem:[#allocation4 + $0x58] sm:$0xff] %v2568_v63  ;;  %v7572_v45 = vpop.f32.mrf.mxu1  ;;  %3501 = vmatpush.msra.mxu2 %v2982_v31  ;;  %v2542_v63 = vadd.f32 %v7527_v32, %v7439_v47  ;;  %3572 = vmatpush.msra.mxu0 %v3137_v60  ;;  %v3132_v47 = vld [vmem:[#allocation10 + $0xa90] sm:$0xff]  ;;  %v3133_v32 = vld [vmem:[#allocation10 + $0xa98] sm:$0xff]  ;;  %v3871_v60 = vld [vmem:[#allocation10 + $0xd48] sm:$0xff] }
 0x379   :  { %v7574_v1 = vpop.f32.mrf.mxu0  ;;  %2907 = vst [vmem:[#allocation4 + $0x60] sm:$0xff] %v2673_v18  ;;  %3394 = vmatpush.msrb.mxu3 %v2991_v7  ;;  %3606 = vmatpush.msra.mxu1 %v2983_v39  ;;  %v7622_v18 = vld [vmem:[#allocation3 + $0x50] sm:$0xff]  ;;  %v3113_v31 = vld [vmem:[#allocation10 + $0x9f8] sm:$0xff] }
 0x37a   :  { %6051 = vmatmul.msk.f32.gmra.mxu3 %vm1152_vm6, %v7576_v51  ;;  %6057 = vmatmul.msk.f32.gmra.mxu2 %vm1152_vm6, %v7576_v51  ;;  %v3128_v7 = vld [vmem:[#allocation10 + $0xa70] sm:$0xff] }
 0x37b   :  { %6063 = vmatmul.msk.f32.gmra.mxu1 %vm1152_vm6, %v7576_v51  ;;  %3395 = vmatpush.msrb.mxu3 %v2986_v27  ;;  %v3108_v39 = vld [vmem:[#allocation10 + $0x9d0] sm:$0xff] }
 0x37c   :  { %3433 = vmatmul.f32.vlgmr.msrb.gmra.mxu0 %v7482_v58  ;;  %3502 = vmatpush.msra.mxu2 %v2977_v56 }
 0x37d   :  { %v2570_v0 = vpop.f32.mrf.mxu3  ;;  %v2675_v34 = vpop.f32.mrf.mxu2  ;;  %3396 = vmatpush.msrb.mxu3 %v2981_v38  ;;  %3607 = vmatpush.msra.mxu1 %v2978_v13  ;;  %v3117_v38 = vld [vmem:[#allocation10 + $0xa18] sm:$0xff] }
 0x37e   :  { %v2571_v42 = vadd.f32 %v2570_v0, %v2536_v21  ;;  %v2676_v54 = vadd.f32 %v2675_v34, %v2641_v11  ;;  %3627 = vmatpush.msrb.mxu2 %v3133_v32  ;;  %v3956_v0 = vld [vmem:[#allocation10 + $0xff0] sm:$0xff] }
 0x37f   :  { %3397 = vmatpush.msrb.mxu3 %v2976_v57  ;;  %4039 = vmatpush.msrb.mxu1 %v3961_v49  ;;  %v3926_v49 = vld [vmem:[#allocation10 + $0xf00] sm:$0xff] }
 0x380   :  { %2911 = vst [vmem:[#allocation4 + $0x80] sm:$0xff] %v2571_v42  ;;  %v7589_v33 = vpop.f32.mrf.mxu1  ;;  %3628 = vmatpush.msrb.mxu2 %v3128_v7  ;;  %v3123_v42 = vld [vmem:[#allocation10 + $0xa48] sm:$0xff]  ;;  %v3093_v7 = vld [vmem:[#allocation10 + $0x958] sm:$0xff] }
 0x381   :  { %v7591_v58 = vpop.f32.mrf.mxu0  ;;  %2912 = vst [vmem:[#allocation4 + $0x88] sm:$0xff] %v2676_v54  ;;  %3522 = vmatpush.msra.mxu3 %v3132_v47  ;;  %4040 = vmatpush.msrb.mxu1 %v3956_v0  ;;  %v3951_v54 = vld [vmem:[#allocation10 + $0xfc8] sm:$0xff] }
 0x382   :  { %6052 = vmatmul.msk.f32.gmra.mxu3 %vm1152_vm6, %v7593_v2  ;;  %6058 = vmatmul.msk.f32.gmra.mxu2 %vm1152_vm6, %v7593_v2 }
 0x383   :  { %6064 = vmatmul.msk.f32.gmra.mxu1 %vm1152_vm6, %v7593_v2  ;;  %3523 = vmatpush.msra.mxu3 %v3127_v22 }
 0x384   :  { %3436 = vmatmul.f32.gmra.mxu0 %v7497_v46  ;;  %3629 = vmatpush.msrb.mxu2 %v3123_v42  ;;  %v3851_v42 = vld [vmem:[#allocation10 + $0xca8] sm:$0xff] }
 0x385   :  { %v2573_v50 = vpop.f32.mrf.mxu3  ;;  %v2678_v24 = vpop.f32.mrf.mxu2  ;;  %3524 = vmatpush.msra.mxu3 %v3122_v5  ;;  %4041 = vmatpush.msrb.mxu1 %v3951_v54  ;;  %v3921_v54 = vld [vmem:[#allocation10 + $0xed8] sm:$0xff] }
 0x386   :  { %v2574_v48 = vadd.f32 %v2573_v50, %v2539_v26  ;;  %v2679_v62 = vadd.f32 %v2678_v24, %v2644_v9  ;;  %v7656_v9 = vld [vmem:[#allocation3 + $0x80] sm:$0xff]  ;;  %3630 = vmatpush.msrb.mxu2 %v3118_v44  ;;  %v3107_v24 = vld [vmem:[#allocation10 + $0x9c8] sm:$0xff] }
 0x387   :  { %3525 = vmatpush.msra.mxu3 %v3117_v38  ;;  %v3881_v26 = vld [vmem:[#allocation10 + $0xd98] sm:$0xff]  ;;  %v3916_v38 = vld [vmem:[#allocation10 + $0xeb0] sm:$0xff] }
 0x388   :  { %2916 = vst [vmem:[#allocation4 + $0xa8] sm:$0xff] %v2574_v48  ;;  %v7606_v15 = vpop.f32.mrf.mxu1  ;;  %4004 = vmatpush.msrb.mxu0 %v3881_v26  ;;  %3631 = vmatpush.msrb.mxu2 %v3113_v31  ;;  %v3936_v48 = vld [vmem:[#allocation10 + $0xf50] sm:$0xff]  ;;  %v3841_v44 = vld [vmem:[#allocation10 + $0xc58] sm:$0xff]  ;;  %v3083_v26 = vld [vmem:[#allocation10 + $0x908] sm:$0xff] }
 0x389   :  { %v7608_v55 = vpop.f32.mrf.mxu0  ;;  %2917 = vst [vmem:[#allocation4 + $0xb0] sm:$0xff] %v2679_v62 }
 0x38a   :  { %6053 = vmatmul.msk.f32.gmra.mxu3 %vm1152_vm6, %v7610_v6  ;;  %6059 = vmatmul.msk.f32.gmra.mxu2 %vm1152_vm6, %v7610_v6 }
 0x38b   :  { %6065 = vmatmul.msk.f32.gmra.mxu1 %vm1152_vm6, %v7610_v6  ;;  %4005 = vmatpush.msrb.mxu0 %v3876_v53  ;;  %v3911_v53 = vld [vmem:[#allocation10 + $0xe88] sm:$0xff] }
 0x38c   :  { %3439 = vmatmul.f32.gmra.mxu0 %v7622_v18  ;;  %3632 = vmatpush.msrb.mxu2 %v3108_v39 }
 0x38d   :  { %v2576_v4 = vpop.f32.mrf.mxu3  ;;  %v2681_v12 = vpop.f32.mrf.mxu2  ;;  %4006 = vmatpush.msrb.mxu0 %v3871_v60  ;;  %v3073_v60 = vld [vmem:[#allocation10 + $0x8b8] sm:$0xff] }
 0x38e   :  { %v2577_v35 = vadd.f32 %v2576_v4, %v2542_v63  ;;  %v2682_v43 = vadd.f32 %v2681_v12, %v2647_v30  ;;  %v3102_v30 = vld [vmem:[#allocation10 + $0x9a0] sm:$0xff]  ;;  %v3103_v63 = vld [vmem:[#allocation10 + $0x9a8] sm:$0xff]  ;;  %v3097_v4 = vld [vmem:[#allocation10 + $0x978] sm:$0xff] }
 0x38f   :  { %v7670_v12 = vld [vmem:[#allocation3 + $0x98] sm:$0xff]  ;;  %3633 = vmatpush.msrb.mxu2 %v3103_v63 }
 0x390   :  { %2921 = vst [vmem:[#allocation4 + $0xd0] sm:$0xff] %v2577_v35  ;;  %v7625_v14 = vpop.f32.mrf.mxu1  ;;  %v3861_v35 = vld [vmem:[#allocation10 + $0xcf8] sm:$0xff] }
 0x391   :  { %v7627_v16 = vpop.f32.mrf.mxu0  ;;  %2922 = vst [vmem:[#allocation4 + $0xd8] sm:$0xff] %v2682_v43  ;;  %v3098_v43 = vld [vmem:[#allocation10 + $0x980] sm:$0xff] }
 0x392   :  { %6054 = vmatmul.msk.f32.gmra.mxu3 %vm1152_vm6, %v7629_v3  ;;  %6060 = vmatmul.msk.f32.gmra.mxu2 %vm1152_vm6, %v7629_v3 }
 0x393   :  { %6066 = vmatmul.msk.f32.gmra.mxu1 %vm1152_vm6, %v7629_v3  ;;  %3634 = vmatpush.msrb.mxu2 %v3098_v43 }
 0x394   :  { %3442 = vmatmul.f32.gmra.mxu0 %v7637_v20 }
 0x395   :  { %v2701_v11 = vpop.f32.mrf.mxu3  ;;  %v7640_v21 = vpop.f32.mrf.mxu2  ;;  %3635 = vmatpush.msrb.mxu2 %v3093_v7  ;;  %v3063_v7 = vld [vmem:[#allocation10 + $0x868] sm:$0xff] }
 0x396   :  { %v2737_v34 = vadd.f32 %v7545_v19, %v2701_v11  ;;  %v3946_v19 = vld [vmem:[#allocation10 + $0xfa0] sm:$0xff]  ;;  %v3092_v11 = vld [vmem:[#allocation10 + $0x950] sm:$0xff] }
 0x397   :  { %4042 = vmatpush.msrb.mxu1 %v3946_v19  ;;  %v3082_v19 = vld [vmem:[#allocation10 + $0x900] sm:$0xff] }
 0x398   :  { %v2772_v29 = vadd.f32 %v7531_v52, %v2737_v34  ;;  %v7644_v27 = vpop.f32.mrf.mxu1  ;;  %v3112_v52 = vld [vmem:[#allocation10 + $0x9f0] sm:$0xff] }
 0x399   :  { %v7646_v37 = vpop.f32.mrf.mxu0  ;;  %3526 = vmatpush.msra.mxu3 %v3112_v52  ;;  %4043 = vmatpush.msrb.mxu1 %v3941_v59 }
 0x39a   :  { %2897 = vst [vmem:[#allocation4 + $0x18] sm:$0xff] %v2772_v29  ;;  %6055 = vmatmul.msk.f32.gmra.mxu3 %vm1152_vm6, %v7648_v8  ;;  %6061 = vmatmul.msk.f32.gmra.mxu2 %vm1152_vm6, %v7648_v8  ;;  %v3087_v29 = vld [vmem:[#allocation10 + $0x928] sm:$0xff] }
 0x39b   :  { %6067 = vmatmul.msk.f32.gmra.mxu1 %vm1152_vm6, %v7648_v8  ;;  %3527 = vmatpush.msra.mxu3 %v3107_v24 }
 0x39c   :  { %3445 = vmatmul.f32.gmra.mxu0 %v7656_v9  ;;  %4044 = vmatpush.msrb.mxu1 %v3936_v48  ;;  %v3078_v48 = vld [vmem:[#allocation10 + $0x8e0] sm:$0xff] }
 0x39d   :  { %v2704_v57 = vpop.f32.mrf.mxu3  ;;  %v7659_v50 = vpop.f32.mrf.mxu2  ;;  %3528 = vmatpush.msra.mxu3 %v3102_v30  ;;  %v3821_v30 = vld [vmem:[#allocation10 + $0xbb8] sm:$0xff] }
 0x39e   :  { %v2740_v56 = vadd.f32 %v7557_v10, %v2704_v57  ;;  %v3866_v10 = vld [vmem:[#allocation10 + $0xd20] sm:$0xff]  ;;  %v3836_v57 = vld [vmem:[#allocation10 + $0xc30] sm:$0xff] }
 0x39f   :  { %4007 = vmatpush.msrb.mxu0 %v3866_v10  ;;  %3529 = vmatpush.msra.mxu3 %v3097_v4  ;;  %v3901_v10 = vld [vmem:[#allocation10 + $0xe38] sm:$0xff]  ;;  %v3067_v4 = vld [vmem:[#allocation10 + $0x888] sm:$0xff] }
 0x3a0   :  { %v2775_v62 = vadd.f32 %v7543_v61, %v2740_v56  ;;  %v7663_v25 = vpop.f32.mrf.mxu1  ;;  %v3931_v61 = vld [vmem:[#allocation10 + $0xf28] sm:$0xff] }
 0x3a1   :  { %v7665_v13 = vpop.f32.mrf.mxu0  ;;  %4045 = vmatpush.msrb.mxu1 %v3931_v61  ;;  %4008 = vmatpush.msrb.mxu0 %v3861_v35  ;;  %v3831_v56 = vld [vmem:[#allocation10 + $0xc08] sm:$0xff]  ;;  %v3068_v35 = vld [vmem:[#allocation10 + $0x890] sm:$0xff] }
 0x3a2   :  { %2903 = vst [vmem:[#allocation4 + $0x40] sm:$0xff] %v2775_v62  ;;  %3398 = vmatmul.f32.vlgmr.msrb.gmra.mxu3 %v7414_v40  ;;  %3503 = vmatmul.f32.vlgmr.msra.gmra.mxu2 %v7414_v40  ;;  %v3906_v62 = vld [vmem:[#allocation10 + $0xe60] sm:$0xff] }
 0x3a3   :  { %3608 = vmatmul.f32.vlgmr.msra.gmra.mxu1 %v7414_v40  ;;  %v3856_v40 = vld [vmem:[#allocation10 + $0xcd0] sm:$0xff]  ;;  %3530 = vmatpush.msra.mxu3 %v3092_v11 }
 0x3a4   :  { %3448 = vmatmul.f32.gmra.mxu0 %v7670_v12  ;;  %4046 = vmatpush.msrb.mxu1 %v3926_v49 }
 0x3a5   :  { %v2707_v47 = vpop.f32.mrf.mxu3  ;;  %v7673_v32 = vpop.f32.mrf.mxu2  ;;  %4009 = vmatpush.msrb.mxu0 %v3856_v40  ;;  %3531 = vmatpush.msra.mxu3 %v3087_v29  ;;  %v3062_v40 = vld [vmem:[#allocation10 + $0x860] sm:$0xff] }
 0x3a6   :  { %v2743_v22 = vadd.f32 %v7574_v1, %v2707_v47  ;;  %v3846_v1 = vld [vmem:[#allocation10 + $0xc80] sm:$0xff]  ;;  %4047 = vmatpush.msrb.mxu1 %v3921_v54  ;;  %v3816_v47 = vld [vmem:[#allocation10 + $0xb90] sm:$0xff] }
 0x3a7   :  { %4010 = vmatpush.msrb.mxu0 %v3851_v42  ;;  %3532 = vmatpush.msra.mxu3 %v3082_v19  ;;  %v3057_v42 = vld [vmem:[#allocation10 + $0x838] sm:$0xff]  ;;  %v3058_v54 = vld [vmem:[#allocation10 + $0x840] sm:$0xff] }
 0x3a8   :  { %v2778_v0 = vadd.f32 %v7555_v23, %v2743_v22  ;;  %v7677_v34 = vpop.f32.mrf.mxu1  ;;  %v3088_v23 = vld [vmem:[#allocation10 + $0x930] sm:$0xff]  ;;  %4048 = vmatpush.msrb.mxu1 %v3916_v38  ;;  %v3811_v22 = vld [vmem:[#allocation10 + $0xb68] sm:$0xff] }
 0x3a9   :  { %v7679_v5 = vpop.f32.mrf.mxu0  ;;  %4011 = vmatpush.msrb.mxu0 %v3846_v1  ;;  %3636 = vmatpush.msrb.mxu2 %v3088_v23  ;;  %v3886_v23 = vld [vmem:[#allocation10 + $0xdc0] sm:$0xff] }
 0x3aa   :  { %2908 = vst [vmem:[#allocation4 + $0x68] sm:$0xff] %v2778_v0  ;;  %3401 = vmatmul.f32.gmra.mxu3 %v7424_v17  ;;  %3506 = vmatmul.f32.gmra.mxu2 %v7424_v17  ;;  %v6155_v0 = vld [vmem:[#allocation3 + $0x60] sm:$0xff] }
 0x3ab   :  { %3611 = vmatmul.f32.gmra.mxu1 %v7424_v17  ;;  %v3077_v17 = vld [vmem:[#allocation10 + $0x8d8] sm:$0xff]  ;;  %4012 = vmatpush.msrb.mxu0 %v3841_v44 }
 0x3ac   :  { %6068 = vmatmul.msk.f32.vlgmr.msra.gmra.mxu0 %vm1152_vm6, %v7559_v36  ;;  %3637 = vmatpush.msrb.mxu2 %v3083_v26 }
 0x3ad   :  { %v2710_v52 = vpop.f32.mrf.mxu3  ;;  %v7686_v31 = vpop.f32.mrf.mxu2  ;;  %4049 = vmatpush.msrb.mxu1 %v3911_v53  ;;  %4013 = vmatpush.msrb.mxu0 %v3836_v57  ;;  %v6157_v57 = vld [vmem:[#allocation3 + $0x90] sm:$0xff] }
 0x3ae   :  { %v2746_v59 = vadd.f32 %v7591_v58, %v2710_v52  ;;  %3533 = vmatpush.msra.mxu3 %v3077_v17  ;;  %v3826_v58 = vld [vmem:[#allocation10 + $0xbe0] sm:$0xff]  ;;  %3638 = vmatpush.msrb.mxu2 %v3078_v48 }
 0x3af   :  { %4014 = vmatpush.msrb.mxu0 %v3831_v56  ;;  %4050 = vmatpush.msrb.mxu1 %v3906_v62  ;;  %v3962_v17 = vld [vmem:[#allocation10 + $0x1020] sm:$0xff] }
 0x3b0   :  { %v2781_v36 = vadd.f32 %v7572_v45, %v2746_v59  ;;  %v7690_v24 = vpop.f32.mrf.mxu1  ;;  %v3072_v45 = vld [vmem:[#allocation10 + $0x8b0] sm:$0xff]  ;;  %3639 = vmatpush.msrb.mxu2 %v3073_v60  ;;  %v6158_v60 = vld [vmem:[#allocation3 + $0x20] sm:$0xff] }
 0x3b1   :  { %v7692_v39 = vpop.f32.mrf.mxu0  ;;  %4015 = vmatpush.msrb.mxu0 %v3826_v58  ;;  %3534 = vmatpush.msra.mxu3 %v3072_v45  ;;  %v3952_v45 = vld [vmem:[#allocation10 + $0xfd0] sm:$0xff] }
 0x3b2   :  { %2913 = vst [vmem:[#allocation4 + $0x90] sm:$0xff] %v2781_v36  ;;  %3404 = vmatmul.f32.gmra.mxu3 %v7432_v28  ;;  %3509 = vmatmul.f32.gmra.mxu2 %v7432_v28  ;;  %v3957_v36 = vld [vmem:[#allocation10 + $0xff8] sm:$0xff] }
 0x3b3   :  { %3614 = vmatmul.f32.gmra.mxu1 %v7432_v28  ;;  %v3896_v28 = vld [vmem:[#allocation10 + $0xe10] sm:$0xff]  ;;  %4016 = vmatpush.msrb.mxu0 %v3821_v30 }
 0x3b4   :  { %6069 = vmatmul.msk.f32.gmra.mxu0 %vm1152_vm6, %v7576_v51  ;;  %4051 = vmatpush.msrb.mxu1 %v3901_v10 }
 0x3b5   :  { %v2713_v63 = vpop.f32.mrf.mxu3  ;;  %v7699_v61 = vpop.f32.mrf.mxu2  ;;  %3535 = vmatpush.msra.mxu3 %v3067_v4  ;;  %3640 = vmatpush.msrb.mxu2 %v3068_v35 }
 0x3b6   :  { %v2749_v43 = vadd.f32 %v7608_v55, %v2713_v63  ;;  %4017 = vmatpush.msrb.mxu0 %v3816_v47  ;;  %4052 = vmatpush.msrb.mxu1 %v3896_v28  ;;  %v3806_v55 = vld [vmem:[#allocation10 + $0xb40] sm:$0xff]  ;;  %v3937_v63 = vld [vmem:[#allocation10 + $0xf58] sm:$0xff]  ;;  %v7752_v47 = vld [vmem:[#allocation3 + $0x30] sm:$0xff] }
 0x3b7   :  { %3536 = vmatpush.msra.mxu3 %v3062_v40  ;;  %3641 = vmatpush.msrb.mxu2 %v3063_v7  ;;  %v3927_v28 = vld [vmem:[#allocation10 + $0xf08] sm:$0xff]  ;;  %v3922_v40 = vld [vmem:[#allocation10 + $0xee0] sm:$0xff] }
 0x3b8   :  { %v2784_v51 = vadd.f32 %v7589_v33, %v2749_v43  ;;  %v7703_v49 = vpop.f32.mrf.mxu1  ;;  %4018 = vmatpush.msrb.mxu0 %v3811_v22  ;;  %v3891_v33 = vld [vmem:[#allocation10 + $0xde8] sm:$0xff]  ;;  %v3982_v22 = vld [vmem:[#allocation10 + $0x10c0] sm:$0xff] }
 0x3b9   :  { %v7705_v11 = vpop.f32.mrf.mxu0  ;;  %4053 = vmatpush.msrb.mxu1 %v3891_v33  ;;  %3537 = vmatpush.msra.mxu3 %v3057_v42  ;;  %v3976_v33 = vld [vmem:[#allocation10 + $0x1090] sm:$0xff]  ;;  %v3977_v42 = vld [vmem:[#allocation10 + $0x1098] sm:$0xff] }
 0x3ba   :  { %2918 = vst [vmem:[#allocation4 + $0xb8] sm:$0xff] %v2784_v51  ;;  %3407 = vmatmul.f32.gmra.mxu3 %v7443_v41  ;;  %3512 = vmatmul.f32.gmra.mxu2 %v7443_v41  ;;  %v3981_v51 = vld [vmem:[#allocation10 + $0x10b8] sm:$0xff] }
 0x3bb   :  { %3617 = vmatmul.f32.gmra.mxu1 %v6155_v0  ;;  %4019 = vmatpush.msrb.mxu0 %v3806_v55  ;;  %v3148_v0 = vld [vmem:[#allocation10 + $0xb10] sm:$0xff] }
 0x3bc   :  { %6070 = vmatmul.msk.f32.gmra.mxu0 %vm1152_vm6, %v7593_v2  ;;  %3642 = vmatpush.msrb.mxu2 %v3058_v54  ;;  %v6156_v2 = vld [vmem:[#allocation3 + $0x78] sm:$0xff] }
 0x3bd   :  { %v2716_v1 = vpop.f32.mrf.mxu3  ;;  %v7711_v29 = vpop.f32.mrf.mxu2  ;;  %4054 = vmatpush.msrb.mxu1 %v3886_v23  ;;  %4144 = vmatpush.msra.mxu0 %v3962_v17  ;;  %v3143_v23 = vld [vmem:[#allocation10 + $0xae8] sm:$0xff] }
 0x3be   :  { %v2752_v41 = vadd.f32 %v7627_v16, %v2716_v1  ;;  %4086 = vmatpush.msra.mxu2 %v3981_v51  ;;  %v3917_v1 = vld [vmem:[#allocation10 + $0xeb8] sm:$0xff]  ;;  %v7776_v17 = vld [vmem:[#allocation3 + $0x48] sm:$0xff] }
 0x3bf   :  { %4145 = vmatpush.msra.mxu0 %v3957_v36  ;;  %4191 = vmatpush.msra.mxu1 %v3982_v22  ;;  %v3966_v36 = vld [vmem:[#allocation10 + $0x1040] sm:$0xff]  ;;  %v7805_v22 = vld [vmem:[#allocation3 + $0x78] sm:$0xff] }
 0x3c0   :  { %v2787_v38 = vadd.f32 %v7606_v15, %v2752_v41  ;;  %v7715_v44 = vpop.f32.mrf.mxu1  ;;  %4087 = vmatpush.msra.mxu2 %v3976_v33  ;;  %v3971_v41 = vld [vmem:[#allocation10 + $0x1068] sm:$0xff] }
 0x3c1   :  { %v7717_v19 = vpop.f32.mrf.mxu0  ;;  %4146 = vmatpush.msra.mxu0 %v3952_v45  ;;  %4192 = vmatpush.msra.mxu1 %v3977_v42 }
 0x3c2   :  { %2923 = vst [vmem:[#allocation4 + $0xe0] sm:$0xff] %v2787_v38  ;;  %3410 = vmatmul.f32.gmra.mxu3 %v6156_v2  ;;  %3515 = vmatmul.f32.gmra.mxu2 %v6156_v2 }
 0x3c3   :  { %3620 = vmatmul.f32.gmra.mxu1 %v6156_v2  ;;  %4088 = vmatpush.msra.mxu2 %v3971_v41  ;;  %v2925_v41 = vld [vmem:[#allocation4] sm:$0xff] }
 0x3c4   :  { %6071 = vmatmul.msk.f32.gmra.mxu0 %vm1152_vm6, %v7610_v6 }
 0x3c5   :  { %v2841_v52 = vpop.f32.mrf.mxu3  ;;  %v7721_v16 = vpop.f32.mrf.mxu2  ;;  %4089 = vmatpush.msra.mxu2 %v3966_v36 }
 0x3c6   :  { %v2842_v26 = vadd.f32 %v2841_v52, %v7640_v21  ;;  %v3225_v33 = vadd.f32 %v7721_v16, %v7625_v14  ;;  %v3874_v14 = vld [vmem:[#allocation10 + $0xd60] sm:$0xff] }
 0x3c8   :  { %v2877_v15 = vadd.f32 %v7646_v37, %v2842_v26  ;;  %v7725_v53 = vpop.f32.mrf.mxu1  ;;  %v3912_v26 = vld [vmem:[#allocation10 + $0xe90] sm:$0xff] }
 0x3c9   :  { %v7727_v59 = vpop.f32.mrf.mxu0 }
 0x3ca   :  { %2899 = vst.msk [vmem:[#allocation4 + $0x20] sm:$0xff] %vm2898_vm15, %v2877_v15  ;;  %3413 = vmatmul.f32.gmra.mxu3 %v6157_v57  ;;  %3518 = vmatmul.f32.gmra.mxu2 %v6157_v57  ;;  %v3972_v15 = vld [vmem:[#allocation10 + $0x1070] sm:$0xff] }
 0x3cb   :  { %3623 = vmatmul.f32.gmra.mxu1 %v6157_v57  ;;  %v3907_v57 = vld [vmem:[#allocation10 + $0xe68] sm:$0xff] }
 0x3cc   :  { %6072 = vmatmul.msk.f32.gmra.mxu0 %vm1152_vm6, %v7629_v3  ;;  %v3947_v3 = vld [vmem:[#allocation10 + $0xfa8] sm:$0xff]  ;;  %4193 = vmatpush.msra.mxu1 %v3972_v15 }
 0x3cd   :  { %v2844_v56 = vpop.f32.mrf.mxu3  ;;  %v7732_v21 = vpop.f32.mrf.mxu2  ;;  %4147 = vmatpush.msra.mxu0 %v3947_v3 }
 0x3ce   :  { %v2845_v37 = vadd.f32 %v2844_v56, %v7659_v50  ;;  %v3942_v50 = vld [vmem:[#allocation10 + $0xf80] sm:$0xff]  ;;  %v3967_v56 = vld [vmem:[#allocation10 + $0x1048] sm:$0xff] }
 0x3cf   :  { %4148 = vmatpush.msra.mxu0 %v3942_v50  ;;  %4194 = vmatpush.msra.mxu1 %v3967_v56  ;;  %v3867_v56 = vld [vmem:[#allocation10 + $0xd28] sm:$0xff] }
 0x3d0   :  { %v2880_v48 = vadd.f32 %v7665_v13, %v2845_v37  ;;  %v7736_v58 = vpop.f32.mrf.mxu1  ;;  %v3902_v37 = vld [vmem:[#allocation10 + $0xe40] sm:$0xff] }
 0x3d1   :  { %v7738_v62 = vpop.f32.mrf.mxu0  ;;  %4149 = vmatpush.msra.mxu0 %v3937_v63  ;;  %v7791_v63 = vld [vmem:[#allocation3 + $0x80] sm:$0xff] }
 0x3d2   :  { %2904 = vst.msk [vmem:[#allocation4 + $0x48] sm:$0xff] %vm2898_vm15, %v2880_v48  ;;  %3538 = vmatmul.f32.vlgmr.msra.gmra.mxu3 %v6158_v60  ;;  %3643 = vmatmul.f32.vlgmr.msrb.gmra.mxu2 %v6158_v60  ;;  %v3897_v60 = vld [vmem:[#allocation10 + $0xe18] sm:$0xff] }
 0x3d3   :  { %4055 = vmatmul.f32.vlgmr.msrb.gmra.mxu1 %v7497_v46  ;;  %v3932_v46 = vld [vmem:[#allocation10 + $0xf30] sm:$0xff] }
 0x3d4   :  { %6073 = vmatmul.msk.f32.gmra.mxu0 %vm1152_vm6, %v7648_v8  ;;  %v7755_v8 = vld [vmem:[#allocation3 + $0x38] sm:$0xff] }
 0x3d5   :  { %v2847_v30 = vpop.f32.mrf.mxu3  ;;  %v7744_v13 = vpop.f32.mrf.mxu2  ;;  %4150 = vmatpush.msra.mxu0 %v3932_v46 }
 0x3d6   :  { %v2848_v10 = vadd.f32 %v2847_v30, %v7673_v32  ;;  %v7759_v32 = vld [vmem:[#allocation3 + $0x50] sm:$0xff] }
 0x3d7   :  { %4151 = vmatpush.msra.mxu0 %v3927_v28 }
 0x3d8   :  { %v2883_v4 = vadd.f32 %v7679_v5, %v2848_v10  ;;  %v7748_v35 = vpop.f32.mrf.mxu1  ;;  %v3153_v5 = vld [vmem:[#allocation10 + $0xb38] sm:$0xff]  ;;  %v3892_v10 = vld [vmem:[#allocation10 + $0xdf0] sm:$0xff] }
 0x3d9   :  { %v7750_v43 = vpop.f32.mrf.mxu0  ;;  %3674 = vmatpush.msrb.mxu3 %v3153_v5  ;;  %4152 = vmatpush.msra.mxu0 %v3922_v40  ;;  %v7810_v40 = vld [vmem:[#allocation3 + $0x98] sm:$0xff] }
 0x3da   :  { %2909 = vst.msk [vmem:[#allocation4 + $0x70] sm:$0xff] %vm2898_vm15, %v2883_v4  ;;  %3541 = vmatmul.f32.gmra.mxu3 %v7755_v8  ;;  %3646 = vmatmul.f32.gmra.mxu2 %v7755_v8  ;;  %v7793_v4 = vld [vmem:[#allocation3 + $0x60] sm:$0xff] }
 0x3db   :  { %4058 = vmatmul.f32.gmra.mxu1 %v7759_v32  ;;  %3675 = vmatpush.msrb.mxu3 %v3148_v0  ;;  %v3884_v0 = vld [vmem:[#allocation10 + $0xdb0] sm:$0xff] }
 0x3dc   :  { %4020 = vmatmul.f32.vlgmr.msrb.gmra.mxu0 %v7752_v47  ;;  %4319 = vmatpush.msrb.mxu1 %v3884_v0 }
 0x3dd   :  { %v2850_v55 = vpop.f32.mrf.mxu3  ;;  %v7763_v7 = vpop.f32.mrf.mxu2  ;;  %3676 = vmatpush.msrb.mxu3 %v3143_v23  ;;  %4153 = vmatpush.msra.mxu0 %v3917_v1  ;;  %v3878_v1 = vld [vmem:[#allocation10 + $0xd80] sm:$0xff]  ;;  %v3879_v23 = vld [vmem:[#allocation10 + $0xd88] sm:$0xff] }
 0x3de   :  { %v2851_v54 = vadd.f32 %v2850_v55, %v7686_v31  ;;  %v7774_v31 = vld [vmem:[#allocation3 + $0x68] sm:$0xff]  ;;  %4320 = vmatpush.msrb.mxu1 %v3879_v23  ;;  %v7838_v23 = vld [vmem:[#allocation3 + $0x40] sm:$0xff] }
 0x3df   :  { %4154 = vmatpush.msra.mxu0 %v3912_v26  ;;  %v3882_v55 = vld [vmem:[#allocation10 + $0xda0] sm:$0xff] }
 0x3e0   :  { %v2886_v38 = vadd.f32 %v7692_v39, %v2851_v54  ;;  %v7767_v2 = vpop.f32.mrf.mxu1  ;;  %v3138_v39 = vld [vmem:[#allocation10 + $0xac0] sm:$0xff]  ;;  %4321 = vmatpush.msrb.mxu1 %v3874_v14  ;;  %v3336_v14 = vadd.f32 %v7736_v58, %v7750_v43  ;;  %v2936_v58 = vld [vmem:[#allocation4 + $0x58] sm:$0xff] }
 0x3e1   :  { %v7769_v52 = vpop.f32.mrf.mxu0  ;;  %4155 = vmatpush.msra.mxu0 %v3907_v57  ;;  %3677 = vmatpush.msrb.mxu3 %v3138_v39  ;;  %v2926_v26 = vld [vmem:[#allocation4 + $0x8] sm:$0xff] }
 0x3e2   :  { %2914 = vst.msk [vmem:[#allocation4 + $0x98] sm:$0xff] %vm2898_vm15, %v2886_v38  ;;  %3544 = vmatmul.f32.gmra.mxu3 %v7622_v18  ;;  %3649 = vmatmul.f32.gmra.mxu2 %v7622_v18 }
 0x3e3   :  { %4061 = vmatmul.f32.gmra.mxu1 %v7774_v31  ;;  %4156 = vmatpush.msra.mxu0 %v3902_v37  ;;  %v3868_v37 = vld [vmem:[#allocation10 + $0xd30] sm:$0xff] }
 0x3e4   :  { %4023 = vmatmul.f32.gmra.mxu0 %v7776_v17  ;;  %4109 = vmatpush.msra.mxu3 %v3882_v55  ;;  %v3857_v55 = vld [vmem:[#allocation10 + $0xcd8] sm:$0xff] }
 0x3e5   :  { %v2853_v48 = vpop.f32.mrf.mxu3  ;;  %v7780_v45 = vpop.f32.mrf.mxu2  ;;  %4157 = vmatpush.msra.mxu0 %v3897_v60  ;;  %v7826_v60 = vld [vmem:[#allocation3 + $0x90] sm:$0xff] }
 0x3e6   :  { %v2854_v18 = vadd.f32 %v2853_v48, %v7699_v61  ;;  %v3887_v61 = vld [vmem:[#allocation10 + $0xdc8] sm:$0xff] }
 0x3e7   :  { %4158 = vmatpush.msra.mxu0 %v3892_v10  ;;  %v7824_v48 = vld [vmem:[#allocation3 + $0xb0] sm:$0xff] }
 0x3e8   :  { %v2889_v3 = vadd.f32 %v7705_v11, %v2854_v18  ;;  %v7784_v50 = vpop.f32.mrf.mxu1  ;;  %v3869_v18 = vld [vmem:[#allocation10 + $0xd38] sm:$0xff]  ;;  %v3863_v10 = vld [vmem:[#allocation10 + $0xd08] sm:$0xff] }
 0x3e9   :  { %v7786_v30 = vpop.f32.mrf.mxu0  ;;  %4159 = vmatpush.msra.mxu0 %v3887_v61  ;;  %v3333_v61 = vadd.f32 %v7725_v53, %v7738_v62  ;;  %4322 = vmatpush.msrb.mxu1 %v3869_v18  ;;  %v3852_v53 = vld [vmem:[#allocation10 + $0xcb0] sm:$0xff] }
 0x3ea   :  { %2919 = vst.msk [vmem:[#allocation4 + $0xc0] sm:$0xff] %vm2898_vm15, %v2889_v3  ;;  %3547 = vmatmul.f32.gmra.mxu3 %v7637_v20  ;;  %3652 = vmatmul.f32.gmra.mxu2 %v7637_v20  ;;  %v3862_v3 = vld [vmem:[#allocation10 + $0xd00] sm:$0xff] }
 0x3eb   :  { %4064 = vmatmul.f32.gmra.mxu1 %v7791_v63 }
 0x3ec   :  { %4026 = vmatmul.f32.gmra.mxu0 %v7793_v4 }
 0x3ed   :  { %v2856_v11 = vpop.f32.mrf.mxu3  ;;  %v7797_v46 = vpop.f32.mrf.mxu2 }
 0x3ee   :  { %v2857_v28 = vadd.f32 %v2856_v11, %v7711_v29  ;;  %v3883_v29 = vld [vmem:[#allocation10 + $0xda8] sm:$0xff]  ;;  %v3228_v11 = vadd.f32 %v7732_v21, %v7644_v27 }
 0x3ef   :  { %4214 = vmatpush.msrb.mxu2 %v3883_v29  ;;  %v3858_v29 = vld [vmem:[#allocation10 + $0xce0] sm:$0xff] }
 0x3f0   :  { %v2892_v5 = vadd.f32 %v7717_v19, %v2857_v28  ;;  %v7801_v51 = vpop.f32.mrf.mxu1  ;;  %v3330_v19 = vadd.f32 %v7715_v44, %v7727_v59  ;;  %v3872_v44 = vld [vmem:[#allocation10 + $0xd50] sm:$0xff]  ;;  %v3873_v59 = vld [vmem:[#allocation10 + $0xd58] sm:$0xff] }
 0x3f1   :  { %v7803_v20 = vpop.f32.mrf.mxu0  ;;  %4215 = vmatpush.msrb.mxu2 %v3878_v1 }
 0x3f2   :  { %2924 = vst.msk [vmem:[#allocation4 + $0xe8] sm:$0xff] %vm2898_vm15, %v2892_v5  ;;  %3550 = vmatmul.f32.gmra.mxu3 %v7656_v9  ;;  %3655 = vmatmul.f32.gmra.mxu2 %v7656_v9  ;;  %v3877_v9 = vld [vmem:[#allocation10 + $0xd78] sm:$0xff] }
 0x3f3   :  { %4067 = vmatmul.f32.gmra.mxu1 %v7810_v40  ;;  %4110 = vmatpush.msra.mxu3 %v3877_v9  ;;  %v3853_v9 = vld [vmem:[#allocation10 + $0xcb8] sm:$0xff] }
 0x3f4   :  { %4029 = vmatmul.f32.gmra.mxu0 %v7805_v22  ;;  %4216 = vmatpush.msrb.mxu2 %v3873_v59  ;;  %v3849_v59 = vld [vmem:[#allocation10 + $0xc98] sm:$0xff] }
 0x3f5   :  { %v3259_v42 = vpop.f32.mrf.mxu3  ;;  %v3364_v54 = vpop.f32.mrf.mxu2  ;;  %4111 = vmatpush.msra.mxu3 %v3872_v44  ;;  %v7843_v44 = vld [vmem:[#allocation3 + $0xa8] sm:$0xff] }
 0x3f6   :  { %v3260_v38 = vadd.f32 %v3259_v42, %v3225_v33  ;;  %v3365_v15 = vadd.f32 %v3364_v54, %v3330_v19  ;;  %4217 = vmatpush.msrb.mxu2 %v3868_v37  ;;  %v3859_v33 = vld [vmem:[#allocation10 + $0xce8] sm:$0xff] }
 0x3f7   :  { %4112 = vmatpush.msra.mxu3 %v3867_v56  ;;  %v2930_v42 = vld [vmem:[#allocation4 + $0x28] sm:$0xff]  ;;  %v2931_v54 = vld [vmem:[#allocation4 + $0x30] sm:$0xff] }
 0x3f8   :  { %v3697_v16 = vadd.f32 %v3260_v38, %v2925_v41  ;;  %v3698_v57 = vadd.f32 %v3365_v15, %v2926_v26  ;;  %v7818_v39 = vpop.f32.mrf.mxu1  ;;  %4218 = vmatpush.msrb.mxu2 %v3863_v10  ;;  %v3854_v41 = vld [vmem:[#allocation10 + $0xcc0] sm:$0xff]  ;;  %v3847_v26 = vld [vmem:[#allocation10 + $0xc88] sm:$0xff]  ;;  %v3848_v15 = vld [vmem:[#allocation10 + $0xc90] sm:$0xff] }
 0x3f9   :  { %v7820_v36 = vpop.f32.mrf.mxu0  ;;  %4113 = vmatpush.msra.mxu3 %v3862_v3  ;;  %v6160_v38 = vld [vmem:[#allocation3 + $0x28] sm:$0xff]  ;;  %v3844_v3 = vld [vmem:[#allocation10 + $0xc70] sm:$0xff] }
 0x3fa   :  { %3727 = vst [vmem:[#allocation4] sm:$0xff] %v3697_v16  ;;  %3553 = vmatmul.f32.gmra.mxu3 %v7670_v12  ;;  %3658 = vmatmul.f32.gmra.mxu2 %v7670_v12  ;;  %v3864_v12 = vld [vmem:[#allocation10 + $0xd10] sm:$0xff]  ;;  %v3231_v16 = vadd.f32 %v7744_v13, %v7663_v25  ;;  %v3843_v56 = vld [vmem:[#allocation10 + $0xc68] sm:$0xff] }
 0x3fb   :  { %3728 = vst [vmem:[#allocation4 + $0x8] sm:$0xff] %v3698_v57  ;;  %4070 = vmatmul.f32.gmra.mxu1 %v7824_v48  ;;  %4114 = vmatpush.msra.mxu3 %v3857_v55  ;;  %v3842_v57 = vld [vmem:[#allocation10 + $0xc60] sm:$0xff] }
 0x3fc   :  { %4032 = vmatmul.f32.gmra.mxu0 %v7826_v60  ;;  %4323 = vmatpush.msrb.mxu1 %v3864_v12  ;;  %v3838_v12 = vld [vmem:[#allocation10 + $0xc40] sm:$0xff] }
 0x3fd   :  { %v3262_v28 = vpop.f32.mrf.mxu3  ;;  %v3367_v5 = vpop.f32.mrf.mxu2  ;;  %4219 = vmatpush.msrb.mxu2 %v3858_v29  ;;  %4115 = vmatpush.msra.mxu3 %v3852_v53  ;;  %v7856_v29 = vld [vmem:[#allocation3 + $0x58] sm:$0xff]  ;;  %v3339_v53 = vadd.f32 %v7748_v35, %v7769_v52  ;;  %v2941_v35 = vld [vmem:[#allocation4 + $0x80] sm:$0xff] }
 0x3fe   :  { %v3263_v0 = vadd.f32 %v3262_v28, %v3228_v11  ;;  %v3368_v19 = vadd.f32 %v3367_v5, %v3333_v61  ;;  %4324 = vmatpush.msrb.mxu1 %v3859_v33  ;;  %v3837_v11 = vld [vmem:[#allocation10 + $0xc38] sm:$0xff]  ;;  %v2935_v28 = vld [vmem:[#allocation4 + $0x50] sm:$0xff]  ;;  %v3818_v52 = vld [vmem:[#allocation10 + $0xba0] sm:$0xff] }
 0x3ff   :  { %4220 = vmatpush.msrb.mxu2 %v3853_v9  ;;  %4116 = vmatpush.msra.mxu3 %v3847_v26  ;;  %v3832_v5 = vld [vmem:[#allocation10 + $0xc10] sm:$0xff]  ;;  %v3833_v33 = vld [vmem:[#allocation10 + $0xc18] sm:$0xff]  ;;  %v3822_v9 = vld [vmem:[#allocation10 + $0xbc0] sm:$0xff] }
 0x400   :  { %v3702_v27 = vadd.f32 %v3263_v0, %v2930_v42  ;;  %v3703_v21 = vadd.f32 %v3368_v19, %v2931_v54  ;;  %v7834_v62 = vpop.f32.mrf.mxu1  ;;  %4325 = vmatpush.msrb.mxu1 %v3854_v41  ;;  %v3839_v0 = vld [vmem:[#allocation10 + $0xc48] sm:$0xff]  ;;  %v6161_v19 = vld [vmem:[#allocation3 + $0x40] sm:$0xff] }
 0x401   :  { %v7836_v1 = vpop.f32.mrf.mxu0  ;;  %4221 = vmatpush.msrb.mxu2 %v3848_v15  ;;  %4117 = vmatpush.msra.mxu3 %v3842_v57  ;;  %v3827_v42 = vld [vmem:[#allocation10 + $0xbe8] sm:$0xff]  ;;  %v3834_v54 = vld [vmem:[#allocation10 + $0xc20] sm:$0xff]  ;;  %v3829_v26 = vld [vmem:[#allocation10 + $0xbf8] sm:$0xff] }
 0x402   :  { %3732 = vst [vmem:[#allocation4 + $0x28] sm:$0xff] %v3702_v27  ;;  %6074 = vmatmul.msk.f32.vlgmr.msrb.gmra.mxu3 %vm1152_vm6, %v6160_v38  ;;  %6080 = vmatmul.msk.f32.vlgmr.msra.gmra.mxu2 %vm1152_vm6, %v7838_v23  ;;  %v3234_v27 = vadd.f32 %v7763_v7, %v7677_v34  ;;  %v2940_v57 = vld [vmem:[#allocation4 + $0x78] sm:$0xff] }
 0x403   :  { %3733 = vst [vmem:[#allocation4 + $0x30] sm:$0xff] %v3703_v21  ;;  %6086 = vmatmul.msk.f32.vlgmr.msra.gmra.mxu1 %vm1152_vm6, %v7838_v23  ;;  %4222 = vmatpush.msrb.mxu2 %v3843_v56  ;;  %v3828_v21 = vld [vmem:[#allocation10 + $0xbf0] sm:$0xff] }
 0x404   :  { %4035 = vmatmul.f32.gmra.mxu0 %v7843_v44  ;;  %4326 = vmatpush.msrb.mxu1 %v3849_v59 }
 0x405   :  { %v3265_v37 = vpop.f32.mrf.mxu3  ;;  %v3370_v18 = vpop.f32.mrf.mxu2  ;;  %4118 = vmatpush.msra.mxu3 %v3837_v11  ;;  %4223 = vmatpush.msrb.mxu2 %v3838_v12  ;;  %v3342_v11 = vadd.f32 %v7767_v2, %v7786_v30  ;;  %v3237_v12 = vadd.f32 %v7780_v45, %v7690_v24  ;;  %v2945_v2 = vld [vmem:[#allocation4 + $0xa0] sm:$0xff]  ;;  %v2946_v30 = vld [vmem:[#allocation4 + $0xa8] sm:$0xff] }
 0x406   :  { %v3266_v10 = vadd.f32 %v3265_v37, %v3231_v16  ;;  %v3371_v61 = vadd.f32 %v3370_v18, %v3336_v14  ;;  %4327 = vmatpush.msrb.mxu1 %v3844_v3  ;;  %v3823_v14 = vld [vmem:[#allocation10 + $0xbc8] sm:$0xff]  ;;  %v3817_v16 = vld [vmem:[#allocation10 + $0xb98] sm:$0xff]  ;;  %v3824_v37 = vld [vmem:[#allocation10 + $0xbd0] sm:$0xff] }
 0x407   :  { %4119 = vmatpush.msra.mxu3 %v3832_v5  ;;  %4224 = vmatpush.msrb.mxu2 %v3833_v33  ;;  %v6162_v18 = vld [vmem:[#allocation3 + $0x58] sm:$0xff] }
 0x408   :  { %v3707_v25 = vadd.f32 %v3266_v10, %v2935_v28  ;;  %v3708_v13 = vadd.f32 %v3371_v61, %v2936_v58  ;;  %v7852_v43 = vpop.f32.mrf.mxu1  ;;  %4328 = vmatpush.msrb.mxu1 %v3839_v0  ;;  %v3812_v3 = vld [vmem:[#allocation10 + $0xb70] sm:$0xff]  ;;  %v3819_v10 = vld [vmem:[#allocation10 + $0xba8] sm:$0xff]  ;;  %v3813_v61 = vld [vmem:[#allocation10 + $0xb78] sm:$0xff] }
 0x409   :  { %v7854_v55 = vpop.f32.mrf.mxu0  ;;  %4120 = vmatpush.msra.mxu3 %v3827_v42  ;;  %4225 = vmatpush.msrb.mxu2 %v3828_v21  ;;  %v3983_v28 = vld [vmem:[#allocation10 + $0x10c8] sm:$0xff]  ;;  %v3978_v58 = vld [vmem:[#allocation10 + $0x10a0] sm:$0xff]  ;;  %v3808_v0 = vld [vmem:[#allocation10 + $0xb50] sm:$0xff] }
 0x40a   :  { %3737 = vst [vmem:[#allocation4 + $0x50] sm:$0xff] %v3707_v25  ;;  %6075 = vmatmul.msk.f32.gmra.mxu3 %vm1152_vm6, %v6161_v19  ;;  %6081 = vmatmul.msk.f32.gmra.mxu2 %vm1152_vm6, %v7856_v29  ;;  %v3807_v25 = vld [vmem:[#allocation10 + $0xb48] sm:$0xff] }
 0x40b   :  { %3738 = vst [vmem:[#allocation4 + $0x58] sm:$0xff] %v3708_v13  ;;  %6087 = vmatmul.msk.f32.gmra.mxu1 %vm1152_vm6, %v7856_v29  ;;  %4121 = vmatpush.msra.mxu3 %v3822_v9  ;;  %v7890_v21 = vld [vmem:[#allocation3 + $0x88] sm:$0xff]  ;;  %v3968_v9 = vld [vmem:[#allocation10 + $0x1050] sm:$0xff] }
 0x40c   :  { %4160 = vmatmul.f32.vlgmr.msra.gmra.mxu0 %v7755_v8  ;;  %4329 = vmatpush.msrb.mxu1 %v3834_v54  ;;  %v3973_v54 = vld [vmem:[#allocation10 + $0x1078] sm:$0xff] }
 0x40d   :  { %v3268_v41 = vpop.f32.mrf.mxu3  ;;  %v3373_v38 = vpop.f32.mrf.mxu2  ;;  %4226 = vmatpush.msrb.mxu2 %v3823_v14  ;;  %4122 = vmatpush.msra.mxu3 %v3817_v16  ;;  %v2950_v16 = vld [vmem:[#allocation4 + $0xc8] sm:$0xff] }
 0x40e   :  { %v3269_v15 = vadd.f32 %v3268_v41, %v3234_v27  ;;  %v3374_v59 = vadd.f32 %v3373_v38, %v3339_v53  ;;  %4330 = vmatpush.msrb.mxu1 %v3829_v26  ;;  %4296 = vmatpush.msrb.mxu0 %v3983_v28  ;;  %v3809_v53 = vld [vmem:[#allocation10 + $0xb58] sm:$0xff]  ;;  %v7886_v27 = vld [vmem:[#allocation3 + $0x70] sm:$0xff]  ;;  %v3345_v41 = vadd.f32 %v7784_v50, %v7803_v20 }
 0x40f   :  { %4227 = vmatpush.msrb.mxu2 %v3818_v52  ;;  %4123 = vmatpush.msra.mxu3 %v3812_v3  ;;  %v3240_v38 = vadd.f32 %v7797_v46, %v7703_v49  ;;  %v7907_v49 = vld [vmem:[#allocation3 + $0xa0] sm:$0xff]  ;;  %v3964_v50 = vld [vmem:[#allocation10 + $0x1030] sm:$0xff]  ;;  %v3959_v3 = vld [vmem:[#allocation10 + $0x1008] sm:$0xff] }
 0x410   :  { %v3712_v34 = vadd.f32 %v3269_v15, %v2940_v57  ;;  %v3713_v7 = vadd.f32 %v3374_v59, %v2941_v35  ;;  %v7868_v8 = vpop.f32.mrf.mxu1  ;;  %4331 = vmatpush.msrb.mxu1 %v3824_v37  ;;  %4297 = vmatpush.msrb.mxu0 %v3978_v58  ;;  %v2951_v57 = vld [vmem:[#allocation4 + $0xd0] sm:$0xff]  ;;  %v3965_v46 = vld [vmem:[#allocation10 + $0x1038] sm:$0xff] }
 0x411   :  { %v7870_v56 = vpop.f32.mrf.mxu0  ;;  %4228 = vmatpush.msrb.mxu2 %v3813_v61  ;;  %4124 = vmatpush.msra.mxu3 %v3807_v25  ;;  %v3955_v28 = vld [vmem:[#allocation10 + $0xfe8] sm:$0xff]  ;;  %v7920_v25 = vld [vmem:[#allocation3 + $0xb8] sm:$0xff] }
 0x412   :  { %3742 = vst [vmem:[#allocation4 + $0x78] sm:$0xff] %v3712_v34  ;;  %6076 = vmatmul.msk.f32.gmra.mxu3 %vm1152_vm6, %v6162_v18  ;;  %6082 = vmatmul.msk.f32.gmra.mxu2 %vm1152_vm6, %v7610_v6  ;;  %v3958_v18 = vld [vmem:[#allocation10 + $0x1000] sm:$0xff] }
 0x413   :  { %3743 = vst [vmem:[#allocation4 + $0x80] sm:$0xff] %v3713_v7  ;;  %6088 = vmatmul.msk.f32.gmra.mxu1 %vm1152_vm6, %v7610_v6  ;;  %v3814_v6 = vld [vmem:[#allocation10 + $0xb80] sm:$0xff]  ;;  %4229 = vmatpush.msrb.mxu2 %v3808_v0 }
 0x414   :  { %4163 = vmatmul.f32.gmra.mxu0 %v7759_v32  ;;  %4332 = vmatpush.msrb.mxu1 %v3819_v10  ;;  %v3960_v10 = vld [vmem:[#allocation10 + $0x1010] sm:$0xff] }
 0x415   :  { %v3271_v13 = vpop.f32.mrf.mxu3  ;;  %v3376_v5 = vpop.f32.mrf.mxu2  ;;  %4298 = vmatpush.msrb.mxu0 %v3973_v54  ;;  %4354 = vmatpush.msra.mxu2 %v3964_v50  ;;  %v3929_v50 = vld [vmem:[#allocation10 + $0xf18] sm:$0xff] }
 0x416   :  { %v3272_v19 = vadd.f32 %v3271_v13, %v3237_v12  ;;  %v3377_v33 = vadd.f32 %v3376_v5, %v3342_v11  ;;  %4333 = vmatpush.msrb.mxu1 %v3814_v6  ;;  %v3953_v11 = vld [vmem:[#allocation10 + $0xfd8] sm:$0xff]  ;;  %v3954_v12 = vld [vmem:[#allocation10 + $0xfe0] sm:$0xff]  ;;  %v2927_v5 = vld [vmem:[#allocation4 + $0x10] sm:$0xff] }
 0x417   :  { %4299 = vmatpush.msrb.mxu0 %v3968_v9  ;;  %4355 = vmatpush.msra.mxu2 %v3959_v3  ;;  %v3948_v6 = vld [vmem:[#allocation10 + $0xfb0] sm:$0xff]  ;;  %v3939_v9 = vld [vmem:[#allocation10 + $0xf68] sm:$0xff] }
 0x418   :  { %v3717_v24 = vadd.f32 %v3272_v19, %v2945_v2  ;;  %v3718_v32 = vadd.f32 %v3377_v33, %v2946_v30  ;;  %v7882_v45 = vpop.f32.mrf.mxu1  ;;  %4334 = vmatpush.msrb.mxu1 %v3809_v53  ;;  %v3943_v19 = vld [vmem:[#allocation10 + $0xf88] sm:$0xff]  ;;  %v3944_v33 = vld [vmem:[#allocation10 + $0xf90] sm:$0xff]  ;;  %v3885_v2 = vld [vmem:[#allocation10 + $0xdb8] sm:$0xff] }
 0x419   :  { %v7884_v42 = vpop.f32.mrf.mxu0  ;;  %4356 = vmatpush.msra.mxu2 %v3954_v12  ;;  %v3880_v30 = vld [vmem:[#allocation10 + $0xd90] sm:$0xff]  ;;  %4424 = vmatpush.msra.mxu0 %v3885_v2  ;;  %v3938_v53 = vld [vmem:[#allocation10 + $0xf60] sm:$0xff]  ;;  %v3923_v3 = vld [vmem:[#allocation10 + $0xee8] sm:$0xff] }
 0x41a   :  { %3747 = vst [vmem:[#allocation4 + $0xa0] sm:$0xff] %v3717_v24  ;;  %6077 = vmatmul.msk.f32.gmra.mxu3 %vm1152_vm6, %v7886_v27  ;;  %6083 = vmatmul.msk.f32.gmra.mxu2 %vm1152_vm6, %v7890_v21  ;;  %v3945_v24 = vld [vmem:[#allocation10 + $0xf98] sm:$0xff] }
 0x41b   :  { %3748 = vst [vmem:[#allocation4 + $0xa8] sm:$0xff] %v3718_v32  ;;  %6089 = vmatmul.msk.f32.gmra.mxu1 %vm1152_vm6, %v7890_v21  ;;  %4425 = vmatpush.msra.mxu0 %v3880_v30  ;;  %v3914_v30 = vld [vmem:[#allocation10 + $0xea0] sm:$0xff] }
 0x41c   :  { %4166 = vmatmul.f32.gmra.mxu0 %v7774_v31  ;;  %v3963_v31 = vld [vmem:[#allocation10 + $0x1028] sm:$0xff]  ;;  %4459 = vmatpush.msra.mxu1 %v3965_v46 }
 0x41d   :  { %v3274_v26 = vpop.f32.mrf.mxu3  ;;  %v3379_v15 = vpop.f32.mrf.mxu2  ;;  %4249 = vmatpush.msrb.mxu3 %v3963_v31  ;;  %v3865_v31 = vld [vmem:[#allocation10 + $0xd18] sm:$0xff] }
 0x41e   :  { %v3275_v59 = vadd.f32 %v3274_v26, %v3240_v38  ;;  %v3380_v14 = vadd.f32 %v3379_v15, %v3345_v41  ;;  %4460 = vmatpush.msra.mxu1 %v3960_v10  ;;  %v3940_v38 = vld [vmem:[#allocation10 + $0xf70] sm:$0xff] }
 0x41f   :  { %4250 = vmatpush.msrb.mxu3 %v3958_v18  ;;  %v3930_v18 = vld [vmem:[#allocation10 + $0xf20] sm:$0xff] }
 0x420   :  { %v3722_v35 = vadd.f32 %v3275_v59, %v2950_v16  ;;  %v3723_v34 = vadd.f32 %v3380_v14, %v2951_v57  ;;  %v7901_v7 = vpop.f32.mrf.mxu1  ;;  %4461 = vmatpush.msra.mxu1 %v3955_v28  ;;  %v2932_v59 = vld [vmem:[#allocation4 + $0x38] sm:$0xff]  ;;  %v3875_v14 = vld [vmem:[#allocation10 + $0xd68] sm:$0xff]  ;;  %v2937_v28 = vld [vmem:[#allocation4 + $0x60] sm:$0xff] }
 0x421   :  { %v7903_v52 = vpop.f32.mrf.mxu0  ;;  %4251 = vmatpush.msrb.mxu3 %v3953_v11  ;;  %v3933_v16 = vld [vmem:[#allocation10 + $0xf38] sm:$0xff]  ;;  %4426 = vmatpush.msra.mxu0 %v3875_v14  ;;  %v3830_v14 = vld [vmem:[#allocation10 + $0xc00] sm:$0xff] }
 0x422   :  { %3752 = vst [vmem:[#allocation4 + $0xc8] sm:$0xff] %v3722_v35  ;;  %6078 = vmatmul.msk.f32.gmra.mxu3 %vm1152_vm6, %v7890_v21  ;;  %6084 = vmatmul.msk.f32.gmra.mxu2 %vm1152_vm6, %v7907_v49  ;;  %v3934_v35 = vld [vmem:[#allocation10 + $0xf40] sm:$0xff] }
 0x423   :  { %3753 = vst [vmem:[#allocation4 + $0xd0] sm:$0xff] %v3723_v34  ;;  %6090 = vmatmul.msk.f32.gmra.mxu1 %vm1152_vm6, %v7907_v49  ;;  %4252 = vmatpush.msrb.mxu3 %v3948_v6  ;;  %v3928_v34 = vld [vmem:[#allocation10 + $0xf10] sm:$0xff]  ;;  %v3850_v6 = vld [vmem:[#allocation10 + $0xca0] sm:$0xff] }
 0x424   :  { %4169 = vmatmul.f32.gmra.mxu0 %v7791_v63 }
 0x425   :  { %v3399_v20 = vpop.f32.mrf.mxu3  ;;  %v7914_v37 = vpop.f32.mrf.mxu2  ;;  %4253 = vmatpush.msrb.mxu3 %v3943_v19  ;;  %v3913_v19 = vld [vmem:[#allocation10 + $0xe98] sm:$0xff] }
 0x426   :  { %v3435_v61 = vadd.f32 %v7820_v36, %v3399_v20  ;;  %v3949_v36 = vld [vmem:[#allocation10 + $0xfb8] sm:$0xff] }
 0x427   :  { %4357 = vmatpush.msra.mxu2 %v3949_v36  ;;  %4254 = vmatpush.msrb.mxu3 %v3938_v53  ;;  %v3918_v36 = vld [vmem:[#allocation10 + $0xec0] sm:$0xff]  ;;  %v3908_v53 = vld [vmem:[#allocation10 + $0xe70] sm:$0xff] }
 0x428   :  { %v3470_v58 = vadd.f32 %v7801_v51, %v3435_v61  ;;  %v7918_v63 = vpop.f32.mrf.mxu1  ;;  %v3950_v51 = vld [vmem:[#allocation10 + $0xfc0] sm:$0xff]  ;;  %v3860_v61 = vld [vmem:[#allocation10 + $0xcf0] sm:$0xff] }
 0x429   :  { %v7922_v13 = vpop.f32.mrf.mxu0  ;;  %4462 = vmatpush.msra.mxu1 %v3950_v51  ;;  %4358 = vmatpush.msra.mxu2 %v3944_v33  ;;  %v3845_v51 = vld [vmem:[#allocation10 + $0xc78] sm:$0xff] }
 0x42a   :  { %v3699_v0 = vadd.f32 %v3470_v58, %v2927_v5  ;;  %6079 = vmatmul.msk.f32.gmra.mxu3 %vm1152_vm6, %v7907_v49  ;;  %6085 = vmatmul.msk.f32.gmra.mxu2 %vm1152_vm6, %v7920_v25  ;;  %v3855_v58 = vld [vmem:[#allocation10 + $0xcc8] sm:$0xff]  ;;  %v3925_v5 = vld [vmem:[#allocation10 + $0xef8] sm:$0xff] }
 0x42b   :  { %6091 = vmatmul.msk.f32.gmra.mxu1 %vm1152_vm6, %v7920_v25  ;;  %4359 = vmatpush.msra.mxu2 %v3939_v9 }
 0x42c   :  { %4172 = vmatmul.f32.gmra.mxu0 %v7810_v40  ;;  %3729 = vst [vmem:[#allocation4 + $0x10] sm:$0xff] %v3699_v0  ;;  %4463 = vmatpush.msra.mxu1 %v3945_v24  ;;  %v3920_v0 = vld [vmem:[#allocation10 + $0xed0] sm:$0xff]  ;;  %v3915_v24 = vld [vmem:[#allocation10 + $0xea8] sm:$0xff] }
 0x42d   :  { %v3402_v32 = vpop.f32.mrf.mxu3  ;;  %v7931_v54 = vpop.f32.mrf.mxu2  ;;  %4255 = vmatpush.msrb.mxu3 %v3933_v16  ;;  %4360 = vmatpush.msra.mxu2 %v3934_v35  ;;  %v3910_v16 = vld [vmem:[#allocation10 + $0xe80] sm:$0xff]  ;;  %v3905_v35 = vld [vmem:[#allocation10 + $0xe58] sm:$0xff] }
 0x42e   :  { %v3438_v41 = vadd.f32 %v7836_v1, %v3402_v32  ;;  %4464 = vmatpush.msra.mxu1 %v3940_v38  ;;  %v3870_v1 = vld [vmem:[#allocation10 + $0xd40] sm:$0xff] }
 0x42f   :  { %4427 = vmatpush.msra.mxu0 %v3870_v1  ;;  %4256 = vmatpush.msrb.mxu3 %v3928_v34  ;;  %v2942_v38 = vld [vmem:[#allocation4 + $0x88] sm:$0xff]  ;;  %v3825_v1 = vld [vmem:[#allocation10 + $0xbd8] sm:$0xff] }
 0x430   :  { %v3473_v40 = vadd.f32 %v7818_v39, %v3438_v41  ;;  %v7935_v26 = vpop.f32.mrf.mxu1  ;;  %v3935_v39 = vld [vmem:[#allocation10 + $0xf48] sm:$0xff]  ;;  %4361 = vmatpush.msra.mxu2 %v3929_v50 }
 0x431   :  { %v7937_v15 = vpop.f32.mrf.mxu0  ;;  %4465 = vmatpush.msra.mxu1 %v3935_v39  ;;  %4428 = vmatpush.msra.mxu0 %v3865_v31  ;;  %v3898_v31 = vld [vmem:[#allocation10 + $0xe20] sm:$0xff]  ;;  %v3899_v50 = vld [vmem:[#allocation10 + $0xe28] sm:$0xff] }
 0x432   :  { %v3704_v57 = vadd.f32 %v3473_v40, %v2932_v59  ;;  %4125 = vmatmul.f32.vlgmr.msra.gmra.mxu3 %v7752_v47  ;;  %4230 = vmatmul.f32.vlgmr.msrb.gmra.mxu2 %v7752_v47  ;;  %v3835_v40 = vld [vmem:[#allocation10 + $0xc28] sm:$0xff]  ;;  %v3909_v59 = vld [vmem:[#allocation10 + $0xe78] sm:$0xff] }
 0x433   :  { %4335 = vmatmul.f32.vlgmr.msrb.gmra.mxu1 %v7752_v47  ;;  %v3924_v47 = vld [vmem:[#allocation10 + $0xef0] sm:$0xff]  ;;  %4257 = vmatpush.msrb.mxu3 %v3923_v3 }
 0x434   :  { %4175 = vmatmul.f32.gmra.mxu0 %v7824_v48  ;;  %3734 = vst [vmem:[#allocation4 + $0x38] sm:$0xff] %v3704_v57  ;;  %4466 = vmatpush.msra.mxu1 %v3930_v18  ;;  %v3904_v57 = vld [vmem:[#allocation10 + $0xe50] sm:$0xff] }
 0x435   :  { %v3405_v46 = vpop.f32.mrf.mxu3  ;;  %v7943_v20 = vpop.f32.mrf.mxu2  ;;  %4429 = vmatpush.msra.mxu0 %v3860_v61  ;;  %4362 = vmatpush.msra.mxu2 %v3924_v47  ;;  %v3900_v18 = vld [vmem:[#allocation10 + $0xe30] sm:$0xff]  ;;  %v3815_v61 = vld [vmem:[#allocation10 + $0xb88] sm:$0xff]  ;;  %v3893_v47 = vld [vmem:[#allocation10 + $0xdf8] sm:$0xff] }
 0x436   :  { %v3441_v10 = vadd.f32 %v7854_v55, %v3405_v46  ;;  %4467 = vmatpush.msra.mxu1 %v3925_v5  ;;  %4258 = vmatpush.msrb.mxu3 %v3918_v36  ;;  %v3888_v5 = vld [vmem:[#allocation10 + $0xdd0] sm:$0xff] }
 0x437   :  { %4430 = vmatpush.msra.mxu0 %v3855_v58  ;;  %v3894_v58 = vld [vmem:[#allocation10 + $0xe00] sm:$0xff] }
 0x438   :  { %v3476_v48 = vadd.f32 %v7834_v62, %v3441_v10  ;;  %v7947_v11 = vpop.f32.mrf.mxu1  ;;  %v3919_v62 = vld [vmem:[#allocation10 + $0xec8] sm:$0xff]  ;;  %4468 = vmatpush.msra.mxu1 %v3920_v0  ;;  %4259 = vmatpush.msrb.mxu3 %v3913_v19  ;;  %v2952_v19 = vld [vmem:[#allocation4 + $0xd8] sm:$0xff] }
 0x439   :  { %v7949_v12 = vpop.f32.mrf.mxu0  ;;  %4431 = vmatpush.msra.mxu0 %v3850_v6  ;;  %4363 = vmatpush.msra.mxu2 %v3919_v62  ;;  %v2947_v10 = vld [vmem:[#allocation4 + $0xb0] sm:$0xff]  ;;  %v3890_v62 = vld [vmem:[#allocation10 + $0xde0] sm:$0xff] }
 0x43a   :  { %v3709_v55 = vadd.f32 %v3476_v48, %v2937_v28  ;;  %4128 = vmatmul.f32.gmra.mxu3 %v7776_v17  ;;  %4233 = vmatmul.f32.gmra.mxu2 %v7776_v17 }
 0x43b   :  { %4338 = vmatmul.f32.gmra.mxu1 %v7776_v17  ;;  %v3840_v17 = vld [vmem:[#allocation10 + $0xc50] sm:$0xff]  ;;  %4432 = vmatpush.msra.mxu0 %v3845_v51 }
 0x43c   :  { %6092 = vmatmul.msk.f32.vlgmr.msrb.gmra.mxu0 %vm1152_vm6, %v7838_v23  ;;  %3739 = vst [vmem:[#allocation4 + $0x60] sm:$0xff] %v3709_v55  ;;  %4364 = vmatpush.msra.mxu2 %v3914_v30  ;;  %v3889_v55 = vld [vmem:[#allocation10 + $0xdd8] sm:$0xff] }
 0x43d   :  { %v3408_v33 = vpop.f32.mrf.mxu3  ;;  %v7956_v2 = vpop.f32.mrf.mxu2  ;;  %4469 = vmatpush.msra.mxu1 %v3915_v24  ;;  %4433 = vmatpush.msra.mxu0 %v3840_v17 }
 0x43e   :  { %v3444_v32 = vadd.f32 %v7870_v56, %v3408_v33  ;;  %4260 = vmatpush.msrb.mxu3 %v3908_v53  ;;  %4365 = vmatpush.msra.mxu2 %v3909_v59  ;;  %v2928_v53 = vld [vmem:[#allocation4 + $0x18] sm:$0xff]  ;;  %v2933_v59 = vld [vmem:[#allocation4 + $0x40] sm:$0xff] }
 0x43f   :  { %4434 = vmatpush.msra.mxu0 %v3835_v40  ;;  %4470 = vmatpush.msra.mxu1 %v3910_v16  ;;  %v3985_v16 = vld [vmem:[#allocation10 + $0x10d8] sm:$0xff] }
 0x440   :  { %v3479_v23 = vadd.f32 %v7852_v43, %v3444_v32  ;;  %v7960_v9 = vpop.f32.mrf.mxu1  ;;  %v3903_v43 = vld [vmem:[#allocation10 + $0xe48] sm:$0xff]  ;;  %4366 = vmatpush.msra.mxu2 %v3904_v57 }
 0x441   :  { %v7962_v41 = vpop.f32.mrf.mxu0  ;;  %4435 = vmatpush.msra.mxu0 %v3830_v14  ;;  %4261 = vmatpush.msrb.mxu3 %v3903_v43  ;;  %v6166_v14 = vld [vmem:[#allocation3 + $0x38] sm:$0xff] }
 0x442   :  { %v3714_v56 = vadd.f32 %v3479_v23, %v2942_v38  ;;  %4131 = vmatmul.f32.gmra.mxu3 %v7793_v4  ;;  %4236 = vmatmul.f32.gmra.mxu2 %v7793_v4 }
 0x443   :  { %4341 = vmatmul.f32.gmra.mxu1 %v7793_v4  ;;  %v3820_v4 = vld [vmem:[#allocation10 + $0xbb0] sm:$0xff]  ;;  %4436 = vmatpush.msra.mxu0 %v3825_v1 }
 0x444   :  { %6093 = vmatmul.msk.f32.gmra.mxu0 %vm1152_vm6, %v7856_v29  ;;  %3744 = vst [vmem:[#allocation4 + $0x88] sm:$0xff] %v3714_v56  ;;  %4471 = vmatpush.msra.mxu1 %v3905_v35  ;;  %v2938_v35 = vld [vmem:[#allocation4 + $0x68] sm:$0xff] }
 0x445   :  { %v3411_v39 = vpop.f32.mrf.mxu3  ;;  %v7969_v34 = vpop.f32.mrf.mxu2  ;;  %4262 = vmatpush.msrb.mxu3 %v3898_v31  ;;  %4367 = vmatpush.msra.mxu2 %v3899_v50  ;;  %v3984_v50 = vld [vmem:[#allocation10 + $0x10d0] sm:$0xff] }
 0x446   :  { %v3447_v46 = vadd.f32 %v7884_v42, %v3411_v39  ;;  %4437 = vmatpush.msra.mxu0 %v3820_v4  ;;  %4472 = vmatpush.msra.mxu1 %v3900_v18  ;;  %v3810_v42 = vld [vmem:[#allocation10 + $0xb60] sm:$0xff]  ;;  %v3975_v39 = vld [vmem:[#allocation10 + $0x1088] sm:$0xff] }
 0x447   :  { %4263 = vmatpush.msrb.mxu3 %v3893_v47  ;;  %4368 = vmatpush.msra.mxu2 %v3894_v58  ;;  %v4817_v4 = vld [vmem:[#allocation13 + $0xf8] sm:$0xff]  ;;  %v2943_v58 = vld [vmem:[#allocation4 + $0x90] sm:$0xff] }
 0x448   :  { %v3482_v29 = vadd.f32 %v7868_v8, %v3447_v46  ;;  %v7975_v28 = vpop.f32.mrf.mxu1  ;;  %4438 = vmatpush.msra.mxu0 %v3815_v61  ;;  %v3895_v8 = vld [vmem:[#allocation10 + $0xe08] sm:$0xff]  ;;  %v3970_v46 = vld [vmem:[#allocation10 + $0x1060] sm:$0xff]  ;;  %v4816_v61 = vld [vmem:[#allocation13 + $0xf0] sm:$0xff] }
 0x449   :  { %v7973_v3 = vpop.f32.mrf.mxu0  ;;  %4473 = vmatpush.msra.mxu1 %v3895_v8  ;;  %4264 = vmatpush.msrb.mxu3 %v3888_v5  ;;  %v3974_v47 = vld [vmem:[#allocation10 + $0x1080] sm:$0xff]  ;;  %v3969_v8 = vld [vmem:[#allocation10 + $0x1058] sm:$0xff]  ;;  %v4815_v5 = vld [vmem:[#allocation13 + $0xe8] sm:$0xff] }
 0x44a   :  { %v3719_v48 = vadd.f32 %v3482_v29, %v2947_v10  ;;  %4134 = vmatmul.f32.gmra.mxu3 %v7805_v22  ;;  %4239 = vmatmul.f32.gmra.mxu2 %v7805_v22  ;;  %v3979_v29 = vld [vmem:[#allocation10 + $0x10a8] sm:$0xff] }
 0x44b   :  { %4344 = vmatmul.f32.gmra.mxu1 %v7805_v22  ;;  %4439 = vmatpush.msra.mxu0 %v3810_v42 }
 0x44c   :  { %6094 = vmatmul.msk.f32.gmra.mxu0 %vm1152_vm6, %v7886_v27  ;;  %3749 = vst [vmem:[#allocation4 + $0xb0] sm:$0xff] %v3719_v48  ;;  %4369 = vmatpush.msra.mxu2 %v3889_v55 }
 0x44d   :  { %v3414_v6 = vpop.f32.mrf.mxu3  ;;  %v7982_v36 = vpop.f32.mrf.mxu2  ;;  %4474 = vmatpush.msra.mxu1 %v3890_v62  ;;  %4401 = vmatpush.msra.mxu3 %v3984_v50  ;;  %v6169_v62 = vld [vmem:[#allocation3 + $0x68] sm:$0xff] }
 0x44e   :  { %v3450_v0 = vadd.f32 %v7903_v52, %v3414_v6  ;;  %4506 = vmatpush.msrb.mxu2 %v3985_v16 }
 0x44f   :  { %4402 = vmatpush.msra.mxu3 %v3979_v29  ;;  %v4878_v29 = vld [vmem:[#allocation13 + $0x2b0] sm:$0xff] }
 0x450   :  { %v3485_v22 = vadd.f32 %v7882_v45, %v3450_v0  ;;  %v7993_v52 = vpop.f32.mrf.mxu1  ;;  %v6170_v0 = vld [vmem:[#allocation3 + $0x48] sm:$0xff] }
 0x451   :  { %v7986_v51 = vpop.f32.mrf.mxu0  ;;  %4403 = vmatpush.msra.mxu3 %v3974_v47 }
 0x452   :  { %v3724_v33 = vadd.f32 %v3485_v22, %v2952_v19  ;;  %4137 = vmatmul.f32.gmra.mxu3 %v7826_v60  ;;  %4242 = vmatmul.f32.gmra.mxu2 %v7826_v60  ;;  %v4813_v19 = vld [vmem:[#allocation13 + $0xd8] sm:$0xff] }
 0x453   :  { %4347 = vmatmul.f32.gmra.mxu1 %v7826_v60  ;;  %4404 = vmatpush.msra.mxu3 %v3969_v8 }
 0x454   :  { %6095 = vmatmul.msk.f32.gmra.mxu0 %vm1152_vm6, %v7890_v21  ;;  %3754 = vst [vmem:[#allocation4 + $0xd8] sm:$0xff] %v3724_v33 }
 0x455   :  { %v3539_v30 = vpop.f32.mrf.mxu3  ;;  %v7995_v24 = vpop.f32.mrf.mxu2 }
 0x456   :  { %v3540_v45 = vadd.f32 %v3539_v30, %v7914_v37  ;;  %v3645_v50 = vadd.f32 %v7995_v24, %v7901_v7  ;;  %v4805_v7 = vld [vmem:[#allocation13 + $0x98] sm:$0xff] }
 0x457   :  { %v2929_v24 = vld [vmem:[#allocation4 + $0x20] sm:$0xff] }
 0x458   :  { %v3575_v32 = vadd.f32 %v7922_v13, %v3540_v45  ;;  %v8008_v37 = vpop.f32.mrf.mxu1  ;;  %v4812_v45 = vld [vmem:[#allocation13 + $0xd0] sm:$0xff] }
 0x459   :  { %v7999_v17 = vpop.f32.mrf.mxu0 }
 0x45a   :  { %v3700_v23 = vadd.f32 %v3575_v32, %v2928_v53  ;;  %4140 = vmatmul.f32.gmra.mxu3 %v7843_v44  ;;  %4245 = vmatmul.f32.gmra.mxu2 %v7843_v44  ;;  %v2948_v32 = vld [vmem:[#allocation4 + $0xb8] sm:$0xff] }
 0x45b   :  { %4350 = vmatmul.f32.gmra.mxu1 %v7843_v44 }
 0x45c   :  { %6096 = vmatmul.msk.f32.gmra.mxu0 %vm1152_vm6, %v7907_v49  ;;  %3730 = vst [vmem:[#allocation4 + $0x18] sm:$0xff] %v3700_v23 }
 0x45d   :  { %v3542_v60 = vpop.f32.mrf.mxu3  ;;  %v8006_v21 = vpop.f32.mrf.mxu2 }
 0x45e   :  { %v3543_v13 = vadd.f32 %v3542_v60, %v7931_v54  ;;  %v6171_v60 = vld [vmem:[#allocation3 + $0x80] sm:$0xff] }
 0x460   :  { %v3578_v38 = vadd.f32 %v7937_v15, %v3543_v13  ;;  %v3980_v15 = vld [vmem:[#allocation10 + $0x10b0] sm:$0xff]  ;;  %v8019_v43 = vpop.f32.mrf.mxu1 }
 0x461   :  { %v8012_v40 = vpop.f32.mrf.mxu0  ;;  %4507 = vmatpush.msrb.mxu2 %v3980_v15  ;;  %v4811_v13 = vld [vmem:[#allocation13 + $0xc8] sm:$0xff]  ;;  %v2953_v15 = vld [vmem:[#allocation4 + $0xe0] sm:$0xff] }
 0x462   :  { %v3705_v56 = vadd.f32 %v3578_v38, %v2933_v59  ;;  %4265 = vmatmul.f32.vlgmr.msrb.gmra.mxu3 %v6166_v14  ;;  %4370 = vmatmul.f32.vlgmr.msra.gmra.mxu2 %v6166_v14  ;;  %v6172_v38 = vld [vmem:[#allocation3 + $0x60] sm:$0xff] }
 0x463   :  { %4475 = vmatmul.f32.vlgmr.msra.gmra.mxu1 %v6166_v14  ;;  %4508 = vmatpush.msrb.mxu2 %v3975_v39  ;;  %v4807_v39 = vld [vmem:[#allocation13 + $0xa8] sm:$0xff] }
 0x464   :  { %6097 = vmatmul.msk.f32.gmra.mxu0 %vm1152_vm6, %v7920_v25  ;;  %3735 = vst [vmem:[#allocation4 + $0x40] sm:$0xff] %v3705_v56  ;;  %v6167_v25 = vld [vmem:[#allocation3 + $0x50] sm:$0xff] }
 0x465   :  { %v3545_v44 = vpop.f32.mrf.mxu3  ;;  %v8016_v49 = vpop.f32.mrf.mxu2  ;;  %4509 = vmatpush.msrb.mxu2 %v3970_v46  ;;  %v6174_v46 = vld [vmem:[#allocation3 + $0x78] sm:$0xff] }
 0x466   :  { %v3546_v54 = vadd.f32 %v3545_v44, %v7943_v20  ;;  %v6168_v20 = vld [vmem:[#allocation3 + $0x30] sm:$0xff]  ;;  %v4809_v44 = vld [vmem:[#allocation13 + $0xb8] sm:$0xff] }
 0x467   :  { %5062 = vmatpush.msra.mxu2 %v4817_v4 }
 0x468   :  { %v3581_v57 = vadd.f32 %v7949_v12, %v3546_v54  ;;  %v8030_v55 = vpop.f32.mrf.mxu1  ;;  %v4808_v54 = vld [vmem:[#allocation13 + $0xb0] sm:$0xff] }
 0x469   :  { %v8022_v1 = vpop.f32.mrf.mxu0  ;;  %5063 = vmatpush.msra.mxu2 %v4816_v61 }
 0x46a   :  { %v3710_v31 = vadd.f32 %v3581_v57, %v2938_v35  ;;  %4268 = vmatmul.f32.gmra.mxu3 %v6167_v25  ;;  %4373 = vmatmul.f32.gmra.mxu2 %v6167_v25  ;;  %v6173_v35 = vld [vmem:[#allocation3 + $0x98] sm:$0xff] }
 0x46b   :  { %4478 = vmatmul.f32.gmra.mxu1 %v6167_v25  ;;  %5064 = vmatpush.msra.mxu2 %v4815_v5  ;;  %v4879_v25 = vld [vmem:[#allocation13 + $0x2b8] sm:$0xff]  ;;  %v4876_v5 = vld [vmem:[#allocation13 + $0x2a0] sm:$0xff] }
 0x46c   :  { %4440 = vmatmul.f32.vlgmr.msra.gmra.mxu0 %v6168_v20  ;;  %3740 = vst [vmem:[#allocation4 + $0x68] sm:$0xff] %v3710_v31  ;;  %v8044_v31 = vld [vmem:[#allocation12] sm:$0x1f]  ;;  %4939 = vmatpush.msrb.mxu3 %v4879_v25  ;;  %v4806_v20 = vld [vmem:[#allocation13 + $0xa0] sm:$0xff] }
 0x46d   :  { %v3548_v18 = vpop.f32.mrf.mxu3  ;;  %v8024_v12 = vpop.f32.mrf.mxu2 }
 0x46e   :  { %v3549_v10 = vadd.f32 %v3548_v18, %v7956_v2  ;;  %v4814_v2 = vld [vmem:[#allocation13 + $0xe0] sm:$0xff]  ;;  %4940 = vmatpush.msrb.mxu3 %v4878_v29 }
 0x46f   :  { %5065 = vmatpush.msra.mxu2 %v4814_v2  ;;  %v6175_v2 = vld [vmem:[#allocation3 + $0xb0] sm:$0xff]  ;;  %v6178_v29 = vld [vmem:[#allocation3 + $0xa8] sm:$0xff] }
 0x470   :  { %v3584_v48 = vadd.f32 %v7962_v41, %v3549_v10  ;;  %v8038_v59 = vpop.f32.mrf.mxu1 }
 0x471   :  { %v8028_v42 = vpop.f32.mrf.mxu0  ;;  %5066 = vmatpush.msra.mxu2 %v4813_v19  ;;  %v4803_v19 = vld [vmem:[#allocation13 + $0x88] sm:$0xff] }
 0x472   :  { %v3715_v6 = vadd.f32 %v3584_v48, %v2943_v58  ;;  %4271 = vmatmul.f32.gmra.mxu3 %v6169_v62  ;;  %4376 = vmatmul.f32.gmra.mxu2 %v6169_v62  ;;  %v4877_v48 = vld [vmem:[#allocation13 + $0x2a8] sm:$0xff] }
 0x473   :  { %4481 = vmatmul.f32.gmra.mxu1 %v6169_v62  ;;  %5067 = vmatpush.msra.mxu2 %v4812_v45  ;;  %v6176_v45 = vld [vmem:[#allocation3 + $0x90] sm:$0xff] }
 0x474   :  { %4443 = vmatmul.f32.gmra.mxu0 %v6170_v0  ;;  %3745 = vst [vmem:[#allocation4 + $0x90] sm:$0xff] %v3715_v6  ;;  %4941 = vmatpush.msrb.mxu3 %v4877_v48  ;;  %v4804_v6 = vld [vmem:[#allocation13 + $0x90] sm:$0xff]  ;;  %v4895_v0 = vld [vmem:[#allocation13 + $0x338] sm:$0xff] }
 0x475   :  { %v3551_v41 = vpop.f32.mrf.mxu3  ;;  %v8032_v22 = vpop.f32.mrf.mxu2  ;;  %5068 = vmatpush.msra.mxu2 %v4811_v13  ;;  %4959 = vmatpush.msrb.mxu0 %v4895_v0  ;;  %v4891_v48 = vld [vmem:[#allocation13 + $0x318] sm:$0xff] }
 0x476   :  { %v3552_v33 = vadd.f32 %v3551_v41, %v7969_v34  ;;  %v4810_v34 = vld [vmem:[#allocation13 + $0xc0] sm:$0xff]  ;;  %4942 = vmatpush.msrb.mxu3 %v4876_v5  ;;  %v4875_v41 = vld [vmem:[#allocation13 + $0x298] sm:$0xff] }
 0x477   :  { %5069 = vmatpush.msra.mxu2 %v4810_v34  ;;  %v4802_v34 = vld [vmem:[#allocation13 + $0x80] sm:$0xff]  ;;  %v5159_v0 = vld [vmem:[#allocation13 + $0x4d8] sm:$0xff] }
 0x478   :  { %v3587_v30 = vadd.f32 %v7973_v3, %v3552_v33  ;;  %v8052_v10 = vpop.f32.mrf.mxu1  ;;  %v4060_v33 = vadd.f32 %v8008_v37, %v8012_v40  ;;  %4943 = vmatpush.msrb.mxu3 %v4875_v41  ;;  %v4893_v40 = vld [vmem:[#allocation13 + $0x328] sm:$0xff]  ;;  %v4868_v41 = vld [vmem:[#allocation13 + $0x260] sm:$0xff] }
 0x479   :  { %v8036_v53 = vpop.f32.mrf.mxu0  ;;  %5070 = vmatpush.msra.mxu2 %v4809_v44 }
 0x47a   :  { %v3720_v23 = vadd.f32 %v3587_v30, %v2948_v32  ;;  %4274 = vmatmul.f32.gmra.mxu3 %v6171_v60  ;;  %4379 = vmatmul.f32.gmra.mxu2 %v6171_v60  ;;  %v3648_v30 = vadd.f32 %v8006_v21, %v7918_v63  ;;  %v2934_v63 = vld [vmem:[#allocation4 + $0x48] sm:$0xff] }
 0x47b   :  { %4484 = vmatmul.f32.gmra.mxu1 %v6171_v60  ;;  %5071 = vmatpush.msra.mxu2 %v4808_v54  ;;  %v3762_v21 = vld [vmem:[#allocation4 + $0x28] sm:$0xff] }
 0x47c   :  { %4446 = vmatmul.f32.gmra.mxu0 %v6172_v38  ;;  %3750 = vst [vmem:[#allocation4 + $0xb8] sm:$0xff] %v3720_v23  ;;  %v4894_v23 = vld [vmem:[#allocation13 + $0x330] sm:$0xff] }
 0x47d   :  { %v3554_v56 = vpop.f32.mrf.mxu3  ;;  %v8040_v3 = vpop.f32.mrf.mxu2  ;;  %5072 = vmatpush.msra.mxu2 %v4807_v39  ;;  %v4874_v38 = vld [vmem:[#allocation13 + $0x290] sm:$0xff]  ;;  %4960 = vmatpush.msrb.mxu0 %v4894_v23  ;;  %v4872_v39 = vld [vmem:[#allocation13 + $0x280] sm:$0xff]  ;;  %v4867_v23 = vld [vmem:[#allocation13 + $0x258] sm:$0xff] }
 0x47e   :  { %v3555_v14 = vadd.f32 %v3554_v56, %v7982_v36  ;;  %v4057_v36 = vadd.f32 %v7993_v52, %v7999_v17  ;;  %v8055_v52 = vperm.slane %v8044_v31, 0  ;;  %v3757_v17 = vld [vmem:[#allocation4] sm:$0xff]  ;;  %4944 = vmatpush.msrb.mxu3 %v4874_v38  ;;  %v3654_v38 = vadd.f32 %v8024_v12, %v7947_v11  ;;  %v3772_v11 = vld [vmem:[#allocation4 + $0x78] sm:$0xff] }
 0x47f   :  { %5073 = vmatpush.msra.mxu2 %v4806_v20  ;;  %4961 = vmatpush.msrb.mxu0 %v4893_v40  ;;  %v4892_v20 = vld [vmem:[#allocation13 + $0x320] sm:$0xff]  ;;  %v4866_v40 = vld [vmem:[#allocation13 + $0x250] sm:$0xff]  ;;  %v4865_v12 = vld [vmem:[#allocation13 + $0x248] sm:$0xff] }
 0x480   :  { %v3590_v16 = vadd.f32 %v7986_v51, %v3555_v14  ;;  %v8065_v54 = vpop.f32.mrf.mxu1 }
 0x481   :  { %v8050_v51 = vpop.f32.mrf.mxu0  ;;  %5074 = vmatpush.msra.mxu2 %v4805_v7  ;;  %4962 = vmatpush.msrb.mxu0 %v4892_v20  ;;  %v4886_v20 = vld [vmem:[#allocation13 + $0x2f0] sm:$0xff] }
 0x482   :  { %v3725_v57 = vadd.f32 %v3590_v16, %v2953_v15  ;;  %4277 = vmatmul.f32.gmra.mxu3 %v6173_v35  ;;  %4382 = vmatmul.f32.gmra.mxu2 %v6173_v35  ;;  %v4873_v16 = vld [vmem:[#allocation13 + $0x288] sm:$0xff] }
 0x483   :  { %4487 = vmatmul.f32.gmra.mxu1 %v6173_v35  ;;  %5075 = vmatpush.msra.mxu2 %v4804_v6  ;;  %v5163_v35 = vld [vmem:[#allocation13 + $0x4f8] sm:$0xff] }
 0x484   :  { %4449 = vmatmul.f32.gmra.mxu0 %v6174_v46  ;;  %3755 = vst [vmem:[#allocation4 + $0xe0] sm:$0xff] %v3725_v57  ;;  %4945 = vmatpush.msrb.mxu3 %v4873_v16  ;;  %v4871_v46 = vld [vmem:[#allocation13 + $0x278] sm:$0xff] }
 0x485   :  { %v3679_v4 = vpop.f32.mrf.mxu3  ;;  %v4091_v18 = vpop.f32.mrf.mxu2  ;;  %5076 = vmatpush.msra.mxu2 %v4803_v19  ;;  %4963 = vmatpush.msrb.mxu0 %v4891_v48  ;;  %v4890_v19 = vld [vmem:[#allocation13 + $0x310] sm:$0xff] }
 0x486   :  { %v3680_v61 = vadd.f32 %v3679_v4, %v3645_v50  ;;  %v4092_v47 = vadd.f32 %v4091_v18, %v4057_v36  ;;  %v6177_v36 = vld [vmem:[#allocation3 + $0x40] sm:$0xff]  ;;  %4946 = vmatpush.msrb.mxu3 %v4872_v39  ;;  %v4063_v4 = vadd.f32 %v8019_v43, %v8022_v1  ;;  %v3651_v18 = vadd.f32 %v8016_v49, %v7935_v26  ;;  %v5160_v43 = vld [vmem:[#allocation13 + $0x4e0] sm:$0xff]  ;;  %v4869_v1 = vld [vmem:[#allocation13 + $0x268] sm:$0xff] }
 0x487   :  { %5077 = vmatpush.msra.mxu2 %v4802_v34  ;;  %v5162_v50 = vld [vmem:[#allocation13 + $0x4f0] sm:$0xff]  ;;  %v2939_v26 = vld [vmem:[#allocation4 + $0x70] sm:$0xff]  ;;  %4964 = vmatpush.msrb.mxu0 %v4890_v19  ;;  %v4887_v39 = vld [vmem:[#allocation13 + $0x2f8] sm:$0xff] }
 0x488   :  { %v3701_v58 = vadd.f32 %v3680_v61, %v2929_v24  ;;  %v4529_v8 = vadd.f32 %v4092_v47, %v3757_v17  ;;  %v5161_v47 = vld [vmem:[#allocation13 + $0x4e8] sm:$0xff]  ;;  %4947 = vmatpush.msrb.mxu3 %v4871_v46  ;;  %v4870_v17 = vld [vmem:[#allocation13 + $0x270] sm:$0xff]  ;;  %v6180_v19 = vld [vmem:[#allocation3 + $0x88] sm:$0xff] }
 0x489   :  { %v8063_v56 = vpop.f32.mrf.mxu0  ;;  %v3767_v49 = vld [vmem:[#allocation4 + $0x50] sm:$0xff]  ;;  %v4910_v48 = vld [vmem:[#allocation13 + $0x3b0] sm:$0xff] }
 0x48a   :  { %3731 = vst.msk [vmem:[#allocation4 + $0x20] sm:$0xff] %vm2898_vm15, %v3701_v58  ;;  %v4631_v62 = vadd.f32 %v8055_v52, %v4529_v8  ;;  %4280 = vmatmul.f32.gmra.mxu3 %v6175_v2  ;;  %4385 = vmatmul.f32.gmra.mxu2 %v6175_v2 }
 0x48b   :  { %4490 = vmatmul.f32.gmra.mxu1 %v6175_v2  ;;  %4948 = vmatpush.msrb.mxu3 %v4870_v17 }
 0x48c   :  { %4452 = vmatmul.f32.gmra.mxu0 %v6176_v45  ;;  %vm4661_vm1 = vcmp.ge.f32.partialorder %v4631_v62, 0.0  ;;  %v4691_v32 = vmul.f32 0.01, %v4631_v62  ;;  %v6179_v45 = vld [vmem:[#allocation3 + $0x58] sm:$0xff] }
 0x48d   :  { %v3682_v60 = vpop.f32.mrf.mxu3  ;;  %v4094_v13 = vpop.f32.mrf.mxu2  ;;  %4949 = vmatpush.msrb.mxu3 %v4869_v1 }
 0x48e   :  { %v4721_v14 = vsel %vm4661_vm1, %v4631_v62, %v4691_v32  ;;  %v3683_v44 = vadd.f32 %v3682_v60, %v3648_v30  ;;  %v4095_v37 = vadd.f32 %v4094_v13, %v4060_v33  ;;  %v8080_v33 = vpop.f32.mrf.mxu1  ;;  %v5158_v32 = vld [vmem:[#allocation13 + $0x4d0] sm:$0xff]  ;;  %v4889_v60 = vld [vmem:[#allocation13 + $0x308] sm:$0xff]  ;;  %v4066_v13 = vadd.f32 %v8030_v55, %v8028_v42 }
 0x48f   :  { %4751 = vst [vmem:[#allocation4] sm:$0xff] %v4721_v14  ;;  %4950 = vmatpush.msrb.mxu3 %v4868_v41  ;;  %v5157_v14 = vld [vmem:[#allocation13 + $0x4c8] sm:$0xff]  ;;  %4965 = vmatpush.msrb.mxu0 %v4889_v60  ;;  %v3660_v60 = vadd.f32 %v8040_v3, %v7975_v28  ;;  %v2954_v28 = vld [vmem:[#allocation4 + $0xe8] sm:$0xff] }
 0x490   :  { %v3706_v15 = vadd.f32 %v3683_v44, %v2934_v63  ;;  %v4534_v57 = vadd.f32 %v4095_v37, %v3762_v21  ;;  %v4888_v63 = vld [vmem:[#allocation13 + $0x300] sm:$0xff]  ;;  %v2944_v42 = vld [vmem:[#allocation4 + $0x98] sm:$0xff] }
 0x491   :  { %v8078_v6 = vpop.f32.mrf.mxu0  ;;  %4951 = vmatpush.msrb.mxu3 %v4867_v23  ;;  %4966 = vmatpush.msrb.mxu0 %v4888_v63  ;;  %v4072_v23 = vadd.f32 %v8052_v10, %v8050_v51  ;;  %v5149_v10 = vld [vmem:[#allocation13 + $0x488] sm:$0xff]  ;;  %v3782_v3 = vld [vmem:[#allocation4 + $0xc8] sm:$0xff] }
 0x492   :  { %3736 = vst.msk [vmem:[#allocation4 + $0x48] sm:$0xff] %vm2898_vm15, %v3706_v15  ;;  %v4636_v25 = vadd.f32 %v8055_v52, %v4534_v57  ;;  %6098 = vmatmul.msk.f32.vlgmr.msra.gmra.mxu3 %vm1152_vm6, %v6177_v36  ;;  %6104 = vmatmul.msk.f32.vlgmr.msrb.gmra.mxu2 %vm1152_vm6, %v6177_v36  ;;  %v5156_v57 = vld [vmem:[#allocation13 + $0x4c0] sm:$0xff]  ;;  %v5155_v36 = vld [vmem:[#allocation13 + $0x4b8] sm:$0xff] }
 0x493   :  { %5223 = vmatpush.msrb.mxu2 %v5163_v35  ;;  %4952 = vmatpush.msrb.mxu3 %v4866_v40  ;;  %v4881_v40 = vld [vmem:[#allocation13 + $0x2c8] sm:$0xff] }
 0x494   :  { %4455 = vmatmul.f32.gmra.mxu0 %v6178_v29  ;;  %vm4666_vm2 = vcmp.ge.f32.partialorder %v4636_v25, 0.0  ;;  %v4696_v61 = vmul.f32 0.01, %v4636_v25  ;;  %v4069_v29 = vadd.f32 %v8038_v59, %v8036_v53  ;;  %v4884_v53 = vld [vmem:[#allocation13 + $0x2e0] sm:$0xff]  ;;  %v4909_v59 = vld [vmem:[#allocation13 + $0x3a8] sm:$0xff] }
 0x495   :  { %v3685_v7 = vpop.f32.mrf.mxu3  ;;  %v4097_v24 = vpop.f32.mrf.mxu2  ;;  %5224 = vmatpush.msrb.mxu2 %v5162_v50  ;;  %4953 = vmatpush.msrb.mxu3 %v4865_v12  ;;  %v4880_v12 = vld [vmem:[#allocation13 + $0x2c0] sm:$0xff] }
 0x496   :  { %v8075_v58 = vsel %vm4666_vm2, %v4636_v25, %v4696_v61  ;;  %v3686_v8 = vadd.f32 %v3685_v7, %v3651_v18  ;;  %v4098_v5 = vadd.f32 %v4097_v24, %v4063_v4  ;;  %v4864_v25 = vld [vmem:[#allocation13 + $0x240] sm:$0xff]  ;;  %4967 = vmatpush.msrb.mxu0 %v4887_v39  ;;  %v4911_v4 = vld [vmem:[#allocation13 + $0x3b8] sm:$0xff]  ;;  %v5154_v18 = vld [vmem:[#allocation13 + $0x4b0] sm:$0xff]  ;;  %v3657_v61 = vadd.f32 %v8032_v22, %v7960_v9 }
 0x497   :  { %4756 = vst [vmem:[#allocation4 + $0x28] sm:$0xff] %v8075_v58  ;;  %5225 = vmatpush.msrb.mxu2 %v5161_v47  ;;  %4954 = vmatpush.msrb.mxu3 %v4864_v25  ;;  %v8105_v47 = vpop.f32.mrf.mxu1  ;;  %v4885_v24 = vld [vmem:[#allocation13 + $0x2e8] sm:$0xff]  ;;  %v2949_v9 = vld [vmem:[#allocation4 + $0xc0] sm:$0xff] }
 0x498   :  { %v3711_v62 = vadd.f32 %v3686_v8, %v2939_v26  ;;  %v4539_v2 = vadd.f32 %v4098_v5, %v3767_v49  ;;  %4979 = vmatpush.msrb.mxu1 %v4911_v4  ;;  %4968 = vmatpush.msrb.mxu0 %v4886_v20  ;;  %v5153_v8 = vld [vmem:[#allocation13 + $0x4a8] sm:$0xff]  ;;  %v3777_v22 = vld [vmem:[#allocation4 + $0xa0] sm:$0xff] }
 0x499   :  { %5226 = vmatpush.msrb.mxu2 %v5160_v43  ;;  %v8093_v50 = vpop.f32.mrf.mxu0  ;;  %v6181_v25 = vld [vmem:[#allocation3 + $0xa0] sm:$0xff] }
 0x49a   :  { %3741 = vst.msk [vmem:[#allocation4 + $0x70] sm:$0xff] %vm2898_vm15, %v3711_v62  ;;  %v4641_v30 = vadd.f32 %v8055_v52, %v4539_v2  ;;  %6099 = vmatmul.msk.f32.gmra.mxu3 %vm1152_vm6, %v6179_v45  ;;  %6105 = vmatmul.msk.f32.gmra.mxu2 %vm1152_vm6, %v6179_v45  ;;  %v5152_v62 = vld [vmem:[#allocation13 + $0x4a0] sm:$0xff]  ;;  %v4907_v45 = vld [vmem:[#allocation13 + $0x398] sm:$0xff] }
 0x49b   :  { %5227 = vmatpush.msrb.mxu2 %v5159_v0  ;;  %4980 = vmatpush.msrb.mxu1 %v4910_v48  ;;  %v4908_v2 = vld [vmem:[#allocation13 + $0x3a0] sm:$0xff]  ;;  %v4883_v0 = vld [vmem:[#allocation13 + $0x2d8] sm:$0xff] }
 0x49c   :  { %vm4671_vm3 = vcmp.ge.f32.partialorder %v4641_v30, 0.0  ;;  %v4701_v34 = vmul.f32 0.01, %v4641_v30  ;;  %4969 = vmatpush.msrb.mxu0 %v4885_v24  ;;  %v3758_v48 = vld [vmem:[#allocation4 + $0x8] sm:$0xff] }
 0x49d   :  { %v3688_v44 = vpop.f32.mrf.mxu3  ;;  %v4100_v37 = vpop.f32.mrf.mxu2  ;;  %5228 = vmatpush.msrb.mxu2 %v5158_v32  ;;  %4981 = vmatpush.msrb.mxu1 %v4909_v59  ;;  %v4882_v32 = vld [vmem:[#allocation13 + $0x2d0] sm:$0xff] }
 0x49e   :  { %v8090_v21 = vsel %vm4671_vm3, %v4641_v30, %v4701_v34  ;;  %v3689_v16 = vadd.f32 %v3688_v44, %v3654_v38  ;;  %v4101_v15 = vadd.f32 %v4100_v37, %v4066_v13  ;;  %4970 = vmatpush.msrb.mxu0 %v4884_v53  ;;  %v5151_v30 = vld [vmem:[#allocation13 + $0x498] sm:$0xff]  ;;  %v5150_v34 = vld [vmem:[#allocation13 + $0x490] sm:$0xff] }
 0x49f   :  { %4761 = vst [vmem:[#allocation4 + $0x50] sm:$0xff] %v8090_v21  ;;  %5229 = vmatpush.msrb.mxu2 %v5157_v14  ;;  %4982 = vmatpush.msrb.mxu1 %v4908_v2  ;;  %v4906_v37 = vld [vmem:[#allocation13 + $0x390] sm:$0xff]  ;;  %v8117_v63 = vpop.f32.mrf.mxu1  ;;  %v4897_v2 = vld [vmem:[#allocation13 + $0x348] sm:$0xff] }
 0x4a0   :  { %v3716_v55 = vadd.f32 %v3689_v16, %v2944_v42  ;;  %v4544_v35 = vadd.f32 %v4101_v15, %v3772_v11  ;;  %4971 = vmatpush.msrb.mxu0 %v4883_v0  ;;  %v4898_v59 = vld [vmem:[#allocation13 + $0x350] sm:$0xff]  ;;  %v3763_v0 = vld [vmem:[#allocation4 + $0x30] sm:$0xff] }
 0x4a1   :  { %5230 = vmatpush.msrb.mxu2 %v5156_v57  ;;  %v8115_v13 = vpop.f32.mrf.mxu0  ;;  %4983 = vmatpush.msrb.mxu1 %v4907_v45  ;;  %v4905_v57 = vld [vmem:[#allocation13 + $0x388] sm:$0xff] }
 0x4a2   :  { %3746 = vst.msk [vmem:[#allocation4 + $0x98] sm:$0xff] %vm2898_vm15, %v3716_v55  ;;  %v4646_v46 = vadd.f32 %v8055_v52, %v4544_v35  ;;  %6100 = vmatmul.msk.f32.gmra.mxu3 %vm1152_vm6, %v7886_v27  ;;  %6106 = vmatmul.msk.f32.gmra.mxu2 %vm1152_vm6, %v7886_v27  ;;  %v5148_v55 = vld [vmem:[#allocation13 + $0x480] sm:$0xff] }
 0x4a3   :  { %5231 = vmatpush.msrb.mxu2 %v5155_v36  ;;  %4972 = vmatpush.msrb.mxu0 %v4882_v32  ;;  %v4904_v35 = vld [vmem:[#allocation13 + $0x380] sm:$0xff]  ;;  %v4903_v36 = vld [vmem:[#allocation13 + $0x378] sm:$0xff] }
 0x4a4   :  { %vm4676_vm4 = vcmp.ge.f32.partialorder %v4646_v46, 0.0  ;;  %v4706_v7 = vmul.f32 0.01, %v4646_v46  ;;  %4984 = vmatpush.msrb.mxu1 %v4906_v37  ;;  %v4798_v37 = vld [vmem:[#allocation13 + $0x60] sm:$0xff] }
 0x4a5   :  { %v3691_v17 = vpop.f32.mrf.mxu3  ;;  %v4103_v27 = vpop.f32.mrf.mxu2  ;;  %5232 = vmatpush.msrb.mxu2 %v5154_v18  ;;  %4973 = vmatpush.msrb.mxu0 %v4881_v40  ;;  %v4902_v18 = vld [vmem:[#allocation13 + $0x370] sm:$0xff]  ;;  %v4927_v40 = vld [vmem:[#allocation13 + $0x438] sm:$0xff] }
 0x4a6   :  { %v4736_v5 = vsel %vm4676_vm4, %v4646_v46, %v4706_v7  ;;  %v3692_v43 = vadd.f32 %v3691_v17, %v3657_v61  ;;  %v4104_v26 = vadd.f32 %v4103_v27, %v4069_v29  ;;  %4985 = vmatpush.msrb.mxu1 %v4905_v57  ;;  %v8132_v17 = vperm.slane %v8044_v31, 1  ;;  %v4901_v27 = vld [vmem:[#allocation13 + $0x368] sm:$0xff]  ;;  %4999 = vmatpush.msra.mxu3 %v4927_v40  ;;  %v4796_v57 = vld [vmem:[#allocation13 + $0x50] sm:$0xff]  ;;  %v4915_v40 = vld [vmem:[#allocation13 + $0x3d8] sm:$0xff] }
 0x4a7   :  { %4766 = vst [vmem:[#allocation4 + $0x78] sm:$0xff] %v4736_v5  ;;  %5233 = vmatpush.msrb.mxu2 %v5153_v8  ;;  %4974 = vmatpush.msrb.mxu0 %v4880_v12  ;;  %v8128_v7 = vpop.f32.mrf.mxu1  ;;  %v6182_v5 = vld [vmem:[#allocation3 + $0xb8] sm:$0xff] }
 0x4a8   :  { %v3721_v49 = vadd.f32 %v3692_v43, %v2949_v9  ;;  %v4549_v1 = vadd.f32 %v4104_v26, %v3777_v22  ;;  %4986 = vmatpush.msrb.mxu1 %v4904_v35  ;;  %v4900_v43 = vld [vmem:[#allocation13 + $0x360] sm:$0xff]  ;;  %v4899_v26 = vld [vmem:[#allocation13 + $0x358] sm:$0xff] }
 0x4a9   :  { %5234 = vmatpush.msrb.mxu2 %v5152_v62  ;;  %v8125_v29 = vpop.f32.mrf.mxu0 }
 0x4aa   :  { %3751 = vst.msk [vmem:[#allocation4 + $0xc0] sm:$0xff] %vm2898_vm15, %v3721_v49  ;;  %v4651_v41 = vadd.f32 %v8055_v52, %v4549_v1  ;;  %6101 = vmatmul.msk.f32.gmra.mxu3 %vm1152_vm6, %v6180_v19  ;;  %6107 = vmatmul.msk.f32.gmra.mxu2 %vm1152_vm6, %v6180_v19 }
 0x4ab   :  { %5235 = vmatpush.msrb.mxu2 %v5151_v30  ;;  %4987 = vmatpush.msrb.mxu1 %v4903_v36  ;;  %v4896_v30 = vld [vmem:[#allocation13 + $0x340] sm:$0xff] }
 0x4ac   :  { %vm4681_vm5 = vcmp.ge.f32.partialorder %v4651_v41, 0.0  ;;  %v4711_v38 = vmul.f32 0.01, %v4651_v41  ;;  %v4794_v36 = vld [vmem:[#allocation13 + $0x40] sm:$0xff] }
 0x4ad   :  { %v3694_v14 = vpop.f32.mrf.mxu3  ;;  %v4106_v44 = vpop.f32.mrf.mxu2  ;;  %5236 = vmatpush.msrb.mxu2 %v5150_v34  ;;  %4988 = vmatpush.msrb.mxu1 %v4902_v18  ;;  %v4799_v34 = vld [vmem:[#allocation13 + $0x68] sm:$0xff]  ;;  %v4793_v18 = vld [vmem:[#allocation13 + $0x38] sm:$0xff] }
 0x4ae   :  { %v4741_v16 = vsel %vm4681_vm5, %v4651_v41, %v4711_v38  ;;  %v3695_v15 = vadd.f32 %v3694_v14, %v3660_v60  ;;  %v4107_v51 = vadd.f32 %v4106_v44, %v4072_v23  ;;  %v3768_v44 = vld [vmem:[#allocation4 + $0x58] sm:$0xff] }
 0x4af   :  { %4771 = vst [vmem:[#allocation4 + $0xa0] sm:$0xff] %v4741_v16  ;;  %5237 = vmatpush.msrb.mxu2 %v5149_v10  ;;  %4989 = vmatpush.msrb.mxu1 %v4901_v27  ;;  %v8143_v41 = vpop.f32.mrf.mxu1 }
 0x4b0   :  { %v3726_v42 = vadd.f32 %v3695_v15, %v2954_v28  ;;  %v4554_v11 = vadd.f32 %v4107_v51, %v3782_v3  ;;  %v4797_v51 = vld [vmem:[#allocation13 + $0x58] sm:$0xff] }
 0x4b1   :  { %5238 = vmatpush.msrb.mxu2 %v5148_v55  ;;  %4990 = vmatpush.msrb.mxu1 %v4900_v43  ;;  %v8140_v49 = vpop.f32.mrf.mxu0  ;;  %v4924_v55 = vld [vmem:[#allocation13 + $0x420] sm:$0xff] }
 0x4b2   :  { %3756 = vst.msk [vmem:[#allocation4 + $0xe8] sm:$0xff] %vm2898_vm15, %v3726_v42  ;;  %v4656_v39 = vadd.f32 %v8055_v52, %v4554_v11  ;;  %6102 = vmatmul.msk.f32.gmra.mxu3 %vm1152_vm6, %v6181_v25  ;;  %6108 = vmatmul.msk.f32.gmra.mxu2 %vm1152_vm6, %v6181_v25  ;;  %v4925_v42 = vld [vmem:[#allocation13 + $0x428] sm:$0xff]  ;;  %v3773_v25 = vld [vmem:[#allocation4 + $0x80] sm:$0xff] }
 0x4b3   :  { %4991 = vmatpush.msrb.mxu1 %v4899_v26  ;;  %v4920_v26 = vld [vmem:[#allocation13 + $0x400] sm:$0xff] }
 0x4b4   :  { %vm4686_vm7 = vcmp.ge.f32.partialorder %v4656_v39, 0.0  ;;  %v4716_v46 = vmul.f32 0.01, %v4656_v39 }
 0x4b5   :  { %v4126_v20 = vpop.f32.mrf.mxu3  ;;  %v8123_v4 = vpop.f32.mrf.mxu2  ;;  %4992 = vmatpush.msrb.mxu1 %v4898_v59  ;;  %v4790_v59 = vld [vmem:[#allocation13 + $0x20] sm:$0xff] }
 0x4b6   :  { %v4746_v61 = vsel %vm4686_vm7, %v4656_v39, %v4716_v46  ;;  %v4162_v52 = vadd.f32 %v8063_v56, %v4126_v20  ;;  %v4923_v46 = vld [vmem:[#allocation13 + $0x418] sm:$0xff] }
 0x4b7   :  { %4776 = vst [vmem:[#allocation4 + $0xc8] sm:$0xff] %v4746_v61  ;;  %4993 = vmatpush.msrb.mxu1 %v4897_v2  ;;  %v8154_v10 = vpop.f32.mrf.mxu1  ;;  %v4922_v61 = vld [vmem:[#allocation13 + $0x410] sm:$0xff]  ;;  %v4789_v2 = vld [vmem:[#allocation13 + $0x18] sm:$0xff] }
 0x4b8   :  { %v4197_v24 = vadd.f32 %v8065_v54, %v4162_v52 }
 0x4b9   :  { %4994 = vmatpush.msrb.mxu1 %v4896_v30  ;;  %v8151_v16 = vpop.f32.mrf.mxu0 }
 0x4ba   :  { %v4530_v8 = vadd.f32 %v4197_v24, %v3758_v48  ;;  %6103 = vmatmul.msk.f32.gmra.mxu3 %vm1152_vm6, %v6182_v5  ;;  %6109 = vmatmul.msk.f32.gmra.mxu2 %vm1152_vm6, %v6182_v5  ;;  %v4921_v48 = vld [vmem:[#allocation13 + $0x408] sm:$0xff] }
 0x4bc   :  { %v4632_v56 = vadd.f32 %v8132_v17, %v4530_v8 }
 0x4bd   :  { %v4129_v53 = vpop.f32.mrf.mxu3  ;;  %v8137_v9 = vpop.f32.mrf.mxu2 }
 0x4be   :  { %vm4662_vm8 = vcmp.ge.f32.partialorder %v4632_v56, 0.0  ;;  %v4692_v54 = vmul.f32 0.01, %v4632_v56  ;;  %v4165_v22 = vadd.f32 %v8078_v6, %v4129_v53  ;;  %v4801_v6 = vld [vmem:[#allocation13 + $0x78] sm:$0xff] }
 0x4bf   :  { %5042 = vmatpush.msra.mxu1 %v4801_v6  ;;  %v8166_v8 = vpop.f32.mrf.mxu1  ;;  %v4788_v6 = vld [vmem:[#allocation13 + $0x10] sm:$0xff] }
 0x4c0   :  { %v4722_v1 = vsel %vm4662_vm8, %v4632_v56, %v4692_v54  ;;  %v4200_v62 = vadd.f32 %v8080_v33, %v4165_v22  ;;  %v4800_v33 = vld [vmem:[#allocation13 + $0x70] sm:$0xff]  ;;  %v4791_v56 = vld [vmem:[#allocation13 + $0x28] sm:$0xff]  ;;  %v3778_v22 = vld [vmem:[#allocation4 + $0xa8] sm:$0xff] }
 0x4c1   :  { %4752 = vst [vmem:[#allocation4 + $0x8] sm:$0xff] %v4722_v1  ;;  %5043 = vmatpush.msra.mxu1 %v4800_v33  ;;  %v8161_v52 = vpop.f32.mrf.mxu0 }
 0x4c2   :  { %v4535_v19 = vadd.f32 %v4200_v62, %v3763_v0  ;;  %4955 = vmatmul.f32.vlgmr.msrb.gmra.mxu3 %v8075_v58  ;;  %5078 = vmatmul.f32.vlgmr.msra.gmra.mxu2 %v4722_v1  ;;  %v4919_v1 = vld [vmem:[#allocation13 + $0x3f8] sm:$0xff]  ;;  %v4918_v0 = vld [vmem:[#allocation13 + $0x3f0] sm:$0xff] }
 0x4c3   :  { %5044 = vmatpush.msra.mxu1 %v4799_v34 }
 0x4c4   :  { %v4637_v45 = vadd.f32 %v8132_v17, %v4535_v19 }
 0x4c5   :  { %v4132_v32 = vpop.f32.mrf.mxu3  ;;  %v8147_v23 = vpop.f32.mrf.mxu2  ;;  %5045 = vmatpush.msra.mxu1 %v4798_v37  ;;  %v4786_v37 = vld [vmem:[#allocation13] sm:$0xff] }
 0x4c6   :  { %vm4667_vm6 = vcmp.ge.f32.partialorder %v4637_v45, 0.0  ;;  %v4697_v60 = vmul.f32 0.01, %v4637_v45  ;;  %v4168_v38 = vadd.f32 %v8093_v50, %v4132_v32  ;;  %v4926_v50 = vld [vmem:[#allocation13 + $0x430] sm:$0xff] }
 0x4c7   :  { %5000 = vmatpush.msra.mxu3 %v4926_v50  ;;  %5046 = vmatpush.msra.mxu1 %v4797_v51  ;;  %v8176_v34 = vpop.f32.mrf.mxu1  ;;  %v4914_v51 = vld [vmem:[#allocation13 + $0x3d0] sm:$0xff] }
 0x4c8   :  { %v4727_v14 = vsel %vm4667_vm6, %v4637_v45, %v4697_v60  ;;  %v4203_v58 = vadd.f32 %v8105_v47, %v4168_v38  ;;  %v4787_v60 = vld [vmem:[#allocation13 + $0x8] sm:$0xff]  ;;  %v4916_v38 = vld [vmem:[#allocation13 + $0x3e0] sm:$0xff] }
 0x4c9   :  { %4757 = vst [vmem:[#allocation4 + $0x30] sm:$0xff] %v4727_v14  ;;  %4975 = vmatmul.f32.vlgmr.msrb.gmra.mxu0 %v4727_v14  ;;  %5001 = vmatpush.msra.mxu3 %v4925_v42  ;;  %v8173_v45 = vpop.f32.mrf.mxu0  ;;  %v4912_v42 = vld [vmem:[#allocation13 + $0x3c0] sm:$0xff] }
 0x4ca   :  { %v4540_v15 = vadd.f32 %v4203_v58, %v3768_v44  ;;  %5239 = vmatmul.f32.vlgmr.msrb.gmra.mxu2 %v8090_v21  ;;  %v4795_v21 = vld [vmem:[#allocation13 + $0x48] sm:$0xff]  ;;  %5047 = vmatpush.msra.mxu1 %v4796_v57 }
 0x4cb   :  { %5002 = vmatpush.msra.mxu3 %v4924_v55  ;;  %v3783_v44 = vld [vmem:[#allocation4 + $0xd0] sm:$0xff]  ;;  %v8187_v55 = vperm.slane %v8044_v31, 2 }
 0x4cc   :  { %v4642_v28 = vadd.f32 %v8132_v17, %v4540_v15  ;;  %5048 = vmatpush.msra.mxu1 %v4795_v21 }
 0x4cd   :  { %v4135_v47 = vpop.f32.mrf.mxu3  ;;  %v8157_v3 = vpop.f32.mrf.mxu2  ;;  %5003 = vmatpush.msra.mxu3 %v4923_v46  ;;  %v4934_v46 = vld [vmem:[#allocation13 + $0x470] sm:$0xff] }
 0x4ce   :  { %vm4672_vm9 = vcmp.ge.f32.partialorder %v4642_v28, 0.0  ;;  %v4702_v11 = vmul.f32 0.01, %v4642_v28  ;;  %v4171_v12 = vadd.f32 %v8115_v13, %v4135_v47  ;;  %5049 = vmatpush.msra.mxu1 %v4794_v36  ;;  %v4913_v47 = vld [vmem:[#allocation13 + $0x3c8] sm:$0xff] }
 0x4cf   :  { %5004 = vmatpush.msra.mxu3 %v4922_v61  ;;  %v4933_v61 = vld [vmem:[#allocation13 + $0x468] sm:$0xff] }
 0x4d0   :  { %v4732_v35 = vsel %vm4672_vm9, %v4642_v28, %v4702_v11  ;;  %v4206_v39 = vadd.f32 %v8117_v63, %v4171_v12  ;;  %v4792_v63 = vld [vmem:[#allocation13 + $0x30] sm:$0xff]  ;;  %5050 = vmatpush.msra.mxu1 %v4793_v18 }
 0x4d1   :  { %4762 = vst [vmem:[#allocation4 + $0x58] sm:$0xff] %v4732_v35  ;;  %5005 = vmatpush.msra.mxu3 %v4921_v48  ;;  %v8183_v11 = vpop.f32.mrf.mxu0  ;;  %v3759_v35 = vld [vmem:[#allocation4 + $0x10] sm:$0xff] }
 0x4d2   :  { %v4545_v20 = vadd.f32 %v4206_v39, %v3773_v25  ;;  %5051 = vmatpush.msra.mxu1 %v4792_v63  ;;  %v4935_v39 = vld [vmem:[#allocation13 + $0x478] sm:$0xff]  ;;  %v8189_v25 = vpop.f32.mrf.mxu1  ;;  %v4846_v63 = vld [vmem:[#allocation13 + $0x1e0] sm:$0xff] }
 0x4d3   :  { %5006 = vmatpush.msra.mxu3 %v4920_v26  ;;  %5027 = vmatpush.msra.mxu0 %v4935_v39  ;;  %v4932_v48 = vld [vmem:[#allocation13 + $0x460] sm:$0xff]  ;;  %v3764_v26 = vld [vmem:[#allocation4 + $0x38] sm:$0xff] }
 0x4d4   :  { %v4647_v13 = vadd.f32 %v8132_v17, %v4545_v20  ;;  %5052 = vmatpush.msra.mxu1 %v4791_v56  ;;  %v4845_v56 = vld [vmem:[#allocation13 + $0x1d8] sm:$0xff]  ;;  %v4854_v39 = vld [vmem:[#allocation13 + $0x220] sm:$0xff] }
 0x4d5   :  { %v4138_v24 = vpop.f32.mrf.mxu3  ;;  %v8164_v27 = vpop.f32.mrf.mxu2  ;;  %5007 = vmatpush.msra.mxu3 %v4919_v1  ;;  %5028 = vmatpush.msra.mxu0 %v4934_v46  ;;  %v4930_v1 = vld [vmem:[#allocation13 + $0x450] sm:$0xff] }
 0x4d6   :  { %vm4677_vm10 = vcmp.ge.f32.partialorder %v4647_v13, 0.0  ;;  %v4707_v5 = vmul.f32 0.01, %v4647_v13  ;;  %v4174_v43 = vadd.f32 %v8125_v29, %v4138_v24  ;;  %5053 = vmatpush.msra.mxu1 %v4790_v59 }
 0x4d7   :  { %5008 = vmatpush.msra.mxu3 %v4918_v0  ;;  %5029 = vmatpush.msra.mxu0 %v4933_v61  ;;  %v4843_v0 = vld [vmem:[#allocation13 + $0x1c8] sm:$0xff]  ;;  %v4853_v61 = vld [vmem:[#allocation13 + $0x218] sm:$0xff] }
 0x4d8   :  { %v4737_v53 = vsel %vm4677_vm10, %v4647_v13, %v4707_v5  ;;  %v4209_v54 = vadd.f32 %v8128_v7, %v4174_v43  ;;  %v4917_v7 = vld [vmem:[#allocation13 + $0x3e8] sm:$0xff]  ;;  %5054 = vmatpush.msra.mxu1 %v4789_v2 }
 0x4d9   :  { %4767 = vst [vmem:[#allocation4 + $0x80] sm:$0xff] %v4737_v53  ;;  %5009 = vmatpush.msra.mxu3 %v4917_v7  ;;  %5030 = vmatpush.msra.mxu0 %v4932_v48  ;;  %v4931_v53 = vld [vmem:[#allocation13 + $0x458] sm:$0xff]  ;;  %v5217_v7 = vld [vmem:[#allocation13 + $0x6a8] sm:$0xff] }
 0x4da   :  { %v4550_v62 = vadd.f32 %v4209_v54, %v3778_v22  ;;  %5055 = vmatpush.msra.mxu1 %v4788_v6  ;;  %v5219_v54 = vld [vmem:[#allocation13 + $0x6b8] sm:$0xff]  ;;  %v8199_v22 = vpop.f32.mrf.mxu0  ;;  %v8201_v2 = vpop.f32.mrf.mxu1  ;;  %v4929_v6 = vld [vmem:[#allocation13 + $0x448] sm:$0xff] }
 0x4db   :  { %5010 = vmatpush.msra.mxu3 %v4916_v38  ;;  %5031 = vmatpush.msra.mxu0 %v4931_v53  ;;  %v4928_v38 = vld [vmem:[#allocation13 + $0x440] sm:$0xff]  ;;  %v4829_v48 = vld [vmem:[#allocation13 + $0x158] sm:$0xff] }
 0x4dc   :  { %v4652_v29 = vadd.f32 %v8132_v17, %v4550_v62  ;;  %5056 = vmatpush.msra.mxu1 %v4787_v60  ;;  %5311 = vmatpush.msra.mxu2 %v5219_v54  ;;  %v5218_v62 = vld [vmem:[#allocation13 + $0x6b0] sm:$0xff]  ;;  %v4857_v60 = vld [vmem:[#allocation13 + $0x238] sm:$0xff] }
 0x4dd   :  { %v4141_v19 = vpop.f32.mrf.mxu3  ;;  %v8171_v30 = vpop.f32.mrf.mxu2  ;;  %5011 = vmatpush.msra.mxu3 %v4915_v40  ;;  %5032 = vmatpush.msra.mxu0 %v4930_v1  ;;  %v4842_v40 = vld [vmem:[#allocation13 + $0x1c0] sm:$0xff]  ;;  %v4828_v54 = vld [vmem:[#allocation13 + $0x150] sm:$0xff]  ;;  %v4851_v1 = vld [vmem:[#allocation13 + $0x208] sm:$0xff] }
 0x4de   :  { %vm4682_vm11 = vcmp.ge.f32.partialorder %v4652_v29, 0.0  ;;  %v4712_v32 = vmul.f32 0.01, %v4652_v29  ;;  %v4177_v33 = vadd.f32 %v8140_v49, %v4141_v19  ;;  %5057 = vmatpush.msra.mxu1 %v4786_v37  ;;  %5312 = vmatpush.msra.mxu2 %v5218_v62  ;;  %v4833_v37 = vld [vmem:[#allocation13 + $0x178] sm:$0xff]  ;;  %v4827_v62 = vld [vmem:[#allocation13 + $0x148] sm:$0xff] }
 0x4df   :  { %5012 = vmatpush.msra.mxu3 %v4914_v51  ;;  %5033 = vmatpush.msra.mxu0 %v4929_v6  ;;  %v4856_v51 = vld [vmem:[#allocation13 + $0x230] sm:$0xff] }
 0x4e0   :  { %v4742_v14 = vsel %vm4682_vm11, %v4652_v29, %v4712_v32  ;;  %v4212_v58 = vadd.f32 %v8143_v41, %v4177_v33  ;;  %5313 = vmatpush.msra.mxu2 %v5217_v7  ;;  %v4850_v7 = vld [vmem:[#allocation13 + $0x200] sm:$0xff] }
 0x4e1   :  { %4772 = vst [vmem:[#allocation4 + $0xa8] sm:$0xff] %v4742_v14  ;;  %5013 = vmatpush.msra.mxu3 %v4913_v47  ;;  %v5216_v14 = vld [vmem:[#allocation13 + $0x6a0] sm:$0xff]  ;;  %5034 = vmatpush.msra.mxu0 %v4928_v38  ;;  %v4841_v47 = vld [vmem:[#allocation13 + $0x1b8] sm:$0xff] }
 0x4e2   :  { %v4555_v15 = vadd.f32 %v4212_v58, %v3783_v44  ;;  %5314 = vmatpush.msra.mxu2 %v5216_v14  ;;  %v5195_v38 = vld [vmem:[#allocation13 + $0x5f8] sm:$0xff]  ;;  %v4826_v14 = vld [vmem:[#allocation13 + $0x140] sm:$0xff] }
 0x4e3   :  { %5014 = vmatpush.msra.mxu3 %v4912_v42  ;;  %5082 = vmatpush.msrb.mxu0 %v4833_v37 }
 0x4e4   :  { %v4657_v49 = vadd.f32 %v8132_v17, %v4555_v15  ;;  %v4849_v17 = vld [vmem:[#allocation13 + $0x1f8] sm:$0xff] }
 0x4e5   :  { %v4266_v50 = vpop.f32.mrf.mxu3  ;;  %v8180_v28 = vpop.f32.mrf.mxu2  ;;  %5102 = vmatpush.msrb.mxu3 %v4849_v17  ;;  %v3769_v15 = vld [vmem:[#allocation4 + $0x60] sm:$0xff] }
 0x4e6   :  { %vm4687_vm12 = vcmp.ge.f32.partialorder %v4657_v49, 0.0  ;;  %v4717_v41 = vmul.f32 0.01, %v4657_v49  ;;  %v4267_v57 = vadd.f32 %v4266_v50, %v8123_v4  ;;  %v4848_v4 = vld [vmem:[#allocation13 + $0x1f0] sm:$0xff] }
 0x4e7   :  { %5103 = vmatpush.msrb.mxu3 %v4848_v4  ;;  %v4832_v50 = vld [vmem:[#allocation13 + $0x170] sm:$0xff]  ;;  %v8213_v4 = vpop.f32.mrf.mxu1 }
 0x4e8   :  { %v4747_v12 = vsel %vm4687_vm12, %v4657_v49, %v4717_v41  ;;  %v4302_v21 = vadd.f32 %v8151_v16, %v4267_v57  ;;  %v4847_v16 = vld [vmem:[#allocation13 + $0x1e8] sm:$0xff]  ;;  %v5215_v49 = vld [vmem:[#allocation13 + $0x698] sm:$0xff]  ;;  %5083 = vmatpush.msrb.mxu0 %v4832_v50  ;;  %v5214_v57 = vld [vmem:[#allocation13 + $0x690] sm:$0xff] }
 0x4e9   :  { %4777 = vst [vmem:[#allocation4 + $0xd0] sm:$0xff] %v4747_v12  ;;  %5104 = vmatpush.msrb.mxu3 %v4847_v16  ;;  %5315 = vmatpush.msra.mxu2 %v5215_v49  ;;  %v4855_v41 = vld [vmem:[#allocation13 + $0x228] sm:$0xff]  ;;  %v4830_v16 = vld [vmem:[#allocation13 + $0x160] sm:$0xff]  ;;  %v4825_v49 = vld [vmem:[#allocation13 + $0x138] sm:$0xff] }
 0x4ea   :  { %v4531_v36 = vadd.f32 %v4302_v21, %v3759_v35  ;;  %v4831_v12 = vld [vmem:[#allocation13 + $0x168] sm:$0xff]  ;;  %v4840_v21 = vld [vmem:[#allocation13 + $0x1b0] sm:$0xff] }
 0x4eb   :  { %5105 = vmatpush.msrb.mxu3 %v4846_v63  ;;  %5316 = vmatpush.msra.mxu2 %v5214_v57  ;;  %v4835_v50 = vld [vmem:[#allocation13 + $0x188] sm:$0xff]  ;;  %v4824_v57 = vld [vmem:[#allocation13 + $0x130] sm:$0xff] }
 0x4ec   :  { %v4633_v20 = vadd.f32 %v8187_v55, %v4531_v36  ;;  %5084 = vmatpush.msrb.mxu0 %v4831_v12  ;;  %v5213_v36 = vld [vmem:[#allocation13 + $0x688] sm:$0xff] }
 0x4ed   :  { %v4269_v18 = vpop.f32.mrf.mxu3  ;;  %v8192_v31 = vpop.f32.mrf.mxu2  ;;  %5106 = vmatpush.msrb.mxu3 %v4845_v56  ;;  %5317 = vmatpush.msra.mxu2 %v5213_v36  ;;  %v4839_v56 = vld [vmem:[#allocation13 + $0x1a8] sm:$0xff] }
 0x4ee   :  { %vm4663_vm13 = vcmp.ge.f32.partialorder %v4633_v20, 0.0  ;;  %v4693_v13 = vmul.f32 0.01, %v4633_v20  ;;  %v4270_v24 = vadd.f32 %v4269_v18, %v8137_v9  ;;  %v4844_v9 = vld [vmem:[#allocation13 + $0x1d0] sm:$0xff]  ;;  %5085 = vmatpush.msrb.mxu0 %v4830_v16 }
 0x4ef   :  { %5107 = vmatpush.msrb.mxu3 %v4844_v9  ;;  %v4781_v18 = vld [vmem:[#allocation4] sm:$0xff]  ;;  %v4838_v9 = vld [vmem:[#allocation13 + $0x1a0] sm:$0xff]  ;;  %v4476_v37 = vpop.f32.mrf.mxu1 }
 0x4f0   :  { %v8195_v5 = vsel %vm4663_vm13, %v4633_v20, %v4693_v13  ;;  %v4305_v43 = vadd.f32 %v8161_v52, %v4270_v24  ;;  %v5212_v13 = vld [vmem:[#allocation13 + $0x680] sm:$0xff]  ;;  %5086 = vmatpush.msrb.mxu0 %v4829_v48 }
 0x4f1   :  { %4753 = vst [vmem:[#allocation4 + $0x10] sm:$0xff] %v8195_v5  ;;  %5108 = vmatpush.msrb.mxu3 %v4843_v0  ;;  %5318 = vmatpush.msra.mxu2 %v5212_v13  ;;  %v4837_v0 = vld [vmem:[#allocation13 + $0x198] sm:$0xff]  ;;  %v5370_v13 = vld [vmem:[#allocation13 + $0x800] sm:$0xff] }
 0x4f2   :  { %v4536_v59 = vadd.f32 %v4305_v43, %v3764_v26  ;;  %v5377_v43 = vld [vmem:[#allocation13 + $0x838] sm:$0xff]  ;;  %v4852_v26 = vld [vmem:[#allocation13 + $0x210] sm:$0xff]  ;;  %5087 = vmatpush.msrb.mxu0 %v4828_v54 }
 0x4f3   :  { %5109 = vmatpush.msrb.mxu3 %v4842_v40  ;;  %5445 = vmatpush.msrb.mxu2 %v5377_v43 }
 0x4f4   :  { %v4638_v52 = vadd.f32 %v8187_v55, %v4536_v59  ;;  %v5376_v59 = vld [vmem:[#allocation13 + $0x830] sm:$0xff]  ;;  %5088 = vmatpush.msrb.mxu0 %v4827_v62 }
 0x4f5   :  { %v4272_v29 = vpop.f32.mrf.mxu3  ;;  %v8204_v19 = vpop.f32.mrf.mxu2  ;;  %5110 = vmatpush.msrb.mxu3 %v4841_v47  ;;  %5446 = vmatpush.msrb.mxu2 %v5376_v59  ;;  %v5189_v59 = vld [vmem:[#allocation13 + $0x5c8] sm:$0xff] }
 0x4f6   :  { %vm4668_vm0 = vcmp.ge.f32.partialorder %v4638_v52, 0.0  ;;  %v4698_v32 = vmul.f32 0.01, %v4638_v52  ;;  %v4273_v33 = vadd.f32 %v4272_v29, %v8147_v23  ;;  %5089 = vmatpush.msrb.mxu0 %v4826_v14 }
 0x4f7   :  { %5111 = vmatpush.msrb.mxu3 %v4840_v21  ;;  %v5192_v21 = vld [vmem:[#allocation13 + $0x5e0] sm:$0xff] }
 0x4f8   :  { %v4728_v58 = vsel %vm4668_vm0, %v4638_v52, %v4698_v32  ;;  %v4308_v44 = vadd.f32 %v8173_v45, %v4273_v33  ;;  %v8208_v45 = vpop.f32.mrf.mxu0  ;;  %v5375_v52 = vld [vmem:[#allocation13 + $0x828] sm:$0xff]  ;;  %5090 = vmatpush.msrb.mxu0 %v4825_v49 }
 0x4f9   :  { %4758 = vst [vmem:[#allocation4 + $0x38] sm:$0xff] %v4728_v58  ;;  %4995 = vmatmul.f32.vlgmr.msrb.gmra.mxu1 %v4728_v58  ;;  %5112 = vmatpush.msrb.mxu3 %v4839_v56  ;;  %v5374_v58 = vld [vmem:[#allocation13 + $0x820] sm:$0xff]  ;;  %v5190_v56 = vld [vmem:[#allocation13 + $0x5d0] sm:$0xff] }
 0x4fa   :  { %v4541_v23 = vadd.f32 %v4308_v44, %v3769_v15  ;;  %5130 = vmatpush.msrb.mxu1 %v4857_v60  ;;  %5447 = vmatpush.msrb.mxu2 %v5375_v52  ;;  %v4836_v44 = vld [vmem:[#allocation13 + $0x190] sm:$0xff]  ;;  %v5188_v52 = vld [vmem:[#allocation13 + $0x5c0] sm:$0xff] }
 0x4fb   :  { %5113 = vmatpush.msrb.mxu3 %v4838_v9  ;;  %5091 = vmatpush.msrb.mxu0 %v4824_v57  ;;  %v4820_v9 = vld [vmem:[#allocation13 + $0x110] sm:$0xff] }
 0x4fc   :  { %v4643_v42 = vadd.f32 %v8187_v55, %v4541_v23  ;;  %5131 = vmatpush.msrb.mxu1 %v4856_v51  ;;  %v5194_v51 = vld [vmem:[#allocation13 + $0x5f0] sm:$0xff]  ;;  %5448 = vmatpush.msrb.mxu2 %v5374_v58  ;;  %v5373_v23 = vld [vmem:[#allocation13 + $0x818] sm:$0xff] }
 0x4fd   :  { %v4275_v17 = vpop.f32.mrf.mxu3  ;;  %v8211_v35 = vpop.f32.mrf.mxu2  ;;  %5114 = vmatpush.msrb.mxu3 %v4837_v0  ;;  %v4819_v0 = vld [vmem:[#allocation13 + $0x108] sm:$0xff]  ;;  %v5364_v57 = vld [vmem:[#allocation13 + $0x7d0] sm:$0xff] }
 0x4fe   :  { %vm4673_vm14 = vcmp.ge.f32.partialorder %v4643_v42, 0.0  ;;  %v4703_v46 = vmul.f32 0.01, %v4643_v42  ;;  %v4276_v20 = vadd.f32 %v4275_v17, %v8157_v3  ;;  %5132 = vmatpush.msrb.mxu1 %v4855_v41  ;;  %v3774_v3 = vld [vmem:[#allocation4 + $0x88] sm:$0xff]  ;;  %v5193_v41 = vld [vmem:[#allocation13 + $0x5e8] sm:$0xff]  ;;  %5449 = vmatpush.msrb.mxu2 %v5373_v23  ;;  %v5186_v23 = vld [vmem:[#allocation13 + $0x5b0] sm:$0xff] }
 0x4ff   :  { %5115 = vmatpush.msrb.mxu3 %v4836_v44  ;;  %v4823_v17 = vld [vmem:[#allocation13 + $0x128] sm:$0xff]  ;;  %v5187_v44 = vld [vmem:[#allocation13 + $0x5b8] sm:$0xff] }
 0x500   :  { %v8216_v24 = vsel %vm4673_vm14, %v4643_v42, %v4703_v46  ;;  %v4311_v63 = vadd.f32 %v8183_v11, %v4276_v20  ;;  %5133 = vmatpush.msrb.mxu1 %v4854_v39  ;;  %v8223_v32 = vpop.f32.mrf.mxu0  ;;  %v5372_v42 = vld [vmem:[#allocation13 + $0x810] sm:$0xff]  ;;  %v5371_v39 = vld [vmem:[#allocation13 + $0x808] sm:$0xff]  ;;  %5092 = vmatpush.msrb.mxu0 %v4823_v17  ;;  %v5184_v17 = vld [vmem:[#allocation13 + $0x5a0] sm:$0xff] }
 0x501   :  { %4763 = vst [vmem:[#allocation4 + $0x60] sm:$0xff] %v8216_v24  ;;  %5058 = vmatmul.f32.vlgmr.msra.gmra.mxu1 %v4781_v18  ;;  %5450 = vmatpush.msrb.mxu2 %v5372_v42  ;;  %v5191_v18 = vld [vmem:[#allocation13 + $0x5d8] sm:$0xff] }
 0x502   :  { %v4546_v53 = vadd.f32 %v4311_v63, %v3774_v3  ;;  %5134 = vmatpush.msrb.mxu1 %v4853_v61  ;;  %5116 = vmatpush.msrb.mxu3 %v4835_v50  ;;  %v4822_v61 = vld [vmem:[#allocation13 + $0x120] sm:$0xff]  ;;  %v4821_v3 = vld [vmem:[#allocation13 + $0x118] sm:$0xff] }
 0x503   :  { %5451 = vmatpush.msrb.mxu2 %v5371_v39  ;;  %5093 = vmatpush.msrb.mxu0 %v4822_v61  ;;  %v5363_v39 = vld [vmem:[#allocation13 + $0x7c8] sm:$0xff] }
 0x504   :  { %v4648_v11 = vadd.f32 %v8187_v55, %v4546_v53  ;;  %5135 = vmatpush.msrb.mxu1 %v4852_v26  ;;  %v5369_v26 = vld [vmem:[#allocation13 + $0x7f8] sm:$0xff]  ;;  %v3784_v53 = vld [vmem:[#allocation4 + $0xd8] sm:$0xff] }
 0x505   :  { %v4278_v29 = vpop.f32.mrf.mxu3  ;;  %v8221_v6 = vpop.f32.mrf.mxu2  ;;  %5452 = vmatpush.msrb.mxu2 %v5370_v13  ;;  %5094 = vmatpush.msrb.mxu0 %v4821_v3  ;;  %v5182_v3 = vld [vmem:[#allocation13 + $0x590] sm:$0xff] }
 0x506   :  { %vm4678_vm1 = vcmp.ge.f32.partialorder %v4648_v11, 0.0  ;;  %v4708_v33 = vmul.f32 0.01, %v4648_v11  ;;  %v4279_v60 = vadd.f32 %v4278_v29, %v8164_v27  ;;  %5136 = vmatpush.msrb.mxu1 %v4851_v1  ;;  %v3779_v27 = vld [vmem:[#allocation4 + $0xb0] sm:$0xff]  ;;  %v5368_v1 = vld [vmem:[#allocation13 + $0x7f0] sm:$0xff] }
 0x507   :  { %5453 = vmatpush.msrb.mxu2 %v5369_v26  ;;  %5095 = vmatpush.msrb.mxu0 %v4820_v9  ;;  %v5367_v29 = vld [vmem:[#allocation13 + $0x7e8] sm:$0xff]  ;;  %v4378_v9 = vadd.f32 %v8204_v19, %v8176_v34  ;;  %v5210_v19 = vld [vmem:[#allocation13 + $0x670] sm:$0xff] }
 0x508   :  { %v8226_v40 = vsel %vm4678_vm1, %v4648_v11, %v4708_v33  ;;  %v4314_v15 = vadd.f32 %v8199_v22, %v4279_v60  ;;  %5137 = vmatpush.msrb.mxu1 %v4850_v7  ;;  %v4834_v22 = vld [vmem:[#allocation13 + $0x180] sm:$0xff]  ;;  %v4444_v63 = vpop.f32.mrf.mxu0  ;;  %v4477_v11 = vadd.f32 %v4476_v37, %v8223_v32  ;;  %v6183_v33 = vld [vmem:[#allocation12] sm:$0x1f] }
 0x509   :  { %4768 = vst [vmem:[#allocation4 + $0x88] sm:$0xff] %v8226_v40  ;;  %5117 = vmatpush.msrb.mxu3 %v4834_v22  ;;  %5454 = vmatpush.msrb.mxu2 %v5368_v1  ;;  %v8239_v60 = vperm.slane %v6183_v33, 3  ;;  %v3761_v37 = vld [vmem:[#allocation4 + $0x20] sm:$0xff]  ;;  %v4375_v22 = vadd.f32 %v8192_v31, %v8166_v8  ;;  %v3766_v31 = vld [vmem:[#allocation4 + $0x48] sm:$0xff]  ;;  %v3771_v34 = vld [vmem:[#allocation4 + $0x70] sm:$0xff] }
 0x50a   :  { %5263 = vmatpush.msra.mxu1 %v5195_v38  ;;  %v4551_v47 = vadd.f32 %v4314_v15, %v3779_v27  ;;  %5096 = vmatpush.msrb.mxu0 %v4819_v0  ;;  %v5365_v27 = vld [vmem:[#allocation13 + $0x7d8] sm:$0xff]  ;;  %v5180_v1 = vld [vmem:[#allocation13 + $0x580] sm:$0xff] }
 0x50b   :  { %5455 = vmatpush.msrb.mxu2 %v5367_v29  ;;  %v3765_v8 = vld [vmem:[#allocation4 + $0x40] sm:$0xff] }
 0x50c   :  { %5264 = vmatpush.msra.mxu1 %v5194_v51  ;;  %v4653_v12 = vadd.f32 %v8187_v55, %v4551_v47  ;;  %v5211_v29 = vld [vmem:[#allocation13 + $0x678] sm:$0xff] }
 0x50d   :  { %v4281_v36 = vpop.f32.mrf.mxu3  ;;  %v8231_v46 = vpop.f32.mrf.mxu2 }
 0x50e   :  { %5265 = vmatpush.msra.mxu1 %v5193_v41  ;;  %vm4683_vm2 = vcmp.ge.f32.partialorder %v4653_v12, 0.0  ;;  %v4713_v20 = vmul.f32 0.01, %v4653_v12  ;;  %v4282_v16 = vadd.f32 %v4281_v36, %v8171_v30  ;;  %v4479_v30 = vpop.f32.mrf.mxu1  ;;  %v5185_v41 = vld [vmem:[#allocation13 + $0x5a8] sm:$0xff] }
 0x50f   :  { %v4480_v42 = vadd.f32 %v4479_v30, %v4444_v63  ;;  %v5362_v63 = vld [vmem:[#allocation13 + $0x7c0] sm:$0xff] }
 0x510   :  { %5266 = vmatpush.msra.mxu1 %v5192_v21  ;;  %v4743_v48 = vsel %vm4683_vm2, %v4653_v12, %v4713_v20  ;;  %v4317_v43 = vadd.f32 %v8208_v45, %v4282_v16  ;;  %v4372_v45 = vadd.f32 %v8180_v28, %v8154_v10  ;;  %v4818_v10 = vld [vmem:[#allocation13 + $0x100] sm:$0xff]  ;;  %v4447_v50 = vpop.f32.mrf.mxu0 }
 0x511   :  { %4773 = vst [vmem:[#allocation4 + $0xb0] sm:$0xff] %v4743_v48  ;;  %v5366_v28 = vld [vmem:[#allocation13 + $0x7e0] sm:$0xff]  ;;  %5097 = vmatpush.msrb.mxu0 %v4818_v10  ;;  %v5183_v48 = vld [vmem:[#allocation13 + $0x598] sm:$0xff] }
 0x512   :  { %5267 = vmatpush.msra.mxu1 %v5191_v18  ;;  %v4556_v54 = vadd.f32 %v4317_v43, %v3784_v53  ;;  %5456 = vmatpush.msrb.mxu2 %v5366_v28  ;;  %v8247_v18 = vperm.slane %v6183_v33, 4 }
 0x514   :  { %5268 = vmatpush.msra.mxu1 %v5190_v56  ;;  %v4658_v62 = vadd.f32 %v8187_v55, %v4556_v54  ;;  %v3760_v55 = vld [vmem:[#allocation4 + $0x18] sm:$0xff]  ;;  %5457 = vmatpush.msrb.mxu2 %v5365_v27 }
 0x515   :  { %v4406_v7 = vpop.f32.mrf.mxu3  ;;  %v4511_v38 = vpop.f32.mrf.mxu2  ;;  %v5181_v54 = vld [vmem:[#allocation13 + $0x588] sm:$0xff] }
 0x516   :  { %5269 = vmatpush.msra.mxu1 %v5189_v59  ;;  %vm4688_vm3 = vcmp.ge.f32.partialorder %v4658_v62, 0.0  ;;  %v4718_v14 = vmul.f32 0.01, %v4658_v62  ;;  %v4407_v58 = vadd.f32 %v4406_v7, %v4372_v45  ;;  %v4512_v32 = vadd.f32 %v4511_v38, %v4477_v11  ;;  %v4482_v12 = vpop.f32.mrf.mxu1  ;;  %5458 = vmatpush.msrb.mxu2 %v5364_v57  ;;  %v5361_v57 = vld [vmem:[#allocation13 + $0x7b8] sm:$0xff] }
 0x517   :  { %v4483_v59 = vadd.f32 %v4482_v12, %v4447_v50 }
 0x518   :  { %5270 = vmatpush.msra.mxu1 %v5188_v52  ;;  %v4748_v15 = vsel %vm4688_vm3, %v4658_v62, %v4718_v14  ;;  %v4532_v51 = vadd.f32 %v4407_v58, %v3760_v55  ;;  %v4533_v49 = vadd.f32 %v4512_v32, %v3761_v37  ;;  %5459 = vmatpush.msrb.mxu2 %v5363_v39  ;;  %v4450_v11 = vpop.f32.mrf.mxu0  ;;  %v3770_v32 = vld [vmem:[#allocation4 + $0x68] sm:$0xff]  ;;  %v5209_v55 = vld [vmem:[#allocation13 + $0x668] sm:$0xff] }
 0x519   :  { %4778 = vst [vmem:[#allocation4 + $0xd8] sm:$0xff] %v4748_v15 }
 0x51a   :  { %5271 = vmatpush.msra.mxu1 %v5187_v44  ;;  %v4634_v47 = vadd.f32 %v8239_v60, %v4532_v51  ;;  %4563 = vst.msk [vmem:[#allocation4 + $0x20] sm:$0xff] %vm2898_vm15, %v4533_v49  ;;  %5460 = vmatpush.msrb.mxu2 %v5362_v63  ;;  %v4381_v49 = vadd.f32 %v8211_v35, %v8189_v25  ;;  %v3776_v25 = vld [vmem:[#allocation4 + $0x98] sm:$0xff] }
 0x51b   :  { %v5360_v35 = vld [vmem:[#allocation13 + $0x7b0] sm:$0xff] }
 0x51c   :  { %5272 = vmatpush.msra.mxu1 %v5186_v23  ;;  %vm4664_vm4 = vcmp.ge.f32.partialorder %v4634_v47, 0.0  ;;  %v4694_v21 = vmul.f32 0.01, %v4634_v47  ;;  %v5208_v23 = vld [vmem:[#allocation13 + $0x660] sm:$0xff] }
 0x51d   :  { %v4409_v36 = vpop.f32.mrf.mxu3  ;;  %v4514_v20 = vpop.f32.mrf.mxu2 }
 0x51e   :  { %5273 = vmatpush.msra.mxu1 %v5185_v41  ;;  %v8245_v16 = vsel %vm4664_vm4, %v4634_v47, %v4694_v21  ;;  %v4410_v61 = vadd.f32 %v4409_v36, %v4375_v22  ;;  %v4515_v13 = vadd.f32 %v4514_v20, %v4480_v42  ;;  %v4485_v7 = vpop.f32.mrf.mxu1  ;;  %v5207_v42 = vld [vmem:[#allocation13 + $0x658] sm:$0xff] }
 0x51f   :  { %4754 = vst [vmem:[#allocation4 + $0x18] sm:$0xff] %v8245_v16  ;;  %v4486_v51 = vadd.f32 %v4485_v7, %v4450_v11  ;;  %v5357_v11 = vld [vmem:[#allocation13 + $0x798] sm:$0xff] }
 0x520   :  { %5274 = vmatpush.msra.mxu1 %v5184_v17  ;;  %v4537_v43 = vadd.f32 %v4410_v61, %v3765_v8  ;;  %v4538_v56 = vadd.f32 %v4515_v13, %v3766_v31  ;;  %v4453_v22 = vpop.f32.mrf.mxu0  ;;  %v3775_v17 = vld [vmem:[#allocation4 + $0x90] sm:$0xff]  ;;  %v5206_v61 = vld [vmem:[#allocation13 + $0x650] sm:$0xff] }
 0x521   :  { %v4593_v26 = vld [vmem:[#allocation4 + $0x20] sm:$0xff]  ;;  %v5359_v31 = vld [vmem:[#allocation13 + $0x7a8] sm:$0xff] }
 0x522   :  { %5275 = vmatpush.msra.mxu1 %v5183_v48  ;;  %v4635_v53 = vadd.f32 %v8247_v18, %v4593_v26  ;;  %v4639_v30 = vadd.f32 %v8239_v60, %v4537_v43  ;;  %4568 = vst.msk [vmem:[#allocation4 + $0x48] sm:$0xff] %vm2898_vm15, %v4538_v56  ;;  %v5205_v43 = vld [vmem:[#allocation13 + $0x648] sm:$0xff]  ;;  %v4384_v26 = vadd.f32 %v8221_v6, %v8201_v2  ;;  %v5204_v2 = vld [vmem:[#allocation13 + $0x640] sm:$0xff]  ;;  %v3781_v6 = vld [vmem:[#allocation4 + $0xc0] sm:$0xff] }
 0x524   :  { %5276 = vmatpush.msra.mxu1 %v5182_v3  ;;  %vm4665_vm5 = vcmp.ge.f32.partialorder %v4635_v53, 0.0  ;;  %v4695_v45 = vmul.f32 0.01, %v4635_v53  ;;  %vm4669_vm7 = vcmp.ge.f32.partialorder %v4639_v30, 0.0  ;;  %v4699_v62 = vmul.f32 0.01, %v4639_v30 }
 0x525   :  { %v4412_v52 = vpop.f32.mrf.mxu3  ;;  %v4517_v0 = vpop.f32.mrf.mxu2 }
 0x526   :  { %5277 = vmatpush.msra.mxu1 %v5181_v54  ;;  %v4725_v33 = vsel %vm4665_vm5, %v4635_v53, %v4695_v45  ;;  %v4729_v38 = vsel %vm4669_vm7, %v4639_v30, %v4699_v62  ;;  %v4413_v14 = vadd.f32 %v4412_v52, %v4378_v9  ;;  %v4518_v58 = vadd.f32 %v4517_v0, %v4483_v59  ;;  %v4488_v13 = vpop.f32.mrf.mxu1  ;;  %v5358_v53 = vld [vmem:[#allocation13 + $0x7a0] sm:$0xff]  ;;  %v3780_v52 = vld [vmem:[#allocation4 + $0xb8] sm:$0xff] }
 0x527   :  { %4755 = vst.msk [vmem:[#allocation4 + $0x20] sm:$0xff] %vm2898_vm15, %v4725_v33  ;;  %5015 = vmatmul.f32.vlgmr.msra.gmra.mxu3 %v4729_v38  ;;  %v5178_v33 = vld [vmem:[#allocation13 + $0x570] sm:$0xff] }
 0x528   :  { %5278 = vmatpush.msra.mxu1 %v5180_v1  ;;  %4759 = vst [vmem:[#allocation4 + $0x40] sm:$0xff] %v4729_v38  ;;  %v4542_v44 = vadd.f32 %v4413_v14, %v3770_v32  ;;  %v4543_v10 = vadd.f32 %v4518_v58, %v3771_v34  ;;  %5283 = vmatpush.msra.mxu3 %v5211_v29  ;;  %v5179_v1 = vld [vmem:[#allocation13 + $0x578] sm:$0xff]  ;;  %v5356_v38 = vld [vmem:[#allocation13 + $0x790] sm:$0xff]  ;;  %v4456_v14 = vpop.f32.mrf.mxu0 }
 0x529   :  { %v4598_v28 = vld [vmem:[#allocation4 + $0x48] sm:$0xff] }
 0x52a   :  { %v4640_v37 = vadd.f32 %v8247_v18, %v4598_v28  ;;  %v4644_v15 = vadd.f32 %v8239_v60, %v4542_v44  ;;  %4573 = vst.msk [vmem:[#allocation4 + $0x70] sm:$0xff] %vm2898_vm15, %v4543_v10  ;;  %5284 = vmatpush.msra.mxu3 %v5210_v19  ;;  %v5203_v34 = vld [vmem:[#allocation13 + $0x638] sm:$0xff]  ;;  %v5177_v44 = vld [vmem:[#allocation13 + $0x568] sm:$0xff] }
 0x52b   :  { %v5355_v10 = vld [vmem:[#allocation13 + $0x788] sm:$0xff] }
 0x52c   :  { %vm4670_vm8 = vcmp.ge.f32.partialorder %v4640_v37, 0.0  ;;  %v4700_v27 = vmul.f32 0.01, %v4640_v37  ;;  %vm4674_vm6 = vcmp.ge.f32.partialorder %v4644_v15, 0.0  ;;  %v4704_v50 = vmul.f32 0.01, %v4644_v15  ;;  %5285 = vmatpush.msra.mxu3 %v5209_v55 }
 0x52d   :  { %v4415_v47 = vpop.f32.mrf.mxu3  ;;  %v4520_v41 = vpop.f32.mrf.mxu2 }
 0x52e   :  { %v4730_v12 = vsel %vm4670_vm8, %v4640_v37, %v4700_v27  ;;  %v8261_v21 = vsel %vm4674_vm6, %v4644_v15, %v4704_v50  ;;  %v4416_v39 = vadd.f32 %v4415_v47, %v4381_v49  ;;  %v4521_v36 = vadd.f32 %v4520_v41, %v4486_v51  ;;  %v4785_v20 = vld [vmem:[#allocation4 + $0x20] sm:$0xff]  ;;  %5286 = vmatpush.msra.mxu3 %v5208_v23  ;;  %v4491_v28 = vpop.f32.mrf.mxu1  ;;  %v5176_v49 = vld [vmem:[#allocation13 + $0x560] sm:$0xff] }
 0x52f   :  { %4760 = vst.msk [vmem:[#allocation4 + $0x48] sm:$0xff] %vm2898_vm15, %v4730_v12  ;;  %6111 = vmatmul.msk.f32.vlgmr.msrb.gmra.mxu1 %vm2898_vm15, %v4785_v20  ;;  %5118 = vmatmul.f32.vlgmr.msrb.gmra.mxu3 %v8245_v16  ;;  %v4489_v16 = vadd.f32 %v4488_v13, %v4453_v22  ;;  %v4492_v15 = vadd.f32 %v4491_v28, %v4456_v14  ;;  %v3785_v50 = vld [vmem:[#allocation4 + $0xe0] sm:$0xff]  ;;  %v3786_v20 = vld [vmem:[#allocation4 + $0xe8] sm:$0xff] }
 0x530   :  { %4764 = vst [vmem:[#allocation4 + $0x68] sm:$0xff] %v8261_v21  ;;  %v4547_v48 = vadd.f32 %v4416_v39, %v3775_v17  ;;  %v4548_v63 = vadd.f32 %v4521_v36, %v3776_v25  ;;  %5425 = vmatpush.msrb.mxu1 %v5361_v57  ;;  %5287 = vmatpush.msra.mxu3 %v5207_v42  ;;  %v5175_v57 = vld [vmem:[#allocation13 + $0x558] sm:$0xff]  ;;  %v5201_v36 = vld [vmem:[#allocation13 + $0x628] sm:$0xff]  ;;  %v5174_v25 = vld [vmem:[#allocation13 + $0x550] sm:$0xff] }
 0x531   :  { %v4603_v8 = vld [vmem:[#allocation4 + $0x70] sm:$0xff]  ;;  %v4387_v51 = vadd.f32 %v8231_v46, %v8213_v4  ;;  %v5543_v42 = vld [vmem:[#allocation13 + $0x9f8] sm:$0xff] }
 0x532   :  { %v4645_v56 = vadd.f32 %v8247_v18, %v4603_v8  ;;  %v4649_v3 = vadd.f32 %v8239_v60, %v4547_v48  ;;  %4578 = vst.msk [vmem:[#allocation4 + $0x98] sm:$0xff] %vm2898_vm15, %v4548_v63  ;;  %5426 = vmatpush.msrb.mxu1 %v5360_v35  ;;  %5288 = vmatpush.msra.mxu3 %v5206_v61  ;;  %v5354_v46 = vld [vmem:[#allocation13 + $0x780] sm:$0xff]  ;;  %v5542_v35 = vld [vmem:[#allocation13 + $0x9f0] sm:$0xff]  ;;  %v5353_v48 = vld [vmem:[#allocation13 + $0x778] sm:$0xff] }
 0x533   :  { %v5200_v63 = vld [vmem:[#allocation13 + $0x620] sm:$0xff]  ;;  %v5535_v28 = vld [vmem:[#allocation13 + $0x9b8] sm:$0xff] }
 0x534   :  { %vm4675_vm9 = vcmp.ge.f32.partialorder %v4645_v56, 0.0  ;;  %v4705_v30 = vmul.f32 0.01, %v4645_v56  ;;  %vm4679_vm10 = vcmp.ge.f32.partialorder %v4649_v3, 0.0  ;;  %v4709_v54 = vmul.f32 0.01, %v4649_v3  ;;  %5427 = vmatpush.msrb.mxu1 %v5359_v31  ;;  %5289 = vmatpush.msra.mxu3 %v5205_v43 }
 0x535   :  { %v4418_v59 = vpop.f32.mrf.mxu3  ;;  %v4523_v9 = vpop.f32.mrf.mxu2  ;;  %v5173_v31 = vld [vmem:[#allocation13 + $0x548] sm:$0xff] }
 0x536   :  { %v4735_v45 = vsel %vm4675_vm9, %v4645_v56, %v4705_v30  ;;  %v8272_v62 = vsel %vm4679_vm10, %v4649_v3, %v4709_v54  ;;  %v4419_v0 = vadd.f32 %v4418_v59, %v4384_v26  ;;  %v4524_v29 = vadd.f32 %v4523_v9, %v4489_v16  ;;  %v4862_v7 = vld [vmem:[#allocation4 + $0x48] sm:$0xff]  ;;  %5428 = vmatpush.msrb.mxu1 %v5358_v53  ;;  %v5541_v43 = vld [vmem:[#allocation13 + $0x9e8] sm:$0xff]  ;;  %v5352_v3 = vld [vmem:[#allocation13 + $0x770] sm:$0xff] }
 0x537   :  { %4765 = vst.msk [vmem:[#allocation4 + $0x70] sm:$0xff] %vm2898_vm15, %v4735_v45  ;;  %6110 = vmatmul.msk.f32.vlgmr.msra.gmra.mxu0 %vm2898_vm15, %v4862_v7  ;;  %5279 = vmatmul.f32.vlgmr.msra.gmra.mxu1 %v8216_v24  ;;  %v5202_v24 = vld [vmem:[#allocation13 + $0x630] sm:$0xff]  ;;  %v5199_v16 = vld [vmem:[#allocation13 + $0x618] sm:$0xff]  ;;  %v5172_v26 = vld [vmem:[#allocation13 + $0x540] sm:$0xff] }
 0x538   :  { %4769 = vst [vmem:[#allocation4 + $0x90] sm:$0xff] %v8272_v62  ;;  %v4552_v58 = vadd.f32 %v4419_v0, %v3780_v52  ;;  %v4553_v32 = vadd.f32 %v4524_v29, %v3781_v6  ;;  %5243 = vmatpush.msra.mxu0 %v5179_v1  ;;  %5429 = vmatpush.msrb.mxu1 %v5357_v11  ;;  %v5540_v53 = vld [vmem:[#allocation13 + $0x9e0] sm:$0xff]  ;;  %v5351_v30 = vld [vmem:[#allocation13 + $0x768] sm:$0xff]  ;;  %v5171_v9 = vld [vmem:[#allocation13 + $0x538] sm:$0xff] }
 0x539   :  { %v4608_v19 = vld [vmem:[#allocation4 + $0x98] sm:$0xff]  ;;  %5290 = vmatpush.msra.mxu3 %v5204_v2  ;;  %v5539_v1 = vld [vmem:[#allocation13 + $0x9d8] sm:$0xff]  ;;  %v5350_v45 = vld [vmem:[#allocation13 + $0x760] sm:$0xff] }
 0x53a   :  { %v4650_v55 = vadd.f32 %v8247_v18, %v4608_v19  ;;  %v4654_v37 = vadd.f32 %v8239_v60, %v4552_v58  ;;  %4583 = vst.msk [vmem:[#allocation4 + $0xc0] sm:$0xff] %vm2898_vm15, %v4553_v32  ;;  %5244 = vmatpush.msra.mxu0 %v5178_v33  ;;  %5430 = vmatpush.msrb.mxu1 %v5356_v38  ;;  %v5198_v52 = vld [vmem:[#allocation13 + $0x610] sm:$0xff]  ;;  %v5349_v7 = vld [vmem:[#allocation13 + $0x758] sm:$0xff]  ;;  %v5197_v2 = vld [vmem:[#allocation13 + $0x608] sm:$0xff] }
 0x53b   :  { %5291 = vmatpush.msra.mxu3 %v5203_v34  ;;  %v5170_v0 = vld [vmem:[#allocation13 + $0x530] sm:$0xff]  ;;  %v5169_v33 = vld [vmem:[#allocation13 + $0x528] sm:$0xff]  ;;  %v5168_v32 = vld [vmem:[#allocation13 + $0x520] sm:$0xff] }
 0x53c   :  { %vm4680_vm11 = vcmp.ge.f32.partialorder %v4650_v55, 0.0  ;;  %v4710_v23 = vmul.f32 0.01, %v4650_v55  ;;  %vm4684_vm12 = vcmp.ge.f32.partialorder %v4654_v37, 0.0  ;;  %v4714_v27 = vmul.f32 0.01, %v4654_v37  ;;  %5245 = vmatpush.msra.mxu0 %v5177_v44  ;;  %5431 = vmatpush.msrb.mxu1 %v5355_v10 }
 0x53d   :  { %v4421_v47 = vpop.f32.mrf.mxu3  ;;  %v4526_v41 = vpop.f32.mrf.mxu2  ;;  %5292 = vmatpush.msra.mxu3 %v5202_v24  ;;  %v5538_v29 = vld [vmem:[#allocation13 + $0x9d0] sm:$0xff]  ;;  %v5537_v38 = vld [vmem:[#allocation13 + $0x9c8] sm:$0xff]  ;;  %v5536_v34 = vld [vmem:[#allocation13 + $0x9c0] sm:$0xff] }
 0x53e   :  { %v4740_v22 = vsel %vm4680_vm11, %v4650_v55, %v4710_v23  ;;  %v8283_v12 = vsel %vm4684_vm12, %v4654_v37, %v4714_v27  ;;  %v4422_v17 = vadd.f32 %v4421_v47, %v4387_v51  ;;  %v4527_v39 = vadd.f32 %v4526_v41, %v4492_v15  ;;  %5246 = vmatpush.msra.mxu0 %v5176_v49  ;;  %v5146_v4 = vld [vmem:[#allocation4 + $0x70] sm:$0xff]  ;;  %v5348_v58 = vld [vmem:[#allocation13 + $0x750] sm:$0xff]  ;;  %v5167_v10 = vld [vmem:[#allocation13 + $0x518] sm:$0xff] }
 0x53f   :  { %4770 = vst.msk [vmem:[#allocation4 + $0x98] sm:$0xff] %vm2898_vm15, %v4740_v22  ;;  %5098 = vmatmul.f32.vlgmr.msrb.gmra.mxu0 %v8195_v5  ;;  %6112 = vmatmul.msk.f32.vlgmr.msra.gmra.mxu2 %vm2898_vm15, %v5146_v4  ;;  %v5347_v44 = vld [vmem:[#allocation13 + $0x748] sm:$0xff]  ;;  %v5393_v37 = vld [vmem:[#allocation13 + $0x8b8] sm:$0xff]  ;;  %v5166_v24 = vld [vmem:[#allocation13 + $0x510] sm:$0xff] }
 0x540   :  { %4774 = vst [vmem:[#allocation4 + $0xb8] sm:$0xff] %v8283_v12  ;;  %v4557_v61 = vadd.f32 %v4422_v17, %v3785_v50  ;;  %v4558_v13 = vadd.f32 %v4527_v39, %v3786_v20  ;;  %5247 = vmatpush.msra.mxu0 %v5175_v57  ;;  %5607 = vmatpush.msra.mxu2 %v5543_v42  ;;  %v5534_v15 = vld [vmem:[#allocation13 + $0x9b0] sm:$0xff]  ;;  %v5165_v49 = vld [vmem:[#allocation13 + $0x508] sm:$0xff]  ;;  %v5527_v50 = vld [vmem:[#allocation13 + $0x978] sm:$0xff] }
 0x541   :  { %v4613_v8 = vld [vmem:[#allocation4 + $0xc0] sm:$0xff]  ;;  %5432 = vmatpush.msrb.mxu1 %v5354_v46  ;;  %5293 = vmatpush.msra.mxu3 %v5201_v36  ;;  %v5533_v23 = vld [vmem:[#allocation13 + $0x9a8] sm:$0xff]  ;;  %v5164_v41 = vld [vmem:[#allocation13 + $0x500] sm:$0xff] }
 0x542   :  { %v4655_v56 = vadd.f32 %v8247_v18, %v4613_v8  ;;  %v4659_v5 = vadd.f32 %v8239_v60, %v4557_v61  ;;  %4588 = vst.msk [vmem:[#allocation4 + $0xe8] sm:$0xff] %vm2898_vm15, %v4558_v13  ;;  %5248 = vmatpush.msra.mxu0 %v5174_v25  ;;  %5608 = vmatpush.msra.mxu2 %v5542_v35  ;;  %v5392_v51 = vld [vmem:[#allocation13 + $0x8b0] sm:$0xff]  ;;  %v5391_v47 = vld [vmem:[#allocation13 + $0x8a8] sm:$0xff]  ;;  %v5532_v57 = vld [vmem:[#allocation13 + $0x9a0] sm:$0xff] }
 0x543   :  { %5433 = vmatpush.msrb.mxu1 %v5353_v48  ;;  %5294 = vmatpush.msra.mxu3 %v5200_v63  ;;  %v5325_v27 = vld [vmem:[#allocation4 + $0x80] sm:$0xff]  ;;  %v5143_v17 = vld [vmem:[#allocation4 + $0x58] sm:$0xff]  ;;  %v5390_v4 = vld [vmem:[#allocation13 + $0x8a0] sm:$0xff] }
 0x544   :  { %vm4685_vm13 = vcmp.ge.f32.partialorder %v4655_v56, 0.0  ;;  %v4715_v54 = vmul.f32 0.01, %v4655_v56  ;;  %vm4689_vm0 = vcmp.ge.f32.partialorder %v4659_v5, 0.0  ;;  %v4719_v59 = vmul.f32 0.01, %v4659_v5  ;;  %5249 = vmatpush.msra.mxu0 %v5173_v31  ;;  %5609 = vmatpush.msra.mxu2 %v5541_v43 }
 0x545   :  { %5434 = vmatpush.msrb.mxu1 %v5352_v3  ;;  %5295 = vmatpush.msra.mxu3 %v5199_v16  ;;  %v5526_v42 = vld [vmem:[#allocation13 + $0x970] sm:$0xff]  ;;  %v5531_v22 = vld [vmem:[#allocation13 + $0x998] sm:$0xff]  ;;  %v5525_v39 = vld [vmem:[#allocation13 + $0x968] sm:$0xff] }
 0x546   :  { %v4745_v60 = vsel %vm4685_vm13, %v4655_v56, %v4715_v54  ;;  %v8292_v11 = vsel %vm4689_vm0, %v4659_v5, %v4719_v59  ;;  %5250 = vmatpush.msra.mxu0 %v5172_v26  ;;  %5610 = vmatpush.msra.mxu2 %v5540_v53  ;;  %v5344_v46 = vld [vmem:[#allocation13 + $0x730] sm:$0xff]  ;;  %v5524_v20 = vld [vmem:[#allocation13 + $0x960] sm:$0xff]  ;;  %v5389_v25 = vld [vmem:[#allocation13 + $0x898] sm:$0xff] }
 0x547   :  { %4775 = vst.msk [vmem:[#allocation4 + $0xc0] sm:$0xff] %vm2898_vm15, %v4745_v60  ;;  %5461 = vmatmul.f32.vlgmr.msrb.gmra.mxu2 %v8226_v40  ;;  %5435 = vmatpush.msrb.mxu1 %v5351_v30  ;;  %v5196_v40 = vld [vmem:[#allocation13 + $0x600] sm:$0xff]  ;;  %v5530_v36 = vld [vmem:[#allocation13 + $0x990] sm:$0xff]  ;;  %v5343_v35 = vld [vmem:[#allocation13 + $0x728] sm:$0xff] }
 0x548   :  { %4779 = vst [vmem:[#allocation4 + $0xe0] sm:$0xff] %v8292_v11  ;;  %5251 = vmatpush.msra.mxu0 %v5171_v9  ;;  %5611 = vmatpush.msra.mxu2 %v5539_v1  ;;  %v5529_v61 = vld [vmem:[#allocation13 + $0x988] sm:$0xff]  ;;  %v5523_v13 = vld [vmem:[#allocation13 + $0x958] sm:$0xff]  ;;  %v5388_v48 = vld [vmem:[#allocation13 + $0x890] sm:$0xff] }
 0x549   :  { %v4618_v6 = vld [vmem:[#allocation4 + $0xe8] sm:$0xff]  ;;  %5436 = vmatpush.msrb.mxu1 %v5350_v45  ;;  %5296 = vmatpush.msra.mxu3 %v5198_v52  ;;  %v5522_v31 = vld [vmem:[#allocation13 + $0x950] sm:$0xff]  ;;  %v5387_v3 = vld [vmem:[#allocation13 + $0x888] sm:$0xff] }
 0x54a   :  { %v4660_v14 = vadd.f32 %v8247_v18, %v4618_v6  ;;  %5252 = vmatpush.msra.mxu0 %v5170_v0  ;;  %5612 = vmatpush.msra.mxu2 %v5538_v29  ;;  %v5346_v18 = vld [vmem:[#allocation13 + $0x740] sm:$0xff]  ;;  %v5341_v43 = vld [vmem:[#allocation13 + $0x718] sm:$0xff]  ;;  %v5521_v16 = vld [vmem:[#allocation13 + $0x948] sm:$0xff] }
 0x54b   :  { %5437 = vmatpush.msrb.mxu1 %v5349_v7  ;;  %5297 = vmatpush.msra.mxu3 %v5197_v2  ;;  %v5342_v63 = vld [vmem:[#allocation13 + $0x720] sm:$0xff]  ;;  %v5709_v56 = vld [vmem:[#allocation13 + $0xbb8] sm:$0xff]  ;;  %v5340_v26 = vld [vmem:[#allocation13 + $0x710] sm:$0xff] }
 0x54c   :  { %vm4690_vm14 = vcmp.ge.f32.partialorder %v4660_v14, 0.0  ;;  %v4720_v19 = vmul.f32 0.01, %v4660_v14  ;;  %5253 = vmatpush.msra.mxu0 %v5169_v33  ;;  %5613 = vmatpush.msra.mxu2 %v5537_v38  ;;  %v5528_v8 = vld [vmem:[#allocation13 + $0x980] sm:$0xff]  ;;  %v5708_v53 = vld [vmem:[#allocation13 + $0xbb0] sm:$0xff]  ;;  %v5339_v59 = vld [vmem:[#allocation13 + $0x708] sm:$0xff] }
 0x54d   :  { %5438 = vmatpush.msrb.mxu1 %v5348_v58  ;;  %5298 = vmatpush.msra.mxu3 %v5196_v40  ;;  %v5507_v5 = vld [vmem:[#allocation4 + $0xa8] sm:$0xff]  ;;  %v5707_v9 = vld [vmem:[#allocation13 + $0xba8] sm:$0xff]  ;;  %v5384_v0 = vld [vmem:[#allocation13 + $0x870] sm:$0xff] }
 0x54e   :  { %v4750_v55 = vsel %vm4690_vm14, %v4660_v14, %v4720_v19  ;;  %5254 = vmatpush.msra.mxu0 %v5168_v32  ;;  %5614 = vmatpush.msra.mxu2 %v5536_v34  ;;  %v5386_v30 = vld [vmem:[#allocation13 + $0x880] sm:$0xff]  ;;  %v5385_v1 = vld [vmem:[#allocation13 + $0x878] sm:$0xff]  ;;  %v5518_v29 = vld [vmem:[#allocation13 + $0x930] sm:$0xff] }
 0x54f   :  { %4780 = vst.msk [vmem:[#allocation4 + $0xe8] sm:$0xff] %vm2898_vm15, %v4750_v55  ;;  %5439 = vmatpush.msrb.mxu1 %v5347_v44  ;;  %5299 = vmatmul.f32.vlgmr.msra.gmra.mxu3 %v8261_v21  ;;  %v5345_v21 = vld [vmem:[#allocation13 + $0x738] sm:$0xff]  ;;  %v5520_v54 = vld [vmem:[#allocation13 + $0x940] sm:$0xff]  ;;  %v5383_v6 = vld [vmem:[#allocation13 + $0x868] sm:$0xff] }
 0x550   :  { %5255 = vmatpush.msra.mxu0 %v5167_v10  ;;  %5615 = vmatpush.msra.mxu2 %v5535_v28  ;;  %v5519_v60 = vld [vmem:[#allocation13 + $0x938] sm:$0xff]  ;;  %v5338_v45 = vld [vmem:[#allocation13 + $0x700] sm:$0xff]  ;;  %v5517_v33 = vld [vmem:[#allocation13 + $0x928] sm:$0xff] }
 0x551   :  { %5440 = vmatpush.msrb.mxu1 %v5346_v18  ;;  %5465 = vmatpush.msrb.mxu3 %v5393_v37  ;;  %v5706_v52 = vld [vmem:[#allocation13 + $0xba0] sm:$0xff]  ;;  %v5337_v7 = vld [vmem:[#allocation13 + $0x6f8] sm:$0xff]  ;;  %v5336_v38 = vld [vmem:[#allocation13 + $0x6f0] sm:$0xff] }
 0x552   :  { %5256 = vmatpush.msra.mxu0 %v5166_v24  ;;  %5616 = vmatpush.msra.mxu2 %v5534_v15  ;;  %v5705_v2 = vld [vmem:[#allocation13 + $0xb98] sm:$0xff]  ;;  %v5704_v14 = vld [vmem:[#allocation13 + $0xb90] sm:$0xff]  ;;  %v5382_v58 = vld [vmem:[#allocation13 + $0x860] sm:$0xff] }
 0x553   :  { %5441 = vmatmul.f32.vlgmr.msrb.gmra.mxu1 %v5325_v27  ;;  %5466 = vmatpush.msrb.mxu3 %v5392_v51  ;;  %v5516_v40 = vld [vmem:[#allocation13 + $0x920] sm:$0xff]  ;;  %v5335_v32 = vld [vmem:[#allocation13 + $0x6e8] sm:$0xff]  ;;  %v5381_v19 = vld [vmem:[#allocation13 + $0x858] sm:$0xff] }
 0x554   :  { %5257 = vmatpush.msra.mxu0 %v5165_v49  ;;  %5617 = vmatpush.msra.mxu2 %v5533_v23  ;;  %v5703_v34 = vld [vmem:[#allocation13 + $0xb88] sm:$0xff]  ;;  %v5515_v44 = vld [vmem:[#allocation13 + $0x918] sm:$0xff]  ;;  %v5334_v10 = vld [vmem:[#allocation13 + $0x6e0] sm:$0xff] }
 0x555   :  { %5587 = vmatpush.msra.mxu1 %v5527_v50  ;;  %5467 = vmatpush.msrb.mxu3 %v5391_v47  ;;  %v5702_v28 = vld [vmem:[#allocation13 + $0xb80] sm:$0xff]  ;;  %v5380_v55 = vld [vmem:[#allocation13 + $0x850] sm:$0xff]  ;;  %v5333_v37 = vld [vmem:[#allocation13 + $0x6d8] sm:$0xff] }
 0x556   :  { %5258 = vmatpush.msra.mxu0 %v5164_v41  ;;  %5618 = vmatpush.msra.mxu2 %v5532_v57  ;;  %v5514_v18 = vld [vmem:[#allocation13 + $0x910] sm:$0xff]  ;;  %v5701_v24 = vld [vmem:[#allocation13 + $0xb78] sm:$0xff]  ;;  %v5379_v15 = vld [vmem:[#allocation13 + $0x848] sm:$0xff] }
 0x557   :  { %5259 = vmatmul.f32.vlgmr.msra.gmra.mxu0 %v5143_v17  ;;  %5588 = vmatpush.msra.mxu1 %v5526_v42  ;;  %v5513_v51 = vld [vmem:[#allocation13 + $0x908] sm:$0xff]  ;;  %v5332_v49 = vld [vmem:[#allocation13 + $0x6d0] sm:$0xff]  ;;  %v5378_v27 = vld [vmem:[#allocation13 + $0x840] sm:$0xff] }
 0x558   :  { %5405 = vmatpush.msrb.mxu0 %v5345_v21  ;;  %5619 = vmatpush.msra.mxu2 %v5531_v22  ;;  %v5700_v23 = vld [vmem:[#allocation13 + $0xb70] sm:$0xff]  ;;  %v5512_v50 = vld [vmem:[#allocation13 + $0x900] sm:$0xff]  ;;  %v5331_v47 = vld [vmem:[#allocation13 + $0x6c8] sm:$0xff] }
 0x559   :  { %5589 = vmatpush.msra.mxu1 %v5525_v39  ;;  %5468 = vmatpush.msrb.mxu3 %v5390_v4  ;;  %v5699_v41 = vld [vmem:[#allocation13 + $0xb68] sm:$0xff]  ;;  %v5330_v57 = vld [vmem:[#allocation13 + $0x6c0] sm:$0xff]  ;;  %v5506_v21 = vld [vmem:[#allocation4 + $0xa0] sm:$0xff] }
 0x55a   :  { %5406 = vmatpush.msrb.mxu0 %v5344_v46  ;;  %5620 = vmatpush.msra.mxu2 %v5530_v36  ;;  %v5698_v42 = vld [vmem:[#allocation13 + $0xb60] sm:$0xff]  ;;  %v5559_v22 = vld [vmem:[#allocation13 + $0xa78] sm:$0xff]  ;;  %v5324_v4 = vld [vmem:[#allocation4 + $0x78] sm:$0xff] }
 0x55b   :  { %5590 = vmatpush.msra.mxu1 %v5524_v20  ;;  %5469 = vmatpush.msrb.mxu3 %v5389_v25  ;;  %v5401_v17 = vld [vmem:[#allocation13 + $0x8f8] sm:$0xff]  ;;  %v5558_v36 = vld [vmem:[#allocation13 + $0xa70] sm:$0xff] }
 0x55c   :  { %5407 = vmatpush.msrb.mxu0 %v5343_v35  ;;  %5621 = vmatpush.msra.mxu2 %v5529_v61  ;;  %v5583_v39 = vld [vmem:[#allocation13 + $0xb38] sm:$0xff]  ;;  %v5400_v20 = vld [vmem:[#allocation13 + $0x8f0] sm:$0xff]  ;;  %v5557_v61 = vld [vmem:[#allocation13 + $0xa68] sm:$0xff] }
 0x55d   :  { %5591 = vmatpush.msra.mxu1 %v5523_v13  ;;  %5470 = vmatpush.msrb.mxu3 %v5388_v48  ;;  %v5697_v46 = vld [vmem:[#allocation13 + $0xb58] sm:$0xff]  ;;  %v5582_v25 = vld [vmem:[#allocation13 + $0xb30] sm:$0xff]  ;;  %v5399_v13 = vld [vmem:[#allocation13 + $0x8e8] sm:$0xff] }
 0x55e   :  { %5408 = vmatpush.msrb.mxu0 %v5342_v63  ;;  %5622 = vmatpush.msra.mxu2 %v5528_v8  ;;  %v5696_v35 = vld [vmem:[#allocation13 + $0xb50] sm:$0xff]  ;;  %v5695_v48 = vld [vmem:[#allocation13 + $0xb48] sm:$0xff]  ;;  %v5556_v63 = vld [vmem:[#allocation13 + $0xa60] sm:$0xff] }
 0x55f   :  { %5623 = vmatmul.f32.vlgmr.msra.gmra.mxu2 %v5507_v5  ;;  %5592 = vmatpush.msra.mxu1 %v5522_v31  ;;  %v5398_v8 = vld [vmem:[#allocation13 + $0x8e0] sm:$0xff]  ;;  %v5397_v5 = vld [vmem:[#allocation13 + $0x8d8] sm:$0xff] }
 0x560   :  { %5409 = vmatpush.msrb.mxu0 %v5341_v43  ;;  %5769 = vmatpush.msrb.mxu2 %v5709_v56  ;;  %v5580_v31 = vld [vmem:[#allocation13 + $0xb20] sm:$0xff]  ;;  %v5555_v56 = vld [vmem:[#allocation13 + $0xa58] sm:$0xff] }
 0x561   :  { %5471 = vmatpush.msrb.mxu3 %v5387_v3  ;;  %5593 = vmatpush.msra.mxu1 %v5521_v16  ;;  %v5694_v43 = vld [vmem:[#allocation13 + $0xb40] sm:$0xff]  ;;  %v5579_v3 = vld [vmem:[#allocation13 + $0xb18] sm:$0xff]  ;;  %v5554_v16 = vld [vmem:[#allocation13 + $0xa50] sm:$0xff] }
 0x562   :  { %5410 = vmatpush.msrb.mxu0 %v5340_v26  ;;  %5770 = vmatpush.msrb.mxu2 %v5708_v53  ;;  %v5765_v26 = vld [vmem:[#allocation13 + $0xd78] sm:$0xff]  ;;  %v5396_v53 = vld [vmem:[#allocation13 + $0x8d0] sm:$0xff] }
 0x563   :  { %5472 = vmatpush.msrb.mxu3 %v5386_v30  ;;  %5594 = vmatpush.msra.mxu1 %v5520_v54  ;;  %v5688_v30 = vld [vmem:[#allocation4 + $0xc8] sm:$0xff]  ;;  %v5578_v54 = vld [vmem:[#allocation13 + $0xb10] sm:$0xff] }
 0x564   :  { %5411 = vmatpush.msrb.mxu0 %v5339_v59  ;;  %5771 = vmatpush.msrb.mxu2 %v5707_v9  ;;  %v5553_v59 = vld [vmem:[#allocation13 + $0xa48] sm:$0xff]  ;;  %v5764_v9 = vld [vmem:[#allocation13 + $0xd70] sm:$0xff] }
 0x565   :  { %5473 = vmatpush.msrb.mxu3 %v5385_v1  ;;  %5595 = vmatpush.msra.mxu1 %v5519_v60  ;;  %v5395_v1 = vld [vmem:[#allocation13 + $0x8c8] sm:$0xff] }
 0x566   :  { %5412 = vmatpush.msrb.mxu0 %v5338_v45  ;;  %5772 = vmatpush.msrb.mxu2 %v5706_v52  ;;  %v5577_v60 = vld [vmem:[#allocation13 + $0xb08] sm:$0xff]  ;;  %v5552_v45 = vld [vmem:[#allocation13 + $0xa40] sm:$0xff] }
 0x567   :  { %5474 = vmatpush.msrb.mxu3 %v5384_v0  ;;  %5596 = vmatpush.msra.mxu1 %v5518_v29  ;;  %v5763_v52 = vld [vmem:[#allocation13 + $0xd68] sm:$0xff]  ;;  %v5394_v0 = vld [vmem:[#allocation13 + $0x8c0] sm:$0xff] }
 0x568   :  { %5413 = vmatpush.msrb.mxu0 %v5337_v7  ;;  %5773 = vmatpush.msrb.mxu2 %v5705_v2  ;;  %v5576_v29 = vld [vmem:[#allocation13 + $0xb00] sm:$0xff]  ;;  %v5575_v2 = vld [vmem:[#allocation13 + $0xaf8] sm:$0xff] }
 0x569   :  { %5475 = vmatpush.msrb.mxu3 %v5383_v6  ;;  %5597 = vmatpush.msra.mxu1 %v5517_v33  ;;  %v5762_v7 = vld [vmem:[#allocation13 + $0xd60] sm:$0xff]  ;;  %v5328_v6 = vld [vmem:[#allocation4 + $0x98] sm:$0xff]  ;;  %v5551_v33 = vld [vmem:[#allocation13 + $0xa38] sm:$0xff] }
 0x56a   :  { %5414 = vmatpush.msrb.mxu0 %v5336_v38  ;;  %5774 = vmatpush.msrb.mxu2 %v5704_v14  ;;  %v5757_v38 = vld [vmem:[#allocation13 + $0xd38] sm:$0xff] }
 0x56b   :  { %5476 = vmatpush.msrb.mxu3 %v5382_v58  ;;  %5598 = vmatpush.msra.mxu1 %v5516_v40  ;;  %v5761_v14 = vld [vmem:[#allocation13 + $0xd58] sm:$0xff]  ;;  %v5574_v40 = vld [vmem:[#allocation13 + $0xaf0] sm:$0xff] }
 0x56c   :  { %5415 = vmatpush.msrb.mxu0 %v5335_v32  ;;  %5775 = vmatpush.msrb.mxu2 %v5703_v34  ;;  %v5510_v58 = vld [vmem:[#allocation4 + $0xc0] sm:$0xff] }
 0x56d   :  { %5477 = vmatpush.msrb.mxu3 %v5381_v19  ;;  %5599 = vmatpush.msra.mxu1 %v5515_v44  ;;  %v5550_v32 = vld [vmem:[#allocation13 + $0xa30] sm:$0xff]  ;;  %v5573_v44 = vld [vmem:[#allocation13 + $0xae8] sm:$0xff] }
 0x56e   :  { %5416 = vmatpush.msrb.mxu0 %v5334_v10  ;;  %5776 = vmatpush.msrb.mxu2 %v5702_v28  ;;  %v5756_v34 = vld [vmem:[#allocation13 + $0xd30] sm:$0xff]  ;;  %v5549_v10 = vld [vmem:[#allocation13 + $0xa28] sm:$0xff] }
 0x56f   :  { %5478 = vmatpush.msrb.mxu3 %v5380_v55  ;;  %5600 = vmatpush.msra.mxu1 %v5514_v18  ;;  %v5760_v19 = vld [vmem:[#allocation13 + $0xd50] sm:$0xff]  ;;  %v5755_v28 = vld [vmem:[#allocation13 + $0xd28] sm:$0xff]  ;;  %v5572_v18 = vld [vmem:[#allocation13 + $0xae0] sm:$0xff] }
 0x570   :  { %5417 = vmatpush.msrb.mxu0 %v5333_v37  ;;  %5777 = vmatpush.msrb.mxu2 %v5701_v24  ;;  %v5759_v55 = vld [vmem:[#allocation13 + $0xd48] sm:$0xff]  ;;  %v5548_v37 = vld [vmem:[#allocation13 + $0xa20] sm:$0xff] }
 0x571   :  { %5479 = vmatpush.msrb.mxu3 %v5379_v15  ;;  %5601 = vmatpush.msra.mxu1 %v5513_v51  ;;  %v5754_v24 = vld [vmem:[#allocation13 + $0xd20] sm:$0xff]  ;;  %v5571_v51 = vld [vmem:[#allocation13 + $0xad8] sm:$0xff] }
 0x572   :  { %5418 = vmatpush.msrb.mxu0 %v5332_v49  ;;  %5778 = vmatpush.msrb.mxu2 %v5700_v23  ;;  %v5758_v15 = vld [vmem:[#allocation13 + $0xd40] sm:$0xff]  ;;  %v5753_v49 = vld [vmem:[#allocation13 + $0xd18] sm:$0xff] }
 0x573   :  { %5480 = vmatpush.msrb.mxu3 %v5378_v27  ;;  %5602 = vmatpush.msra.mxu1 %v5512_v50  ;;  %v5547_v23 = vld [vmem:[#allocation13 + $0xa18] sm:$0xff]  ;;  %v5570_v50 = vld [vmem:[#allocation13 + $0xad0] sm:$0xff] }
 0x574   :  { %5419 = vmatpush.msrb.mxu0 %v5331_v47  ;;  %5779 = vmatpush.msrb.mxu2 %v5699_v41  ;;  %v5692_v27 = vld [vmem:[#allocation4 + $0xe8] sm:$0xff]  ;;  %v5752_v47 = vld [vmem:[#allocation13 + $0xd10] sm:$0xff] }
 0x575   :  { %5481 = vmatmul.f32.vlgmr.msrb.gmra.mxu3 %v8272_v62  ;;  %5603 = vmatmul.f32.vlgmr.msra.gmra.mxu1 %v5506_v21  ;;  %v5581_v62 = vld [vmem:[#allocation13 + $0xb28] sm:$0xff]  ;;  %v5546_v41 = vld [vmem:[#allocation13 + $0xa10] sm:$0xff] }
 0x576   :  { %5420 = vmatpush.msrb.mxu0 %v5330_v57  ;;  %5780 = vmatpush.msrb.mxu2 %v5698_v42  ;;  %v5569_v57 = vld [vmem:[#allocation13 + $0xac8] sm:$0xff] }
 0x577   :  { %5421 = vmatmul.f32.vlgmr.msrb.gmra.mxu0 %v5324_v4  ;;  %5627 = vmatpush.msra.mxu3 %v5559_v22  ;;  %v5751_v42 = vld [vmem:[#allocation13 + $0xd08] sm:$0xff]  ;;  %v5568_v22 = vld [vmem:[#allocation13 + $0xac0] sm:$0xff]  ;;  %v5567_v4 = vld [vmem:[#allocation13 + $0xab8] sm:$0xff] }
 0x578   :  { %5493 = vmatpush.msra.mxu0 %v5401_v17  ;;  %5675 = vmatpush.msrb.mxu1 %v5583_v39  ;;  %v5545_v21 = vld [vmem:[#allocation13 + $0xa08] sm:$0xff]  ;;  %v5750_v17 = vld [vmem:[#allocation13 + $0xd00] sm:$0xff] }
 0x579   :  { %5781 = vmatpush.msrb.mxu2 %v5697_v46  ;;  %5628 = vmatpush.msra.mxu3 %v5558_v36  ;;  %v5544_v39 = vld [vmem:[#allocation13 + $0xa00] sm:$0xff]  ;;  %v5725_v46 = vld [vmem:[#allocation13 + $0xc38] sm:$0xff] }
 0x57a   :  { %5494 = vmatpush.msra.mxu0 %v5400_v20  ;;  %5676 = vmatpush.msrb.mxu1 %v5582_v25  ;;  %v5749_v36 = vld [vmem:[#allocation13 + $0xcf8] sm:$0xff]  ;;  %v5508_v20 = vld [vmem:[#allocation4 + $0xb0] sm:$0xff]  ;;  %v5566_v25 = vld [vmem:[#allocation13 + $0xab0] sm:$0xff] }
 0x57b   :  { %5782 = vmatpush.msrb.mxu2 %v5696_v35  ;;  %5629 = vmatpush.msra.mxu3 %v5557_v61  ;;  %v5724_v35 = vld [vmem:[#allocation13 + $0xc30] sm:$0xff] }
 0x57c   :  { %5495 = vmatpush.msra.mxu0 %v5399_v13  ;;  %5677 = vmatpush.msrb.mxu1 %v5581_v62  ;;  %v5748_v61 = vld [vmem:[#allocation13 + $0xcf0] sm:$0xff]  ;;  %v5565_v13 = vld [vmem:[#allocation13 + $0xaa8] sm:$0xff] }
 0x57d   :  { %5783 = vmatpush.msrb.mxu2 %v5695_v48  ;;  %5630 = vmatpush.msra.mxu3 %v5556_v63  ;;  %v5723_v62 = vld [vmem:[#allocation13 + $0xc28] sm:$0xff]  ;;  %v5564_v63 = vld [vmem:[#allocation13 + $0xaa0] sm:$0xff] }
 0x57e   :  { %5496 = vmatpush.msra.mxu0 %v5398_v8  ;;  %5678 = vmatpush.msrb.mxu1 %v5580_v31  ;;  %v5747_v48 = vld [vmem:[#allocation13 + $0xce8] sm:$0xff]  ;;  %v5722_v8 = vld [vmem:[#allocation13 + $0xc20] sm:$0xff] }
 0x57f   :  { %5784 = vmatpush.msrb.mxu2 %v5694_v43  ;;  %5631 = vmatpush.msra.mxu3 %v5555_v56  ;;  %v5746_v31 = vld [vmem:[#allocation13 + $0xce0] sm:$0xff]  ;;  %v5563_v43 = vld [vmem:[#allocation13 + $0xa98] sm:$0xff] }
 0x580   :  { %5497 = vmatpush.msra.mxu0 %v5397_v5  ;;  %5679 = vmatpush.msrb.mxu1 %v5579_v3  ;;  %v5721_v56 = vld [vmem:[#allocation13 + $0xc18] sm:$0xff]  ;;  %v5562_v3 = vld [vmem:[#allocation13 + $0xa90] sm:$0xff] }
 0x581   :  { %5785 = vmatmul.f32.vlgmr.msrb.gmra.mxu2 %v5688_v30  ;;  %5632 = vmatpush.msra.mxu3 %v5554_v16  ;;  %v5745_v5 = vld [vmem:[#allocation13 + $0xcd8] sm:$0xff]  ;;  %v5720_v16 = vld [vmem:[#allocation13 + $0xc10] sm:$0xff]  ;;  %v5719_v30 = vld [vmem:[#allocation13 + $0xc08] sm:$0xff] }
 0x582   :  { %5857 = vmatpush.msra.mxu2 %v5765_v26  ;;  %5498 = vmatpush.msra.mxu0 %v5396_v53  ;;  %v5744_v26 = vld [vmem:[#allocation13 + $0xcd0] sm:$0xff]  ;;  %v5561_v53 = vld [vmem:[#allocation13 + $0xa88] sm:$0xff] }
 0x583   :  { %5680 = vmatpush.msrb.mxu1 %v5578_v54  ;;  %5633 = vmatpush.msra.mxu3 %v5553_v59  ;;  %v5743_v54 = vld [vmem:[#allocation13 + $0xcc8] sm:$0xff]  ;;  %v5560_v59 = vld [vmem:[#allocation13 + $0xa80] sm:$0xff] }
 0x584   :  { %5858 = vmatpush.msra.mxu2 %v5764_v9  ;;  %5499 = vmatpush.msra.mxu0 %v5395_v1  ;;  %v5718_v9 = vld [vmem:[#allocation13 + $0xc00] sm:$0xff] }
 0x585   :  { %5681 = vmatpush.msrb.mxu1 %v5577_v60  ;;  %5634 = vmatpush.msra.mxu3 %v5552_v45  ;;  %v5742_v1 = vld [vmem:[#allocation13 + $0xcc0] sm:$0xff]  ;;  %v5741_v60 = vld [vmem:[#allocation13 + $0xcb8] sm:$0xff] }
 0x586   :  { %5859 = vmatpush.msra.mxu2 %v5763_v52  ;;  %5500 = vmatpush.msra.mxu0 %v5394_v0  ;;  %v5717_v45 = vld [vmem:[#allocation13 + $0xbf8] sm:$0xff]  ;;  %v5740_v52 = vld [vmem:[#allocation13 + $0xcb0] sm:$0xff] }
 0x587   :  { %5682 = vmatpush.msrb.mxu1 %v5576_v29  ;;  %6113 = vmatmul.msk.f32.vlgmr.msra.gmra.mxu0 %vm2898_vm15, %v5328_v6  ;;  %v5716_v0 = vld [vmem:[#allocation13 + $0xbf0] sm:$0xff]  ;;  %v5739_v29 = vld [vmem:[#allocation13 + $0xca8] sm:$0xff]  ;;  %v5714_v6 = vld [vmem:[#allocation13 + $0xbe0] sm:$0xff] }
 0x588   :  { %5860 = vmatpush.msra.mxu2 %v5762_v7  ;;  %5647 = vmatpush.msrb.mxu0 %v5575_v2  ;;  %v5715_v7 = vld [vmem:[#allocation13 + $0xbe8] sm:$0xff]  ;;  %v5738_v2 = vld [vmem:[#allocation13 + $0xca0] sm:$0xff] }
 0x589   :  { %6114 = vmatmul.msk.f32.vlgmr.msrb.gmra.mxu1 %vm2898_vm15, %v5510_v58  ;;  %5635 = vmatpush.msra.mxu3 %v5551_v33  ;;  %v5737_v33 = vld [vmem:[#allocation13 + $0xc98] sm:$0xff]  ;;  %v5711_v58 = vld [vmem:[#allocation13 + $0xbc8] sm:$0xff] }
 0x58a   :  { %5829 = vmatpush.msra.mxu1 %v5757_v38  ;;  %5861 = vmatpush.msra.mxu2 %v5761_v14  ;;  %v5713_v38 = vld [vmem:[#allocation13 + $0xbd8] sm:$0xff]  ;;  %v5736_v14 = vld [vmem:[#allocation13 + $0xc90] sm:$0xff] }
 0x58b   :  { %5648 = vmatpush.msrb.mxu0 %v5574_v40  ;;  %5636 = vmatpush.msra.mxu3 %v5550_v32  ;;  %v5734_v40 = vld [vmem:[#allocation13 + $0xc80] sm:$0xff] }
 0x58c   :  { %5830 = vmatpush.msra.mxu1 %v5756_v34  ;;  %5862 = vmatpush.msra.mxu2 %v5760_v19  ;;  %v5710_v32 = vld [vmem:[#allocation13 + $0xbc0] sm:$0xff]  ;;  %v5733_v34 = vld [vmem:[#allocation13 + $0xc78] sm:$0xff] }
 0x58d   :  { %5649 = vmatpush.msrb.mxu0 %v5573_v44  ;;  %5637 = vmatpush.msra.mxu3 %v5549_v10  ;;  %v5689_v19 = vld [vmem:[#allocation4 + $0xd0] sm:$0xff]  ;;  %v5732_v44 = vld [vmem:[#allocation13 + $0xc70] sm:$0xff] }
 0x58e   :  { %5831 = vmatpush.msra.mxu1 %v5755_v28  ;;  %5863 = vmatpush.msra.mxu2 %v5759_v55  ;;  %v5731_v10 = vld [vmem:[#allocation13 + $0xc68] sm:$0xff]  ;;  %v5730_v28 = vld [vmem:[#allocation13 + $0xc60] sm:$0xff]  ;;  %v5729_v55 = vld [vmem:[#allocation13 + $0xc58] sm:$0xff] }
 0x58f   :  { %5650 = vmatpush.msrb.mxu0 %v5572_v18  ;;  %5638 = vmatpush.msra.mxu3 %v5548_v37  ;;  %v5728_v18 = vld [vmem:[#allocation13 + $0xc50] sm:$0xff]  ;;  %v5727_v37 = vld [vmem:[#allocation13 + $0xc48] sm:$0xff] }
 0x590   :  { %5832 = vmatpush.msra.mxu1 %v5754_v24  ;;  %5864 = vmatpush.msra.mxu2 %v5758_v15  ;;  %v5726_v24 = vld [vmem:[#allocation13 + $0xc40] sm:$0xff]  ;;  %v5690_v15 = vld [vmem:[#allocation4 + $0xd8] sm:$0xff] }
 0x591   :  { %5651 = vmatpush.msrb.mxu0 %v5571_v51  ;;  %6115 = vmatmul.msk.f32.vlgmr.msra.gmra.mxu2 %vm2898_vm15, %v5692_v27  ;;  %v4976_v51 = vpop.f32.mrf.mxu0 }
 0x592   :  { %5833 = vmatpush.msra.mxu1 %v5753_v49  ;;  %5639 = vmatpush.msra.mxu3 %v5547_v23  ;;  %v4996_v49 = vpop.f32.mrf.mxu1  ;;  %v4956_v23 = vpop.f32.mrf.mxu3 }
 0x593   :  { %5652 = vmatpush.msrb.mxu0 %v5570_v50  ;;  %v5079_v50 = vpop.f32.mrf.mxu2 }
 0x594   :  { %5834 = vmatpush.msra.mxu1 %v5752_v47  ;;  %5640 = vmatpush.msra.mxu3 %v5546_v41 }
 0x595   :  { %5653 = vmatpush.msrb.mxu0 %v5569_v57 }
 0x596   :  { %5835 = vmatpush.msra.mxu1 %v5751_v42  ;;  %5641 = vmatpush.msra.mxu3 %v5545_v21 }
 0x597   :  { %5654 = vmatpush.msrb.mxu0 %v5568_v22 }
 0x598   :  { %5836 = vmatpush.msra.mxu1 %v5750_v17  ;;  %5642 = vmatpush.msra.mxu3 %v5544_v39 }
 0x599   :  { %5643 = vmatmul.f32.vlgmr.msra.gmra.mxu3 %v5508_v20  ;;  %5655 = vmatpush.msrb.mxu0 %v5567_v4 }
 0x59a   :  { %5789 = vmatpush.msrb.mxu3 %v5725_v46  ;;  %5837 = vmatpush.msra.mxu1 %v5749_v36  ;;  %v5059_v47 = vpop.f32.mrf.mxu1  ;;  %v4977_v36 = vadd.f32 %v4976_v51, %v4956_v23 }
 0x59b   :  { %5656 = vmatpush.msrb.mxu0 %v5566_v25  ;;  %v5240_v21 = vpop.f32.mrf.mxu2 }
 0x59c   :  { %5790 = vmatpush.msrb.mxu3 %v5724_v35  ;;  %5838 = vmatpush.msra.mxu1 %v5748_v61  ;;  %v4997_v25 = vadd.f32 %v4996_v49, %v4977_v36 }
 0x59d   :  { %5657 = vmatpush.msrb.mxu0 %v5565_v13 }
 0x59e   :  { %5791 = vmatpush.msrb.mxu3 %v5723_v62  ;;  %5839 = vmatpush.msra.mxu1 %v5747_v48 }
 0x59f   :  { %5658 = vmatpush.msrb.mxu0 %v5564_v63 }
 0x5a0   :  { %5792 = vmatpush.msrb.mxu3 %v5722_v8  ;;  %5840 = vmatpush.msra.mxu1 %v5746_v31 }
 0x5a1   :  { %5659 = vmatpush.msrb.mxu0 %v5563_v43 }
 0x5a2   :  { %5793 = vmatpush.msrb.mxu3 %v5721_v56  ;;  %5841 = vmatpush.msra.mxu1 %v5745_v5 }
 0x5a3   :  { %5660 = vmatpush.msrb.mxu0 %v5562_v3 }
 0x5a4   :  { %5794 = vmatpush.msrb.mxu3 %v5720_v16  ;;  %5842 = vmatpush.msra.mxu1 %v5744_v26 }
 0x5a5   :  { %5661 = vmatpush.msrb.mxu0 %v5561_v53 }
 0x5a6   :  { %5795 = vmatpush.msrb.mxu3 %v5719_v30  ;;  %5843 = vmatpush.msra.mxu1 %v5743_v54 }
 0x5a7   :  { %5662 = vmatpush.msrb.mxu0 %v5560_v59 }
 0x5a8   :  { %5796 = vmatpush.msrb.mxu3 %v5718_v9  ;;  %5844 = vmatpush.msra.mxu1 %v5742_v1 }
 0x5a9   :  { %5663 = vmatmul.f32.vlgmr.msrb.gmra.mxu0 %v8283_v12  ;;  %5845 = vmatmul.f32.vlgmr.msra.gmra.mxu1 %v8292_v11  ;;  %v5712_v12 = vld [vmem:[#allocation13 + $0xbd0] sm:$0xff]  ;;  %v5735_v11 = vld [vmem:[#allocation13 + $0xc88] sm:$0xff] }
 0x5aa   :  { %5809 = vmatpush.msra.mxu0 %v5741_v60  ;;  %5797 = vmatpush.msrb.mxu3 %v5717_v45  ;;  %v5016_v41 = vpop.f32.mrf.mxu3 }
 0x5ab   :  { %v5017_v61 = vadd.f32 %v5016_v41, %v4997_v25 }
 0x5ac   :  { %5810 = vmatpush.msra.mxu0 %v5740_v52  ;;  %5798 = vmatpush.msrb.mxu3 %v5716_v0  ;;  %v5139_v57 = vpop.f32.mrf.mxu1 }
 0x5ae   :  { %5811 = vmatpush.msra.mxu0 %v5739_v29  ;;  %5799 = vmatpush.msrb.mxu3 %v5715_v7 }
 0x5b0   :  { %5812 = vmatpush.msra.mxu0 %v5738_v2  ;;  %5800 = vmatpush.msrb.mxu3 %v5714_v6 }
 0x5b2   :  { %5813 = vmatpush.msra.mxu0 %v5737_v33  ;;  %5801 = vmatpush.msrb.mxu3 %v5713_v38  ;;  %v5119_v22 = vpop.f32.mrf.mxu3 }
 0x5b4   :  { %5814 = vmatpush.msra.mxu0 %v5736_v14  ;;  %5802 = vmatpush.msrb.mxu3 %v5712_v12  ;;  %v5036_v27 = vpop.f32.mrf.mxu0  ;;  %v5280_v39 = vpop.f32.mrf.mxu1 }
 0x5b5   :  { %v5037_v48 = vadd.f32 %v5036_v27, %v5017_v61 }
 0x5b6   :  { %5815 = vmatpush.msra.mxu0 %v5735_v11  ;;  %5803 = vmatpush.msrb.mxu3 %v5711_v58 }
 0x5b7   :  { %v5060_v8 = vadd.f32 %v5059_v47, %v5037_v48 }
 0x5b8   :  { %5816 = vmatpush.msra.mxu0 %v5734_v40  ;;  %5804 = vmatpush.msrb.mxu3 %v5710_v32 }
 0x5b9   :  { %5805 = vmatmul.f32.vlgmr.msrb.gmra.mxu3 %v5689_v19  ;;  %v5080_v3 = vadd.f32 %v5079_v50, %v5060_v8 }
 0x5ba   :  { %5817 = vmatpush.msra.mxu0 %v5733_v34 }
 0x5bc   :  { %5818 = vmatpush.msra.mxu0 %v5732_v44  ;;  %v5099_v42 = vpop.f32.mrf.mxu0 }
 0x5bd   :  { %v5100_v53 = vadd.f32 %v5099_v42, %v5080_v3 }
 0x5be   :  { %5819 = vmatpush.msra.mxu0 %v5731_v10 }
 0x5bf   :  { %v5120_v60 = vadd.f32 %v5119_v22, %v5100_v53 }
 0x5c0   :  { %5820 = vmatpush.msra.mxu0 %v5730_v28  ;;  %v6129_v28 = vld [vmem:[#allocation15] ss:$0 sm:$0xff] }
 0x5c1   :  { %v5140_v6 = vadd.f32 %v5139_v57, %v5120_v60 }
 0x5c2   :  { %5821 = vmatpush.msra.mxu0 %v5729_v55  ;;  %v5320_v4 = vpop.f32.mrf.mxu2 }
 0x5c4   :  { %5822 = vmatpush.msra.mxu0 %v5728_v18 }
 0x5c6   :  { %5823 = vmatpush.msra.mxu0 %v5727_v37 }
 0x5c8   :  { %5824 = vmatpush.msra.mxu0 %v5726_v24 }
 0x5c9   :  { %5825 = vmatmul.f32.vlgmr.msra.gmra.mxu0 %v5690_v15 }
 0x5ca   :  { %v5462_v13 = vpop.f32.mrf.mxu2 }
 0x5d0   :  { %v5442_v35 = vpop.f32.mrf.mxu1 }
 0x5d2   :  { %v5300_v46 = vpop.f32.mrf.mxu3 }
 0x5d4   :  { %v5260_v17 = vpop.f32.mrf.mxu0 }
 0x5d5   :  { %v5261_v31 = vadd.f32 %v5260_v17, %v5240_v21 }
 0x5d7   :  { %v5281_v16 = vadd.f32 %v5280_v39, %v5261_v31 }
 0x5d9   :  { %v5301_v54 = vadd.f32 %v5300_v46, %v5281_v16 }
 0x5db   :  { %v5321_v29 = vadd.f32 %v5320_v4, %v5301_v54 }
 0x5dd   :  { %v5323_v12 = vadd.f32 %v5321_v29, %v5140_v6 }
 0x5e2   :  { %v5624_v56 = vpop.f32.mrf.mxu2 }
 0x5f2   :  { %v5604_v43 = vpop.f32.mrf.mxu1 }
 0x5f3   :  { %v5625_v59 = vadd.f32 %v5624_v56, %v5604_v43 }
 0x5f4   :  { %v5422_v20 = vpop.f32.mrf.mxu0 }
 0x5f5   :  { %v5443_v26 = vadd.f32 %v5442_v35, %v5422_v20 }
 0x5f7   :  { %v5463_v9 = vadd.f32 %v5462_v13, %v5443_v26 }
 0x5f8   :  { %v5482_v62 = vpop.f32.mrf.mxu3 }
 0x5f9   :  { %v5483_v7 = vadd.f32 %v5482_v62, %v5463_v9 }
 0x604   :  { %v5502_v63 = vpop.f32.mrf.mxu0  ;;  %v5786_v52 = vpop.f32.mrf.mxu2 }
 0x605   :  { %v5503_v33 = vadd.f32 %v5502_v63, %v5483_v7 }
 0x606   :  { %v5684_v1 = vpop.f32.mrf.mxu1 }
 0x607   :  { %v5505_v32 = vadd.f32 %v5503_v33, %v5323_v12 }
 0x614   :  { %v5866_v19 = vpop.f32.mrf.mxu2 }
 0x61c   :  { %v5644_v5 = vpop.f32.mrf.mxu3 }
 0x61d   :  { %v5645_v45 = vadd.f32 %v5644_v5, %v5625_v59 }
 0x626   :  { %v5664_v30 = vpop.f32.mrf.mxu0  ;;  %v5846_v40 = vpop.f32.mrf.mxu1 }
 0x627   :  { %v5665_v2 = vadd.f32 %v5664_v30, %v5645_v45 }
 0x629   :  { %v5685_v11 = vadd.f32 %v5684_v1, %v5665_v2 }
 0x62b   :  { %v5687_v44 = vadd.f32 %v5685_v11, %v5505_v32 }
 0x63c   :  { %v5806_v0 = vpop.f32.mrf.mxu3 }
 0x63d   :  { %v5807_v38 = vadd.f32 %v5806_v0, %v5786_v52 }
 0x646   :  { %v5826_v14 = vpop.f32.mrf.mxu0 }
 0x647   :  { %v5827_v58 = vadd.f32 %v5826_v14, %v5807_v38 }
 0x649   :  { %v5847_v34 = vadd.f32 %v5846_v40, %v5827_v58 }
 0x64b   :  { %v5867_v10 = vadd.f32 %v5866_v19, %v5847_v34 }
 0x64d   :  { %v5869_v55 = vadd.f32 %v5867_v10, %v5687_v44 }
 0x64f   :  { %v5874_v18 = vadd.f32 %v6129_v28, %v5869_v55 }
 0x651   :  { %5875 = vst [vmem:[%s8318_s9] sm:$0xff] %v5874_v18 }
 0x652   :  { %5880 = vsyncpa [#allocation6], 1 }
 0x653   :  { %5881 = vsyncpa [#allocation8], 1 }
 0x654   :  { %5882 = vsyncpa [#allocation11], 1 }
 0x655   :  { %5883 = vsyncpa [#allocation14], 1 }

</bundles_post_ra>
